<compile_context>
chip_gen: v7x
topology: tpu7x:2x2x1
jax: 0.10.0
libtpu: 0.0.40
codegen_flags: <defaults>
</compile_context>

<pallas_src>
import functools

import jax
import jax.numpy as jnp
from jax.experimental import pallas as pl
from jax.experimental.pallas import tpu as pltpu

EPS = 1e-5
LANE = 128   # lane-dense channel padding for weights / conv outputs


def _round_up(x, m):
    return (x + m - 1) // m * m


def _nbytes(a):
    return a.size * a.dtype.itemsize


def _cost(flops, bytes_accessed):
    return pl.CostEstimate(flops=int(flops), transcendentals=0,
                           bytes_accessed=int(bytes_accessed))


# ----------------------------------------------------------------------------
# Host-side layout prep (cheap, ~1x activation volume, done in bf16)
# ----------------------------------------------------------------------------
def _pad_and_planes(x, stride):
    """x (N,H,W,C) -> zero-padded "parity planes" (N*s*s, HP, WP, C).

    plane[(n*s + p)*s + q, i, j, c] == xpad[n, s*i + p, s*j + q, c], where xpad
    is x zero-padded by 1 on each spatial side (rounded up to a multiple of s).
    Tap (dh, dw) of a 3x3 / stride-s conv then becomes the *unit-stride* slice
    plane[p=dh%s, q=dw%s][dh//s : dh//s + Hout, dw//s : dw//s + Wout], so the
    kernel never needs strided or halo-overlapping accesses.
    """
    n, h, w, c = x.shape
    s = stride
    hp = _round_up(h + 2, s)
    wp = _round_up(w + 2, s)
    xp = jnp.pad(x, ((0, 0), (1, hp - h - 1), (1, wp - w - 1), (0, 0)))
    xp = xp.reshape(n, hp // s, s, wp // s, s, c)
    xp = jnp.transpose(xp, (0, 2, 4, 1, 3, 5))        # (N, s, s, HP/s, WP/s, C)
    return xp.reshape(n * s * s, hp // s, wp // s, c)


# ----------------------------------------------------------------------------
# BN helpers (training-mode BN folded into y = x*scale + shift)
# ----------------------------------------------------------------------------
def _emit_stats(s_ref, acc):
    ssum = jnp.sum(acc, axis=0, keepdims=True)           # (1, Cpad) f32
    ssq = jnp.sum(acc * acc, axis=0, keepdims=True)      # (1, Cpad) f32
    pad = jnp.zeros((6, acc.shape[1]), jnp.float32)
    s_ref[...] = jnp.concatenate([ssum, ssq, pad], axis=0)   # (8, Cpad)


def _reduce_stats(stats, cpad):
    st = stats.reshape(-1, 8, cpad)
    return st[:, 0, :].sum(axis=0), st[:, 1, :].sum(axis=0)


def _bn_scale_shift(ssum, ssq, m_true, gamma_pad, beta_pad):
    mean = ssum / m_true
    var = jnp.maximum(ssq / m_true - mean * mean, 0.0)
    scale = gamma_pad * jax.lax.rsqrt(var + EPS)
    shift = beta_pad - mean * scale
    return (scale[None, :].astype(jnp.float32),
            shift[None, :].astype(jnp.float32))


# ----------------------------------------------------------------------------
# Kernel 1: conv1 (3x3, stride) with in-kernel tap formation + partial stats
# ----------------------------------------------------------------------------
def _conv1_kernel(stride, hout, wout, cin, cpad):
    taps = [(dh, dw) for dh in range(3) for dw in range(3)]

    def kernel(xpl_ref, w_ref, c_ref, s_ref, acc_ref):
        acc_ref[...] = jnp.zeros_like(acc_ref)
        for t, (dh, dw) in enumerate(taps):
            plane = (dh % stride) * stride + (dw % stride)
            r0, c0 = dh // stride, dw // stride
            tap = xpl_ref[plane, r0:r0 + hout, c0:c0 + wout, :]   # (Ho,Wo,Cin) bf16
            acc_ref[...] += jnp.dot(tap.reshape(hout * wout, cin), w_ref[t],
                                    preferred_element_type=jnp.float32)
        acc = acc_ref[...]
        c_ref[0] = acc.reshape(hout, wout, cpad).astype(c_ref.dtype)
        _emit_stats(s_ref, acc)

    return kernel


def _conv1_call(xplanes, w1r, n_imgs, hout, wout, cin, cpad, stride):
    ss = stride * stride
    flops = 2 * n_imgs * hout * wout * 9 * cin * cpad
    byt = (_nbytes(xplanes) + _nbytes(w1r)
           + n_imgs * hout * wout * cpad * 2 + n_imgs * 8 * cpad * 4)
    return pl.pallas_call(
        _conv1_kernel(stride, hout, wout, cin, cpad),
        grid=(n_imgs,),
        in_specs=[
            pl.BlockSpec((ss,) + tuple(xplanes.shape[1:]),
                         lambda i: (i, 0, 0, 0)),
            pl.BlockSpec(w1r.shape, lambda i: (0, 0, 0)),        # resident
        ],
        out_specs=[
            pl.BlockSpec((1, hout, wout, cpad), lambda i: (i, 0, 0, 0)),
            pl.BlockSpec((8, cpad), lambda i: (i, 0)),
        ],
        out_shape=(
            jax.ShapeDtypeStruct((n_imgs, hout, wout, cpad), jnp.bfloat16),
            jax.ShapeDtypeStruct((n_imgs * 8, cpad), jnp.float32),
        ),
        scratch_shapes=[pltpu.VMEM((hout * wout, cpad), jnp.float32)],
        compiler_params=pltpu.CompilerParams(dimension_semantics=("parallel",)),
        cost_estimate=_cost(flops, byt),
    )(xplanes, w1r)


# ----------------------------------------------------------------------------
# Kernel 2: BN1-apply + ReLU (fused) -> in-VMEM padded slab -> conv2 matmul,
#           plus (optionally) the 1x1 shortcut conv; partial stats for both.
# ----------------------------------------------------------------------------
def _conv2_kernel(hout, wout, cpad, cin_sc, has_sc):
    taps = [(dh, dw) for dh in range(3) for dw in range(3)]

    def kernel(*refs):
        if has_sc:
            (c1_ref, sc1_ref, sh1_ref, w2_ref, xs_ref, wsc_ref,
             c2_ref, s2_ref, csc_ref, ssc_ref, ypad_ref, acc_ref) = refs
        else:
            (c1_ref, sc1_ref, sh1_ref, w2_ref,
             c2_ref, s2_ref, ypad_ref, acc_ref) = refs

        # --- BN1 (precomputed scale/shift) + ReLU applied in VMEM -----------
        y = jnp.maximum(
            c1_ref[0].astype(jnp.float32) * sc1_ref[...] + sh1_ref[...], 0.0)

        # --- zero-padded activation slab built entirely in VMEM -------------
        zc = jnp.zeros((hout, 1, cpad), jnp.float32)
        ypad_ref[...] = jnp.zeros_like(ypad_ref)
        ypad_ref[1:hout + 1, :, :] = jnp.concatenate(
            [zc, y, zc], axis=1).astype(jnp.bfloat16)

        # --- conv2: 9 shifted views of the slab, one accumulating dot each --
        acc_ref[...] = jnp.zeros_like(acc_ref)
        for t, (dh, dw) in enumerate(taps):
            tap = ypad_ref[dh:dh + hout, dw:dw + wout, :]         # (Ho,Wo,Cpad)
            acc_ref[...] += jnp.dot(tap.reshape(hout * wout, cpad), w2_ref[t],
                                    preferred_element_type=jnp.float32)
        acc = acc_ref[...]
        c2_ref[0] = acc.reshape(hout, wout, cpad).astype(c2_ref.dtype)
        _emit_stats(s2_ref, acc)

        # --- fused 1x1 shortcut conv (same HBM pass, no extra call) ---------
        if has_sc:
            xs = xs_ref[0].reshape(hout * wout, cin_sc)
            accs = jnp.dot(xs, wsc_ref[...], preferred_element_type=jnp.float32)
            csc_ref[0] = accs.reshape(hout, wout, cpad).astype(csc_ref.dtype)
            _emit_stats(ssc_ref, accs)

    return kernel


def _conv2_call(c1, scale1, shift1, w2r, xsc, wscr):
    n_imgs, hout, wout, cpad = c1.shape
    has_sc = xsc is not None
    img_spec = pl.BlockSpec((1, hout, wout, cpad), lambda i: (i, 0, 0, 0))
    vec_spec = pl.BlockSpec((1, cpad), lambda i: (0, 0))
    st_spec = pl.BlockSpec((8, cpad), lambda i: (i, 0))

    args = [c1, scale1, shift1, w2r]
    in_specs = [img_spec, vec_spec, vec_spec,
                pl.BlockSpec(w2r.shape, lambda i: (0, 0, 0))]
    out_shape = [jax.ShapeDtypeStruct((n_imgs, hout, wout, cpad), jnp.bfloat16),
                 jax.ShapeDtypeStruct((n_imgs * 8, cpad), jnp.float32)]
    out_specs = [img_spec, st_spec]

    flops = 2 * n_imgs * hout * wout * 9 * cpad * cpad
    byt = 2 * _nbytes(c1) + _nbytes(w2r) + n_imgs * 8 * cpad * 4

    cin_sc = 0
    if has_sc:
        cin_sc = xsc.shape[-1]
        args += [xsc, wscr]
        in_specs += [pl.BlockSpec((1, hout, wout, cin_sc),
                                  lambda i: (i, 0, 0, 0)),
                     pl.BlockSpec(wscr.shape, lambda i: (0, 0))]
        out_shape += [jax.ShapeDtypeStruct((n_imgs, hout, wout, cpad),
                                           jnp.bfloat16),
                      jax.ShapeDtypeStruct((n_imgs * 8, cpad), jnp.float32)]
        out_specs += [img_spec, st_spec]
        flops += 2 * n_imgs * hout * wout * cin_sc * cpad
        byt += (_nbytes(xsc) + _nbytes(wscr)
                + n_imgs * hout * wout * cpad * 2 + n_imgs * 8 * cpad * 4)

    return pl.pallas_call(
        _conv2_kernel(hout, wout, cpad, cin_sc, has_sc),
        grid=(n_imgs,),
        in_specs=in_specs,
        out_specs=out_specs,
        out_shape=tuple(out_shape),
        scratch_shapes=[pltpu.VMEM((hout + 2, wout + 2, cpad), jnp.bfloat16),
                        pltpu.VMEM((hout * wout, cpad), jnp.float32)],
        compiler_params=pltpu.CompilerParams(dimension_semantics=("parallel",)),
        cost_estimate=_cost(flops, byt),
    )(*args)


# ----------------------------------------------------------------------------
# Kernel 3: BN2 [+ BN_shortcut] + residual add + ReLU (elementwise, fused)
# ----------------------------------------------------------------------------
def _final_kernel(planes, has_sc):
    def kernel(*refs):
        if has_sc:
            c2_ref, sc2_ref, sh2_ref, csc_ref, rsc_ref, rsh_ref, o_ref = refs
            y = c2_ref[0].astype(jnp.float32) * sc2_ref[...] + sh2_ref[...]
            y = y + csc_ref[0].astype(jnp.float32) * rsc_ref[...] + rsh_ref[...]
            y = y[:, :, :planes]
        else:
            # identity shortcut: plain bf16 residual, no scale/shift FMA
            c2_ref, sc2_ref, sh2_ref, r_ref, o_ref = refs
            y = c2_ref[0].astype(jnp.float32) * sc2_ref[...] + sh2_ref[...]
            y = y[:, :, :planes] + r_ref[0].astype(jnp.float32)
        o_ref[0] = jnp.maximum(y, 0.0).astype(o_ref.dtype)

    return kernel


def _final_call(c2, scale2, shift2, residual, rscale, rshift, planes, has_sc):
    n_imgs, hout, wout, cpad = c2.shape
    img_cpad = pl.BlockSpec((1, hout, wout, cpad), lambda i: (i, 0, 0, 0))
    vec_spec = pl.BlockSpec((1, cpad), lambda i: (0, 0))
    if has_sc:
        args = [c2, scale2, shift2, residual, rscale, rshift]
        in_specs = [img_cpad, vec_spec, vec_spec, img_cpad, vec_spec, vec_spec]
    else:
        args = [c2, scale2, shift2, residual]
        in_specs = [img_cpad, vec_spec, vec_spec,
                    pl.BlockSpec((1, hout, wout, planes),
                                 lambda i: (i, 0, 0, 0))]
    byt = sum(_nbytes(a) for a in args) + n_imgs * hout * wout * planes * 4
    return pl.pallas_call(
        _final_kernel(planes, has_sc),
        grid=(n_imgs,),
        in_specs=in_specs,
        out_specs=pl.BlockSpec((1, hout, wout, planes),
                               lambda i: (i, 0, 0, 0)),
        out_shape=jax.ShapeDtypeStruct((n_imgs, hout, wout, planes),
                                       jnp.float32),
        compiler_params=pltpu.CompilerParams(dimension_semantics=("parallel",)),
        cost_estimate=_cost(6 * n_imgs * hout * wout * cpad, byt),
    )(*args)


# ----------------------------------------------------------------------------
# BasicBlock forward (NHWC)
# ----------------------------------------------------------------------------
def basic_block_forward(x_nhwc, params, stride=1):
    n, h, w, cin = x_nhwc.shape
    planes = params["w1"].shape[-1]
    cpad = _round_up(planes, LANE)
    h1 = (h - 1) // stride + 1
    w1_ = (w - 1) // stride + 1
    m1 = n * h1 * w1_                      # true BN sample count (no padding)

    def pad_vec(v):
        return jnp.pad(v.reshape(-1), (0, cpad - planes)).astype(jnp.float32)

    g1, b1 = pad_vec(params["g1"]), pad_vec(params["b1"])
    g2, b2 = pad_vec(params["g2"]), pad_vec(params["b2"])

    x_bf16 = x_nhwc.astype(jnp.bfloat16)   # cast before any layout prep

    # ---- conv1 (3x3, stride) + BN1 partial stats ----------------------------
    w1r = jnp.pad(params["w1"].reshape(9, cin, planes),
                  ((0, 0), (0, 0), (0, cpad - planes))).astype(jnp.bfloat16)
    xplanes = _pad_and_planes(x_bf16, stride)
    c1, stats1 = _conv1_call(xplanes, w1r, n, h1, w1_, cin, cpad, stride)
    s1, q1 = _reduce_stats(stats1, cpad)
    scale1, shift1 = _bn_scale_shift(s1, q1, m1, g1, b1)

    # ---- BN1-apply + ReLU + conv2 (+ fused 1x1 shortcut conv) ---------------
    w2r = jnp.pad(params["w2"].reshape(9, planes, planes),
                  ((0, 0), (0, cpad - planes),
                   (0, cpad - planes))).astype(jnp.bfloat16)
    has_sc = (stride != 1) or (cin != planes)
    if has_sc:
        xsc = x_bf16[:, ::stride, ::stride, :]              # (N, H1, W1, Cin)
        wscr = jnp.pad(params["w_sc"].reshape(cin, planes),
                       ((0, 0), (0, cpad - planes))).astype(jnp.bfloat16)
        c2, stats2, csc, statsc = _conv2_call(c1, scale1, shift1, w2r, xsc, wscr)
    else:
        c2, stats2 = _conv2_call(c1, scale1, shift1, w2r, None, None)

    s2, q2 = _reduce_stats(stats2, cpad)
    scale2, shift2 = _bn_scale_shift(s2, q2, m1, g2, b2)

    # ---- BN2 [+ BN_shortcut] + residual add + ReLU ---------------------------
    if has_sc:
        gsc, bsc = pad_vec(params["g_sc"]), pad_vec(params["b_sc"])
        ssc, qsc = _reduce_stats(statsc, cpad)
        rscale, rshift = _bn_scale_shift(ssc, qsc, m1, gsc, bsc)
        return _final_call(c2, scale2, shift2, csc, rscale, rshift, planes, True)
    return _final_call(c2, scale2, shift2, x_bf16, None, None, planes, False)


# ----------------------------------------------------------------------------
# Pure-JAX reference (numerical sanity check)
# ----------------------------------------------------------------------------
def _bn_train_ref(x, g, b):
    mean = x.mean(axis=(0, 1, 2), keepdims=True)
    var = ((x - mean) ** 2).mean(axis=(0, 1, 2), keepdims=True)
    return ((x - mean) * jax.lax.rsqrt(var + EPS) * g.reshape(1, 1, 1, -1)
            + b.reshape(1, 1, 1, -1))


def ref_forward(x_nhwc, params, stride=1):
    dn = ("NHWC", "HWIO", "NHWC")
    c1 = jax.lax.conv_general_dilated(x_nhwc, params["w1"], (stride, stride),
                                      ((1, 1), (1, 1)), dimension_numbers=dn)
    o1 = jax.nn.relu(_bn_train_ref(c1, params["g1"], params["b1"]))
    c2 = jax.lax.conv_general_dilated(o1, params["w2"], (1, 1),
                                      ((1, 1), (1, 1)), dimension_numbers=dn)
    o2 = _bn_train_ref(c2, params["g2"], params["b2"])
    if "w_sc" in params:
        sc = jax.lax.conv_general_dilated(x_nhwc, params["w_sc"],
                                          (stride, stride), ((0, 0), (0, 0)),
                                          dimension_numbers=dn)
        sc = _bn_train_ref(sc, params["g_sc"], params["b_sc"])
    else:
        sc = x_nhwc
    return jax.nn.relu(o2 + sc)


# ----------------------------------------------------------------------------
# Deterministic parameter init (shapes per BasicBlock.__init__)
# ----------------------------------------------------------------------------
def init_params(key, in_planes, planes, stride):
    ks = jax.random.split(key, 9)
    p = {
        "w1": 0.1 * jax.random.normal(ks[0], (3, 3, in_planes, planes),
                                      jnp.float32),
        "g1": 1.0 + 0.1 * jax.random.normal(ks[1], (1, planes), jnp.float32),
        "b1": 0.1 * jax.random.normal(ks[2], (1, planes), jnp.float32),
        "w2": 0.1 * jax.random.normal(ks[3], (3, 3, planes, planes),
                                      jnp.float32),
        "g2": 1.0 + 0.1 * jax.random.normal(ks[4], (1, planes), jnp.float32),
        "b2": 0.1 * jax.random.normal(ks[5], (1, planes), jnp.float32),
    }
    if stride != 1 or in_planes != planes:
        p["w_sc"] = 0.1 * jax.random.normal(ks[6], (1, 1, in_planes, planes),
                                            jnp.float32)
        p["g_sc"] = 1.0 + 0.1 * jax.random.normal(ks[7], (1, planes),
                                                  jnp.float32)
        p["b_sc"] = 0.1 * jax.random.normal(ks[8], (1, planes), jnp.float32)
    return p


if __name__ == "__main__":
    key = jax.random.PRNGKey(0)
    # (in_planes, planes, stride): conv-shortcut, identity-shortcut, strided
    configs = [(4, 8, 1), (8, 8, 1), (4, 8, 2)]
    for idx, (in_planes, planes, stride) in enumerate(configs):
        kx, kp = jax.random.split(jax.random.fold_in(key, idx))

        # PyTorch-convention NCHW input, transposed to the kernel's NHWC layout.
        x_nchw = jax.random.normal(kx, (2, in_planes, 16, 16), jnp.float32)
        x_nhwc = jnp.transpose(x_nchw, (0, 2, 3, 1))
        params = init_params(kp, in_planes, planes, stride)

        fwd = jax.jit(functools.partial(basic_block_forward, stride=stride))
        out = jax.block_until_ready(fwd(x_nhwc, params))
        ref = jax.block_until_ready(ref_forward(x_nhwc, params, stride))

        assert out.shape == ref.shape, (out.shape, ref.shape)
        err = float(jnp.max(jnp.abs(out - ref)))
        # deliberate precision choice: the whole activation path (input, c1,
        # out1, c2, residual) is bf16 on the MXU with f32 accumulation/stats,
        # compared against a pure-f32 reference -> modest absolute tolerance.
        assert err < 1e-1, \
            f"config {(in_planes, planes, stride)}: max abs err {err}"

    print("KERNEL_OK")
</pallas_src>

<mosaic_0001>
module attributes {stable_mosaic.version = 11 : i64} {
  func.func @kernel(%arg0: i32, %arg1: memref<1x18x18x4xbf16, #tpu.memory_space<vmem>>, %arg2: memref<9x4x128xbf16, #tpu.memory_space<vmem>>, %arg3: memref<1x16x16x128xbf16, #tpu.memory_space<vmem>>, %arg4: memref<8x128xf32, #tpu.memory_space<vmem>>, %arg5: memref<256x128xf32, #tpu.memory_space<vmem>>) attributes {dimension_semantics = [#tpu.dimension_semantics<parallel>], iteration_bounds = array<i64: 2>, scalar_prefetch = 0 : i64, scratch_operands = 1 : i64, tpu.core_type = #tpu.core_type<tc>, window_params = [{transform_indices = @transform_0, window_bounds = array<i64: 1, 18, 18, 4>}, {pipeline_mode = #tpu.pipeline_mode<synchronous>, transform_indices = @transform_1, window_bounds = array<i64: 9, 4, 128>}, {transform_indices = @transform_2, window_bounds = array<i64: 1, 16, 16, 128>}, {transform_indices = @transform_3, window_bounds = array<i64: 8, 128>}]} {
    %cst = arith.constant 0.000000e+00 : f32
    %0 = vector.broadcast %cst : f32 to vector<256x128xf32>
    %c0 = arith.constant 0 : index
    %c0_0 = arith.constant 0 : index
    %1 = vector.load %arg5[%c0, %c0_0] : memref<256x128xf32, #tpu.memory_space<vmem>>, vector<256x128xf32>
    tpu.vector_store %arg5[%c0, %c0_0], %0 {strides = array<i32>} : memref<256x128xf32, #tpu.memory_space<vmem>>, vector<256x128xf32>,
    %c0_1 = arith.constant 0 : index
    %c0_2 = arith.constant 0 : index
    %c0_3 = arith.constant 0 : index
    %c0_4 = arith.constant 0 : index
    %2 = vector.load %arg1[%c0_1, %c0_2, %c0_3, %c0_4] : memref<1x18x18x4xbf16, #tpu.memory_space<vmem>>, vector<1x16x16x4xbf16>
    %3 = vector.shape_cast %2 : vector<1x16x16x4xbf16> to vector<16x16x4xbf16>
    %c0_5 = arith.constant 0 : index
    %c0_6 = arith.constant 0 : index
    %4 = vector.load %arg5[%c0_5, %c0_6] : memref<256x128xf32, #tpu.memory_space<vmem>>, vector<256x128xf32>
    %5 = vector.shape_cast %3 : vector<16x16x4xbf16> to vector<256x4xbf16>
    %c0_7 = arith.constant 0 : index
    %c0_8 = arith.constant 0 : index
    %c0_9 = arith.constant 0 : index
    %6 = vector.load %arg2[%c0_7, %c0_8, %c0_9] : memref<9x4x128xbf16, #tpu.memory_space<vmem>>, vector<1x4x128xbf16>
    %7 = vector.shape_cast %6 : vector<1x4x128xbf16> to vector<4x128xbf16>
    %cst_10 = arith.constant dense<0.000000e+00> : vector<256x128xf32>
    %8 = tpu.matmul %5, %7, %cst_10 {dimension_numbers = #tpu.dot_dimension_numbers<[1], [0], [0], [1], [0, 0, 1, 1], [], []>} : vector<256x4xbf16>, vector<4x128xbf16>, vector<256x128xf32> -> vector<256x128xf32>
    %9 = arith.addf %4, %8 : vector<256x128xf32>
    %c0_11 = arith.constant 0 : index
    %c0_12 = arith.constant 0 : index
    %10 = vector.load %arg5[%c0_11, %c0_12] : memref<256x128xf32, #tpu.memory_space<vmem>>, vector<256x128xf32>
    tpu.vector_store %arg5[%c0_11, %c0_12], %9 {strides = array<i32>} : memref<256x128xf32, #tpu.memory_space<vmem>>, vector<256x128xf32>,
    %c0_13 = arith.constant 0 : index
    %c0_14 = arith.constant 0 : index
    %c1 = arith.constant 1 : index
    %c0_15 = arith.constant 0 : index
    %11 = vector.load %arg1[%c0_13, %c0_14, %c1, %c0_15] : memref<1x18x18x4xbf16, #tpu.memory_space<vmem>>, vector<1x16x16x4xbf16>
    %12 = vector.shape_cast %11 : vector<1x16x16x4xbf16> to vector<16x16x4xbf16>
    %c0_16 = arith.constant 0 : index
    %c0_17 = arith.constant 0 : index
    %13 = vector.load %arg5[%c0_16, %c0_17] : memref<256x128xf32, #tpu.memory_space<vmem>>, vector<256x128xf32>
    %14 = vector.shape_cast %12 : vector<16x16x4xbf16> to vector<256x4xbf16>
    %c1_18 = arith.constant 1 : index
    %c0_19 = arith.constant 0 : index
    %c0_20 = arith.constant 0 : index
    %15 = vector.load %arg2[%c1_18, %c0_19, %c0_20] : memref<9x4x128xbf16, #tpu.memory_space<vmem>>, vector<1x4x128xbf16>
    %16 = vector.shape_cast %15 : vector<1x4x128xbf16> to vector<4x128xbf16>
    %cst_21 = arith.constant dense<0.000000e+00> : vector<256x128xf32>
    %17 = tpu.matmul %14, %16, %cst_21 {dimension_numbers = #tpu.dot_dimension_numbers<[1], [0], [0], [1], [0, 0, 1, 1], [], []>} : vector<256x4xbf16>, vector<4x128xbf16>, vector<256x128xf32> -> vector<256x128xf32>
    %18 = arith.addf %13, %17 : vector<256x128xf32>
    %c0_22 = arith.constant 0 : index
    %c0_23 = arith.constant 0 : index
    %19 = vector.load %arg5[%c0_22, %c0_23] : memref<256x128xf32, #tpu.memory_space<vmem>>, vector<256x128xf32>
    tpu.vector_store %arg5[%c0_22, %c0_23], %18 {strides = array<i32>} : memref<256x128xf32, #tpu.memory_space<vmem>>, vector<256x128xf32>,
    %c0_24 = arith.constant 0 : index
    %c0_25 = arith.constant 0 : index
    %c2 = arith.constant 2 : index
    %c0_26 = arith.constant 0 : index
    %20 = vector.load %arg1[%c0_24, %c0_25, %c2, %c0_26] : memref<1x18x18x4xbf16, #tpu.memory_space<vmem>>, vector<1x16x16x4xbf16>
    %21 = vector.shape_cast %20 : vector<1x16x16x4xbf16> to vector<16x16x4xbf16>
    %c0_27 = arith.constant 0 : index
    %c0_28 = arith.constant 0 : index
    %22 = vector.load %arg5[%c0_27, %c0_28] : memref<256x128xf32, #tpu.memory_space<vmem>>, vector<256x128xf32>
    %23 = vector.shape_cast %21 : vector<16x16x4xbf16> to vector<256x4xbf16>
    %c2_29 = arith.constant 2 : index
    %c0_30 = arith.constant 0 : index
    %c0_31 = arith.constant 0 : index
    %24 = vector.load %arg2[%c2_29, %c0_30, %c0_31] : memref<9x4x128xbf16, #tpu.memory_space<vmem>>, vector<1x4x128xbf16>
    %25 = vector.shape_cast %24 : vector<1x4x128xbf16> to vector<4x128xbf16>
    %cst_32 = arith.constant dense<0.000000e+00> : vector<256x128xf32>
    %26 = tpu.matmul %23, %25, %cst_32 {dimension_numbers = #tpu.dot_dimension_numbers<[1], [0], [0], [1], [0, 0, 1, 1], [], []>} : vector<256x4xbf16>, vector<4x128xbf16>, vector<256x128xf32> -> vector<256x128xf32>
    %27 = arith.addf %22, %26 : vector<256x128xf32>
    %c0_33 = arith.constant 0 : index
    %c0_34 = arith.constant 0 : index
    %28 = vector.load %arg5[%c0_33, %c0_34] : memref<256x128xf32, #tpu.memory_space<vmem>>, vector<256x128xf32>
    tpu.vector_store %arg5[%c0_33, %c0_34], %27 {strides = array<i32>} : memref<256x128xf32, #tpu.memory_space<vmem>>, vector<256x128xf32>,
    %c0_35 = arith.constant 0 : index
    %c1_36 = arith.constant 1 : index
    %c0_37 = arith.constant 0 : index
    %c0_38 = arith.constant 0 : index
    %29 = vector.load %arg1[%c0_35, %c1_36, %c0_37, %c0_38] : memref<1x18x18x4xbf16, #tpu.memory_space<vmem>>, vector<1x16x16x4xbf16>
    %30 = vector.shape_cast %29 : vector<1x16x16x4xbf16> to vector<16x16x4xbf16>
    %c0_39 = arith.constant 0 : index
    %c0_40 = arith.constant 0 : index
    %31 = vector.load %arg5[%c0_39, %c0_40] : memref<256x128xf32, #tpu.memory_space<vmem>>, vector<256x128xf32>
    %32 = vector.shape_cast %30 : vector<16x16x4xbf16> to vector<256x4xbf16>
    %c3 = arith.constant 3 : index
    %c0_41 = arith.constant 0 : index
    %c0_42 = arith.constant 0 : index
    %33 = vector.load %arg2[%c3, %c0_41, %c0_42] : memref<9x4x128xbf16, #tpu.memory_space<vmem>>, vector<1x4x128xbf16>
    %34 = vector.shape_cast %33 : vector<1x4x128xbf16> to vector<4x128xbf16>
    %cst_43 = arith.constant dense<0.000000e+00> : vector<256x128xf32>
    %35 = tpu.matmul %32, %34, %cst_43 {dimension_numbers = #tpu.dot_dimension_numbers<[1], [0], [0], [1], [0, 0, 1, 1], [], []>} : vector<256x4xbf16>, vector<4x128xbf16>, vector<256x128xf32> -> vector<256x128xf32>
    %36 = arith.addf %31, %35 : vector<256x128xf32>
    %c0_44 = arith.constant 0 : index
    %c0_45 = arith.constant 0 : index
    %37 = vector.load %arg5[%c0_44, %c0_45] : memref<256x128xf32, #tpu.memory_space<vmem>>, vector<256x128xf32>
    tpu.vector_store %arg5[%c0_44, %c0_45], %36 {strides = array<i32>} : memref<256x128xf32, #tpu.memory_space<vmem>>, vector<256x128xf32>,
    %c0_46 = arith.constant 0 : index
    %c1_47 = arith.constant 1 : index
    %c1_48 = arith.constant 1 : index
    %c0_49 = arith.constant 0 : index
    %38 = vector.load %arg1[%c0_46, %c1_47, %c1_48, %c0_49] : memref<1x18x18x4xbf16, #tpu.memory_space<vmem>>, vector<1x16x16x4xbf16>
    %39 = vector.shape_cast %38 : vector<1x16x16x4xbf16> to vector<16x16x4xbf16>
    %c0_50 = arith.constant 0 : index
    %c0_51 = arith.constant 0 : index
    %40 = vector.load %arg5[%c0_50, %c0_51] : memref<256x128xf32, #tpu.memory_space<vmem>>, vector<256x128xf32>
    %41 = vector.shape_cast %39 : vector<16x16x4xbf16> to vector<256x4xbf16>
    %c4 = arith.constant 4 : index
    %c0_52 = arith.constant 0 : index
    %c0_53 = arith.constant 0 : index
    %42 = vector.load %arg2[%c4, %c0_52, %c0_53] : memref<9x4x128xbf16, #tpu.memory_space<vmem>>, vector<1x4x128xbf16>
    %43 = vector.shape_cast %42 : vector<1x4x128xbf16> to vector<4x128xbf16>
    %cst_54 = arith.constant dense<0.000000e+00> : vector<256x128xf32>
    %44 = tpu.matmul %41, %43, %cst_54 {dimension_numbers = #tpu.dot_dimension_numbers<[1], [0], [0], [1], [0, 0, 1, 1], [], []>} : vector<256x4xbf16>, vector<4x128xbf16>, vector<256x128xf32> -> vector<256x128xf32>
    %45 = arith.addf %40, %44 : vector<256x128xf32>
    %c0_55 = arith.constant 0 : index
    %c0_56 = arith.constant 0 : index
    %46 = vector.load %arg5[%c0_55, %c0_56] : memref<256x128xf32, #tpu.memory_space<vmem>>, vector<256x128xf32>
    tpu.vector_store %arg5[%c0_55, %c0_56], %45 {strides = array<i32>} : memref<256x128xf32, #tpu.memory_space<vmem>>, vector<256x128xf32>,
    %c0_57 = arith.constant 0 : index
    %c1_58 = arith.constant 1 : index
    %c2_59 = arith.constant 2 : index
    %c0_60 = arith.constant 0 : index
    %47 = vector.load %arg1[%c0_57, %c1_58, %c2_59, %c0_60] : memref<1x18x18x4xbf16, #tpu.memory_space<vmem>>, vector<1x16x16x4xbf16>
    %48 = vector.shape_cast %47 : vector<1x16x16x4xbf16> to vector<16x16x4xbf16>
    %c0_61 = arith.constant 0 : index
    %c0_62 = arith.constant 0 : index
    %49 = vector.load %arg5[%c0_61, %c0_62] : memref<256x128xf32, #tpu.memory_space<vmem>>, vector<256x128xf32>
    %50 = vector.shape_cast %48 : vector<16x16x4xbf16> to vector<256x4xbf16>
    %c5 = arith.constant 5 : index
    %c0_63 = arith.constant 0 : index
    %c0_64 = arith.constant 0 : index
    %51 = vector.load %arg2[%c5, %c0_63, %c0_64] : memref<9x4x128xbf16, #tpu.memory_space<vmem>>, vector<1x4x128xbf16>
    %52 = vector.shape_cast %51 : vector<1x4x128xbf16> to vector<4x128xbf16>
    %cst_65 = arith.constant dense<0.000000e+00> : vector<256x128xf32>
    %53 = tpu.matmul %50, %52, %cst_65 {dimension_numbers = #tpu.dot_dimension_numbers<[1], [0], [0], [1], [0, 0, 1, 1], [], []>} : vector<256x4xbf16>, vector<4x128xbf16>, vector<256x128xf32> -> vector<256x128xf32>
    %54 = arith.addf %49, %53 : vector<256x128xf32>
    %c0_66 = arith.constant 0 : index
    %c0_67 = arith.constant 0 : index
    %55 = vector.load %arg5[%c0_66, %c0_67] : memref<256x128xf32, #tpu.memory_space<vmem>>, vector<256x128xf32>
    tpu.vector_store %arg5[%c0_66, %c0_67], %54 {strides = array<i32>} : memref<256x128xf32, #tpu.memory_space<vmem>>, vector<256x128xf32>,
    %c0_68 = arith.constant 0 : index
    %c2_69 = arith.constant 2 : index
    %c0_70 = arith.constant 0 : index
    %c0_71 = arith.constant 0 : index
    %56 = vector.load %arg1[%c0_68, %c2_69, %c0_70, %c0_71] : memref<1x18x18x4xbf16, #tpu.memory_space<vmem>>, vector<1x16x16x4xbf16>
    %57 = vector.shape_cast %56 : vector<1x16x16x4xbf16> to vector<16x16x4xbf16>
    %c0_72 = arith.constant 0 : index
    %c0_73 = arith.constant 0 : index
    %58 = vector.load %arg5[%c0_72, %c0_73] : memref<256x128xf32, #tpu.memory_space<vmem>>, vector<256x128xf32>
    %59 = vector.shape_cast %57 : vector<16x16x4xbf16> to vector<256x4xbf16>
    %c6 = arith.constant 6 : index
    %c0_74 = arith.constant 0 : index
    %c0_75 = arith.constant 0 : index
    %60 = vector.load %arg2[%c6, %c0_74, %c0_75] : memref<9x4x128xbf16, #tpu.memory_space<vmem>>, vector<1x4x128xbf16>
    %61 = vector.shape_cast %60 : vector<1x4x128xbf16> to vector<4x128xbf16>
    %cst_76 = arith.constant dense<0.000000e+00> : vector<256x128xf32>
    %62 = tpu.matmul %59, %61, %cst_76 {dimension_numbers = #tpu.dot_dimension_numbers<[1], [0], [0], [1], [0, 0, 1, 1], [], []>} : vector<256x4xbf16>, vector<4x128xbf16>, vector<256x128xf32> -> vector<256x128xf32>
    %63 = arith.addf %58, %62 : vector<256x128xf32>
    %c0_77 = arith.constant 0 : index
    %c0_78 = arith.constant 0 : index
    %64 = vector.load %arg5[%c0_77, %c0_78] : memref<256x128xf32, #tpu.memory_space<vmem>>, vector<256x128xf32>
    tpu.vector_store %arg5[%c0_77, %c0_78], %63 {strides = array<i32>} : memref<256x128xf32, #tpu.memory_space<vmem>>, vector<256x128xf32>,
    %c0_79 = arith.constant 0 : index
    %c2_80 = arith.constant 2 : index
    %c1_81 = arith.constant 1 : index
    %c0_82 = arith.constant 0 : index
    %65 = vector.load %arg1[%c0_79, %c2_80, %c1_81, %c0_82] : memref<1x18x18x4xbf16, #tpu.memory_space<vmem>>, vector<1x16x16x4xbf16>
    %66 = vector.shape_cast %65 : vector<1x16x16x4xbf16> to vector<16x16x4xbf16>
    %c0_83 = arith.constant 0 : index
    %c0_84 = arith.constant 0 : index
    %67 = vector.load %arg5[%c0_83, %c0_84] : memref<256x128xf32, #tpu.memory_space<vmem>>, vector<256x128xf32>
    %68 = vector.shape_cast %66 : vector<16x16x4xbf16> to vector<256x4xbf16>
    %c7 = arith.constant 7 : index
    %c0_85 = arith.constant 0 : index
    %c0_86 = arith.constant 0 : index
    %69 = vector.load %arg2[%c7, %c0_85, %c0_86] : memref<9x4x128xbf16, #tpu.memory_space<vmem>>, vector<1x4x128xbf16>
    %70 = vector.shape_cast %69 : vector<1x4x128xbf16> to vector<4x128xbf16>
    %cst_87 = arith.constant dense<0.000000e+00> : vector<256x128xf32>
    %71 = tpu.matmul %68, %70, %cst_87 {dimension_numbers = #tpu.dot_dimension_numbers<[1], [0], [0], [1], [0, 0, 1, 1], [], []>} : vector<256x4xbf16>, vector<4x128xbf16>, vector<256x128xf32> -> vector<256x128xf32>
    %72 = arith.addf %67, %71 : vector<256x128xf32>
    %c0_88 = arith.constant 0 : index
    %c0_89 = arith.constant 0 : index
    %73 = vector.load %arg5[%c0_88, %c0_89] : memref<256x128xf32, #tpu.memory_space<vmem>>, vector<256x128xf32>
    tpu.vector_store %arg5[%c0_88, %c0_89], %72 {strides = array<i32>} : memref<256x128xf32, #tpu.memory_space<vmem>>, vector<256x128xf32>,
    %c0_90 = arith.constant 0 : index
    %c2_91 = arith.constant 2 : index
    %c2_92 = arith.constant 2 : index
    %c0_93 = arith.constant 0 : index
    %74 = vector.load %arg1[%c0_90, %c2_91, %c2_92, %c0_93] : memref<1x18x18x4xbf16, #tpu.memory_space<vmem>>, vector<1x16x16x4xbf16>
    %75 = vector.shape_cast %74 : vector<1x16x16x4xbf16> to vector<16x16x4xbf16>
    %c0_94 = arith.constant 0 : index
    %c0_95 = arith.constant 0 : index
    %76 = vector.load %arg5[%c0_94, %c0_95] : memref<256x128xf32, #tpu.memory_space<vmem>>, vector<256x128xf32>
    %77 = vector.shape_cast %75 : vector<16x16x4xbf16> to vector<256x4xbf16>
    %c8 = arith.constant 8 : index
    %c0_96 = arith.constant 0 : index
    %c0_97 = arith.constant 0 : index
    %78 = vector.load %arg2[%c8, %c0_96, %c0_97] : memref<9x4x128xbf16, #tpu.memory_space<vmem>>, vector<1x4x128xbf16>
    %79 = vector.shape_cast %78 : vector<1x4x128xbf16> to vector<4x128xbf16>
    %cst_98 = arith.constant dense<0.000000e+00> : vector<256x128xf32>
    %80 = tpu.matmul %77, %79, %cst_98 {dimension_numbers = #tpu.dot_dimension_numbers<[1], [0], [0], [1], [0, 0, 1, 1], [], []>} : vector<256x4xbf16>, vector<4x128xbf16>, vector<256x128xf32> -> vector<256x128xf32>
    %81 = arith.addf %76, %80 : vector<256x128xf32>
    %c0_99 = arith.constant 0 : index
    %c0_100 = arith.constant 0 : index
    %82 = vector.load %arg5[%c0_99, %c0_100] : memref<256x128xf32, #tpu.memory_space<vmem>>, vector<256x128xf32>
    tpu.vector_store %arg5[%c0_99, %c0_100], %81 {strides = array<i32>} : memref<256x128xf32, #tpu.memory_space<vmem>>, vector<256x128xf32>,
    %c0_101 = arith.constant 0 : index
    %c0_102 = arith.constant 0 : index
    %83 = vector.load %arg5[%c0_101, %c0_102] : memref<256x128xf32, #tpu.memory_space<vmem>>, vector<256x128xf32>
    %84 = vector.shape_cast %83 : vector<256x128xf32> to vector<16x16x128xf32>
    %85 = arith.truncf %84 : vector<16x16x128xf32> to vector<16x16x128xbf16>
    %c0_103 = arith.constant 0 : index
    %c0_104 = arith.constant 0 : index
    %c0_105 = arith.constant 0 : index
    %c0_106 = arith.constant 0 : index
    %86 = vector.load %arg3[%c0_103, %c0_104, %c0_105, %c0_106] : memref<1x16x16x128xbf16, #tpu.memory_space<vmem>>, vector<1x16x16x128xbf16>
    %87 = vector.shape_cast %86 : vector<1x16x16x128xbf16> to vector<16x16x128xbf16>
    %88 = vector.shape_cast %85 : vector<16x16x128xbf16> to vector<1x16x16x128xbf16>
    tpu.vector_store %arg3[%c0_103, %c0_104, %c0_105, %c0_106], %88 {strides = array<i32>} : memref<1x16x16x128xbf16, #tpu.memory_space<vmem>>, vector<1x16x16x128xbf16>,
    %cst_107 = arith.constant dense<0.000000e+00> : vector<128xf32>
    %89 = vector.multi_reduction <add>, %83, %cst_107 [0] : vector<256x128xf32> to vector<128xf32>
    %90 = vector.shape_cast %89 : vector<128xf32> to vector<1x128xf32>
    %91 = arith.mulf %83, %83 : vector<256x128xf32>
    %cst_108 = arith.constant dense<0.000000e+00> : vector<128xf32>
    %92 = vector.multi_reduction <add>, %91, %cst_108 [0] : vector<256x128xf32> to vector<128xf32>
    %93 = vector.shape_cast %92 : vector<128xf32> to vector<1x128xf32>
    %cst_109 = arith.constant 0.000000e+00 : f32
    %94 = vector.broadcast %cst_109 : f32 to vector<6x128xf32>
    %95 = tpu.concatenate %90, %93, %94 in 0 : vector<1x128xf32>, vector<1x128xf32>, vector<6x128xf32> -> vector<8x128xf32>
    %c0_110 = arith.constant 0 : index
    %c0_111 = arith.constant 0 : index
    %96 = vector.load %arg4[%c0_110, %c0_111] : memref<8x128xf32, #tpu.memory_space<vmem>>, vector<8x128xf32>
    tpu.vector_store %arg4[%c0_110, %c0_111], %95 {strides = array<i32>} : memref<8x128xf32, #tpu.memory_space<vmem>>, vector<8x128xf32>,
    return
  }
  func.func @transform_0(%arg0: i32) -> (i32, i32, i32, i32) {
    %c0_i32 = arith.constant 0 : i32
    %c0_i32_0 = arith.constant 0 : i32
    %c0_i32_1 = arith.constant 0 : i32
    %c0_i32_2 = arith.constant 0 : i32
    return %arg0, %c0_i32, %c0_i32_0, %c0_i32_1 : i32, i32, i32, i32
  }
  func.func @transform_1(%arg0: i32) -> (i32, i32, i32) {
    %c0_i32 = arith.constant 0 : i32
    %c0_i32_0 = arith.constant 0 : i32
    %c0_i32_1 = arith.constant 0 : i32
    %c0_i32_2 = arith.constant 0 : i32
    return %c0_i32, %c0_i32_0, %c0_i32_1 : i32, i32, i32
  }
  func.func @transform_2(%arg0: i32) -> (i32, i32, i32, i32) {
    %c0_i32 = arith.constant 0 : i32
    %c0_i32_0 = arith.constant 0 : i32
    %c0_i32_1 = arith.constant 0 : i32
    %c0_i32_2 = arith.constant 0 : i32
    return %arg0, %c0_i32, %c0_i32_0, %c0_i32_1 : i32, i32, i32, i32
  }
  func.func @transform_3(%arg0: i32) -> (i32, i32) {
    %c0_i32 = arith.constant 0 : i32
    %c0_i32_0 = arith.constant 0 : i32
    return %arg0, %c0_i32 : i32, i32
  }
}

module attributes {stable_mosaic.version = 11 : i64} {
  func.func @kernel(%arg0: i32, %arg1: memref<1x16x16x128xbf16, #tpu.memory_space<vmem>>, %arg2: memref<1x128xf32, #tpu.memory_space<vmem>>, %arg3: memref<1x128xf32, #tpu.memory_space<vmem>>, %arg4: memref<1x16x16x128xbf16, #tpu.memory_space<vmem>>, %arg5: memref<1x128xf32, #tpu.memory_space<vmem>>, %arg6: memref<1x128xf32, #tpu.memory_space<vmem>>, %arg7: memref<1x16x16x8xf32, #tpu.memory_space<vmem>>) attributes {dimension_semantics = [#tpu.dimension_semantics<parallel>], iteration_bounds = array<i64: 2>, scalar_prefetch = 0 : i64, scratch_operands = 0 : i64, tpu.core_type = #tpu.core_type<tc>, window_params = [{transform_indices = @transform_0, window_bounds = array<i64: 1, 16, 16, 128>}, {pipeline_mode = #tpu.pipeline_mode<synchronous>, transform_indices = @transform_1, window_bounds = array<i64: 1, 128>}, {pipeline_mode = #tpu.pipeline_mode<synchronous>, transform_indices = @transform_2, window_bounds = array<i64: 1, 128>}, {transform_indices = @transform_3, window_bounds = array<i64: 1, 16, 16, 128>}, {pipeline_mode = #tpu.pipeline_mode<synchronous>, transform_indices = @transform_4, window_bounds = array<i64: 1, 128>}, {pipeline_mode = #tpu.pipeline_mode<synchronous>, transform_indices = @transform_5, window_bounds = array<i64: 1, 128>}, {transform_indices = @transform_6, window_bounds = array<i64: 1, 16, 16, 8>}]} {
    %c0 = arith.constant 0 : index
    %c0_0 = arith.constant 0 : index
    %c0_1 = arith.constant 0 : index
    %c0_2 = arith.constant 0 : index
    %0 = vector.load %arg1[%c0, %c0_0, %c0_1, %c0_2] : memref<1x16x16x128xbf16, #tpu.memory_space<vmem>>, vector<1x16x16x128xbf16>
    %1 = vector.shape_cast %0 : vector<1x16x16x128xbf16> to vector<16x16x128xbf16>
    %2 = arith.extf %1 : vector<16x16x128xbf16> to vector<16x16x128xf32>
    %c0_3 = arith.constant 0 : index
    %c0_4 = arith.constant 0 : index
    %3 = vector.load %arg2[%c0_3, %c0_4] : memref<1x128xf32, #tpu.memory_space<vmem>>, vector<1x128xf32>
    %4 = vector.shape_cast %3 : vector<1x128xf32> to vector<1x1x128xf32>
    %5 = vector.broadcast %4 : vector<1x1x128xf32> to vector<16x16x128xf32>
    %6 = arith.mulf %2, %5 : vector<16x16x128xf32>
    %c0_5 = arith.constant 0 : index
    %c0_6 = arith.constant 0 : index
    %7 = vector.load %arg3[%c0_5, %c0_6] : memref<1x128xf32, #tpu.memory_space<vmem>>, vector<1x128xf32>
    %8 = vector.shape_cast %7 : vector<1x128xf32> to vector<1x1x128xf32>
    %9 = vector.broadcast %8 : vector<1x1x128xf32> to vector<16x16x128xf32>
    %10 = arith.addf %6, %9 : vector<16x16x128xf32>
    %c0_7 = arith.constant 0 : index
    %c0_8 = arith.constant 0 : index
    %c0_9 = arith.constant 0 : index
    %c0_10 = arith.constant 0 : index
    %11 = vector.load %arg4[%c0_7, %c0_8, %c0_9, %c0_10] : memref<1x16x16x128xbf16, #tpu.memory_space<vmem>>, vector<1x16x16x128xbf16>
    %12 = vector.shape_cast %11 : vector<1x16x16x128xbf16> to vector<16x16x128xbf16>
    %13 = arith.extf %12 : vector<16x16x128xbf16> to vector<16x16x128xf32>
    %c0_11 = arith.constant 0 : index
    %c0_12 = arith.constant 0 : index
    %14 = vector.load %arg5[%c0_11, %c0_12] : memref<1x128xf32, #tpu.memory_space<vmem>>, vector<1x128xf32>
    %15 = vector.shape_cast %14 : vector<1x128xf32> to vector<1x1x128xf32>
    %16 = vector.broadcast %15 : vector<1x1x128xf32> to vector<16x16x128xf32>
    %17 = arith.mulf %13, %16 : vector<16x16x128xf32>
    %18 = arith.addf %10, %17 : vector<16x16x128xf32>
    %c0_13 = arith.constant 0 : index
    %c0_14 = arith.constant 0 : index
    %19 = vector.load %arg6[%c0_13, %c0_14] : memref<1x128xf32, #tpu.memory_space<vmem>>, vector<1x128xf32>
    %20 = vector.shape_cast %19 : vector<1x128xf32> to vector<1x1x128xf32>
    %21 = vector.broadcast %20 : vector<1x1x128xf32> to vector<16x16x128xf32>
    %22 = arith.addf %18, %21 : vector<16x16x128xf32>
    %23 = vector.extract_strided_slice %22 {offsets = [0, 0, 0], sizes = [16, 16, 8], strides = [1, 1, 1]} : vector<16x16x128xf32> to vector<16x16x8xf32>
    %cst = arith.constant 0.000000e+00 : f32
    %24 = vector.broadcast %cst : f32 to vector<16x16x8xf32>
    %25 = arith.maximumf %23, %24 : vector<16x16x8xf32>
    %c0_15 = arith.constant 0 : index
    %c0_16 = arith.constant 0 : index
    %c0_17 = arith.constant 0 : index
    %c0_18 = arith.constant 0 : index
    %26 = vector.load %arg7[%c0_15, %c0_16, %c0_17, %c0_18] : memref<1x16x16x8xf32, #tpu.memory_space<vmem>>, vector<1x16x16x8xf32>
    %27 = vector.shape_cast %26 : vector<1x16x16x8xf32> to vector<16x16x8xf32>
    %28 = vector.shape_cast %25 : vector<16x16x8xf32> to vector<1x16x16x8xf32>
    tpu.vector_store %arg7[%c0_15, %c0_16, %c0_17, %c0_18], %28 {strides = array<i32>} : memref<1x16x16x8xf32, #tpu.memory_space<vmem>>, vector<1x16x16x8xf32>,
    return
  }
  func.func @transform_0(%arg0: i32) -> (i32, i32, i32, i32) {
    %c0_i32 = arith.constant 0 : i32
    %c0_i32_0 = arith.constant 0 : i32
    %c0_i32_1 = arith.constant 0 : i32
    %c0_i32_2 = arith.constant 0 : i32
    return %arg0, %c0_i32, %c0_i32_0, %c0_i32_1 : i32, i32, i32, i32
  }
  func.func @transform_1(%arg0: i32) -> (i32, i32) {
    %c0_i32 = arith.constant 0 : i32
    %c0_i32_0 = arith.constant 0 : i32
    %c0_i32_1 = arith.constant 0 : i32
    return %c0_i32, %c0_i32_0 : i32, i32
  }
  func.func @transform_2(%arg0: i32) -> (i32, i32) {
    %c0_i32 = arith.constant 0 : i32
    %c0_i32_0 = arith.constant 0 : i32
    %c0_i32_1 = arith.constant 0 : i32
    return %c0_i32, %c0_i32_0 : i32, i32
  }
  func.func @transform_3(%arg0: i32) -> (i32, i32, i32, i32) {
    %c0_i32 = arith.constant 0 : i32
    %c0_i32_0 = arith.constant 0 : i32
    %c0_i32_1 = arith.constant 0 : i32
    %c0_i32_2 = arith.constant 0 : i32
    return %arg0, %c0_i32, %c0_i32_0, %c0_i32_1 : i32, i32, i32, i32
  }
  func.func @transform_4(%arg0: i32) -> (i32, i32) {
    %c0_i32 = arith.constant 0 : i32
    %c0_i32_0 = arith.constant 0 : i32
    %c0_i32_1 = arith.constant 0 : i32
    return %c0_i32, %c0_i32_0 : i32, i32
  }
  func.func @transform_5(%arg0: i32) -> (i32, i32) {
    %c0_i32 = arith.constant 0 : i32
    %c0_i32_0 = arith.constant 0 : i32
    %c0_i32_1 = arith.constant 0 : i32
    return %c0_i32, %c0_i32_0 : i32, i32
  }
  func.func @transform_6(%arg0: i32) -> (i32, i32, i32, i32) {
    %c0_i32 = arith.constant 0 : i32
    %c0_i32_0 = arith.constant 0 : i32
    %c0_i32_1 = arith.constant 0 : i32
    %c0_i32_2 = arith.constant 0 : i32
    return %arg0, %c0_i32, %c0_i32_0, %c0_i32_1 : i32, i32, i32, i32
  }
}

module attributes {stable_mosaic.version = 11 : i64} {
  func.func @kernel(%arg0: i32, %arg1: memref<1x16x16x128xbf16, #tpu.memory_space<vmem>>, %arg2: memref<1x128xf32, #tpu.memory_space<vmem>>, %arg3: memref<1x128xf32, #tpu.memory_space<vmem>>, %arg4: memref<9x128x128xbf16, #tpu.memory_space<vmem>>, %arg5: memref<1x16x16x4xbf16, #tpu.memory_space<vmem>>, %arg6: memref<4x128xbf16, #tpu.memory_space<vmem>>, %arg7: memref<1x16x16x128xbf16, #tpu.memory_space<vmem>>, %arg8: memref<8x128xf32, #tpu.memory_space<vmem>>, %arg9: memref<1x16x16x128xbf16, #tpu.memory_space<vmem>>, %arg10: memref<8x128xf32, #tpu.memory_space<vmem>>, %arg11: memref<18x18x128xbf16, #tpu.memory_space<vmem>>, %arg12: memref<256x128xf32, #tpu.memory_space<vmem>>) attributes {dimension_semantics = [#tpu.dimension_semantics<parallel>], iteration_bounds = array<i64: 2>, scalar_prefetch = 0 : i64, scratch_operands = 2 : i64, tpu.core_type = #tpu.core_type<tc>, window_params = [{transform_indices = @transform_0, window_bounds = array<i64: 1, 16, 16, 128>}, {pipeline_mode = #tpu.pipeline_mode<synchronous>, transform_indices = @transform_1, window_bounds = array<i64: 1, 128>}, {pipeline_mode = #tpu.pipeline_mode<synchronous>, transform_indices = @transform_2, window_bounds = array<i64: 1, 128>}, {pipeline_mode = #tpu.pipeline_mode<synchronous>, transform_indices = @transform_3, window_bounds = array<i64: 9, 128, 128>}, {transform_indices = @transform_4, window_bounds = array<i64: 1, 16, 16, 4>}, {pipeline_mode = #tpu.pipeline_mode<synchronous>, transform_indices = @transform_5, window_bounds = array<i64: 4, 128>}, {transform_indices = @transform_6, window_bounds = array<i64: 1, 16, 16, 128>}, {transform_indices = @transform_7, window_bounds = array<i64: 8, 128>}, {transform_indices = @transform_8, window_bounds = array<i64: 1, 16, 16, 128>}, {transform_indices = @transform_9, window_bounds = array<i64: 8, 128>}]} {
    %c0 = arith.constant 0 : index
    %c0_0 = arith.constant 0 : index
    %c0_1 = arith.constant 0 : index
    %c0_2 = arith.constant 0 : index
    %0 = vector.load %arg1[%c0, %c0_0, %c0_1, %c0_2] : memref<1x16x16x128xbf16, #tpu.memory_space<vmem>>, vector<1x16x16x128xbf16>
    %1 = vector.shape_cast %0 : vector<1x16x16x128xbf16> to vector<16x16x128xbf16>
    %2 = arith.extf %1 : vector<16x16x128xbf16> to vector<16x16x128xf32>
    %c0_3 = arith.constant 0 : index
    %c0_4 = arith.constant 0 : index
    %3 = vector.load %arg2[%c0_3, %c0_4] : memref<1x128xf32, #tpu.memory_space<vmem>>, vector<1x128xf32>
    %4 = vector.shape_cast %3 : vector<1x128xf32> to vector<1x1x128xf32>
    %5 = vector.broadcast %4 : vector<1x1x128xf32> to vector<16x16x128xf32>
    %6 = arith.mulf %2, %5 : vector<16x16x128xf32>
    %c0_5 = arith.constant 0 : index
    %c0_6 = arith.constant 0 : index
    %7 = vector.load %arg3[%c0_5, %c0_6] : memref<1x128xf32, #tpu.memory_space<vmem>>, vector<1x128xf32>
    %8 = vector.shape_cast %7 : vector<1x128xf32> to vector<1x1x128xf32>
    %9 = vector.broadcast %8 : vector<1x1x128xf32> to vector<16x16x128xf32>
    %10 = arith.addf %6, %9 : vector<16x16x128xf32>
    %cst = arith.constant 0.000000e+00 : f32
    %11 = vector.broadcast %cst : f32 to vector<16x16x128xf32>
    %12 = arith.maximumf %10, %11 : vector<16x16x128xf32>
    %cst_7 = arith.constant 0.000000e+00 : f32
    %13 = vector.broadcast %cst_7 : f32 to vector<16x1x128xf32>
    %cst_8 = arith.constant 0.000000e+00 : bf16
    %14 = vector.broadcast %cst_8 : bf16 to vector<18x18x128xbf16>
    %c0_9 = arith.constant 0 : index
    %c0_10 = arith.constant 0 : index
    %c0_11 = arith.constant 0 : index
    %15 = vector.load %arg11[%c0_9, %c0_10, %c0_11] : memref<18x18x128xbf16, #tpu.memory_space<vmem>>, vector<18x18x128xbf16>
    tpu.vector_store %arg11[%c0_9, %c0_10, %c0_11], %14 {strides = array<i32>} : memref<18x18x128xbf16, #tpu.memory_space<vmem>>, vector<18x18x128xbf16>,
    %16 = tpu.concatenate %13, %12, %13 in 1 : vector<16x1x128xf32>, vector<16x16x128xf32>, vector<16x1x128xf32> -> vector<16x18x128xf32>
    %17 = arith.truncf %16 : vector<16x18x128xf32> to vector<16x18x128xbf16>
    %c1 = arith.constant 1 : index
    %c0_12 = arith.constant 0 : index
    %c0_13 = arith.constant 0 : index
    %18 = vector.load %arg11[%c1, %c0_12, %c0_13] : memref<18x18x128xbf16, #tpu.memory_space<vmem>>, vector<16x18x128xbf16>
    tpu.vector_store %arg11[%c1, %c0_12, %c0_13], %17 {strides = array<i32>} : memref<18x18x128xbf16, #tpu.memory_space<vmem>>, vector<16x18x128xbf16>,
    %cst_14 = arith.constant 0.000000e+00 : f32
    %19 = vector.broadcast %cst_14 : f32 to vector<256x128xf32>
    %c0_15 = arith.constant 0 : index
    %c0_16 = arith.constant 0 : index
    %20 = vector.load %arg12[%c0_15, %c0_16] : memref<256x128xf32, #tpu.memory_space<vmem>>, vector<256x128xf32>
    tpu.vector_store %arg12[%c0_15, %c0_16], %19 {strides = array<i32>} : memref<256x128xf32, #tpu.memory_space<vmem>>, vector<256x128xf32>,
    %c0_17 = arith.constant 0 : index
    %c0_18 = arith.constant 0 : index
    %c0_19 = arith.constant 0 : index
    %21 = vector.load %arg11[%c0_17, %c0_18, %c0_19] : memref<18x18x128xbf16, #tpu.memory_space<vmem>>, vector<16x16x128xbf16>
    %c0_20 = arith.constant 0 : index
    %c0_21 = arith.constant 0 : index
    %22 = vector.load %arg12[%c0_20, %c0_21] : memref<256x128xf32, #tpu.memory_space<vmem>>, vector<256x128xf32>
    %23 = vector.shape_cast %21 : vector<16x16x128xbf16> to vector<256x128xbf16>
    %c0_22 = arith.constant 0 : index
    %c0_23 = arith.constant 0 : index
    %c0_24 = arith.constant 0 : index
    %24 = vector.load %arg4[%c0_22, %c0_23, %c0_24] : memref<9x128x128xbf16, #tpu.memory_space<vmem>>, vector<1x128x128xbf16>
    %25 = vector.shape_cast %24 : vector<1x128x128xbf16> to vector<128x128xbf16>
    %cst_25 = arith.constant dense<0.000000e+00> : vector<256x128xf32>
    %26 = tpu.matmul %23, %25, %cst_25 {dimension_numbers = #tpu.dot_dimension_numbers<[1], [0], [0], [1], [0, 0, 1, 1], [], []>} : vector<256x128xbf16>, vector<128x128xbf16>, vector<256x128xf32> -> vector<256x128xf32>
    %27 = arith.addf %22, %26 : vector<256x128xf32>
    %c0_26 = arith.constant 0 : index
    %c0_27 = arith.constant 0 : index
    %28 = vector.load %arg12[%c0_26, %c0_27] : memref<256x128xf32, #tpu.memory_space<vmem>>, vector<256x128xf32>
    tpu.vector_store %arg12[%c0_26, %c0_27], %27 {strides = array<i32>} : memref<256x128xf32, #tpu.memory_space<vmem>>, vector<256x128xf32>,
    %c0_28 = arith.constant 0 : index
    %c1_29 = arith.constant 1 : index
    %c0_30 = arith.constant 0 : index
    %29 = vector.load %arg11[%c0_28, %c1_29, %c0_30] : memref<18x18x128xbf16, #tpu.memory_space<vmem>>, vector<16x16x128xbf16>
    %c0_31 = arith.constant 0 : index
    %c0_32 = arith.constant 0 : index
    %30 = vector.load %arg12[%c0_31, %c0_32] : memref<256x128xf32, #tpu.memory_space<vmem>>, vector<256x128xf32>
    %31 = vector.shape_cast %29 : vector<16x16x128xbf16> to vector<256x128xbf16>
    %c1_33 = arith.constant 1 : index
    %c0_34 = arith.constant 0 : index
    %c0_35 = arith.constant 0 : index
    %32 = vector.load %arg4[%c1_33, %c0_34, %c0_35] : memref<9x128x128xbf16, #tpu.memory_space<vmem>>, vector<1x128x128xbf16>
    %33 = vector.shape_cast %32 : vector<1x128x128xbf16> to vector<128x128xbf16>
    %cst_36 = arith.constant dense<0.000000e+00> : vector<256x128xf32>
    %34 = tpu.matmul %31, %33, %cst_36 {dimension_numbers = #tpu.dot_dimension_numbers<[1], [0], [0], [1], [0, 0, 1, 1], [], []>} : vector<256x128xbf16>, vector<128x128xbf16>, vector<256x128xf32> -> vector<256x128xf32>
    %35 = arith.addf %30, %34 : vector<256x128xf32>
    %c0_37 = arith.constant 0 : index
    %c0_38 = arith.constant 0 : index
    %36 = vector.load %arg12[%c0_37, %c0_38] : memref<256x128xf32, #tpu.memory_space<vmem>>, vector<256x128xf32>
    tpu.vector_store %arg12[%c0_37, %c0_38], %35 {strides = array<i32>} : memref<256x128xf32, #tpu.memory_space<vmem>>, vector<256x128xf32>,
    %c0_39 = arith.constant 0 : index
    %c2 = arith.constant 2 : index
    %c0_40 = arith.constant 0 : index
    %37 = vector.load %arg11[%c0_39, %c2, %c0_40] : memref<18x18x128xbf16, #tpu.memory_space<vmem>>, vector<16x16x128xbf16>
    %c0_41 = arith.constant 0 : index
    %c0_42 = arith.constant 0 : index
    %38 = vector.load %arg12[%c0_41, %c0_42] : memref<256x128xf32, #tpu.memory_space<vmem>>, vector<256x128xf32>
    %39 = vector.shape_cast %37 : vector<16x16x128xbf16> to vector<256x128xbf16>
    %c2_43 = arith.constant 2 : index
    %c0_44 = arith.constant 0 : index
    %c0_45 = arith.constant 0 : index
    %40 = vector.load %arg4[%c2_43, %c0_44, %c0_45] : memref<9x128x128xbf16, #tpu.memory_space<vmem>>, vector<1x128x128xbf16>
    %41 = vector.shape_cast %40 : vector<1x128x128xbf16> to vector<128x128xbf16>
    %cst_46 = arith.constant dense<0.000000e+00> : vector<256x128xf32>
    %42 = tpu.matmul %39, %41, %cst_46 {dimension_numbers = #tpu.dot_dimension_numbers<[1], [0], [0], [1], [0, 0, 1, 1], [], []>} : vector<256x128xbf16>, vector<128x128xbf16>, vector<256x128xf32> -> vector<256x128xf32>
    %43 = arith.addf %38, %42 : vector<256x128xf32>
    %c0_47 = arith.constant 0 : index
    %c0_48 = arith.constant 0 : index
    %44 = vector.load %arg12[%c0_47, %c0_48] : memref<256x128xf32, #tpu.memory_space<vmem>>, vector<256x128xf32>
    tpu.vector_store %arg12[%c0_47, %c0_48], %43 {strides = array<i32>} : memref<256x128xf32, #tpu.memory_space<vmem>>, vector<256x128xf32>,
    %c1_49 = arith.constant 1 : index
    %c0_50 = arith.constant 0 : index
    %c0_51 = arith.constant 0 : index
    %45 = vector.load %arg11[%c1_49, %c0_50, %c0_51] : memref<18x18x128xbf16, #tpu.memory_space<vmem>>, vector<16x16x128xbf16>
    %c0_52 = arith.constant 0 : index
    %c0_53 = arith.constant 0 : index
    %46 = vector.load %arg12[%c0_52, %c0_53] : memref<256x128xf32, #tpu.memory_space<vmem>>, vector<256x128xf32>
    %47 = vector.shape_cast %45 : vector<16x16x128xbf16> to vector<256x128xbf16>
    %c3 = arith.constant 3 : index
    %c0_54 = arith.constant 0 : index
    %c0_55 = arith.constant 0 : index
    %48 = vector.load %arg4[%c3, %c0_54, %c0_55] : memref<9x128x128xbf16, #tpu.memory_space<vmem>>, vector<1x128x128xbf16>
    %49 = vector.shape_cast %48 : vector<1x128x128xbf16> to vector<128x128xbf16>
    %cst_56 = arith.constant dense<0.000000e+00> : vector<256x128xf32>
    %50 = tpu.matmul %47, %49, %cst_56 {dimension_numbers = #tpu.dot_dimension_numbers<[1], [0], [0], [1], [0, 0, 1, 1], [], []>} : vector<256x128xbf16>, vector<128x128xbf16>, vector<256x128xf32> -> vector<256x128xf32>
    %51 = arith.addf %46, %50 : vector<256x128xf32>
    %c0_57 = arith.constant 0 : index
    %c0_58 = arith.constant 0 : index
    %52 = vector.load %arg12[%c0_57, %c0_58] : memref<256x128xf32, #tpu.memory_space<vmem>>, vector<256x128xf32>
    tpu.vector_store %arg12[%c0_57, %c0_58], %51 {strides = array<i32>} : memref<256x128xf32, #tpu.memory_space<vmem>>, vector<256x128xf32>,
    %c1_59 = arith.constant 1 : index
    %c1_60 = arith.constant 1 : index
    %c0_61 = arith.constant 0 : index
    %53 = vector.load %arg11[%c1_59, %c1_60, %c0_61] : memref<18x18x128xbf16, #tpu.memory_space<vmem>>, vector<16x16x128xbf16>
    %c0_62 = arith.constant 0 : index
    %c0_63 = arith.constant 0 : index
    %54 = vector.load %arg12[%c0_62, %c0_63] : memref<256x128xf32, #tpu.memory_space<vmem>>, vector<256x128xf32>
    %55 = vector.shape_cast %53 : vector<16x16x128xbf16> to vector<256x128xbf16>
    %c4 = arith.constant 4 : index
    %c0_64 = arith.constant 0 : index
    %c0_65 = arith.constant 0 : index
    %56 = vector.load %arg4[%c4, %c0_64, %c0_65] : memref<9x128x128xbf16, #tpu.memory_space<vmem>>, vector<1x128x128xbf16>
    %57 = vector.shape_cast %56 : vector<1x128x128xbf16> to vector<128x128xbf16>
    %cst_66 = arith.constant dense<0.000000e+00> : vector<256x128xf32>
    %58 = tpu.matmul %55, %57, %cst_66 {dimension_numbers = #tpu.dot_dimension_numbers<[1], [0], [0], [1], [0, 0, 1, 1], [], []>} : vector<256x128xbf16>, vector<128x128xbf16>, vector<256x128xf32> -> vector<256x128xf32>
    %59 = arith.addf %54, %58 : vector<256x128xf32>
    %c0_67 = arith.constant 0 : index
    %c0_68 = arith.constant 0 : index
    %60 = vector.load %arg12[%c0_67, %c0_68] : memref<256x128xf32, #tpu.memory_space<vmem>>, vector<256x128xf32>
    tpu.vector_store %arg12[%c0_67, %c0_68], %59 {strides = array<i32>} : memref<256x128xf32, #tpu.memory_space<vmem>>, vector<256x128xf32>,
    %c1_69 = arith.constant 1 : index
    %c2_70 = arith.constant 2 : index
    %c0_71 = arith.constant 0 : index
    %61 = vector.load %arg11[%c1_69, %c2_70, %c0_71] : memref<18x18x128xbf16, #tpu.memory_space<vmem>>, vector<16x16x128xbf16>
    %c0_72 = arith.constant 0 : index
    %c0_73 = arith.constant 0 : index
    %62 = vector.load %arg12[%c0_72, %c0_73] : memref<256x128xf32, #tpu.memory_space<vmem>>, vector<256x128xf32>
    %63 = vector.shape_cast %61 : vector<16x16x128xbf16> to vector<256x128xbf16>
    %c5 = arith.constant 5 : index
    %c0_74 = arith.constant 0 : index
    %c0_75 = arith.constant 0 : index
    %64 = vector.load %arg4[%c5, %c0_74, %c0_75] : memref<9x128x128xbf16, #tpu.memory_space<vmem>>, vector<1x128x128xbf16>
    %65 = vector.shape_cast %64 : vector<1x128x128xbf16> to vector<128x128xbf16>
    %cst_76 = arith.constant dense<0.000000e+00> : vector<256x128xf32>
    %66 = tpu.matmul %63, %65, %cst_76 {dimension_numbers = #tpu.dot_dimension_numbers<[1], [0], [0], [1], [0, 0, 1, 1], [], []>} : vector<256x128xbf16>, vector<128x128xbf16>, vector<256x128xf32> -> vector<256x128xf32>
    %67 = arith.addf %62, %66 : vector<256x128xf32>
    %c0_77 = arith.constant 0 : index
    %c0_78 = arith.constant 0 : index
    %68 = vector.load %arg12[%c0_77, %c0_78] : memref<256x128xf32, #tpu.memory_space<vmem>>, vector<256x128xf32>
    tpu.vector_store %arg12[%c0_77, %c0_78], %67 {strides = array<i32>} : memref<256x128xf32, #tpu.memory_space<vmem>>, vector<256x128xf32>,
    %c2_79 = arith.constant 2 : index
    %c0_80 = arith.constant 0 : index
    %c0_81 = arith.constant 0 : index
    %69 = vector.load %arg11[%c2_79, %c0_80, %c0_81] : memref<18x18x128xbf16, #tpu.memory_space<vmem>>, vector<16x16x128xbf16>
    %c0_82 = arith.constant 0 : index
    %c0_83 = arith.constant 0 : index
    %70 = vector.load %arg12[%c0_82, %c0_83] : memref<256x128xf32, #tpu.memory_space<vmem>>, vector<256x128xf32>
    %71 = vector.shape_cast %69 : vector<16x16x128xbf16> to vector<256x128xbf16>
    %c6 = arith.constant 6 : index
    %c0_84 = arith.constant 0 : index
    %c0_85 = arith.constant 0 : index
    %72 = vector.load %arg4[%c6, %c0_84, %c0_85] : memref<9x128x128xbf16, #tpu.memory_space<vmem>>, vector<1x128x128xbf16>
    %73 = vector.shape_cast %72 : vector<1x128x128xbf16> to vector<128x128xbf16>
    %cst_86 = arith.constant dense<0.000000e+00> : vector<256x128xf32>
    %74 = tpu.matmul %71, %73, %cst_86 {dimension_numbers = #tpu.dot_dimension_numbers<[1], [0], [0], [1], [0, 0, 1, 1], [], []>} : vector<256x128xbf16>, vector<128x128xbf16>, vector<256x128xf32> -> vector<256x128xf32>
    %75 = arith.addf %70, %74 : vector<256x128xf32>
    %c0_87 = arith.constant 0 : index
    %c0_88 = arith.constant 0 : index
    %76 = vector.load %arg12[%c0_87, %c0_88] : memref<256x128xf32, #tpu.memory_space<vmem>>, vector<256x128xf32>
    tpu.vector_store %arg12[%c0_87, %c0_88], %75 {strides = array<i32>} : memref<256x128xf32, #tpu.memory_space<vmem>>, vector<256x128xf32>,
    %c2_89 = arith.constant 2 : index
    %c1_90 = arith.constant 1 : index
    %c0_91 = arith.constant 0 : index
    %77 = vector.load %arg11[%c2_89, %c1_90, %c0_91] : memref<18x18x128xbf16, #tpu.memory_space<vmem>>, vector<16x16x128xbf16>
    %c0_92 = arith.constant 0 : index
    %c0_93 = arith.constant 0 : index
    %78 = vector.load %arg12[%c0_92, %c0_93] : memref<256x128xf32, #tpu.memory_space<vmem>>, vector<256x128xf32>
    %79 = vector.shape_cast %77 : vector<16x16x128xbf16> to vector<256x128xbf16>
    %c7 = arith.constant 7 : index
    %c0_94 = arith.constant 0 : index
    %c0_95 = arith.constant 0 : index
    %80 = vector.load %arg4[%c7, %c0_94, %c0_95] : memref<9x128x128xbf16, #tpu.memory_space<vmem>>, vector<1x128x128xbf16>
    %81 = vector.shape_cast %80 : vector<1x128x128xbf16> to vector<128x128xbf16>
    %cst_96 = arith.constant dense<0.000000e+00> : vector<256x128xf32>
    %82 = tpu.matmul %79, %81, %cst_96 {dimension_numbers = #tpu.dot_dimension_numbers<[1], [0], [0], [1], [0, 0, 1, 1], [], []>} : vector<256x128xbf16>, vector<128x128xbf16>, vector<256x128xf32> -> vector<256x128xf32>
    %83 = arith.addf %78, %82 : vector<256x128xf32>
    %c0_97 = arith.constant 0 : index
    %c0_98 = arith.constant 0 : index
    %84 = vector.load %arg12[%c0_97, %c0_98] : memref<256x128xf32, #tpu.memory_space<vmem>>, vector<256x128xf32>
    tpu.vector_store %arg12[%c0_97, %c0_98], %83 {strides = array<i32>} : memref<256x128xf32, #tpu.memory_space<vmem>>, vector<256x128xf32>,
    %c2_99 = arith.constant 2 : index
    %c2_100 = arith.constant 2 : index
    %c0_101 = arith.constant 0 : index
    %85 = vector.load %arg11[%c2_99, %c2_100, %c0_101] : memref<18x18x128xbf16, #tpu.memory_space<vmem>>, vector<16x16x128xbf16>
    %c0_102 = arith.constant 0 : index
    %c0_103 = arith.constant 0 : index
    %86 = vector.load %arg12[%c0_102, %c0_103] : memref<256x128xf32, #tpu.memory_space<vmem>>, vector<256x128xf32>
    %87 = vector.shape_cast %85 : vector<16x16x128xbf16> to vector<256x128xbf16>
    %c8 = arith.constant 8 : index
    %c0_104 = arith.constant 0 : index
    %c0_105 = arith.constant 0 : index
    %88 = vector.load %arg4[%c8, %c0_104, %c0_105] : memref<9x128x128xbf16, #tpu.memory_space<vmem>>, vector<1x128x128xbf16>
    %89 = vector.shape_cast %88 : vector<1x128x128xbf16> to vector<128x128xbf16>
    %cst_106 = arith.constant dense<0.000000e+00> : vector<256x128xf32>
    %90 = tpu.matmul %87, %89, %cst_106 {dimension_numbers = #tpu.dot_dimension_numbers<[1], [0], [0], [1], [0, 0, 1, 1], [], []>} : vector<256x128xbf16>, vector<128x128xbf16>, vector<256x128xf32> -> vector<256x128xf32>
    %91 = arith.addf %86, %90 : vector<256x128xf32>
    %c0_107 = arith.constant 0 : index
    %c0_108 = arith.constant 0 : index
    %92 = vector.load %arg12[%c0_107, %c0_108] : memref<256x128xf32, #tpu.memory_space<vmem>>, vector<256x128xf32>
    tpu.vector_store %arg12[%c0_107, %c0_108], %91 {strides = array<i32>} : memref<256x128xf32, #tpu.memory_space<vmem>>, vector<256x128xf32>,
    %c0_109 = arith.constant 0 : index
    %c0_110 = arith.constant 0 : index
    %93 = vector.load %arg12[%c0_109, %c0_110] : memref<256x128xf32, #tpu.memory_space<vmem>>, vector<256x128xf32>
    %94 = vector.shape_cast %93 : vector<256x128xf32> to vector<16x16x128xf32>
    %95 = arith.truncf %94 : vector<16x16x128xf32> to vector<16x16x128xbf16>
    %c0_111 = arith.constant 0 : index
    %c0_112 = arith.constant 0 : index
    %c0_113 = arith.constant 0 : index
    %c0_114 = arith.constant 0 : index
    %96 = vector.load %arg7[%c0_111, %c0_112, %c0_113, %c0_114] : memref<1x16x16x128xbf16, #tpu.memory_space<vmem>>, vector<1x16x16x128xbf16>
    %97 = vector.shape_cast %96 : vector<1x16x16x128xbf16> to vector<16x16x128xbf16>
    %98 = vector.shape_cast %95 : vector<16x16x128xbf16> to vector<1x16x16x128xbf16>
    tpu.vector_store %arg7[%c0_111, %c0_112, %c0_113, %c0_114], %98 {strides = array<i32>} : memref<1x16x16x128xbf16, #tpu.memory_space<vmem>>, vector<1x16x16x128xbf16>,
    %cst_115 = arith.constant dense<0.000000e+00> : vector<128xf32>
    %99 = vector.multi_reduction <add>, %93, %cst_115 [0] : vector<256x128xf32> to vector<128xf32>
    %100 = vector.shape_cast %99 : vector<128xf32> to vector<1x128xf32>
    %101 = arith.mulf %93, %93 : vector<256x128xf32>
    %cst_116 = arith.constant dense<0.000000e+00> : vector<128xf32>
    %102 = vector.multi_reduction <add>, %101, %cst_116 [0] : vector<256x128xf32> to vector<128xf32>
    %103 = vector.shape_cast %102 : vector<128xf32> to vector<1x128xf32>
    %cst_117 = arith.constant 0.000000e+00 : f32
    %104 = vector.broadcast %cst_117 : f32 to vector<6x128xf32>
    %105 = tpu.concatenate %100, %103, %104 in 0 : vector<1x128xf32>, vector<1x128xf32>, vector<6x128xf32> -> vector<8x128xf32>
    %c0_118 = arith.constant 0 : index
    %c0_119 = arith.constant 0 : index
    %106 = vector.load %arg8[%c0_118, %c0_119] : memref<8x128xf32, #tpu.memory_space<vmem>>, vector<8x128xf32>
    tpu.vector_store %arg8[%c0_118, %c0_119], %105 {strides = array<i32>} : memref<8x128xf32, #tpu.memory_space<vmem>>, vector<8x128xf32>,
    %c0_120 = arith.constant 0 : index
    %c0_121 = arith.constant 0 : index
    %c0_122 = arith.constant 0 : index
    %c0_123 = arith.constant 0 : index
    %107 = vector.load %arg5[%c0_120, %c0_121, %c0_122, %c0_123] : memref<1x16x16x4xbf16, #tpu.memory_space<vmem>>, vector<1x16x16x4xbf16>
    %108 = vector.shape_cast %107 : vector<1x16x16x4xbf16> to vector<16x16x4xbf16>
    %109 = vector.shape_cast %108 : vector<16x16x4xbf16> to vector<256x4xbf16>
    %c0_124 = arith.constant 0 : index
    %c0_125 = arith.constant 0 : index
    %110 = vector.load %arg6[%c0_124, %c0_125] : memref<4x128xbf16, #tpu.memory_space<vmem>>, vector<4x128xbf16>
    %cst_126 = arith.constant dense<0.000000e+00> : vector<256x128xf32>
    %111 = tpu.matmul %109, %110, %cst_126 {dimension_numbers = #tpu.dot_dimension_numbers<[1], [0], [0], [1], [0, 0, 1, 1], [], []>} : vector<256x4xbf16>, vector<4x128xbf16>, vector<256x128xf32> -> vector<256x128xf32>
    %112 = vector.shape_cast %111 : vector<256x128xf32> to vector<16x16x128xf32>
    %113 = arith.truncf %112 : vector<16x16x128xf32> to vector<16x16x128xbf16>
    %c0_127 = arith.constant 0 : index
    %c0_128 = arith.constant 0 : index
    %c0_129 = arith.constant 0 : index
    %c0_130 = arith.constant 0 : index
    %114 = vector.load %arg9[%c0_127, %c0_128, %c0_129, %c0_130] : memref<1x16x16x128xbf16, #tpu.memory_space<vmem>>, vector<1x16x16x128xbf16>
    %115 = vector.shape_cast %114 : vector<1x16x16x128xbf16> to vector<16x16x128xbf16>
    %116 = vector.shape_cast %113 : vector<16x16x128xbf16> to vector<1x16x16x128xbf16>
    tpu.vector_store %arg9[%c0_127, %c0_128, %c0_129, %c0_130], %116 {strides = array<i32>} : memref<1x16x16x128xbf16, #tpu.memory_space<vmem>>, vector<1x16x16x128xbf16>,
    %cst_131 = arith.constant dense<0.000000e+00> : vector<128xf32>
    %117 = vector.multi_reduction <add>, %111, %cst_131 [0] : vector<256x128xf32> to vector<128xf32>
    %118 = vector.shape_cast %117 : vector<128xf32> to vector<1x128xf32>
    %119 = arith.mulf %111, %111 : vector<256x128xf32>
    %cst_132 = arith.constant dense<0.000000e+00> : vector<128xf32>
    %120 = vector.multi_reduction <add>, %119, %cst_132 [0] : vector<256x128xf32> to vector<128xf32>
    %121 = vector.shape_cast %120 : vector<128xf32> to vector<1x128xf32>
    %cst_133 = arith.constant 0.000000e+00 : f32
    %122 = vector.broadcast %cst_133 : f32 to vector<6x128xf32>
    %123 = tpu.concatenate %118, %121, %122 in 0 : vector<1x128xf32>, vector<1x128xf32>, vector<6x128xf32> -> vector<8x128xf32>
    %c0_134 = arith.constant 0 : index
    %c0_135 = arith.constant 0 : index
    %124 = vector.load %arg10[%c0_134, %c0_135] : memref<8x128xf32, #tpu.memory_space<vmem>>, vector<8x128xf32>
    tpu.vector_store %arg10[%c0_134, %c0_135], %123 {strides = array<i32>} : memref<8x128xf32, #tpu.memory_space<vmem>>, vector<8x128xf32>,
    return
  }
  func.func @transform_0(%arg0: i32) -> (i32, i32, i32, i32) {
    %c0_i32 = arith.constant 0 : i32
    %c0_i32_0 = arith.constant 0 : i32
    %c0_i32_1 = arith.constant 0 : i32
    %c0_i32_2 = arith.constant 0 : i32
    return %arg0, %c0_i32, %c0_i32_0, %c0_i32_1 : i32, i32, i32, i32
  }
  func.func @transform_1(%arg0: i32) -> (i32, i32) {
    %c0_i32 = arith.constant 0 : i32
    %c0_i32_0 = arith.constant 0 : i32
    %c0_i32_1 = arith.constant 0 : i32
    return %c0_i32, %c0_i32_0 : i32, i32
  }
  func.func @transform_2(%arg0: i32) -> (i32, i32) {
    %c0_i32 = arith.constant 0 : i32
    %c0_i32_0 = arith.constant 0 : i32
    %c0_i32_1 = arith.constant 0 : i32
    return %c0_i32, %c0_i32_0 : i32, i32
  }
  func.func @transform_3(%arg0: i32) -> (i32, i32, i32) {
    %c0_i32 = arith.constant 0 : i32
    %c0_i32_0 = arith.constant 0 : i32
    %c0_i32_1 = arith.constant 0 : i32
    %c0_i32_2 = arith.constant 0 : i32
    return %c0_i32, %c0_i32_0, %c0_i32_1 : i32, i32, i32
  }
  func.func @transform_4(%arg0: i32) -> (i32, i32, i32, i32) {
    %c0_i32 = arith.constant 0 : i32
    %c0_i32_0 = arith.constant 0 : i32
    %c0_i32_1 = arith.constant 0 : i32
    %c0_i32_2 = arith.constant 0 : i32
    return %arg0, %c0_i32, %c0_i32_0, %c0_i32_1 : i32, i32, i32, i32
  }
  func.func @transform_5(%arg0: i32) -> (i32, i32) {
    %c0_i32 = arith.constant 0 : i32
    %c0_i32_0 = arith.constant 0 : i32
    %c0_i32_1 = arith.constant 0 : i32
    return %c0_i32, %c0_i32_0 : i32, i32
  }
  func.func @transform_6(%arg0: i32) -> (i32, i32, i32, i32) {
    %c0_i32 = arith.constant 0 : i32
    %c0_i32_0 = arith.constant 0 : i32
    %c0_i32_1 = arith.constant 0 : i32
    %c0_i32_2 = arith.constant 0 : i32
    return %arg0, %c0_i32, %c0_i32_0, %c0_i32_1 : i32, i32, i32, i32
  }
  func.func @transform_7(%arg0: i32) -> (i32, i32) {
    %c0_i32 = arith.constant 0 : i32
    %c0_i32_0 = arith.constant 0 : i32
    return %arg0, %c0_i32 : i32, i32
  }
  func.func @transform_8(%arg0: i32) -> (i32, i32, i32, i32) {
    %c0_i32 = arith.constant 0 : i32
    %c0_i32_0 = arith.constant 0 : i32
    %c0_i32_1 = arith.constant 0 : i32
    %c0_i32_2 = arith.constant 0 : i32
    return %arg0, %c0_i32, %c0_i32_0, %c0_i32_1 : i32, i32, i32, i32
  }
  func.func @transform_9(%arg0: i32) -> (i32, i32) {
    %c0_i32 = arith.constant 0 : i32
    %c0_i32_0 = arith.constant 0 : i32
    return %arg0, %c0_i32 : i32, i32
  }
}

</mosaic_0001>

<bundles_post_ra>
// kernel: basic_block_forward.5
= control target key start
LH: loop header
LB: loop body
LE: loop exit
PB: predicated region body
PF: predicated region fallthrough
CT: control target
= control target key end

     0   :  { %s949_s21 = smov 0   ;;  %s1223_s0 = inlined_call_operand.vmem [shape: bf16[2,16,16,128], index: 0, kind: input, shape index: {}]   ;;  %s1224_s1 = inlined_call_operand.vmem [shape: f32[1,128], index: 1, kind: input, shape index: {}]   ;;  %s1225_s2 = inlined_call_operand.vmem [shape: f32[1,128], index: 2, kind: input, shape index: {}]   ;;  %s1226_s3 = inlined_call_operand.vmem [shape: bf16[2,16,16,128], index: 3, kind: input, shape index: {}]   ;;  %s1227_s4 = inlined_call_operand.vmem [shape: f32[1,128], index: 4, kind: input, shape index: {}]   ;;  %s1228_s5 = inlined_call_operand.vmem [shape: f32[1,128], index: 5, kind: input, shape index: {}]   ;;  %s1229_s6 = inlined_call_operand.vmem [shape: f32[2,16,16,8], index: 6, kind: output, shape index: {}]  }
   0x1 LB: > { %s720_s22 = sadd.s32 4294967295, %s912_s21   ;;  %p724_p0 = scmp.ge.s32.totalorder %s912_s21, 1  ;;  %s912_s21 = sphi %s949_s21, %s16_s21  }
   0x2   : > { %p222_p1 = scmp.lt.s32.totalorder %s912_s21, 3 }
   0x4   : > { %p223_p2 = pnand %p724_p0, %p222_p1 }
   0x5   : > { %p257_p3 = scmp.lt.s32.totalorder (!%p223_p2), %s720_s22, 1  ;;  %v973_v0 = vld [vmem:[%s1224_s1] ss:$0 sm:$0xff] (!%p223_p2)  ;;  %vm620_vm0 = vcmask (!%p223_p2), 64512  }
   0x6   : > { %226 = sbr.rel (%p223_p2) target bundleno = 89 (0x59), region = 44  ;;  %v978_v1 = vld [vmem:[%s1227_s4] ss:$0 sm:$0xff] (!%p223_p2) }
   0x7   : > { %v987_v10 = vld [vmem:[%s1225_s2] ss:$0 sm:$0xff] (!%p223_p2) }
   0x8   : > { %v1004_v29 = vld [vmem:[%s1228_s5] ss:$0 sm:$0xff] (!%p223_p2) }
   0xd   : > { %s1231_s22 = smov (!%p257_p3, %s720_s22), 1 }
   0xe   : > { %s737_s23 = sshll.u32 %s1231_s22, 7  ;;  %s739_s14 = sshll.u32 %s1231_s22, 8 }
   0xf   : > { %s963_s26 = scalar_lea.vmem %s1223_s0, %s737_s23  ;;  %s968_s29 = scalar_lea.vmem %s1226_s3, %s737_s23 }
  0x10   : > { %v741_v2 = vld [vmem:[%s963_s26] sm:$0xff]   ;;  %v868_v4 = vld [vmem:[%s963_s26 + $0x8] sm:$0xff]   ;;  %v869_v15 = vld [vmem:[%s963_s26 + $0x10] sm:$0xff]   ;;  %s1021_s17 = scalar_lea.vmem %s1229_s6, %s739_s14 }
  0x11   : > { %v805_v3 = vld [vmem:[%s968_s29] sm:$0xff]   ;;  %v742_v5 = vunpack.c.l.bf16 %v741_v2  ;;  %v743_v7 = vunpack.c.h.bf16 %v741_v2  ;;  %v883_v9 = vld [vmem:[%s968_s29 + $0x8] sm:$0xff]   ;;  %v746_v11 = vunpack.c.l.bf16 %v868_v4  ;;  %v747_v13 = vunpack.c.h.bf16 %v868_v4  ;;  %v884_v16 = vld [vmem:[%s968_s29 + $0x10] sm:$0xff]  }
  0x12   : > { %v806_v6 = vunpack.c.l.bf16 %v805_v3  ;;  %v807_v8 = vunpack.c.h.bf16 %v805_v3  ;;  %v810_v12 = vunpack.c.l.bf16 %v883_v9  ;;  %v811_v14 = vunpack.c.h.bf16 %v883_v9  ;;  %v870_v34 = vld [vmem:[%s963_s26 + $0x18] sm:$0xff]   ;;  %v871_v56 = vld [vmem:[%s963_s26 + $0x20] sm:$0xff]  }
  0x13   : > { %v343_v17 = vmul.f32 %v742_v5, %v973_v0  ;;  %v344_v19 = vmul.f32 %v743_v7, %v973_v0  ;;  %v345_v21 = vmul.f32 %v746_v11, %v973_v0  ;;  %v346_v23 = vmul.f32 %v747_v13, %v973_v0  ;;  %v885_v39 = vld [vmem:[%s968_s29 + $0x18] sm:$0xff]   ;;  %v886_v57 = vld [vmem:[%s968_s29 + $0x20] sm:$0xff]  }
  0x14   : > { %v485_v18 = vmul.f32 %v806_v6, %v978_v1  ;;  %v486_v20 = vmul.f32 %v807_v8, %v978_v1  ;;  %v487_v22 = vmul.f32 %v810_v12, %v978_v1  ;;  %v488_v24 = vmul.f32 %v811_v14, %v978_v1  ;;  %v872_v8 = vld [vmem:[%s963_s26 + $0x28] sm:$0xff]  }
  0x15   : > { %v382_v25 = vadd.f32 %v987_v10, %v343_v17  ;;  %v383_v26 = vadd.f32 %v987_v10, %v344_v19  ;;  %v750_v27 = vunpack.c.l.bf16 %v869_v15  ;;  %v814_v28 = vunpack.c.l.bf16 %v884_v16  ;;  %v887_v14 = vld [vmem:[%s968_s29 + $0x28] sm:$0xff]  }
  0x16   : > { %v384_v30 = vadd.f32 %v987_v10, %v345_v21  ;;  %v385_v31 = vadd.f32 %v987_v10, %v346_v23  ;;  %v751_v32 = vunpack.c.h.bf16 %v869_v15  ;;  %v815_v33 = vunpack.c.h.bf16 %v884_v16 }
  0x17   : > { %v517_v35 = vadd.f32 %v485_v18, %v382_v25  ;;  %v518_v36 = vadd.f32 %v486_v20, %v383_v26  ;;  %v347_v37 = vmul.f32 %v750_v27, %v973_v0  ;;  %v489_v38 = vmul.f32 %v814_v28, %v978_v1  ;;  %v873_v27 = vld [vmem:[%s963_s26 + $0x30] sm:$0xff]  }
  0x18   : > { %v519_v40 = vadd.f32 %v487_v22, %v384_v30  ;;  %v520_v41 = vadd.f32 %v488_v24, %v385_v31  ;;  %v348_v42 = vmul.f32 %v751_v32, %v973_v0  ;;  %v490_v43 = vmul.f32 %v815_v33, %v978_v1  ;;  %v888_v33 = vld [vmem:[%s968_s29 + $0x30] sm:$0xff]  }
  0x19   : > { %v556_v44 = vadd.f32 %v1004_v29, %v517_v35  ;;  %v557_v45 = vadd.f32 %v1004_v29, %v518_v36  ;;  %v386_v46 = vadd.f32 %v987_v10, %v347_v37  ;;  %v754_v47 = vunpack.c.l.bf16 %v870_v34 }
  0x1a   : > { %v558_v48 = vadd.f32 %v1004_v29, %v519_v40  ;;  %v559_v49 = vadd.f32 %v1004_v29, %v520_v41  ;;  %v387_v50 = vadd.f32 %v987_v10, %v348_v42  ;;  %v818_v51 = vunpack.c.l.bf16 %v885_v39 }
  0x1b   : > { %v588_v52 = vmax.f32 %v556_v44, 0.0  ;;  %v589_v53 = vmax.f32 %v557_v45, 0.0  ;;  %v521_v54 = vadd.f32 %v489_v38, %v386_v46  ;;  %v349_v55 = vmul.f32 %v754_v47, %v973_v0 }
  0x1c   : > { %v590_v58 = vmax.f32 %v558_v48, 0.0  ;;  %v591_v59 = vmax.f32 %v559_v49, 0.0  ;;  %v522_v60 = vadd.f32 %v490_v43, %v387_v50  ;;  %v491_v61 = vmul.f32 %v818_v51, %v978_v1  ;;  %v874_v50 = vld [vmem:[%s963_s26 + $0x38] sm:$0xff]  }
  0x1d   : > { %621 = vst.msk [vmem:[%s1021_s17] sm:$0xff] %vm620_vm0, %v588_v52  ;;  %622 = vst.msk [vmem:[%s1021_s17 + $0x8] sm:$0xff] %vm620_vm0, %v589_v53  ;;  %v560_v62 = vadd.f32 %v1004_v29, %v521_v54  ;;  %v388_v63 = vadd.f32 %v987_v10, %v349_v55  ;;  %v755_v2 = vunpack.c.h.bf16 %v870_v34  ;;  %v819_v3 = vunpack.c.h.bf16 %v885_v39  ;;  %v889_v51 = vld [vmem:[%s968_s29 + $0x38] sm:$0xff]  }
  0x1e   : > { %623 = vst.msk [vmem:[%s1021_s17 + $0x10] sm:$0xff] %vm620_vm0, %v590_v58  ;;  %624 = vst.msk [vmem:[%s1021_s17 + $0x18] sm:$0xff] %vm620_vm0, %v591_v59  ;;  %v561_v4 = vadd.f32 %v1004_v29, %v522_v60  ;;  %v758_v5 = vunpack.c.l.bf16 %v871_v56  ;;  %v822_v6 = vunpack.c.l.bf16 %v886_v57  ;;  %v759_v7 = vunpack.c.h.bf16 %v871_v56 }
  0x1f   : > { %v592_v9 = vmax.f32 %v560_v62, 0.0  ;;  %v523_v11 = vadd.f32 %v491_v61, %v388_v63  ;;  %v350_v12 = vmul.f32 %v755_v2, %v973_v0  ;;  %v492_v13 = vmul.f32 %v819_v3, %v978_v1  ;;  %v875_v2 = vld [vmem:[%s963_s26 + $0x40] sm:$0xff]  }
  0x20   : > { %v593_v15 = vmax.f32 %v561_v4, 0.0  ;;  %v351_v16 = vmul.f32 %v758_v5, %v973_v0  ;;  %v493_v17 = vmul.f32 %v822_v6, %v978_v1  ;;  %v352_v18 = vmul.f32 %v759_v7, %v973_v0  ;;  %v890_v7 = vld [vmem:[%s968_s29 + $0x40] sm:$0xff]  }
  0x21   : > { %625 = vst.msk [vmem:[%s1021_s17 + $0x20] sm:$0xff] %vm620_vm0, %v592_v9  ;;  %v562_v19 = vadd.f32 %v1004_v29, %v523_v11  ;;  %v389_v20 = vadd.f32 %v987_v10, %v350_v12  ;;  %v823_v21 = vunpack.c.h.bf16 %v886_v57  ;;  %v762_v22 = vunpack.c.l.bf16 %v872_v8 }
  0x22   : > { %626 = vst.msk [vmem:[%s1021_s17 + $0x28] sm:$0xff] %vm620_vm0, %v593_v15  ;;  %v390_v23 = vadd.f32 %v987_v10, %v351_v16  ;;  %v391_v24 = vadd.f32 %v987_v10, %v352_v18  ;;  %v826_v25 = vunpack.c.l.bf16 %v887_v14  ;;  %v763_v26 = vunpack.c.h.bf16 %v872_v8 }
  0x23   : > { %v594_v28 = vmax.f32 %v562_v19, 0.0  ;;  %v524_v30 = vadd.f32 %v492_v13, %v389_v20  ;;  %v494_v31 = vmul.f32 %v823_v21, %v978_v1  ;;  %v353_v32 = vmul.f32 %v762_v22, %v973_v0  ;;  %v876_v21 = vld [vmem:[%s963_s26 + $0x48] sm:$0xff]  }
  0x24   : > { %v525_v34 = vadd.f32 %v493_v17, %v390_v23  ;;  %v495_v35 = vmul.f32 %v826_v25, %v978_v1  ;;  %v354_v36 = vmul.f32 %v763_v26, %v973_v0  ;;  %v827_v37 = vunpack.c.h.bf16 %v887_v14  ;;  %v891_v26 = vld [vmem:[%s968_s29 + $0x48] sm:$0xff]  }
  0x25   : > { %627 = vst.msk [vmem:[%s1021_s17 + $0x30] sm:$0xff] %vm620_vm0, %v594_v28  ;;  %v563_v38 = vadd.f32 %v1004_v29, %v524_v30  ;;  %v526_v39 = vadd.f32 %v494_v31, %v391_v24  ;;  %v392_v40 = vadd.f32 %v987_v10, %v353_v32  ;;  %v766_v41 = vunpack.c.l.bf16 %v873_v27 }
  0x26   : > { %v564_v42 = vadd.f32 %v1004_v29, %v525_v34  ;;  %v393_v43 = vadd.f32 %v987_v10, %v354_v36  ;;  %v496_v44 = vmul.f32 %v827_v37, %v978_v1  ;;  %v830_v45 = vunpack.c.l.bf16 %v888_v33 }
  0x27   : > { %v595_v46 = vmax.f32 %v563_v38, 0.0  ;;  %v565_v47 = vadd.f32 %v1004_v29, %v526_v39  ;;  %v527_v48 = vadd.f32 %v495_v35, %v392_v40  ;;  %v355_v49 = vmul.f32 %v766_v41, %v973_v0 }
  0x28   : > { %v596_v52 = vmax.f32 %v564_v42, 0.0  ;;  %v528_v53 = vadd.f32 %v496_v44, %v393_v43  ;;  %v497_v54 = vmul.f32 %v830_v45, %v978_v1  ;;  %v767_v55 = vunpack.c.h.bf16 %v873_v27  ;;  %v877_v44 = vld [vmem:[%s963_s26 + $0x50] sm:$0xff]  }
  0x29   : > { %628 = vst.msk [vmem:[%s1021_s17 + $0x38] sm:$0xff] %vm620_vm0, %v595_v46  ;;  %v597_v56 = vmax.f32 %v565_v47, 0.0  ;;  %v566_v57 = vadd.f32 %v1004_v29, %v527_v48  ;;  %v394_v58 = vadd.f32 %v987_v10, %v355_v49  ;;  %v831_v59 = vunpack.c.h.bf16 %v888_v33  ;;  %v892_v45 = vld [vmem:[%s968_s29 + $0x50] sm:$0xff]  }
  0x2a   : > { %629 = vst.msk [vmem:[%s1021_s17 + $0x40] sm:$0xff] %vm620_vm0, %v596_v52  ;;  %v567_v60 = vadd.f32 %v1004_v29, %v528_v53  ;;  %v356_v61 = vmul.f32 %v767_v55, %v973_v0  ;;  %v770_v62 = vunpack.c.l.bf16 %v874_v50  ;;  %v834_v63 = vunpack.c.l.bf16 %v889_v51 }
  0x2b   : > { %630 = vst.msk [vmem:[%s1021_s17 + $0x48] sm:$0xff] %vm620_vm0, %v597_v56  ;;  %v598_v3 = vmax.f32 %v566_v57, 0.0  ;;  %v529_v4 = vadd.f32 %v497_v54, %v394_v58  ;;  %v498_v5 = vmul.f32 %v831_v59, %v978_v1  ;;  %v771_v6 = vunpack.c.h.bf16 %v874_v50  ;;  %v878_v58 = vld [vmem:[%s963_s26 + $0x58] sm:$0xff]  }
  0x2c   : > { %v599_v8 = vmax.f32 %v567_v60, 0.0  ;;  %v395_v9 = vadd.f32 %v987_v10, %v356_v61  ;;  %v357_v11 = vmul.f32 %v770_v62, %v973_v0  ;;  %v499_v12 = vmul.f32 %v834_v63, %v978_v1  ;;  %v893_v63 = vld [vmem:[%s968_s29 + $0x58] sm:$0xff]  }
  0x2d   : > { %631 = vst.msk [vmem:[%s1021_s17 + $0x50] sm:$0xff] %vm620_vm0, %v598_v3  ;;  %v568_v13 = vadd.f32 %v1004_v29, %v529_v4  ;;  %v358_v14 = vmul.f32 %v771_v6, %v973_v0  ;;  %v835_v15 = vunpack.c.h.bf16 %v889_v51  ;;  %v774_v16 = vunpack.c.l.bf16 %v875_v2 }
  0x2e   : > { %632 = vst.msk [vmem:[%s1021_s17 + $0x58] sm:$0xff] %vm620_vm0, %v599_v8  ;;  %v530_v17 = vadd.f32 %v498_v5, %v395_v9  ;;  %v396_v18 = vadd.f32 %v987_v10, %v357_v11  ;;  %v838_v19 = vunpack.c.l.bf16 %v890_v7  ;;  %v775_v20 = vunpack.c.h.bf16 %v875_v2 }
  0x2f   : > { %v600_v22 = vmax.f32 %v568_v13, 0.0  ;;  %v397_v23 = vadd.f32 %v987_v10, %v358_v14  ;;  %v500_v24 = vmul.f32 %v835_v15, %v978_v1  ;;  %v359_v25 = vmul.f32 %v774_v16, %v973_v0  ;;  %v879_v15 = vld [vmem:[%s963_s26 + $0x60] sm:$0xff]  }
  0x30   : > { %v569_v27 = vadd.f32 %v1004_v29, %v530_v17  ;;  %v531_v28 = vadd.f32 %v499_v12, %v396_v18  ;;  %v501_v30 = vmul.f32 %v838_v19, %v978_v1  ;;  %v360_v31 = vmul.f32 %v775_v20, %v973_v0  ;;  %v894_v20 = vld [vmem:[%s968_s29 + $0x60] sm:$0xff]  }
  0x31   : > { %633 = vst.msk [vmem:[%s1021_s17 + $0x60] sm:$0xff] %vm620_vm0, %v600_v22  ;;  %v532_v32 = vadd.f32 %v500_v24, %v397_v23  ;;  %v398_v33 = vadd.f32 %v987_v10, %v359_v25  ;;  %v839_v34 = vunpack.c.h.bf16 %v890_v7  ;;  %v778_v35 = vunpack.c.l.bf16 %v876_v21 }
  0x32   : > { %v601_v36 = vmax.f32 %v569_v27, 0.0  ;;  %v570_v37 = vadd.f32 %v1004_v29, %v531_v28  ;;  %v399_v38 = vadd.f32 %v987_v10, %v360_v31  ;;  %v842_v39 = vunpack.c.l.bf16 %v891_v26 }
  0x33   : > { %v571_v40 = vadd.f32 %v1004_v29, %v532_v32  ;;  %v533_v41 = vadd.f32 %v501_v30, %v398_v33  ;;  %v502_v42 = vmul.f32 %v839_v34, %v978_v1  ;;  %v361_v43 = vmul.f32 %v778_v35, %v973_v0 }
  0x34   : > { %634 = vst.msk [vmem:[%s1021_s17 + $0x68] sm:$0xff] %vm620_vm0, %v601_v36  ;;  %v602_v46 = vmax.f32 %v570_v37, 0.0  ;;  %v503_v47 = vmul.f32 %v842_v39, %v978_v1  ;;  %v779_v48 = vunpack.c.h.bf16 %v876_v21  ;;  %v843_v49 = vunpack.c.h.bf16 %v891_v26  ;;  %v895_v39 = vld [vmem:[%s968_s29 + $0x68] sm:$0xff]  }
  0x35   : > { %v603_v50 = vmax.f32 %v571_v40, 0.0  ;;  %v572_v51 = vadd.f32 %v1004_v29, %v533_v41  ;;  %v534_v52 = vadd.f32 %v502_v42, %v399_v38  ;;  %v400_v53 = vadd.f32 %v987_v10, %v361_v43  ;;  %v880_v38 = vld [vmem:[%s963_s26 + $0x68] sm:$0xff]  }
  0x36   : > { %635 = vst.msk [vmem:[%s1021_s17 + $0x70] sm:$0xff] %vm620_vm0, %v602_v46  ;;  %v362_v54 = vmul.f32 %v779_v48, %v973_v0  ;;  %v504_v55 = vmul.f32 %v843_v49, %v978_v1  ;;  %v782_v56 = vunpack.c.l.bf16 %v877_v44  ;;  %v846_v57 = vunpack.c.l.bf16 %v892_v45 }
  0x37   : > { %636 = vst.msk [vmem:[%s1021_s17 + $0x78] sm:$0xff] %vm620_vm0, %v603_v50  ;;  %v604_v59 = vmax.f32 %v572_v51, 0.0  ;;  %v573_v60 = vadd.f32 %v1004_v29, %v534_v52  ;;  %v535_v61 = vadd.f32 %v503_v47, %v400_v53  ;;  %v783_v62 = vunpack.c.h.bf16 %v877_v44  ;;  %v881_v52 = vld [vmem:[%s963_s26 + $0x70] sm:$0xff]  }
  0x38   : > { %v401_v2 = vadd.f32 %v987_v10, %v362_v54  ;;  %v363_v3 = vmul.f32 %v782_v56, %v973_v0  ;;  %v505_v4 = vmul.f32 %v846_v57, %v978_v1  ;;  %v847_v5 = vunpack.c.h.bf16 %v892_v45  ;;  %v896_v57 = vld [vmem:[%s968_s29 + $0x70] sm:$0xff]  }
  0x39   : > { %637 = vst.msk [vmem:[%s1021_s17 + $0x80] sm:$0xff] %vm620_vm0, %v604_v59  ;;  %v605_v6 = vmax.f32 %v573_v60, 0.0  ;;  %v574_v7 = vadd.f32 %v1004_v29, %v535_v61  ;;  %v364_v8 = vmul.f32 %v783_v62, %v973_v0  ;;  %v786_v9 = vunpack.c.l.bf16 %v878_v58 }
  0x3a   : > { %v536_v11 = vadd.f32 %v504_v55, %v401_v2  ;;  %v402_v12 = vadd.f32 %v987_v10, %v363_v3  ;;  %v506_v13 = vmul.f32 %v847_v5, %v978_v1  ;;  %v850_v14 = vunpack.c.l.bf16 %v893_v63 }
  0x3b   : > { %638 = vst.msk [vmem:[%s1021_s17 + $0x88] sm:$0xff] %vm620_vm0, %v605_v6  ;;  %v606_v16 = vmax.f32 %v574_v7, 0.0  ;;  %v403_v17 = vadd.f32 %v987_v10, %v364_v8  ;;  %v365_v18 = vmul.f32 %v786_v9, %v973_v0  ;;  %v787_v19 = vunpack.c.h.bf16 %v878_v58  ;;  %v882_v8 = vld [vmem:[%s963_s26 + $0x78] sm:$0xff]  }
  0x3c   : > { %v575_v21 = vadd.f32 %v1004_v29, %v536_v11  ;;  %v537_v22 = vadd.f32 %v505_v4, %v402_v12  ;;  %v507_v23 = vmul.f32 %v850_v14, %v978_v1  ;;  %v851_v24 = vunpack.c.h.bf16 %v893_v63  ;;  %v897_v14 = vld [vmem:[%s968_s29 + $0x78] sm:$0xff]  }
  0x3d   : > { %639 = vst.msk [vmem:[%s1021_s17 + $0x90] sm:$0xff] %vm620_vm0, %v606_v16  ;;  %v538_v25 = vadd.f32 %v506_v13, %v403_v17  ;;  %v404_v26 = vadd.f32 %v987_v10, %v365_v18  ;;  %v366_v27 = vmul.f32 %v787_v19, %v973_v0  ;;  %v790_v28 = vunpack.c.l.bf16 %v879_v15 }
  0x3e   : > { %v607_v30 = vmax.f32 %v575_v21, 0.0  ;;  %v576_v31 = vadd.f32 %v1004_v29, %v537_v22  ;;  %v508_v32 = vmul.f32 %v851_v24, %v978_v1  ;;  %v854_v33 = vunpack.c.l.bf16 %v894_v20 }
  0x3f   : > { %v577_v34 = vadd.f32 %v1004_v29, %v538_v25  ;;  %v539_v35 = vadd.f32 %v507_v23, %v404_v26  ;;  %v405_v36 = vadd.f32 %v987_v10, %v366_v27  ;;  %v367_v37 = vmul.f32 %v790_v28, %v973_v0 }
  0x40   : > { %640 = vst.msk [vmem:[%s1021_s17 + $0x98] sm:$0xff] %vm620_vm0, %v607_v30  ;;  %v608_v40 = vmax.f32 %v576_v31, 0.0  ;;  %v509_v41 = vmul.f32 %v854_v33, %v978_v1  ;;  %v791_v42 = vunpack.c.h.bf16 %v879_v15  ;;  %v855_v43 = vunpack.c.h.bf16 %v894_v20 }
  0x41   : > { %v609_v44 = vmax.f32 %v577_v34, 0.0  ;;  %v578_v45 = vadd.f32 %v1004_v29, %v539_v35  ;;  %v540_v46 = vadd.f32 %v508_v32, %v405_v36  ;;  %v406_v47 = vadd.f32 %v987_v10, %v367_v37 }
  0x42   : > { %641 = vst.msk [vmem:[%s1021_s17 + $0xa0] sm:$0xff] %vm620_vm0, %v608_v40  ;;  %v368_v48 = vmul.f32 %v791_v42, %v973_v0  ;;  %v510_v49 = vmul.f32 %v855_v43, %v978_v1  ;;  %v794_v50 = vunpack.c.l.bf16 %v880_v38  ;;  %v858_v51 = vunpack.c.l.bf16 %v895_v39 }
  0x43   : > { %642 = vst.msk [vmem:[%s1021_s17 + $0xa8] sm:$0xff] %vm620_vm0, %v609_v44  ;;  %v610_v53 = vmax.f32 %v578_v45, 0.0  ;;  %v579_v54 = vadd.f32 %v1004_v29, %v540_v46  ;;  %v541_v55 = vadd.f32 %v509_v41, %v406_v47  ;;  %v795_v56 = vunpack.c.h.bf16 %v880_v38 }
  0x44   : > { %v407_v58 = vadd.f32 %v987_v10, %v368_v48  ;;  %v369_v59 = vmul.f32 %v794_v50, %v973_v0  ;;  %v511_v60 = vmul.f32 %v858_v51, %v978_v1  ;;  %v859_v61 = vunpack.c.h.bf16 %v895_v39 }
  0x45   : > { %643 = vst.msk [vmem:[%s1021_s17 + $0xb0] sm:$0xff] %vm620_vm0, %v610_v53  ;;  %v611_v62 = vmax.f32 %v579_v54, 0.0  ;;  %v580_v63 = vadd.f32 %v1004_v29, %v541_v55  ;;  %v370_v2 = vmul.f32 %v795_v56, %v973_v0  ;;  %v798_v3 = vunpack.c.l.bf16 %v881_v52 }
  0x46   : > { %v542_v4 = vadd.f32 %v510_v49, %v407_v58  ;;  %v408_v5 = vadd.f32 %v987_v10, %v369_v59  ;;  %v512_v6 = vmul.f32 %v859_v61, %v978_v1  ;;  %v862_v7 = vunpack.c.l.bf16 %v896_v57 }
  0x47   : > { %644 = vst.msk [vmem:[%s1021_s17 + $0xb8] sm:$0xff] %vm620_vm0, %v611_v62  ;;  %v612_v9 = vmax.f32 %v580_v63, 0.0  ;;  %v409_v11 = vadd.f32 %v987_v10, %v370_v2  ;;  %v371_v12 = vmul.f32 %v798_v3, %v973_v0  ;;  %v799_v13 = vunpack.c.h.bf16 %v881_v52 }
  0x48   : > { %v581_v15 = vadd.f32 %v1004_v29, %v542_v4  ;;  %v543_v16 = vadd.f32 %v511_v60, %v408_v5  ;;  %v513_v17 = vmul.f32 %v862_v7, %v978_v1  ;;  %v863_v18 = vunpack.c.h.bf16 %v896_v57 }
  0x49   : > { %645 = vst.msk [vmem:[%s1021_s17 + $0xc0] sm:$0xff] %vm620_vm0, %v612_v9  ;;  %v544_v19 = vadd.f32 %v512_v6, %v409_v11  ;;  %v410_v20 = vadd.f32 %v987_v10, %v371_v12  ;;  %v372_v21 = vmul.f32 %v799_v13, %v973_v0  ;;  %v802_v22 = vunpack.c.l.bf16 %v882_v8 }
  0x4a   : > { %v613_v23 = vmax.f32 %v581_v15, 0.0  ;;  %v582_v24 = vadd.f32 %v1004_v29, %v543_v16  ;;  %v514_v25 = vmul.f32 %v863_v18, %v978_v1  ;;  %v866_v26 = vunpack.c.l.bf16 %v897_v14 }
  0x4b   : > { %v583_v27 = vadd.f32 %v1004_v29, %v544_v19  ;;  %v545_v28 = vadd.f32 %v513_v17, %v410_v20  ;;  %v411_v30 = vadd.f32 %v987_v10, %v372_v21  ;;  %v373_v31 = vmul.f32 %v802_v22, %v973_v0 }
  0x4c   : > { %646 = vst.msk [vmem:[%s1021_s17 + $0xc8] sm:$0xff] %vm620_vm0, %v613_v23  ;;  %v614_v32 = vmax.f32 %v582_v24, 0.0  ;;  %v515_v33 = vmul.f32 %v866_v26, %v978_v1  ;;  %v803_v34 = vunpack.c.h.bf16 %v882_v8  ;;  %v867_v35 = vunpack.c.h.bf16 %v897_v14 }
  0x4d   : > { %v615_v36 = vmax.f32 %v583_v27, 0.0  ;;  %v584_v37 = vadd.f32 %v1004_v29, %v545_v28  ;;  %v546_v38 = vadd.f32 %v514_v25, %v411_v30  ;;  %v412_v39 = vadd.f32 %v987_v10, %v373_v31 }
  0x4e   : > { %647 = vst.msk [vmem:[%s1021_s17 + $0xd0] sm:$0xff] %vm620_vm0, %v614_v32  ;;  %v374_v40 = vmul.f32 %v803_v34, %v973_v0  ;;  %v516_v41 = vmul.f32 %v867_v35, %v978_v1 }
  0x4f   : > { %648 = vst.msk [vmem:[%s1021_s17 + $0xd8] sm:$0xff] %vm620_vm0, %v615_v36  ;;  %v616_v42 = vmax.f32 %v584_v37, 0.0  ;;  %v585_v43 = vadd.f32 %v1004_v29, %v546_v38  ;;  %v547_v44 = vadd.f32 %v515_v33, %v412_v39 }
  0x50   : > { %v413_v45 = vadd.f32 %v987_v10, %v374_v40 }
  0x51   : > { %649 = vst.msk [vmem:[%s1021_s17 + $0xe0] sm:$0xff] %vm620_vm0, %v616_v42  ;;  %v617_v46 = vmax.f32 %v585_v43, 0.0  ;;  %v586_v47 = vadd.f32 %v1004_v29, %v547_v44 }
  0x52   : > { %v548_v48 = vadd.f32 %v516_v41, %v413_v45 }
  0x53   : > { %650 = vst.msk [vmem:[%s1021_s17 + $0xe8] sm:$0xff] %vm620_vm0, %v617_v46  ;;  %v618_v0 = vmax.f32 %v586_v47, 0.0 }
  0x54   : > { %v587_v49 = vadd.f32 %v1004_v29, %v548_v48 }
  0x55   : > { %651 = vst.msk [vmem:[%s1021_s17 + $0xf0] sm:$0xff] %vm620_vm0, %v618_v0 }
  0x56   : > { %v619_v1 = vmax.f32 %v587_v49, 0.0 }
  0x58   : > { %652 = vst.msk [vmem:[%s1021_s17 + $0xf8] sm:$0xff] %vm620_vm0, %v619_v1 }
  0x59 PF: > { %s16_s21 = sadd.s32 1, %s912_s21  }
  0x5a   : > { %p13_p4 = scmp.ge.s32.totalorder %s16_s21, 4  }
  0x5c   :  { %15 = sbr.rel (!%p13_p4) target bundleno = 1 (0x1), region = 77 }

// kernel: basic_block_forward.3
= control target key start
LH: loop header
LB: loop body
LE: loop exit
PB: predicated region body
PF: predicated region fallthrough
CT: control target
= control target key end

     0   :  { %s7530_s12 = smov 0   ;;  %s8837_s0 = inlined_call_operand.vmem [shape: bf16[2,18,18,4], index: 0, kind: input, shape index: {}]   ;;  %s8838_s1 = inlined_call_operand.vmem [shape: bf16[9,4,128], index: 1, kind: input, shape index: {}]   ;;  %s8839_s2 = inlined_call_operand.vmem [shape: bf16[2,16,16,128], index: 2, kind: output, shape index: {0}]   ;;  %s8840_s3 = inlined_call_operand.vmem [shape: f32[16,128], index: 3, kind: output, shape index: {1}]  }
   0x1 LB: > { %s5946_s13 = sadd.s32 4294967295, %s7508_s12   ;;  %p5950_p0 = scmp.ge.s32.totalorder %s7508_s12, 1  ;;  %s7508_s12 = sphi %s7530_s12, %s14_s12  }
   0x2   : > { %p140_p1 = scmp.lt.s32.totalorder %s7508_s12, 3 }
   0x4   : > { %p141_p2 = pnand %p5950_p0, %p140_p1 }
   0x5   : > { %v279_v0 = vld [vmem:[%s8838_s1] sm:$0x3] (!%p141_p2)  ;;  %vm409_vm0 = vcmask (!%p141_p2), 1041408   ;;  %p168_p3 = scmp.lt.s32.totalorder (!%p141_p2), %s5946_s13, 1  ;;  %v6182_v2 = vld [vmem:[%s8838_s1 + $0x8] sm:$0x3] (!%p141_p2) }
   0x6   : > { %144 = sbr.rel (%p141_p2) target bundleno = 560 (0x230), region = 28  ;;  %7434 = vmatprep.subr.msk.bf16.mxu1 (!%p141_p2), %vm409_vm0, %v279_v0  ;;  %v411_v1 = vsel (!%p141_p2), %vm409_vm0, %v279_v0, 0  ;;  %v5987_v3 = vld [vmem:[%s8838_s1 + $0x2] sm:$0x3] (!%p141_p2)  ;;  %7438 = vmatprep.subr.msk.bf16.mxu0 (!%p141_p2), %vm409_vm0, %v6182_v2  ;;  %v7553_v4 = vsel (!%p141_p2), %vm409_vm0, %v6182_v2, 0  ;;  %vm360_vm1 = vcmask (!%p141_p2), 31744  }
   0x7   : > { %6871 = vmatpush3.bf16.msra.mxu1 (!%p141_p2), %v411_v1  ;;  %7007 = vmatpush3.bf16.msra.mxu0 (!%p141_p2), %v7553_v4  ;;  %v6279_v5 = vld [vmem:[%s8838_s1 + $0xa] sm:$0x3] (!%p141_p2)  ;;  %vm718_vm2 = vsmask.f32 (!%p141_p2), 3328  ;;  %vm719_vm3 = vsmask.f32 (!%p141_p2), 7440 }
   0x8   : > { %7435 = vmatprep.subr.msk.bf16.mxu1 (!%p141_p2), %vm409_vm0, %v5987_v3  ;;  %7440 = vmatprep.subr.msk.bf16.mxu0 (!%p141_p2), %vm409_vm0, %v6279_v5  ;;  %v7570_v6 = vld [vmem:[%s8838_s1 + $0xc] sm:$0x3] (!%p141_p2)  ;;  %v6036_v7 = vld [vmem:[%s8838_s1 + $0x4] sm:$0x3] (!%p141_p2)  ;;  %v7578_v8 = vld [vmem:[%s8838_s1 + $0xe] sm:$0x3] (!%p141_p2) }
   0x9   : > { %v1204_v10 = vsel (!%p141_p2), %vm409_vm0, %v5987_v3, 0  ;;  %v7584_v12 = vsel (!%p141_p2), %vm409_vm0, %v6279_v5, 0  ;;  %v7590_v14 = vsel (!%p141_p2), %vm409_vm0, %v7570_v6, 0  ;;  %v7594_v15 = vsel (!%p141_p2), %vm409_vm0, %v6036_v7, 0  ;;  %vm7612_vm4 = vmor (!%p141_p2), %vm718_vm2, %vm719_vm3 }
   0xa   : > { %v7598_v16 = vsel (!%p141_p2), %vm409_vm0, %v7578_v8, 0  ;;  %vm1559_vm5 = vcmask (!%p141_p2), 1042432   ;;  %vm1560_vm6 = vcmask (!%p141_p2), 1046532   ;;  %vm5856_vm8 = vcmask (!%p141_p2), 1040384  }
   0xb   : > { %vm7687_vm7 = vmor (!%p141_p2), %vm1559_vm5, %vm1560_vm6 }
   0xd   : > { %s8846_s13 = smov (!%p168_p3, %s5946_s13), 1 }
   0xe   : > { %s7444_s22 = smul.u32 216, %s8846_s13  ;;  %s6589_s11 = sshll.u32 %s8846_s13, 7 }
   0xf   : > { %s8807_s16 = scalar_lea.vmem %s8839_s2, %s6589_s11  ;;  %s5954_s17 = sshll.u32 %s8846_s13, 3 }
  0x10   : > { %s7565_s25 = scalar_lea.vmem %s8837_s0, %s7444_s22  ;;  %s181_s20 = scalar_lea.vmem %s8840_s3, %s5954_s17 }
  0x11   : > { %v7453_v9 = vld [vmem:[%s7565_s25] sm:$0xff]   ;;  %v7454_v11 = vld [vmem:[%s7565_s25 + $0xc] sm:$0xff]   ;;  %v7455_v13 = vld [vmem:[%s7565_s25 + $0x18] sm:$0xff]  }
  0x12   : > { %6872 = vmatprep.mubr.msk.bf16.mxu1 %vm360_vm1, %v7453_v9  ;;  %v6134_v17 = vld [vmem:[%s7565_s25 + $0xc] sm:$0xf]  ;;  %v6135_v18 = vld [vmem:[%s7565_s25 + $0x10] sm:$0xf]  ;;  %v6136_v19 = vld [vmem:[%s7565_s25 + $0x14] sm:$0x1] }
  0x13   : > { %6873 = vmatmul.mubr.msk.bf16.vlgmr.msra.gmra.mrb[0].mxu1 %vm360_vm1, %v7454_v11  ;;  %v7456_v20 = vld [vmem:[%s7565_s25 + $0x24] sm:$0xff]   ;;  %v2504_v21 = vshrl.u32 %v6134_v17, 16  ;;  %v2507_v22 = vshll.u32 %v6134_v17, 16  ;;  %v2513_v23 = vshll.u32 %v6135_v18, 16  ;;  %v2517_v24 = vshrl.u32 %v6135_v18, 16  ;;  %v7457_v42 = vld [vmem:[%s7565_s25 + $0x30] sm:$0xff]  }
  0x14   : > { %6876 = vmatprep.mubr.msk.bf16.mxu1 %vm360_vm1, %v7455_v13  ;;  %6905 = vmatpush3.bf16.msra.mxu1 %v1204_v10  ;;  %v6137_v25 = vld [vmem:[%s7565_s25 + $0x18] sm:$0xf]  ;;  %v2523_v26 = vshll.u32 %v6136_v19, 16  ;;  %v6138_v27 = vld [vmem:[%s7565_s25 + $0x1c] sm:$0xf] }
  0x15   : > { %7436 = vmatprep.subr.msk.bf16.mxu1 %vm409_vm0, %v6036_v7  ;;  %v6139_v28 = vld [vmem:[%s7565_s25 + $0x20] sm:$0x1]  ;;  %v2528_v29 = vshrl.u32 %v6137_v25, 16  ;;  %v2506_v30 = vrot.slane %v2504_v21, 4  ;;  %v2509_v31 = vrot.slane %v2507_v22, 5  ;;  %v2515_v32 = vrot.slane %v2513_v23, 5 }
  0x16   : > { %v2519_v33 = vrot.slane %v2517_v24, 4  ;;  %v2525_v34 = vrot.slane %v2523_v26, 5  ;;  %v2531_v36 = vshll.u32 %v6137_v25, 16  ;;  %v2537_v37 = vshll.u32 %v6138_v27, 16  ;;  %v6140_v46 = vld [vmem:[%s7565_s25 + $0x24] sm:$0xf] }
  0x17   : > { %v2530_v35 = vrot.slane %v2528_v29, 4  ;;  %v2510_v38 = vor.u32 %v2509_v31, %v2506_v30  ;;  %v2541_v40 = vshrl.u32 %v6138_v27, 16  ;;  %v2547_v41 = vshll.u32 %v6139_v28, 16  ;;  %v6141_v51 = vld [vmem:[%s7565_s25 + $0x28] sm:$0xf]  ;;  %v7458_v60 = vld [vmem:[%s7565_s25 + $0x3c] sm:$0xff]  }
  0x18   : > { %v2520_v39 = vor.u32 %v2519_v33, %v2515_v32  ;;  %v2533_v44 = vrot.slane %v2531_v36, 5  ;;  %v2539_v45 = vrot.slane %v2537_v37, 5  ;;  %v6142_v53 = vld [vmem:[%s7565_s25 + $0x2c] sm:$0x1]  ;;  %v2552_v54 = vshrl.u32 %v6140_v46, 16 }
  0x19   : > { %v2511_v47 = vrot.slane %v2510_v38, 4  ;;  %v2543_v49 = vrot.slane %v2541_v40, 4  ;;  %v2549_v50 = vrot.slane %v2547_v41, 5  ;;  %v2555_v55 = vshll.u32 %v6140_v46, 16  ;;  %v6143_v62 = vld [vmem:[%s7565_s25 + $0x30] sm:$0xf] }
  0x1a   : > { %v2521_v48 = vrot.slane %v2520_v39, 4  ;;  %v2534_v52 = vor.u32 %v2533_v44, %v2530_v35  ;;  %v2561_v56 = vshll.u32 %v6141_v51, 16  ;;  %v2565_v61 = vshrl.u32 %v6141_v51, 16  ;;  %v6144_v63 = vld [vmem:[%s7565_s25 + $0x34] sm:$0xf]  ;;  %v7459_v7 = vld [vmem:[%s7565_s25 + $0x48] sm:$0xff]  }
  0x1b   : > { %6877 = vmatmul.mubr.msk.bf16.gmra.mrb[4].mxu1 %vm360_vm1, %v7456_v20  ;;  %v2516_v57 = vsel %vm7612_vm4, %v2511_v47, %v2515_v32  ;;  %v2544_v59 = vor.u32 %v2543_v49, %v2539_v45  ;;  %v2554_v2 = vrot.slane %v2552_v54, 4  ;;  %v2557_v3 = vrot.slane %v2555_v55, 5  ;;  %v6145_v5 = vld [vmem:[%s7565_s25 + $0x38] sm:$0x1]  ;;  %v6146_v25 = vld [vmem:[%s7565_s25 + $0x3c] sm:$0xf] }
  0x1c   : > { %6880 = vmatprep.mubr.msk.bf16.mxu1 %vm360_vm1, %v7457_v42  ;;  %v2526_v58 = vsel %vm7612_vm4, %v2521_v48, %v2525_v34  ;;  %v2535_v1 = vrot.slane %v2534_v52, 4  ;;  %v2563_v10 = vrot.slane %v2561_v56, 5  ;;  %v2567_v11 = vrot.slane %v2565_v61, 4  ;;  %v6147_v30 = vld [vmem:[%s7565_s25 + $0x40] sm:$0xf]  ;;  %v7460_v49 = vld [vmem:[%s7565_s25 + $0x54] sm:$0xff]  }
  0x1d   : > { %v6183_v0 = vcombine.low %v2516_v57, %v2526_v58  ;;  %v2545_v9 = vrot.slane %v2544_v59, 4  ;;  %v2571_v13 = vshll.u32 %v6142_v53, 16  ;;  %v2558_v18 = vor.u32 %v2557_v3, %v2554_v2  ;;  %v6148_v37 = vld [vmem:[%s7565_s25 + $0x44] sm:$0x1]  ;;  %v6149_v40 = vld [vmem:[%s7565_s25 + $0x48] sm:$0xf] }
  0x1e   : > { %v2540_v17 = vsel %vm7612_vm4, %v2535_v1, %v2539_v45  ;;  %v2576_v19 = vshrl.u32 %v6143_v62, 16  ;;  %v2579_v20 = vshll.u32 %v6143_v62, 16  ;;  %v2568_v22 = vor.u32 %v2567_v11, %v2563_v10  ;;  %v6150_v46 = vld [vmem:[%s7565_s25 + $0x4c] sm:$0xf]  ;;  %v6151_v52 = vld [vmem:[%s7565_s25 + $0x50] sm:$0x1] }
  0x1f   : > { %7008 = vmatprep.mubr.msk.bf16.mxu0 %vm360_vm1, %v6183_v0  ;;  %v2550_v21 = vsel %vm7612_vm4, %v2545_v9, %v2549_v50  ;;  %v2573_v23 = vrot.slane %v2571_v13, 5  ;;  %v2585_v24 = vshll.u32 %v6144_v63, 16  ;;  %v2559_v27 = vrot.slane %v2558_v18, 4  ;;  %v7461_v56 = vld [vmem:[%s7565_s25 + $0x60] sm:$0xff]   ;;  %v6153_v13 = vld [vmem:[%s7565_s25 + $0x58] sm:$0xf] }
  0x20   : > { %v6184_v26 = vcombine.low %v2540_v17, %v2550_v21  ;;  %v2578_v28 = vrot.slane %v2576_v19, 4  ;;  %v2581_v29 = vrot.slane %v2579_v20, 5  ;;  %v2569_v31 = vrot.slane %v2568_v22, 4  ;;  %v6154_v21 = vld [vmem:[%s7565_s25 + $0x5c] sm:$0x1] }
  0x21   : > { %v2587_v32 = vrot.slane %v2585_v24, 5  ;;  %v2589_v33 = vshrl.u32 %v6144_v63, 16  ;;  %v2595_v34 = vshll.u32 %v6145_v5, 16  ;;  %v2564_v35 = vsel %vm7612_vm4, %v2559_v27, %v2563_v10  ;;  %v6152_v5 = vld [vmem:[%s7565_s25 + $0x54] sm:$0xf] }
  0x22   : > { %7009 = vmatmul.mubr.msk.bf16.vlgmr.msra.gmra.mrb[0].mxu0 %vm360_vm1, %v6184_v26  ;;  %v2582_v36 = vor.u32 %v2581_v29, %v2578_v28  ;;  %v2600_v38 = vshrl.u32 %v6146_v25, 16  ;;  %v2603_v39 = vshll.u32 %v6146_v25, 16  ;;  %v2574_v41 = vsel %vm7612_vm4, %v2569_v31, %v2573_v23  ;;  %v6155_v22 = vld [vmem:[%s7565_s25 + $0x60] sm:$0xf]  ;;  %v6156_v27 = vld [vmem:[%s7565_s25 + $0x64] sm:$0xf] }
  0x23   : > { %6881 = vmatmul.mubr.msk.bf16.gmra.mrb[8].mxu1 %vm360_vm1, %v7458_v60  ;;  %7041 = vmatpush3.bf16.msra.mxu0 %v7584_v12  ;;  %v2591_v42 = vrot.slane %v2589_v33, 4  ;;  %v2597_v44 = vrot.slane %v2595_v34, 5  ;;  %v2609_v45 = vshll.u32 %v6147_v30, 16  ;;  %v6185_v47 = vcombine.low %v2564_v35, %v2574_v41 }
  0x24   : > { %6884 = vmatprep.mubr.msk.bf16.mxu1 %vm360_vm1, %v7459_v7  ;;  %v2583_v48 = vrot.slane %v2582_v36, 4  ;;  %v2602_v50 = vrot.slane %v2600_v38, 4  ;;  %v2605_v51 = vrot.slane %v2603_v39, 5  ;;  %7441 = vmatprep.subr.msk.bf16.mxu0 %vm409_vm0, %v7570_v6  ;;  %v2613_v12 = vshrl.u32 %v6147_v30, 16  ;;  %v7462_v30 = vld [vmem:[%s7565_s25 + $0x6c] sm:$0xff]   ;;  %v7463_v38 = vld [vmem:[%s7565_s25 + $0x78] sm:$0xff]  }
  0x25   : > { %v2592_v53 = vor.u32 %v2591_v42, %v2587_v32  ;;  %v2611_v54 = vrot.slane %v2609_v45, 5  ;;  %v2619_v55 = vshll.u32 %v6148_v37, 16  ;;  %7012 = vmatprep.mubr.msk.bf16.mxu0 %vm360_vm1, %v6185_v47  ;;  %v2624_v59 = vshrl.u32 %v6149_v40, 16  ;;  %v6157_v37 = vld [vmem:[%s7565_s25 + $0x68] sm:$0x1] }
  0x26   : > { %v2588_v57 = vsel %vm7612_vm4, %v2583_v48, %v2587_v32  ;;  %v2606_v58 = vor.u32 %v2605_v51, %v2602_v50  ;;  %v2627_v60 = vshll.u32 %v6149_v40, 16  ;;  %v2615_v62 = vrot.slane %v2613_v12, 4 }
  0x27   : > { %v2593_v61 = vrot.slane %v2592_v53, 4  ;;  %v2621_v63 = vrot.slane %v2619_v55, 5  ;;  %v2633_v0 = vshll.u32 %v6150_v46, 16  ;;  %v2626_v1 = vrot.slane %v2624_v59, 4  ;;  %v6219_v59 = vld [vmem:[%s7565_s25 + $0x1c] sm:$0xf] }
  0x28   : > { %v2607_v6 = vrot.slane %v2606_v58, 4  ;;  %v2629_v2 = vrot.slane %v2627_v60, 5  ;;  %v2637_v3 = vshrl.u32 %v6150_v46, 16  ;;  %v2616_v9 = vor.u32 %v2615_v62, %v2611_v54  ;;  %v6218_v58 = vld [vmem:[%s7565_s25 + $0x18] sm:$0xe] }
  0x29   : > { %v2598_v7 = vsel %vm7612_vm4, %v2593_v61, %v2597_v44  ;;  %v2635_v10 = vrot.slane %v2633_v0, 5  ;;  %v2643_v11 = vshll.u32 %v6151_v52, 16  ;;  %v2648_v25 = vshrl.u32 %v6152_v5, 16  ;;  %v6215_v44 = vld [vmem:[%s7565_s25 + $0xc] sm:$0xe] }
  0x2a   : > { %v6186_v17 = vcombine.low %v2588_v57, %v2598_v7  ;;  %v2612_v18 = vsel %vm7612_vm4, %v2607_v6, %v2611_v54  ;;  %v2630_v19 = vor.u32 %v2629_v2, %v2626_v1  ;;  %v2639_v20 = vrot.slane %v2637_v3, 4  ;;  %v6217_v54 = vld [vmem:[%s7565_s25 + $0x14] sm:$0x1]  ;;  %v6220_v6 = vld [vmem:[%s7565_s25 + $0x20] sm:$0x1]  ;;  %v7464_v3 = vld [vmem:[%s7565_s25 + $0x84] sm:$0xff]  }
  0x2b   : > { %6885 = vmatmul.mubr.msk.bf16.gmra.mrb[12].mxu1 %vm360_vm1, %v7460_v49  ;;  %v2617_v23 = vrot.slane %v2616_v9, 4  ;;  %v2645_v24 = vrot.slane %v2643_v11, 5  ;;  %v2651_v26 = vshll.u32 %v6152_v5, 16  ;;  %v2657_v31 = vshll.u32 %v6153_v13, 16  ;;  %v6216_v49 = vld [vmem:[%s7565_s25 + $0x10] sm:$0xf] }
  0x2c   : > { %6888 = vmatprep.mubr.msk.bf16.mxu1 %vm360_vm1, %v7461_v56  ;;  %7013 = vmatmul.mubr.msk.bf16.gmra.mrb[4].mxu0 %vm360_vm1, %v6186_v17  ;;  %v2631_v28 = vrot.slane %v2630_v19, 4  ;;  %v2640_v29 = vor.u32 %v2639_v20, %v2635_v10  ;;  %v2661_v32 = vshrl.u32 %v6153_v13, 16  ;;  %v2650_v34 = vrot.slane %v2648_v25, 4 }
  0x2d   : > { %v2622_v33 = vsel %vm7612_vm4, %v2617_v23, %v2621_v63  ;;  %v2653_v35 = vrot.slane %v2651_v26, 5  ;;  %v2667_v36 = vshll.u32 %v6154_v21, 16  ;;  %v2659_v42 = vrot.slane %v2657_v31, 5  ;;  %v6221_v21 = vld [vmem:[%s7565_s25 + $0x24] sm:$0xe]  ;;  %v7465_v26 = vld [vmem:[%s7565_s25 + $0x90] sm:$0xff]  }
  0x2e   : > { %v6187_v39 = vcombine.low %v2612_v18, %v2622_v33  ;;  %v2636_v40 = vsel %vm7612_vm4, %v2631_v28, %v2635_v10  ;;  %v2641_v41 = vrot.slane %v2640_v29, 4  ;;  %v2663_v46 = vrot.slane %v2661_v32, 4 }
  0x2f   : > { %v2654_v45 = vor.u32 %v2653_v35, %v2650_v34  ;;  %v2669_v47 = vrot.slane %v2667_v36, 5  ;;  %v2672_v48 = vshrl.u32 %v6155_v22, 16  ;;  %v2675_v51 = vshll.u32 %v6155_v22, 16  ;;  %v6224_v36 = vld [vmem:[%s7565_s25 + $0x30] sm:$0xe] }
  0x30   : > { %7016 = vmatprep.mubr.msk.bf16.mxu0 %vm360_vm1, %v6187_v39  ;;  %v2646_v50 = vsel %vm7612_vm4, %v2641_v41, %v2645_v24  ;;  %v2681_v52 = vshll.u32 %v6156_v27, 16  ;;  %v2685_v53 = vshrl.u32 %v6156_v27, 16  ;;  %v2664_v56 = vor.u32 %v2663_v46, %v2659_v42  ;;  %v6222_v27 = vld [vmem:[%s7565_s25 + $0x28] sm:$0xf] }
  0x31   : > { %v6188_v12 = vcombine.low %v2636_v40, %v2646_v50  ;;  %v2655_v55 = vrot.slane %v2654_v45, 4  ;;  %v2674_v57 = vrot.slane %v2672_v48, 4  ;;  %v2677_v60 = vrot.slane %v2675_v51, 5  ;;  %v6227_v50 = vld [vmem:[%s7565_s25 + $0x3c] sm:$0xe] }
  0x32   : > { %v2683_v61 = vrot.slane %v2681_v52, 5  ;;  %v2687_v62 = vrot.slane %v2685_v53, 4  ;;  %v2691_v63 = vshll.u32 %v6157_v37, 16  ;;  %v2665_v2 = vrot.slane %v2664_v56, 4  ;;  %v6225_v37 = vld [vmem:[%s7565_s25 + $0x34] sm:$0xf] }
  0x33   : > { %6889 = vmatmul.mubr.msk.bf16.gmra.mrb[16].mxu1 %vm360_vm1, %v7462_v30  ;;  %v2660_v1 = vsel %vm7612_vm4, %v2655_v55, %v2659_v42  ;;  %v6263_v5 = vrot.slane %v6215_v44, 9  ;;  %v3343_v7 = vrot.slane %v6216_v49, 5  ;;  %v2678_v9 = vor.u32 %v2677_v60, %v2674_v57  ;;  %v6223_v30 = vld [vmem:[%s7565_s25 + $0x2c] sm:$0x1]  ;;  %v6228_v51 = vld [vmem:[%s7565_s25 + $0x40] sm:$0xf] }
  0x34   : > { %6892 = vmatprep.mubr.msk.bf16.mxu1 %vm360_vm1, %v7463_v38  ;;  %7017 = vmatmul.mubr.msk.bf16.gmra.mrb[8].mxu0 %vm360_vm1, %v6188_v12  ;;  %v2688_v10 = vor.u32 %v2687_v62, %v2683_v61  ;;  %v2693_v11 = vrot.slane %v2691_v63, 5  ;;  %v3346_v13 = vrot.slane %v6217_v54, 5  ;;  %v2670_v17 = vsel %vm7612_vm4, %v2665_v2, %v2669_v47  ;;  %v6226_v38 = vld [vmem:[%s7565_s25 + $0x38] sm:$0x1]  ;;  %v7466_v52 = vld [vmem:[%s7565_s25 + $0x9c] sm:$0xff]  }
  0x35   : > { %v3344_v18 = vsel %vm7687_vm7, %v6263_v5, %v3343_v7  ;;  %v3345_v19 = vrot.slane %v3343_v7, 4  ;;  %v6264_v20 = vrot.slane %v6218_v58, 9  ;;  %v6189_v22 = vcombine.low %v2660_v1, %v2670_v17  ;;  %v6229_v55 = vld [vmem:[%s7565_s25 + $0x44] sm:$0x1]  ;;  %v6230_v56 = vld [vmem:[%s7565_s25 + $0x48] sm:$0xe] }
  0x36   : > { %v2679_v23 = vrot.slane %v2678_v9, 4  ;;  %v2689_v24 = vrot.slane %v2688_v10, 4  ;;  %v3350_v25 = vrot.slane %v6219_v59, 5  ;;  %v3353_v29 = vrot.slane %v6220_v6, 5  ;;  %v7467_v58 = vld [vmem:[%s7565_s25 + $0xa8] sm:$0xff]  }
  0x37   : > { %v3347_v28 = vsel %vm7687_vm7, %v3345_v19, %v3346_v13  ;;  %v6265_v31 = vrot.slane %v6221_v21, 9  ;;  %v3357_v32 = vrot.slane %v6222_v27, 5  ;;  %7020 = vmatprep.mubr.msk.bf16.mxu0 %vm360_vm1, %v6189_v22  ;;  %v3360_v44 = vrot.slane %v6223_v30, 5  ;;  %v6231_v62 = vld [vmem:[%s7565_s25 + $0x4c] sm:$0xf] }
  0x38   : > { %v2684_v33 = vsel %vm7612_vm4, %v2679_v23, %v2683_v61  ;;  %v2694_v34 = vsel %vm7612_vm4, %v2689_v24, %v2693_v11  ;;  %v6280_v35 = vcombine.low %v3344_v18, %v3347_v28  ;;  %v3351_v40 = vsel %vm7687_vm7, %v6264_v20, %v3350_v25  ;;  %v6232_v1 = vld [vmem:[%s7565_s25 + $0x50] sm:$0x1]  ;;  %v638_v5 = vld [vmem:[%s7565_s25] sm:$0xf]  ;;  %v639_v13 = vld [vmem:[%s7565_s25 + $0x4] sm:$0xf] }
  0x39   : > { %v6190_v39 = vcombine.low %v2684_v33, %v2694_v34  ;;  %v3352_v41 = vrot.slane %v3350_v25, 4  ;;  %v3359_v42 = vrot.slane %v3357_v32, 4  ;;  %v6266_v45 = vrot.slane %v6224_v36, 9  ;;  %v640_v17 = vld [vmem:[%s7565_s25 + $0x8] sm:$0x1] }
  0x3a   : > { %v3364_v46 = vrot.slane %v6225_v37, 5  ;;  %v3367_v47 = vrot.slane %v6226_v38, 5  ;;  %v3358_v49 = vsel %vm7687_vm7, %v6265_v31, %v3357_v32  ;;  %v6267_v59 = vrot.slane %v6227_v50, 9  ;;  %v641_v22 = vld [vmem:[%s7565_s25 + $0xc] sm:$0xf] }
  0x3b   : > { %6893 = vmatmul.mubr.msk.bf16.gmra.mrb[20].mxu1 %vm360_vm1, %v7464_v3  ;;  %v3354_v48 = vsel %vm7687_vm7, %v3352_v41, %v3353_v29  ;;  %v3361_v53 = vsel %vm7687_vm7, %v3359_v42, %v3360_v44  ;;  %v3371_v60 = vrot.slane %v6228_v51, 5  ;;  %v3374_v61 = vrot.slane %v6229_v55, 5  ;;  %v642_v27 = vld [vmem:[%s7565_s25 + $0x10] sm:$0xf]  ;;  %v643_v32 = vld [vmem:[%s7565_s25 + $0x14] sm:$0x1] }
  0x3c   : > { %6896 = vmatprep.mubr.msk.bf16.mxu1 %vm360_vm1, %v7465_v26  ;;  %7021 = vmatmul.mubr.msk.bf16.gmra.mrb[12].mxu0 %vm360_vm1, %v6190_v39  ;;  %v7730_v54 = vsel %vm7687_vm7, %v6266_v45, %v3364_v46  ;;  %v3366_v12 = vrot.slane %v3364_v46, 4  ;;  %v6281_v57 = vcombine.low %v3351_v40, %v3354_v48  ;;  %v6282_v63 = vcombine.low %v3358_v49, %v3361_v53  ;;  %v6233_v33 = vld [vmem:[%s7565_s25 + $0x54] sm:$0xe]  ;;  %v6234_v38 = vld [vmem:[%s7565_s25 + $0x58] sm:$0xf] }
  0x3d   : > { %7042 = vmatprep.mubr.msk.bf16.mxu0 %vm360_vm1, %v6280_v35  ;;  %v6268_v2 = vrot.slane %v6230_v56, 9  ;;  %v3378_v3 = vrot.slane %v6231_v62, 5  ;;  %v7747_v9 = vsel %vm7687_vm7, %v6267_v59, %v3371_v60  ;;  %v3373_v10 = vrot.slane %v3371_v60, 4  ;;  %v6235_v44 = vld [vmem:[%s7565_s25 + $0x5c] sm:$0x1]  ;;  %v7468_v45 = vld [vmem:[%s7565_s25 + $0xb4] sm:$0xff]  }
  0x3e   : > { %v7739_v6 = vsel %vm7687_vm7, %v3366_v12, %v3367_v47  ;;  %v3381_v11 = vrot.slane %v6232_v1, 5  ;;  %v722_v20 = vshrl.u32 %v638_v5, 16  ;;  %v725_v21 = vshll.u32 %v638_v5, 16  ;;  %v6236_v50 = vld [vmem:[%s7565_s25 + $0x60] sm:$0xe] }
  0x3f   : > { %v6283_v7 = vcombine.low %v7730_v54, %v7739_v6  ;;  %v7753_v18 = vsel %vm7687_vm7, %v6268_v2, %v3378_v3  ;;  %v3380_v19 = vrot.slane %v3378_v3, 4  ;;  %v7759_v23 = vsel %vm7687_vm7, %v3373_v10, %v3374_v61  ;;  %v6237_v55 = vld [vmem:[%s7565_s25 + $0x64] sm:$0xf]  ;;  %v6238_v59 = vld [vmem:[%s7565_s25 + $0x68] sm:$0x1] }
  0x40   : > { %v731_v24 = vshll.u32 %v639_v13, 16  ;;  %v735_v25 = vshrl.u32 %v639_v13, 16  ;;  %v741_v26 = vshll.u32 %v640_v17, 16  ;;  %v6284_v28 = vcombine.low %v7747_v9, %v7759_v23  ;;  %v644_v1 = vld [vmem:[%s7565_s25 + $0x18] sm:$0xf] }
  0x41   : > { %v7767_v29 = vsel %vm7687_vm7, %v3380_v19, %v3381_v11  ;;  %v724_v30 = vrot.slane %v722_v20, 4  ;;  %v727_v31 = vrot.slane %v725_v21, 5  ;;  %v746_v40 = vshrl.u32 %v641_v22, 16  ;;  %v645_v19 = vld [vmem:[%s7565_s25 + $0x1c] sm:$0xf] }
  0x42   : > { %v6285_v34 = vcombine.low %v7753_v18, %v7767_v29  ;;  %v733_v35 = vrot.slane %v731_v24, 5  ;;  %v737_v36 = vrot.slane %v735_v25, 4  ;;  %v743_v37 = vrot.slane %v741_v26, 5  ;;  %v649_v9 = vld [vmem:[%s7565_s25 + $0x2c] sm:$0x1] }
  0x43   : > { %6897 = vmatmul.mubr.msk.bf16.gmra.mrb[24].mxu1 %vm360_vm1, %v7466_v52  ;;  %v728_v39 = vor.u32 %v727_v31, %v724_v30  ;;  %v749_v41 = vshll.u32 %v641_v22, 16  ;;  %v755_v42 = vshll.u32 %v642_v27, 16  ;;  %v759_v47 = vshrl.u32 %v642_v27, 16  ;;  %v646_v22 = vld [vmem:[%s7565_s25 + $0x20] sm:$0x1] }
  0x44   : > { %6900 = vmatprep.mubr.msk.bf16.mxu1 %vm360_vm1, %v7467_v58  ;;  %7043 = vmatmul.mubr.msk.bf16.vlgmr.msra.gmra.mrb[0].mxu0 %vm360_vm1, %v6281_v57  ;;  %v738_v46 = vor.u32 %v737_v36, %v733_v35  ;;  %v765_v48 = vshll.u32 %v643_v32, 16  ;;  %v6269_v49 = vrot.slane %v6233_v33, 9  ;;  %v748_v52 = vrot.slane %v746_v40, 4  ;;  %v647_v32 = vld [vmem:[%s7565_s25 + $0x24] sm:$0xf] }
  0x45   : > { %7075 = vmatpush3.bf16.msra.mxu0 %v7590_v14  ;;  %7046 = vmatprep.mubr.msk.bf16.mxu0 %vm360_vm1, %v6282_v63  ;;  %v729_v51 = vrot.slane %v728_v39, 4  ;;  %v751_v53 = vrot.slane %v749_v41, 5  ;;  %v757_v12 = vrot.slane %v755_v42, 5  ;;  %v761_v14 = vrot.slane %v759_v47, 4  ;;  %v6239_v23 = vld [vmem:[%s7565_s25 + $0x6c] sm:$0xe] }
  0x46   : > { %7442 = vmatprep.subr.msk.bf16.mxu0 %vm409_vm0, %v7578_v8  ;;  %v739_v56 = vrot.slane %v738_v46, 4  ;;  %v767_v57 = vrot.slane %v765_v48, 5  ;;  %v3385_v58 = vrot.slane %v6234_v38, 5  ;;  %v3388_v62 = vrot.slane %v6235_v44, 5  ;;  %v6240_v44 = vld [vmem:[%s7565_s25 + $0x70] sm:$0xf] }
  0x47   : > { %v734_v60 = vsel %vm7612_vm4, %v729_v51, %v733_v35  ;;  %v752_v61 = vor.u32 %v751_v53, %v748_v52  ;;  %v6270_v63 = vrot.slane %v6236_v50, 9  ;;  %v762_v8 = vor.u32 %v761_v14, %v757_v12  ;;  %v648_v35 = vld [vmem:[%s7565_s25 + $0x28] sm:$0xf]  ;;  %v6242_v50 = vld [vmem:[%s7565_s25 + $0x78] sm:$0xe] }
  0x48   : > { %v744_v2 = vsel %vm7612_vm4, %v739_v56, %v743_v37  ;;  %v7792_v3 = vsel %vm7687_vm7, %v6269_v49, %v3385_v58  ;;  %v3387_v5 = vrot.slane %v3385_v58, 4  ;;  %v3392_v13 = vrot.slane %v6237_v55, 5  ;;  %v6243_v55 = vld [vmem:[%s7565_s25 + $0x7c] sm:$0xf] }
  0x49   : > { %v5988_v10 = vcombine.low %v734_v60, %v744_v2  ;;  %v753_v11 = vrot.slane %v752_v61, 4  ;;  %v3395_v17 = vrot.slane %v6238_v59, 5  ;;  %v763_v20 = vrot.slane %v762_v8, 4  ;;  %v6244_v59 = vld [vmem:[%s7565_s25 + $0x80] sm:$0x1] }
  0x4a   : > { %v3389_v21 = vsel %vm7687_vm7, %v3387_v5, %v3388_v62  ;;  %v770_v24 = vshrl.u32 %v644_v1, 16  ;;  %v773_v25 = vshll.u32 %v644_v1, 16  ;;  %v7808_v30 = vsel %vm7687_vm7, %v6270_v63, %v3392_v13  ;;  %v650_v1 = vld [vmem:[%s7565_s25 + $0x30] sm:$0xf] }
  0x4b   : > { %6901 = vmatmul.mubr.msk.bf16.gmra.mrb[28].mxu1 %vm360_vm1, %v7468_v45  ;;  %v758_v26 = vsel %vm7612_vm4, %v753_v11, %v757_v12  ;;  %v6286_v27 = vcombine.low %v7792_v3, %v3389_v21  ;;  %v3394_v31 = vrot.slane %v3392_v13, 4  ;;  %v768_v54 = vsel %vm7612_vm4, %v763_v20, %v767_v57  ;;  %v6241_v45 = vld [vmem:[%s7565_s25 + $0x74] sm:$0x1] }
  0x4c   : > { %7047 = vmatmul.mubr.msk.bf16.gmra.mrb[4].mxu0 %vm360_vm1, %v6283_v7  ;;  %6906 = vmatprep.mubr.msk.bf16.mxu1 %vm360_vm1, %v5988_v10  ;;  %v772_v6 = vrot.slane %v770_v24, 4  ;;  %v775_v7 = vrot.slane %v773_v25, 5  ;;  %v779_v33 = vshll.u32 %v645_v19, 16  ;;  %v5989_v36 = vcombine.low %v758_v26, %v768_v54  ;;  %v652_v25 = vld [vmem:[%s7565_s25 + $0x38] sm:$0x1] }
  0x4d   : > { %7050 = vmatprep.mubr.msk.bf16.mxu0 %vm360_vm1, %v6284_v28  ;;  %v7820_v37 = vsel %vm7687_vm7, %v3394_v31, %v3395_v17  ;;  %v783_v38 = vshrl.u32 %v645_v19, 16  ;;  %v789_v39 = vshll.u32 %v646_v22, 16  ;;  %v794_v42 = vshrl.u32 %v647_v32, 16  ;;  %v653_v26 = vld [vmem:[%s7565_s25 + $0x3c] sm:$0xf] }
  0x4e   : > { %v6287_v28 = vcombine.low %v7808_v30, %v7820_v37  ;;  %v776_v40 = vor.u32 %v775_v7, %v772_v6  ;;  %v781_v41 = vrot.slane %v779_v33, 5  ;;  %v797_v48 = vshll.u32 %v647_v32, 16 }
  0x4f   : > { %v785_v46 = vrot.slane %v783_v38, 4  ;;  %v791_v47 = vrot.slane %v789_v39, 5  ;;  %v803_v49 = vshll.u32 %v648_v35, 16  ;;  %v796_v52 = vrot.slane %v794_v42, 4 }
  0x50   : > { %v777_v51 = vrot.slane %v776_v40, 4  ;;  %v807_v53 = vshrl.u32 %v648_v35, 16  ;;  %v813_v12 = vshll.u32 %v649_v9, 16  ;;  %v799_v14 = vrot.slane %v797_v48, 5 }
  0x51   : > { %v786_v56 = vor.u32 %v785_v46, %v781_v41  ;;  %v805_v57 = vrot.slane %v803_v49, 5  ;;  %v6271_v58 = vrot.slane %v6239_v23, 9  ;;  %v3399_v63 = vrot.slane %v6240_v44, 5  ;;  %v655_v23 = vld [vmem:[%s7565_s25 + $0x44] sm:$0x1] }
  0x52   : > { %v782_v60 = vsel %vm7612_vm4, %v777_v51, %v781_v41  ;;  %v809_v61 = vrot.slane %v807_v53, 4  ;;  %v815_v62 = vrot.slane %v813_v12, 5  ;;  %v800_v8 = vor.u32 %v799_v14, %v796_v52  ;;  %v6245_v41 = vld [vmem:[%s7565_s25 + $0x84] sm:$0xe] }
  0x53   : > { %6907 = vmatmul.mubr.msk.bf16.vlgmr.msra.gmra.mrb[0].mxu1 %vm360_vm1, %v5989_v36  ;;  %v787_v2 = vrot.slane %v786_v56, 4  ;;  %v3402_v3 = vrot.slane %v6241_v45, 5  ;;  %v6272_v5 = vrot.slane %v6242_v50, 9  ;;  %v3400_v10 = vsel %vm7687_vm7, %v6271_v58, %v3399_v63  ;;  %v654_v36 = vld [vmem:[%s7565_s25 + $0x40] sm:$0xf] }
  0x54   : > { %6939 = vmatpush3.bf16.msra.mxu1 %v7594_v15  ;;  %7051 = vmatmul.mubr.msk.bf16.gmra.mrb[8].mxu0 %vm360_vm1, %v6285_v34  ;;  %v810_v15 = vor.u32 %v809_v61, %v805_v57  ;;  %v3401_v11 = vrot.slane %v3399_v63, 4  ;;  %v3406_v13 = vrot.slane %v6243_v55, 5  ;;  %v801_v18 = vrot.slane %v800_v8, 4  ;;  %v651_v34 = vld [vmem:[%s7565_s25 + $0x34] sm:$0xf] }
  0x55   : > { %7054 = vmatprep.mubr.msk.bf16.mxu0 %vm360_vm1, %v6286_v27  ;;  %v792_v17 = vsel %vm7612_vm4, %v787_v2, %v791_v47  ;;  %v3409_v29 = vrot.slane %v6244_v59, 5  ;;  %v818_v19 = vshrl.u32 %v650_v1, 16  ;;  %v821_v7 = vshll.u32 %v650_v1, 16  ;;  %v6246_v47 = vld [vmem:[%s7565_s25 + $0x88] sm:$0xf] }
  0x56   : > { %v5990_v20 = vcombine.low %v782_v60, %v792_v17  ;;  %v811_v21 = vrot.slane %v810_v15, 4  ;;  %v3403_v22 = vsel %vm7687_vm7, %v3401_v11, %v3402_v3  ;;  %v7850_v24 = vsel %vm7687_vm7, %v6272_v5, %v3406_v13  ;;  %v6247_v56 = vld [vmem:[%s7565_s25 + $0x8c] sm:$0x1]  ;;  %v6250_v3 = vld [vmem:[%s7565_s25 + $0x98] sm:$0x1] }
  0x57   : > { %v806_v27 = vsel %vm7612_vm4, %v801_v18, %v805_v57  ;;  %v6288_v31 = vcombine.low %v3400_v10, %v3403_v22  ;;  %v3408_v32 = vrot.slane %v3406_v13, 4  ;;  %v820_v54 = vrot.slane %v818_v19, 4  ;;  %v6248_v57 = vld [vmem:[%s7565_s25 + $0x90] sm:$0xe]  ;;  %v656_v5 = vld [vmem:[%s7565_s25 + $0x48] sm:$0xf] }
  0x58   : > { %6910 = vmatprep.mubr.msk.bf16.mxu1 %vm360_vm1, %v5990_v20  ;;  %v816_v6 = vsel %vm7612_vm4, %v811_v21, %v815_v62  ;;  %v827_v33 = vshll.u32 %v651_v34, 16  ;;  %v831_v35 = vshrl.u32 %v651_v34, 16  ;;  %v837_v9 = vshll.u32 %v652_v25, 16  ;;  %v6249_v62 = vld [vmem:[%s7565_s25 + $0x94] sm:$0xf] }
  0x59   : > { %v5991_v38 = vcombine.low %v806_v27, %v816_v6  ;;  %v3410_v39 = vsel %vm7687_vm7, %v3408_v32, %v3409_v29  ;;  %v842_v40 = vshrl.u32 %v653_v26, 16  ;;  %v823_v44 = vrot.slane %v821_v7, 5  ;;  %v657_v19 = vld [vmem:[%s7565_s25 + $0x4c] sm:$0xf] }
  0x5a   : > { %v6289_v42 = vcombine.low %v7850_v24, %v3410_v39  ;;  %v829_v45 = vrot.slane %v827_v33, 5  ;;  %v833_v46 = vrot.slane %v831_v35, 4  ;;  %v839_v48 = vrot.slane %v837_v9, 5  ;;  %v658_v24 = vld [vmem:[%s7565_s25 + $0x50] sm:$0x1] }
  0x5b   : > { %6911 = vmatmul.mubr.msk.bf16.gmra.mrb[4].mxu1 %vm360_vm1, %v5991_v38  ;;  %v844_v49 = vrot.slane %v842_v40, 4  ;;  %v845_v50 = vshll.u32 %v653_v26, 16  ;;  %v851_v51 = vshll.u32 %v654_v36, 16  ;;  %v824_v52 = vor.u32 %v823_v44, %v820_v54  ;;  %v659_v54 = vld [vmem:[%s7565_s25 + $0x54] sm:$0xf] }
  0x5c   : > { %7055 = vmatmul.mubr.msk.bf16.gmra.mrb[12].mxu0 %vm360_vm1, %v6287_v28  ;;  %v834_v53 = vor.u32 %v833_v46, %v829_v45  ;;  %v855_v12 = vshrl.u32 %v654_v36, 16  ;;  %v861_v55 = vshll.u32 %v655_v23, 16  ;;  %v6273_v28 = vrot.slane %v6245_v41, 9  ;;  %v660_v36 = vld [vmem:[%s7565_s25 + $0x58] sm:$0xf] }
  0x5d   : > { %7058 = vmatprep.mubr.msk.bf16.mxu0 %vm360_vm1, %v6288_v31  ;;  %v847_v30 = vrot.slane %v845_v50, 5  ;;  %v853_v37 = vrot.slane %v851_v51, 5  ;;  %v3413_v14 = vrot.slane %v6246_v47, 5  ;;  %v825_v58 = vrot.slane %v824_v52, 4  ;;  %v661_v40 = vld [vmem:[%s7565_s25 + $0x5c] sm:$0x1] }
  0x5e   : > { %v835_v59 = vrot.slane %v834_v53, 4  ;;  %v857_v60 = vrot.slane %v855_v12, 4  ;;  %v863_v61 = vrot.slane %v861_v55, 5  ;;  %v3416_v8 = vrot.slane %v6247_v56, 5  ;;  %v6251_v41 = vld [vmem:[%s7565_s25 + $0x9c] sm:$0xe] }
  0x5f   : > { %v848_v63 = vor.u32 %v847_v30, %v844_v49  ;;  %v3414_v1 = vsel %vm7687_vm7, %v6273_v28, %v3413_v14  ;;  %v3415_v2 = vrot.slane %v3413_v14, 4  ;;  %v830_v15 = vsel %vm7612_vm4, %v825_v58, %v829_v45  ;;  %v6252_v47 = vld [vmem:[%s7565_s25 + $0xa0] sm:$0xf]  ;;  %v6253_v52 = vld [vmem:[%s7565_s25 + $0xa4] sm:$0x1] }
  0x60   : > { %v840_v10 = vsel %vm7612_vm4, %v835_v59, %v839_v48  ;;  %v858_v11 = vor.u32 %v857_v60, %v853_v37  ;;  %v6274_v13 = vrot.slane %v6248_v57, 9  ;;  %v3420_v34 = vrot.slane %v6249_v62, 5  ;;  %v6254_v30 = vld [vmem:[%s7565_s25 + $0xa8] sm:$0xe]  ;;  %v6255_v58 = vld [vmem:[%s7565_s25 + $0xac] sm:$0xf] }
  0x61   : > { %v5992_v17 = vcombine.low %v830_v15, %v840_v10  ;;  %v849_v18 = vrot.slane %v848_v63, 4  ;;  %v3417_v29 = vsel %vm7687_vm7, %v3415_v2, %v3416_v8  ;;  %v3423_v22 = vrot.slane %v6250_v3, 5  ;;  %v6256_v63 = vld [vmem:[%s7565_s25 + $0xb0] sm:$0x1]  ;;  %v663_v15 = vld [vmem:[%s7565_s25 + $0x64] sm:$0xf] }
  0x62   : > { %v859_v20 = vrot.slane %v858_v11, 4  ;;  %v6290_v21 = vcombine.low %v3414_v1, %v3417_v29  ;;  %v866_v25 = vshrl.u32 %v656_v5, 16  ;;  %v3421_v27 = vsel %vm7687_vm7, %v6274_v13, %v3420_v34 }
  0x63   : > { %6914 = vmatprep.mubr.msk.bf16.mxu1 %vm360_vm1, %v5992_v17  ;;  %v854_v26 = vsel %vm7612_vm4, %v849_v18, %v853_v37  ;;  %v3422_v31 = vrot.slane %v3420_v34, 4  ;;  %v869_v32 = vshll.u32 %v656_v5, 16  ;;  %v875_v33 = vshll.u32 %v657_v19, 16  ;;  %v662_v5 = vld [vmem:[%s7565_s25 + $0x60] sm:$0xf] }
  0x64   : > { %7059 = vmatmul.mubr.msk.bf16.gmra.mrb[16].mxu0 %vm360_vm1, %v6289_v42  ;;  %v864_v6 = vsel %vm7612_vm4, %v859_v20, %v863_v61  ;;  %v868_v7 = vrot.slane %v866_v25, 4  ;;  %v879_v35 = vshrl.u32 %v657_v19, 16  ;;  %v885_v23 = vshll.u32 %v658_v24, 16  ;;  %v664_v18 = vld [vmem:[%s7565_s25 + $0x68] sm:$0x1] }
  0x65   : > { %7062 = vmatprep.mubr.msk.bf16.mxu0 %vm360_vm1, %v6290_v21  ;;  %v5993_v38 = vcombine.low %v854_v26, %v864_v6  ;;  %v3424_v39 = vsel %vm7687_vm7, %v3422_v31, %v3423_v22  ;;  %v871_v9 = vrot.slane %v869_v32, 5  ;;  %v877_v44 = vrot.slane %v875_v33, 5  ;;  %v665_v21 = vld [vmem:[%s7565_s25 + $0x6c] sm:$0xf]  ;;  %v666_v6 = vld [vmem:[%s7565_s25 + $0x70] sm:$0xf] }
  0x66   : > { %v6291_v42 = vcombine.low %v3421_v27, %v3424_v39  ;;  %v881_v45 = vrot.slane %v879_v35, 4  ;;  %v890_v46 = vshrl.u32 %v659_v54, 16  ;;  %v887_v49 = vrot.slane %v885_v23, 5 }
  0x67   : > { %6915 = vmatmul.mubr.msk.bf16.gmra.mrb[8].mxu1 %vm360_vm1, %v5993_v38  ;;  %v872_v48 = vor.u32 %v871_v9, %v868_v7  ;;  %v893_v50 = vshll.u32 %v659_v54, 16  ;;  %v899_v51 = vshll.u32 %v660_v36, 16  ;;  %v903_v55 = vshrl.u32 %v660_v36, 16  ;;  %v667_v38 = vld [vmem:[%s7565_s25 + $0x74] sm:$0x1] }
  0x68   : > { %v882_v53 = vor.u32 %v881_v45, %v877_v44  ;;  %v892_v12 = vrot.slane %v890_v46, 4  ;;  %v909_v56 = vshll.u32 %v661_v40, 16  ;;  %v6275_v57 = vrot.slane %v6251_v41, 9  ;;  %v6257_v41 = vld [vmem:[%s7565_s25 + $0xb4] sm:$0xe] }
  0x69   : > { %v873_v37 = vrot.slane %v872_v48, 4  ;;  %v895_v28 = vrot.slane %v893_v50, 5  ;;  %v901_v14 = vrot.slane %v899_v51, 5  ;;  %v905_v60 = vrot.slane %v903_v55, 4  ;;  %v6259_v48 = vld [vmem:[%s7565_s25 + $0xbc] sm:$0x1] }
  0x6a   : > { %v883_v59 = vrot.slane %v882_v53, 4  ;;  %v911_v61 = vrot.slane %v909_v56, 5  ;;  %v3427_v62 = vrot.slane %v6252_v47, 5  ;;  %v3430_v8 = vrot.slane %v6253_v52, 5 }
  0x6b   : > { %v878_v1 = vsel %vm7612_vm4, %v873_v37, %v877_v44  ;;  %v896_v2 = vor.u32 %v895_v28, %v892_v12  ;;  %v6276_v3 = vrot.slane %v6254_v30, 9  ;;  %v906_v11 = vor.u32 %v905_v60, %v901_v14  ;;  %v6261_v12 = vld [vmem:[%s7565_s25 + $0xc4] sm:$0xf]  ;;  %v6262_v28 = vld [vmem:[%s7565_s25 + $0xc8] sm:$0x1] }
  0x6c   : > { %7063 = vmatmul.mubr.msk.bf16.gmra.mrb[20].mxu0 %vm360_vm1, %v6291_v42  ;;  %v888_v10 = vsel %vm7612_vm4, %v883_v59, %v887_v49  ;;  %v3428_v13 = vsel %vm7687_vm7, %v6275_v57, %v3427_v62  ;;  %v3429_v17 = vrot.slane %v3427_v62, 4  ;;  %v3434_v19 = vrot.slane %v6255_v58, 5  ;;  %v6258_v42 = vld [vmem:[%s7565_s25 + $0xb8] sm:$0xf]  ;;  %v6260_v49 = vld [vmem:[%s7565_s25 + $0xc0] sm:$0xe] }
  0x6d   : > { %v5994_v29 = vcombine.low %v878_v1, %v888_v10  ;;  %v897_v34 = vrot.slane %v896_v2, 4  ;;  %v3437_v20 = vrot.slane %v6256_v63, 5  ;;  %v907_v22 = vrot.slane %v906_v11, 4 }
  0x6e   : > { %v3431_v24 = vsel %vm7687_vm7, %v3429_v17, %v3430_v8  ;;  %v914_v25 = vshrl.u32 %v662_v5, 16  ;;  %v917_v26 = vshll.u32 %v662_v5, 16  ;;  %v3435_v32 = vsel %vm7687_vm7, %v6276_v3, %v3434_v19  ;;  %v669_v17 = vld [vmem:[%s7565_s25 + $0x7c] sm:$0xf] }
  0x6f   : > { %6918 = vmatprep.mubr.msk.bf16.mxu1 %vm360_vm1, %v5994_v29  ;;  %v902_v27 = vsel %vm7612_vm4, %v897_v34, %v901_v14  ;;  %v6292_v31 = vcombine.low %v3428_v13, %v3431_v24  ;;  %v3436_v54 = vrot.slane %v3434_v19, 4  ;;  %v912_v7 = vsel %vm7612_vm4, %v907_v22, %v911_v61  ;;  %v668_v14 = vld [vmem:[%s7565_s25 + $0x78] sm:$0xf]  ;;  %v670_v19 = vld [vmem:[%s7565_s25 + $0x80] sm:$0x1] }
  0x70   : > { %v916_v33 = vrot.slane %v914_v25, 4  ;;  %v919_v35 = vrot.slane %v917_v26, 5  ;;  %v923_v36 = vshll.u32 %v663_v15, 16  ;;  %v5995_v39 = vcombine.low %v902_v27, %v912_v7  ;;  %v671_v26 = vld [vmem:[%s7565_s25 + $0x84] sm:$0xf] }
  0x71   : > { %7066 = vmatprep.mubr.msk.bf16.mxu0 %vm360_vm1, %v6292_v31  ;;  %v3438_v9 = vsel %vm7687_vm7, %v3436_v54, %v3437_v20  ;;  %v927_v23 = vshrl.u32 %v663_v15, 16  ;;  %v933_v40 = vshll.u32 %v664_v18, 16  ;;  %v938_v47 = vshrl.u32 %v665_v21, 16  ;;  %v672_v27 = vld [vmem:[%s7565_s25 + $0x88] sm:$0xf] }
  0x72   : > { %v6293_v44 = vcombine.low %v3435_v32, %v3438_v9  ;;  %v920_v45 = vor.u32 %v919_v35, %v916_v33  ;;  %v925_v46 = vrot.slane %v923_v36, 5  ;;  %6919 = vmatmul.mubr.msk.bf16.gmra.mrb[12].mxu1 %vm360_vm1, %v5995_v39  ;;  %v941_v52 = vshll.u32 %v665_v21, 16 }
  0x73   : > { %v929_v50 = vrot.slane %v927_v23, 4  ;;  %v935_v51 = vrot.slane %v933_v40, 5  ;;  %v947_v53 = vshll.u32 %v666_v6, 16  ;;  %v940_v56 = vrot.slane %v938_v47, 4  ;;  %v673_v40 = vld [vmem:[%s7565_s25 + $0x8c] sm:$0x1] }
  0x74   : > { %7067 = vmatmul.mubr.msk.bf16.gmra.mrb[24].mxu0 %vm360_vm1, %v6293_v44  ;;  %v921_v55 = vrot.slane %v920_v45, 4  ;;  %v951_v30 = vshrl.u32 %v666_v6, 16  ;;  %v957_v37 = vshll.u32 %v667_v38, 16  ;;  %v943_v58 = vrot.slane %v941_v52, 5  ;;  %v7469_v38 = vld [vmem:[%s7565_s25 + $0x18] sm:$0xff]  }
  0x75   : > { %v930_v57 = vor.u32 %v929_v50, %v925_v46  ;;  %v949_v59 = vrot.slane %v947_v53, 5  ;;  %v6277_v60 = vrot.slane %v6257_v41, 9  ;;  %v3441_v1 = vrot.slane %v6258_v42, 5  ;;  %v674_v47 = vld [vmem:[%s7565_s25 + $0x90] sm:$0xf] }
  0x76   : > { %v926_v61 = vsel %vm7612_vm4, %v921_v55, %v925_v46  ;;  %v953_v62 = vrot.slane %v951_v30, 4  ;;  %v959_v63 = vrot.slane %v957_v37, 5  ;;  %v944_v8 = vor.u32 %v943_v58, %v940_v56  ;;  %v675_v56 = vld [vmem:[%s7565_s25 + $0x94] sm:$0xf]  ;;  %v677_v58 = vld [vmem:[%s7565_s25 + $0x9c] sm:$0xf] }
  0x77   : > { %v931_v2 = vrot.slane %v930_v57, 4  ;;  %v3444_v3 = vrot.slane %v6259_v48, 5  ;;  %v6278_v5 = vrot.slane %v6260_v49, 9  ;;  %v3442_v10 = vsel %vm7687_vm7, %v6277_v60, %v3441_v1 }
  0x78   : > { %v954_v15 = vor.u32 %v953_v62, %v949_v59  ;;  %v3443_v11 = vrot.slane %v3441_v1, 4  ;;  %v3448_v13 = vrot.slane %v6261_v12, 5  ;;  %v945_v29 = vrot.slane %v944_v8, 4 }
  0x79   : > { %v936_v18 = vsel %vm7612_vm4, %v931_v2, %v935_v51  ;;  %v3451_v34 = vrot.slane %v6262_v28, 5  ;;  %v962_v20 = vshrl.u32 %v668_v14, 16  ;;  %v965_v33 = vshll.u32 %v668_v14, 16  ;;  %v676_v28 = vld [vmem:[%s7565_s25 + $0x98] sm:$0x1] }
  0x7a   : > { %v5996_v21 = vcombine.low %v926_v61, %v936_v18  ;;  %v955_v22 = vrot.slane %v954_v15, 4  ;;  %v3445_v24 = vsel %vm7687_vm7, %v3443_v11, %v3444_v3  ;;  %v3449_v25 = vsel %vm7687_vm7, %v6278_v5, %v3448_v13  ;;  %v7470_v11 = vld [vmem:[%s7565_s25 + $0x24] sm:$0xff]  }
  0x7b   : > { %v950_v31 = vsel %vm7612_vm4, %v945_v29, %v949_v59  ;;  %v6294_v32 = vcombine.low %v3442_v10, %v3445_v24  ;;  %v3450_v54 = vrot.slane %v3448_v13, 4  ;;  %v964_v6 = vrot.slane %v962_v20, 4  ;;  %v679_v24 = vld [vmem:[%s7565_s25 + $0xa4] sm:$0x1] }
  0x7c   : > { %6922 = vmatprep.mubr.msk.bf16.mxu1 %vm360_vm1, %v5996_v21  ;;  %v960_v7 = vsel %vm7612_vm4, %v955_v22, %v959_v63  ;;  %v971_v35 = vshll.u32 %v669_v17, 16  ;;  %v975_v36 = vshrl.u32 %v669_v17, 16  ;;  %v981_v23 = vshll.u32 %v670_v19, 16  ;;  %v678_v63 = vld [vmem:[%s7565_s25 + $0xa0] sm:$0xf]  ;;  %v7471_v19 = vld [vmem:[%s7565_s25 + $0x30] sm:$0xff]  }
  0x7d   : > { %v5997_v39 = vcombine.low %v950_v31, %v960_v7  ;;  %7070 = vmatprep.mubr.msk.bf16.mxu0 %vm360_vm1, %v6294_v32  ;;  %v3452_v9 = vsel %vm7687_vm7, %v3450_v54, %v3451_v34  ;;  %v986_v41 = vshrl.u32 %v671_v26, 16  ;;  %v967_v44 = vrot.slane %v965_v33, 5  ;;  %v680_v54 = vld [vmem:[%s7565_s25 + $0xa8] sm:$0xf] }
  0x7e   : > { %v6295_v42 = vcombine.low %v3449_v25, %v3452_v9  ;;  %v973_v45 = vrot.slane %v971_v35, 5  ;;  %v977_v46 = vrot.slane %v975_v36, 4  ;;  %v983_v48 = vrot.slane %v981_v23, 5  ;;  %v681_v36 = vld [vmem:[%s7565_s25 + $0xac] sm:$0xf] }
  0x7f   : > { %6923 = vmatmul.mubr.msk.bf16.gmra.mrb[16].mxu1 %vm360_vm1, %v5997_v39  ;;  %v988_v49 = vrot.slane %v986_v41, 4  ;;  %v989_v50 = vshll.u32 %v671_v26, 16  ;;  %v995_v51 = vshll.u32 %v672_v27, 16  ;;  %v968_v52 = vor.u32 %v967_v44, %v964_v6  ;;  %v683_v41 = vld [vmem:[%s7565_s25 + $0xb4] sm:$0xf] }
  0x80   : > { %7071 = vmatmul.mubr.msk.bf16.gmra.mrb[28].mxu0 %vm360_vm1, %v6295_v42  ;;  %v978_v53 = vor.u32 %v977_v46, %v973_v45  ;;  %v999_v12 = vshrl.u32 %v672_v27, 16  ;;  %v1005_v55 = vshll.u32 %v673_v40, 16  ;;  %v1010_v14 = vshrl.u32 %v674_v47, 16  ;;  %v682_v40 = vld [vmem:[%s7565_s25 + $0xb0] sm:$0x1] }
  0x81   : > { %v991_v30 = vrot.slane %v989_v50, 5  ;;  %v997_v37 = vrot.slane %v995_v51, 5  ;;  %7076 = vmatprep.mubr.msk.bf16.mxu0 %vm360_vm1, %v7469_v38  ;;  %v1013_v57 = vshll.u32 %v674_v47, 16  ;;  %v969_v59 = vrot.slane %v968_v52, 4  ;;  %v7998_v42 = vld [vmem:[%s8838_s1 + $0x6] sm:$0x3] }
  0x82   : > { %v979_v60 = vrot.slane %v978_v53, 4  ;;  %v1001_v61 = vrot.slane %v999_v12, 4  ;;  %v1007_v62 = vrot.slane %v1005_v55, 5  ;;  %v1012_v2 = vrot.slane %v1010_v14, 4  ;;  %7437 = vmatprep.subr.msk.bf16.mxu1 %vm409_vm0, %v7998_v42  ;;  %v7472_v55 = vld [vmem:[%s7565_s25 + $0x3c] sm:$0xff]  }
  0x83   : > { %v992_v1 = vor.u32 %v991_v30, %v988_v49  ;;  %v1015_v8 = vrot.slane %v1013_v57, 5  ;;  %v1019_v3 = vshll.u32 %v675_v56, 16  ;;  %v974_v5 = vsel %vm7612_vm4, %v969_v59, %v973_v45  ;;  %v685_v57 = vld [vmem:[%s7565_s25 + $0xbc] sm:$0x1] }
  0x84   : > { %v984_v15 = vsel %vm7612_vm4, %v979_v60, %v983_v48  ;;  %v1002_v10 = vor.u32 %v1001_v61, %v997_v37  ;;  %v1023_v13 = vshrl.u32 %v675_v56, 16  ;;  %v1029_v22 = vshll.u32 %v676_v28, 16 }
  0x85   : > { %v5998_v17 = vcombine.low %v974_v5, %v984_v15  ;;  %v993_v18 = vrot.slane %v992_v1, 4  ;;  %v1016_v29 = vor.u32 %v1015_v8, %v1012_v2  ;;  %v1021_v34 = vrot.slane %v1019_v3, 5  ;;  %v1432_v5 = vld [vmem:[%s7565_s25 + $0x4] sm:$0xf]  ;;  %v1433_v15 = vld [vmem:[%s7565_s25 + $0x8] sm:$0x1] }
  0x86   : > { %v1003_v20 = vrot.slane %v1002_v10, 4  ;;  %v1025_v21 = vrot.slane %v1023_v13, 4  ;;  %v1034_v25 = vshrl.u32 %v677_v58, 16  ;;  %v1037_v31 = vshll.u32 %v677_v58, 16  ;;  %v7473_v58 = vld [vmem:[%s7565_s25 + $0x48] sm:$0xff]  }
  0x87   : > { %6926 = vmatprep.mubr.msk.bf16.mxu1 %vm360_vm1, %v5998_v17  ;;  %v998_v26 = vsel %vm7612_vm4, %v993_v18, %v997_v37  ;;  %v1017_v27 = vrot.slane %v1016_v29, 4  ;;  %v1043_v32 = vshll.u32 %v678_v63, 16  ;;  %v1031_v33 = vrot.slane %v1029_v22, 5  ;;  %v1434_v18 = vld [vmem:[%s7565_s25 + $0xc] sm:$0xe] }
  0x88   : > { %v1008_v6 = vsel %vm7612_vm4, %v1003_v20, %v1007_v62  ;;  %7077 = vmatmul.mubr.msk.bf16.vlgmr.msra.gmra.mrb[0].mxu0 %vm360_vm1, %v7470_v11  ;;  %v1026_v7 = vor.u32 %v1025_v21, %v1021_v34  ;;  %v1036_v35 = vrot.slane %v1034_v25, 4  ;;  %v1039_v9 = vrot.slane %v1037_v31, 5  ;;  %v1435_v21 = vld [vmem:[%s7565_s25 + $0x10] sm:$0xf]  ;;  %v1436_v22 = vld [vmem:[%s7565_s25 + $0x14] sm:$0x1] }
  0x89   : > { %v5999_v38 = vcombine.low %v998_v26, %v1008_v6  ;;  %7109 = vmatpush3.bf16.msra.mxu0 %v7598_v16  ;;  %v1022_v39 = vsel %vm7612_vm4, %v1017_v27, %v1021_v34  ;;  %v1045_v23 = vrot.slane %v1043_v32, 5  ;;  %7080 = vmatprep.mubr.msk.bf16.mxu0 %vm360_vm1, %v7471_v19  ;;  %v1047_v45 = vshrl.u32 %v678_v63, 16  ;;  %v684_v16 = vld [vmem:[%s7565_s25 + $0xb8] sm:$0xf]  ;;  %v1431_v63 = vld [vmem:[%s7565_s25] sm:$0xe] }
  0x8a   : > { %v1027_v44 = vrot.slane %v1026_v7, 4  ;;  %v1053_v46 = vshll.u32 %v679_v24, 16  ;;  %v1058_v47 = vshrl.u32 %v680_v54, 16  ;;  %v1040_v48 = vor.u32 %v1039_v9, %v1036_v35  ;;  %v1437_v31 = vld [vmem:[%s7565_s25 + $0x18] sm:$0xe] }
  0x8b   : > { %6927 = vmatmul.mubr.msk.bf16.gmra.mrb[20].mxu1 %vm360_vm1, %v5999_v38  ;;  %v1061_v49 = vshll.u32 %v680_v54, 16  ;;  %v1067_v50 = vshll.u32 %v681_v36, 16  ;;  %v1071_v51 = vshrl.u32 %v681_v36, 16  ;;  %v1049_v53 = vrot.slane %v1047_v45, 4  ;;  %v1438_v32 = vld [vmem:[%s7565_s25 + $0x1c] sm:$0xf] }
  0x8c   : > { %v1032_v52 = vsel %vm7612_vm4, %v1027_v44, %v1031_v33  ;;  %v1055_v12 = vrot.slane %v1053_v46, 5  ;;  %v1060_v56 = vrot.slane %v1058_v47, 4  ;;  %v1041_v37 = vrot.slane %v1040_v48, 4  ;;  %v7474_v35 = vld [vmem:[%s7565_s25 + $0x54] sm:$0xff]   ;;  %v1439_v36 = vld [vmem:[%s7565_s25 + $0x20] sm:$0x1] }
  0x8d   : > { %v6000_v30 = vcombine.low %v1022_v39, %v1032_v52  ;;  %v1063_v28 = vrot.slane %v1061_v49, 5  ;;  %v1069_v14 = vrot.slane %v1067_v50, 5  ;;  %v1050_v59 = vor.u32 %v1049_v53, %v1045_v23  ;;  %v1440_v47 = vld [vmem:[%s7565_s25 + $0x24] sm:$0xe]  ;;  %v1442_v52 = vld [vmem:[%s7565_s25 + $0x2c] sm:$0x1] }
  0x8e   : > { %v1073_v60 = vrot.slane %v1071_v51, 4  ;;  %v1077_v61 = vshll.u32 %v682_v40, 16  ;;  %v1082_v62 = vshrl.u32 %v683_v41, 16  ;;  %v1046_v1 = vsel %vm7612_vm4, %v1041_v37, %v1045_v23  ;;  %v7475_v40 = vld [vmem:[%s7565_s25 + $0x60] sm:$0xff]  }
  0x8f   : > { %6930 = vmatprep.mubr.msk.bf16.mxu1 %vm360_vm1, %v6000_v30  ;;  %v1064_v2 = vor.u32 %v1063_v28, %v1060_v56  ;;  %v1085_v8 = vshll.u32 %v683_v41, 16  ;;  %v1091_v3 = vshll.u32 %v684_v16, 16  ;;  %v1051_v10 = vrot.slane %v1050_v59, 4  ;;  %v1443_v30 = vld [vmem:[%s7565_s25 + $0x30] sm:$0xe] }
  0x90   : > { %7081 = vmatmul.mubr.msk.bf16.gmra.mrb[4].mxu0 %vm360_vm1, %v7472_v55  ;;  %v1074_v11 = vor.u32 %v1073_v60, %v1069_v14  ;;  %v1079_v13 = vrot.slane %v1077_v61, 5  ;;  %v1084_v17 = vrot.slane %v1082_v62, 4  ;;  %v1095_v20 = vshrl.u32 %v684_v16, 16  ;;  %v1441_v16 = vld [vmem:[%s7565_s25 + $0x28] sm:$0xf] }
  0x91   : > { %v1065_v29 = vrot.slane %v1064_v2, 4  ;;  %v1087_v34 = vrot.slane %v1085_v8, 5  ;;  %v1093_v19 = vrot.slane %v1091_v3, 5  ;;  %7084 = vmatprep.mubr.msk.bf16.mxu0 %vm360_vm1, %v7473_v58  ;;  %v1056_v24 = vsel %vm7612_vm4, %v1051_v10, %v1055_v12  ;;  %v1444_v58 = vld [vmem:[%s7565_s25 + $0x34] sm:$0xf]  ;;  %v7476_v10 = vld [vmem:[%s7565_s25 + $0x6c] sm:$0xff]  }
  0x92   : > { %v1075_v25 = vrot.slane %v1074_v11, 4  ;;  %v1101_v26 = vshll.u32 %v685_v57, 16  ;;  %v6020_v27 = vrot.slane %v1431_v63, 9  ;;  %v6001_v54 = vcombine.low %v1046_v1, %v1056_v24  ;;  %v1445_v59 = vld [vmem:[%s7565_s25 + $0x38] sm:$0x1] }
  0x93   : > { %v1070_v6 = vsel %vm7612_vm4, %v1065_v29, %v1069_v14  ;;  %v1088_v7 = vor.u32 %v1087_v34, %v1084_v17  ;;  %v1097_v33 = vrot.slane %v1095_v20, 4  ;;  %v1564_v9 = vrot.slane %v1432_v5, 5  ;;  %v1446_v60 = vld [vmem:[%s7565_s25 + $0x3c] sm:$0xe]  ;;  %v1447_v61 = vld [vmem:[%s7565_s25 + $0x40] sm:$0xf] }
  0x94   : > { %v1080_v38 = vsel %vm7612_vm4, %v1075_v25, %v1079_v13  ;;  %v1103_v39 = vrot.slane %v1101_v26, 5  ;;  %v1567_v23 = vrot.slane %v1433_v15, 5  ;;  %6931 = vmatmul.mubr.msk.bf16.gmra.mrb[24].mxu1 %vm360_vm1, %v6001_v54  ;;  %v6021_v46 = vrot.slane %v1434_v18, 9  ;;  %v1448_v8 = vld [vmem:[%s7565_s25 + $0x44] sm:$0x1]  ;;  %v7477_v34 = vld [vmem:[%s7565_s25 + $0x78] sm:$0xff]  }
  0x95   : > { %v6002_v41 = vcombine.low %v1070_v6, %v1080_v38  ;;  %v1089_v44 = vrot.slane %v1088_v7, 4  ;;  %v1098_v45 = vor.u32 %v1097_v33, %v1093_v19  ;;  %v1565_v48 = vsel %vm7687_vm7, %v6020_v27, %v1564_v9  ;;  %v1449_v3 = vld [vmem:[%s7565_s25 + $0x48] sm:$0xe]  ;;  %v1450_v20 = vld [vmem:[%s7565_s25 + $0x4c] sm:$0xf] }
  0x96   : > { %v1566_v49 = vrot.slane %v1564_v9, 4  ;;  %v1571_v50 = vrot.slane %v1435_v21, 5  ;;  %v1574_v51 = vrot.slane %v1436_v22, 5  ;;  %v6022_v55 = vrot.slane %v1437_v31, 9  ;;  %v1451_v21 = vld [vmem:[%s7565_s25 + $0x50] sm:$0x1] }
  0x97   : > { %6934 = vmatprep.mubr.msk.bf16.mxu1 %vm360_vm1, %v6002_v41  ;;  %v1094_v53 = vsel %vm7612_vm4, %v1089_v44, %v1093_v19  ;;  %v1099_v12 = vrot.slane %v1098_v45, 4  ;;  %v1578_v56 = vrot.slane %v1438_v32, 5  ;;  %v1581_v57 = vrot.slane %v1439_v36, 5  ;;  %v1452_v27 = vld [vmem:[%s7565_s25 + $0x54] sm:$0xe] }
  0x98   : > { %7085 = vmatmul.mubr.msk.bf16.gmra.mrb[8].mxu0 %vm360_vm1, %v7474_v35  ;;  %v1568_v37 = vsel %vm7687_vm7, %v1566_v49, %v1567_v23  ;;  %v8046_v28 = vsel %vm7687_vm7, %v6021_v46, %v1571_v50  ;;  %v1573_v14 = vrot.slane %v1571_v50, 4  ;;  %v6023_v11 = vrot.slane %v1440_v47, 9  ;;  %v1453_v31 = vld [vmem:[%s7565_s25 + $0x58] sm:$0xf]  ;;  %v1454_v7 = vld [vmem:[%s7565_s25 + $0x5c] sm:$0x1] }
  0x99   : > { %v1104_v62 = vsel %vm7612_vm4, %v1099_v12, %v1103_v39  ;;  %v6037_v63 = vcombine.low %v1565_v48, %v1568_v37  ;;  %7088 = vmatprep.mubr.msk.bf16.mxu0 %vm360_vm1, %v7475_v40  ;;  %v8057_v1 = vsel %vm7687_vm7, %v6022_v55, %v1578_v56  ;;  %v1580_v2 = vrot.slane %v1578_v56, 4  ;;  %v1455_v39 = vld [vmem:[%s7565_s25 + $0x60] sm:$0xe]  ;;  %v1456_v44 = vld [vmem:[%s7565_s25 + $0x64] sm:$0xf] }
  0x9a   : > { %v6003_v5 = vcombine.low %v1094_v53, %v1104_v62  ;;  %v8063_v15 = vsel %vm7687_vm7, %v1573_v14, %v1574_v51  ;;  %v1585_v13 = vrot.slane %v1441_v16, 5  ;;  %v1588_v29 = vrot.slane %v1442_v52, 5  ;;  %v1457_v45 = vld [vmem:[%s7565_s25 + $0x68] sm:$0x1]  ;;  %v1458_v46 = vld [vmem:[%s7565_s25 + $0x6c] sm:$0xe] }
  0x9b   : > { %v6038_v17 = vcombine.low %v8046_v28, %v8063_v15  ;;  %v8070_v18 = vsel %vm7687_vm7, %v1580_v2, %v1581_v57  ;;  %v8075_v19 = vsel %vm409_vm0, %v7998_v42, 0  ;;  %v6024_v26 = vrot.slane %v1443_v30, 9  ;;  %v1459_v47 = vld [vmem:[%s7565_s25 + $0x70] sm:$0xf]  ;;  %v1460_v51 = vld [vmem:[%s7565_s25 + $0x74] sm:$0x1] }
  0x9c   : > { %v6039_v22 = vcombine.low %v8057_v1, %v8070_v18  ;;  %v8083_v24 = vsel %vm7687_vm7, %v6023_v11, %v1585_v13  ;;  %v1587_v25 = vrot.slane %v1585_v13, 4  ;;  %6935 = vmatmul.mubr.msk.bf16.gmra.mrb[28].mxu1 %vm360_vm1, %v6003_v5  ;;  %v1592_v32 = vrot.slane %v1444_v58, 5  ;;  %v1461_v14 = vld [vmem:[%s7565_s25 + $0x78] sm:$0xe]  ;;  %v1462_v57 = vld [vmem:[%s7565_s25 + $0x7c] sm:$0xf] }
  0x9d   : > { %v1595_v42 = vrot.slane %v1445_v59, 5  ;;  %v6025_v54 = vrot.slane %v1446_v60, 9  ;;  %v1599_v6 = vrot.slane %v1447_v61, 5  ;;  %6940 = vmatprep.mubr.msk.bf16.mxu1 %vm360_vm1, %v6037_v63  ;;  %v1602_v35 = vrot.slane %v1448_v8, 5  ;;  %v7478_v58 = vld [vmem:[%s7565_s25 + $0x84] sm:$0xff]  }
  0x9e   : > { %v8092_v33 = vsel %vm7687_vm7, %v1587_v25, %v1588_v29  ;;  %v6026_v36 = vrot.slane %v1449_v3, 9  ;;  %v1606_v38 = vrot.slane %v1450_v20, 5  ;;  %v8099_v23 = vsel %vm7687_vm7, %v6024_v26, %v1592_v32  ;;  %v1463_v63 = vld [vmem:[%s7565_s25 + $0x80] sm:$0x1]  ;;  %v1464_v1 = vld [vmem:[%s7565_s25 + $0x84] sm:$0xe] }
  0x9f   : > { %v6040_v9 = vcombine.low %v8083_v24, %v8092_v33  ;;  %v1594_v40 = vrot.slane %v1592_v32, 4  ;;  %v8103_v41 = vsel %vm7687_vm7, %v6025_v54, %v1599_v6  ;;  %v1601_v16 = vrot.slane %v1599_v6, 4  ;;  %v1465_v15 = vld [vmem:[%s7565_s25 + $0x88] sm:$0xf]  ;;  %v6377_v26 = vld [vmem:[%s7565_s25 + $0x18] sm:$0xf] }
  0xa0   : > { %7089 = vmatmul.mubr.msk.bf16.gmra.mrb[12].mxu0 %vm360_vm1, %v7476_v10  ;;  %v8112_v48 = vsel %vm7687_vm7, %v6026_v36, %v1606_v38  ;;  %v1608_v49 = vrot.slane %v1606_v38, 4  ;;  %v1609_v50 = vrot.slane %v1451_v21, 5  ;;  %v6027_v53 = vrot.slane %v1452_v27, 9  ;;  %v7479_v10 = vld [vmem:[%s7565_s25 + $0x90] sm:$0xff]   ;;  %v6378_v32 = vld [vmem:[%s7565_s25 + $0x1c] sm:$0xf] }
  0xa1   : > { %7092 = vmatprep.mubr.msk.bf16.mxu0 %vm360_vm1, %v7477_v34  ;;  %v8118_v52 = vsel %vm7687_vm7, %v1594_v40, %v1595_v42  ;;  %v1613_v12 = vrot.slane %v1453_v31, 5  ;;  %v1616_v55 = vrot.slane %v1454_v7, 5  ;;  %v8124_v30 = vsel %vm7687_vm7, %v1601_v16, %v1602_v35  ;;  %v1466_v34 = vld [vmem:[%s7565_s25 + $0x8c] sm:$0x1]  ;;  %v7501_v42 = vld [vmem:[%s8838_s1 + $0x8] sm:$0x3] }
  0xa2   : > { %v6041_v56 = vcombine.low %v8099_v23, %v8118_v52  ;;  %v8128_v37 = vsel %vm7687_vm7, %v1608_v49, %v1609_v50  ;;  %v6028_v28 = vrot.slane %v1455_v39, 9  ;;  %v6042_v59 = vcombine.low %v8103_v41, %v8124_v30  ;;  %v6522_v36 = vld [vmem:[%s8838_s1 + $0x10] sm:$0x3] }
  0xa3   : > { %v6043_v60 = vcombine.low %v8112_v48, %v8128_v37  ;;  %v8139_v61 = vsel %vm7687_vm7, %v6027_v53, %v1613_v12  ;;  %v1615_v62 = vrot.slane %v1613_v12, 4  ;;  %v1620_v2 = vrot.slane %v1456_v44, 5  ;;  %v6379_v44 = vld [vmem:[%s7565_s25 + $0x20] sm:$0x1]  ;;  %7443 = vmatprep.subr.msk.bf16.mxu0 %vm409_vm0, %v6522_v36 }
  0xa4   : > { %v1623_v8 = vrot.slane %v1457_v45, 5  ;;  %v6029_v3 = vrot.slane %v1458_v46, 9  ;;  %v1627_v5 = vrot.slane %v1459_v47, 5  ;;  %6941 = vmatmul.mubr.msk.bf16.vlgmr.msra.gmra.mrb[0].mxu1 %vm360_vm1, %v6038_v17  ;;  %v1630_v13 = vrot.slane %v1460_v51, 5  ;;  %v6380_v46 = vld [vmem:[%s7565_s25 + $0x24] sm:$0xf] }
  0xa5   : > { %v8148_v11 = vsel %vm7687_vm7, %v1615_v62, %v1616_v55  ;;  %v6030_v18 = vrot.slane %v1461_v14, 9  ;;  %v1634_v29 = vrot.slane %v1462_v57, 5  ;;  %6944 = vmatprep.mubr.msk.bf16.mxu1 %vm360_vm1, %v6039_v22  ;;  %6973 = vmatpush3.bf16.msra.mxu1 %v8075_v19  ;;  %v8157_v17 = vsel %vm7687_vm7, %v6028_v28, %v1620_v2  ;;  %v6381_v28 = vld [vmem:[%s7565_s25 + $0x28] sm:$0xf]  ;;  %v7480_v14 = vld [vmem:[%s7565_s25 + $0x9c] sm:$0xff]  }
  0xa6   : > { %v6044_v20 = vcombine.low %v8139_v61, %v8148_v11  ;;  %v1622_v21 = vrot.slane %v1620_v2, 4  ;;  %v8161_v25 = vsel %vm7687_vm7, %v6029_v3, %v1627_v5  ;;  %v1629_v27 = vrot.slane %v1627_v5, 4  ;;  %7439 = vmatprep.subr.msk.bf16.mxu1 %vm409_vm0, %v7501_v42  ;;  %v6382_v62 = vld [vmem:[%s7565_s25 + $0x2c] sm:$0x1] }
  0xa7   : > { %v8166_v31 = vsel %vm7687_vm7, %v6030_v18, %v1634_v29  ;;  %v1636_v19 = vrot.slane %v1634_v29, 4  ;;  %v1637_v22 = vrot.slane %v1463_v63, 5  ;;  %v6031_v6 = vrot.slane %v1464_v1, 9  ;;  %v7481_v2 = vld [vmem:[%s7565_s25 + $0xa8] sm:$0xff]   ;;  %v1468_v18 = vld [vmem:[%s7565_s25 + $0x94] sm:$0xf] }
  0xa8   : > { %7093 = vmatmul.mubr.msk.bf16.gmra.mrb[16].mxu0 %vm360_vm1, %v7478_v58  ;;  %v8176_v54 = vsel %vm7687_vm7, %v1622_v21, %v1623_v8  ;;  %v1641_v7 = vrot.slane %v1465_v15, 5  ;;  %v1644_v35 = vrot.slane %v1466_v34, 5  ;;  %v8186_v39 = vsel %vm7687_vm7, %v1629_v27, %v1630_v13  ;;  %v1469_v27 = vld [vmem:[%s7565_s25 + $0x98] sm:$0x1] }
  0xa9   : > { %7096 = vmatprep.mubr.msk.bf16.mxu0 %vm360_vm1, %v7479_v10  ;;  %v6045_v38 = vcombine.low %v8157_v17, %v8176_v54  ;;  %v8190_v40 = vsel %vm7687_vm7, %v1636_v19, %v1637_v22  ;;  %v4283_v45 = vshrl.u32 %v6377_v26, 16  ;;  %v6046_v47 = vcombine.low %v8161_v25, %v8186_v39  ;;  %v1467_v10 = vld [vmem:[%s7565_s25 + $0x90] sm:$0xe]  ;;  %v1470_v19 = vld [vmem:[%s7565_s25 + $0x9c] sm:$0xe] }
  0xaa   : > { %v6047_v16 = vcombine.low %v8166_v31, %v8190_v40  ;;  %v8201_v49 = vsel %vm7687_vm7, %v6031_v6, %v1641_v7  ;;  %v1643_v50 = vrot.slane %v1641_v7, 4  ;;  %v4286_v53 = vshll.u32 %v6377_v26, 16  ;;  %v6390_v17 = vld [vmem:[%s7565_s25 + $0x4c] sm:$0xf]  ;;  %v6396_v39 = vld [vmem:[%s7565_s25 + $0x64] sm:$0xf] }
  0xab   : > { %v4285_v51 = vrot.slane %v4283_v45, 4  ;;  %v4292_v12 = vshll.u32 %v6378_v32, 16  ;;  %v4296_v55 = vshrl.u32 %v6378_v32, 16  ;;  %v4302_v58 = vshll.u32 %v6379_v44, 16 }
  0xac   : > { %v8207_v57 = vsel %vm7687_vm7, %v1643_v50, %v1644_v35  ;;  %v4307_v63 = vshrl.u32 %v6380_v46, 16  ;;  %v4310_v1 = vshll.u32 %v6380_v46, 16  ;;  %6945 = vmatmul.mubr.msk.bf16.gmra.mrb[4].mxu1 %vm360_vm1, %v6040_v9  ;;  %v4288_v3 = vrot.slane %v4286_v53, 5  ;;  %v1472_v50 = vld [vmem:[%s7565_s25 + $0xa4] sm:$0x1] }
  0xad   : > { %v6048_v8 = vcombine.low %v8201_v49, %v8207_v57  ;;  %v4294_v5 = vrot.slane %v4292_v12, 5  ;;  %v4298_v15 = vrot.slane %v4296_v55, 4  ;;  %6948 = vmatprep.mubr.msk.bf16.mxu1 %vm360_vm1, %v6041_v56  ;;  %v4304_v13 = vrot.slane %v4302_v58, 5  ;;  %v1471_v56 = vld [vmem:[%s7565_s25 + $0xa0] sm:$0xf]  ;;  %v7482_v58 = vld [vmem:[%s7565_s25 + $0xb4] sm:$0xff]  }
  0xae   : > { %v4309_v24 = vrot.slane %v4307_v63, 4  ;;  %v4312_v33 = vrot.slane %v4310_v1, 5  ;;  %v4316_v9 = vshll.u32 %v6381_v28, 16  ;;  %v4289_v29 = vor.u32 %v4288_v3, %v4285_v51  ;;  %v7483_v3 = vld [vmem:[%s7565_s25 + $0xc0] sm:$0xff]  }
  0xaf   : > { %v4299_v34 = vor.u32 %v4298_v15, %v4294_v5  ;;  %v4320_v21 = vshrl.u32 %v6381_v28, 16  ;;  %v4326_v26 = vshll.u32 %v6382_v62, 16  ;;  %v8227_v23 = vsel %vm409_vm0, %v6522_v36, 0  ;;  %v6383_v28 = vld [vmem:[%s7565_s25 + $0x30] sm:$0xf] }
  0xb0   : > { %7097 = vmatmul.mubr.msk.bf16.gmra.mrb[20].mxu0 %vm360_vm1, %v7480_v14  ;;  %v4313_v22 = vor.u32 %v4312_v33, %v4309_v24  ;;  %v4318_v32 = vrot.slane %v4316_v9, 5  ;;  %v6032_v52 = vrot.slane %v1467_v10, 9  ;;  %v4290_v42 = vrot.slane %v4289_v29, 4  ;;  %v6384_v14 = vld [vmem:[%s7565_s25 + $0x34] sm:$0xf] }
  0xb1   : > { %7100 = vmatprep.mubr.msk.bf16.mxu0 %vm360_vm1, %v7481_v2  ;;  %v4300_v6 = vrot.slane %v4299_v34, 4  ;;  %v4322_v7 = vrot.slane %v4320_v21, 4  ;;  %v4328_v35 = vrot.slane %v4326_v26, 5  ;;  %v1648_v45 = vrot.slane %v1468_v18, 5  ;;  %v6385_v24 = vld [vmem:[%s7565_s25 + $0x38] sm:$0x1] }
  0xb2   : > { %v4314_v44 = vrot.slane %v4313_v22, 4  ;;  %v1651_v46 = vrot.slane %v1469_v27, 5  ;;  %v6033_v51 = vrot.slane %v1470_v19, 9  ;;  %v4295_v36 = vsel %vm7612_vm4, %v4290_v42, %v4294_v5  ;;  %v6386_v9 = vld [vmem:[%s7565_s25 + $0x3c] sm:$0xf] }
  0xb3   : > { %v4305_v53 = vsel %vm7612_vm4, %v4300_v6, %v4304_v13  ;;  %v4323_v12 = vor.u32 %v4322_v7, %v4318_v32  ;;  %v1655_v55 = vrot.slane %v1471_v56, 5  ;;  %v8245_v1 = vsel %vm7687_vm7, %v6032_v52, %v1648_v45  ;;  %v6388_v34 = vld [vmem:[%s7565_s25 + $0x44] sm:$0x1]  ;;  %v1473_v22 = vld [vmem:[%s7565_s25 + $0xa8] sm:$0xe] }
  0xb4   : > { %v8239_v62 = vcombine.low %v4295_v36, %v4305_v53  ;;  %v4319_v63 = vsel %vm7612_vm4, %v4314_v44, %v4318_v32  ;;  %v1650_v2 = vrot.slane %v1648_v45, 4  ;;  %6949 = vmatmul.mubr.msk.bf16.gmra.mrb[8].mxu1 %vm360_vm1, %v6042_v59  ;;  %v1658_v13 = vrot.slane %v1472_v50, 5  ;;  %v1474_v32 = vld [vmem:[%s7565_s25 + $0xac] sm:$0xf]  ;;  %v1475_v7 = vld [vmem:[%s7565_s25 + $0xb0] sm:$0x1] }
  0xb5   : > { %v4324_v5 = vrot.slane %v4323_v12, 4  ;;  %v8254_v15 = vsel %vm7687_vm7, %v6033_v51, %v1655_v55  ;;  %v1657_v10 = vrot.slane %v1655_v55, 4  ;;  %6952 = vmatprep.mubr.msk.bf16.mxu1 %vm360_vm1, %v6043_v60  ;;  %v4331_v30 = vshrl.u32 %v6383_v28, 16  ;;  %v6387_v60 = vld [vmem:[%s7565_s25 + $0x40] sm:$0xf]  ;;  %v7484_v51 = vld [vmem:[%s7565_s25 + $0xcc] sm:$0xff]  }
  0xb6   : > { %v8263_v41 = vsel %vm7687_vm7, %v1650_v2, %v1651_v46  ;;  %v4334_v59 = vshll.u32 %v6383_v28, 16  ;;  %v4340_v33 = vshll.u32 %v6384_v14, 16  ;;  %v4344_v37 = vshrl.u32 %v6384_v14, 16  ;;  %v1476_v50 = vld [vmem:[%s7565_s25 + $0xb4] sm:$0xe] }
  0xb7   : > { %v4329_v18 = vsel %vm7612_vm4, %v4324_v5, %v4328_v35  ;;  %v6049_v29 = vcombine.low %v8245_v1, %v8263_v41  ;;  %v8272_v48 = vsel %vm7687_vm7, %v1657_v10, %v1658_v13  ;;  %v4333_v27 = vrot.slane %v4331_v30, 4  ;;  %v1477_v28 = vld [vmem:[%s7565_s25 + $0xb8] sm:$0xf]  ;;  %v6389_v5 = vld [vmem:[%s7565_s25 + $0x48] sm:$0xf] }
  0xb8   : > { %7101 = vmatmul.mubr.msk.bf16.gmra.mrb[24].mxu0 %vm360_vm1, %v7482_v58  ;;  %v8277_v21 = vcombine.low %v4319_v63, %v4329_v18  ;;  %v6050_v26 = vcombine.low %v8254_v15, %v8272_v48  ;;  %v4336_v19 = vrot.slane %v4334_v59, 5  ;;  %v4342_v52 = vrot.slane %v4340_v33, 5 }
  0xb9   : > { %7104 = vmatprep.mubr.msk.bf16.mxu0 %vm360_vm1, %v7483_v3  ;;  %v4346_v56 = vrot.slane %v4344_v37, 4  ;;  %v4350_v42 = vshll.u32 %v6385_v24, 16  ;;  %v4355_v6 = vshrl.u32 %v6386_v9, 16  ;;  %v4358_v44 = vshll.u32 %v6386_v9, 16  ;;  %v1478_v3 = vld [vmem:[%s7565_s25 + $0xbc] sm:$0x1] }
  0xba   : > { %v4337_v35 = vor.u32 %v4336_v19, %v4333_v27  ;;  %v4364_v45 = vshll.u32 %v6387_v60, 16  ;;  %v4368_v46 = vshrl.u32 %v6387_v60, 16  ;;  %v4374_v55 = vshll.u32 %v6388_v34, 16  ;;  %v6391_v27 = vld [vmem:[%s7565_s25 + $0x50] sm:$0x1] }
  0xbb   : > { %v4347_v36 = vor.u32 %v4346_v56, %v4342_v52  ;;  %v4352_v53 = vrot.slane %v4350_v42, 5  ;;  %v4357_v12 = vrot.slane %v4355_v6, 4  ;;  %v4360_v58 = vrot.slane %v4358_v44, 5  ;;  %v6392_v56 = vld [vmem:[%s7565_s25 + $0x54] sm:$0xf] }
  0xbc   : > { %v4338_v14 = vrot.slane %v4337_v35, 4  ;;  %v4366_v63 = vrot.slane %v4364_v45, 5  ;;  %v4370_v2 = vrot.slane %v4368_v46, 4  ;;  %6953 = vmatmul.mubr.msk.bf16.gmra.mrb[12].mxu1 %vm360_vm1, %v6044_v20  ;;  %v4376_v13 = vrot.slane %v4374_v55, 5  ;;  %v6393_v35 = vld [vmem:[%s7565_s25 + $0x58] sm:$0xf] }
  0xbd   : > { %v4348_v10 = vrot.slane %v4347_v36, 4  ;;  %v6034_v24 = vrot.slane %v1473_v22, 9  ;;  %v1662_v30 = vrot.slane %v1474_v32, 5  ;;  %6956 = vmatprep.mubr.msk.bf16.mxu1 %vm360_vm1, %v6045_v38  ;;  %v4361_v33 = vor.u32 %v4360_v58, %v4357_v12  ;;  %v6395_v36 = vld [vmem:[%s7565_s25 + $0x60] sm:$0xf] }
  0xbe   : > { %v4343_v59 = vsel %vm7612_vm4, %v4338_v14, %v4342_v52  ;;  %v4371_v9 = vor.u32 %v4370_v2, %v4366_v63  ;;  %v1665_v18 = vrot.slane %v1475_v7, 5  ;;  %v6035_v37 = vrot.slane %v1476_v50, 9 }
  0xbf   : > { %v4353_v61 = vsel %vm7612_vm4, %v4348_v10, %v4352_v53  ;;  %v8304_v11 = vsel %vm7687_vm7, %v6034_v24, %v1662_v30  ;;  %v1664_v20 = vrot.slane %v1662_v30, 4  ;;  %v4362_v38 = vrot.slane %v4361_v33, 4 }
  0xc0   : > { %7105 = vmatmul.mubr.msk.bf16.gmra.mrb[28].mxu0 %vm360_vm1, %v7484_v51  ;;  %v6428_v54 = vcombine.low %v4343_v59, %v4353_v61  ;;  %v4372_v60 = vrot.slane %v4371_v9, 4  ;;  %v1669_v34 = vrot.slane %v1477_v28, 5  ;;  %v1672_v22 = vrot.slane %v1478_v3, 5  ;;  %v6394_v51 = vld [vmem:[%s7565_s25 + $0x5c] sm:$0x1] }
  0xc1   : > { %7110 = vmatprep.mubr.msk.bf16.mxu0 %vm360_vm1, %v8239_v62  ;;  %v8313_v19 = vsel %vm7687_vm7, %v1664_v20, %v1665_v18  ;;  %v4379_v32 = vshrl.u32 %v6389_v5, 16  ;;  %v4382_v52 = vshll.u32 %v6389_v5, 16  ;;  %v4367_v42 = vsel %vm7612_vm4, %v4362_v38, %v4366_v63  ;;  %v6397_v18 = vld [vmem:[%s7565_s25 + $0x68] sm:$0x1] }
  0xc2   : > { %v4377_v6 = vsel %vm7612_vm4, %v4372_v60, %v4376_v13  ;;  %v6051_v7 = vcombine.low %v8304_v11, %v8313_v19  ;;  %v8324_v62 = vsel %vm7687_vm7, %v6035_v37, %v1669_v34  ;;  %v1671_v45 = vrot.slane %v1669_v34, 4  ;;  %v6398_v37 = vld [vmem:[%s7565_s25 + $0x6c] sm:$0xf]  ;;  %v6399_v34 = vld [vmem:[%s7565_s25 + $0x70] sm:$0xf] }
  0xc3   : > { %v8327_v44 = vcombine.low %v4367_v42, %v4377_v6  ;;  %v4381_v46 = vrot.slane %v4379_v32, 4  ;;  %v4384_v50 = vrot.slane %v4382_v52, 5  ;;  %v4388_v53 = vshll.u32 %v6390_v17, 16 }
  0xc4   : > { %v4392_v12 = vshrl.u32 %v6390_v17, 16  ;;  %v4398_v55 = vshll.u32 %v6391_v27, 16  ;;  %v4403_v28 = vshrl.u32 %v6392_v56, 16  ;;  %6957 = vmatmul.mubr.msk.bf16.gmra.mrb[16].mxu1 %vm360_vm1, %v6046_v47  ;;  %v8337_v14 = vsel %vm7687_vm7, %v1671_v45, %v1672_v22 }
  0xc5   : > { %v4385_v58 = vor.u32 %v4384_v50, %v4381_v46  ;;  %v4406_v63 = vshll.u32 %v6392_v56, 16  ;;  %v4412_v2 = vshll.u32 %v6393_v35, 16  ;;  %6960 = vmatprep.mubr.msk.bf16.mxu1 %vm360_vm1, %v6047_v16  ;;  %v6052_v3 = vcombine.low %v8324_v62, %v8337_v14 }
  0xc6   : > { %v4390_v5 = vrot.slane %v4388_v53, 5  ;;  %v4394_v10 = vrot.slane %v4392_v12, 4  ;;  %v4400_v25 = vrot.slane %v4398_v55, 5  ;;  %v4405_v13 = vrot.slane %v4403_v28, 4 }
  0xc7   : > { %v4386_v47 = vrot.slane %v4385_v58, 4  ;;  %v4408_v24 = vrot.slane %v4406_v63, 5  ;;  %v4414_v30 = vrot.slane %v4412_v2, 5  ;;  %v4416_v31 = vshrl.u32 %v6393_v35, 16 }
  0xc8   : > { %7111 = vmatmul.mubr.msk.bf16.vlgmr.msra.gmra.mrb[0].mxu0 %vm360_vm1, %v8277_v21  ;;  %v4395_v59 = vor.u32 %v4394_v10, %v4390_v5  ;;  %v4422_v40 = vshll.u32 %v6394_v51, 16  ;;  %v4427_v16 = vshrl.u32 %v6395_v36, 16  ;;  %v4430_v61 = vshll.u32 %v6395_v36, 16  ;;  %v6401_v51 = vld [vmem:[%s7565_s25 + $0x78] sm:$0xf] }
  0xc9   : > { %7143 = vmatpush3.bf16.msra.mxu0 %v8227_v23  ;;  %7114 = vmatprep.mubr.msk.bf16.mxu0 %vm360_vm1, %v6428_v54  ;;  %v4391_v33 = vsel %vm7612_vm4, %v4386_v47, %v4390_v5  ;;  %v4409_v9 = vor.u32 %v4408_v24, %v4405_v13  ;;  %v4436_v20 = vshll.u32 %v6396_v39, 16  ;;  %v4418_v21 = vrot.slane %v4416_v31, 4  ;;  %v6400_v54 = vld [vmem:[%s7565_s25 + $0x74] sm:$0x1]  ;;  %v6404_v47 = vld [vmem:[%s7565_s25 + $0x84] sm:$0xf] }
  0xca   : > { %v4396_v17 = vrot.slane %v4395_v59, 4  ;;  %v4424_v38 = vrot.slane %v4422_v40, 5  ;;  %v4429_v60 = vrot.slane %v4427_v16, 4  ;;  %v4432_v22 = vrot.slane %v4430_v61, 5  ;;  %v6405_v59 = vld [vmem:[%s7565_s25 + $0x88] sm:$0xf] }
  0xcb   : > { %v4410_v27 = vrot.slane %v4409_v9, 4  ;;  %v4438_v23 = vrot.slane %v4436_v20, 5  ;;  %v4440_v32 = vshrl.u32 %v6396_v39, 16  ;;  %v4419_v56 = vor.u32 %v4418_v21, %v4414_v30  ;;  %v6403_v39 = vld [vmem:[%s7565_s25 + $0x80] sm:$0x1] }
  0xcc   : > { %v4401_v52 = vsel %vm7612_vm4, %v4396_v17, %v4400_v25  ;;  %v4446_v42 = vshll.u32 %v6397_v18, 16  ;;  %v4451_v6 = vshrl.u32 %v6398_v37, 16  ;;  %6961 = vmatmul.mubr.msk.bf16.gmra.mrb[20].mxu1 %vm360_vm1, %v6048_v8  ;;  %v4433_v46 = vor.u32 %v4432_v22, %v4429_v60 }
  0xcd   : > { %v6430_v35 = vcombine.low %v4391_v33, %v4401_v52  ;;  %v4415_v45 = vsel %vm7612_vm4, %v4410_v27, %v4414_v30  ;;  %v4442_v50 = vrot.slane %v4440_v32, 4  ;;  %6964 = vmatprep.mubr.msk.bf16.mxu1 %vm360_vm1, %v6049_v29  ;;  %v4420_v36 = vrot.slane %v4419_v56, 4  ;;  %v6402_v29 = vld [vmem:[%s7565_s25 + $0x7c] sm:$0xf]  ;;  %v6408_v52 = vld [vmem:[%s7565_s25 + $0x94] sm:$0xf] }
  0xce   : > { %v4448_v53 = vrot.slane %v4446_v42, 5  ;;  %v4453_v12 = vrot.slane %v4451_v6, 4  ;;  %v4454_v55 = vshll.u32 %v6398_v37, 16  ;;  %v4434_v49 = vrot.slane %v4433_v46, 4  ;;  %v6409_v42 = vld [vmem:[%s7565_s25 + $0x98] sm:$0x1] }
  0xcf   : > { %v4443_v57 = vor.u32 %v4442_v50, %v4438_v23  ;;  %v4460_v8 = vshll.u32 %v6399_v34, 16  ;;  %v4464_v28 = vshrl.u32 %v6399_v34, 16  ;;  %v4425_v58 = vsel %vm7612_vm4, %v4420_v36, %v4424_v38  ;;  %v6406_v38 = vld [vmem:[%s7565_s25 + $0x8c] sm:$0x1]  ;;  %v6410_v50 = vld [vmem:[%s7565_s25 + $0x9c] sm:$0xf] }
  0xd0   : > { %7115 = vmatmul.mubr.msk.bf16.gmra.mrb[4].mxu0 %vm360_vm1, %v8327_v44  ;;  %v4456_v1 = vrot.slane %v4454_v55, 5  ;;  %v4470_v41 = vshll.u32 %v6400_v54, 16  ;;  %v4475_v63 = vshrl.u32 %v6401_v51, 16  ;;  %v6431_v2 = vcombine.low %v4415_v45, %v4425_v58  ;;  %v6407_v54 = vld [vmem:[%s7565_s25 + $0x90] sm:$0xf] }
  0xd1   : > { %7118 = vmatprep.mubr.msk.bf16.mxu0 %vm360_vm1, %v6430_v35  ;;  %v4439_v5 = vsel %vm7612_vm4, %v4434_v49, %v4438_v23  ;;  %v4444_v10 = vrot.slane %v4443_v57, 4  ;;  %v4462_v25 = vrot.slane %v4460_v8, 5  ;;  %v4466_v44 = vrot.slane %v4464_v28, 4 }
  0xd2   : > { %v4457_v13 = vor.u32 %v4456_v1, %v4453_v12  ;;  %v4472_v24 = vrot.slane %v4470_v41, 5  ;;  %v4477_v30 = vrot.slane %v4475_v63, 4  ;;  %v4478_v40 = vshll.u32 %v6401_v51, 16  ;;  %v7485_v51 = vld [vmem:[%s7565_s25 + $0xc] sm:$0xff]   ;;  %v6411_v63 = vld [vmem:[%s7565_s25 + $0xa0] sm:$0xf] }
  0xd3   : > { %v4449_v31 = vsel %vm7612_vm4, %v4444_v10, %v4448_v53  ;;  %v4484_v16 = vshll.u32 %v6402_v29, 16  ;;  %v4488_v33 = vshrl.u32 %v6402_v29, 16  ;;  %v4467_v61 = vor.u32 %v4466_v44, %v4462_v25 }
  0xd4   : > { %v6432_v9 = vcombine.low %v4439_v5, %v4449_v31  ;;  %v4458_v18 = vrot.slane %v4457_v13, 4  ;;  %v4494_v20 = vshll.u32 %v6403_v39, 16  ;;  %6965 = vmatmul.mubr.msk.bf16.gmra.mrb[24].mxu1 %vm360_vm1, %v6050_v26  ;;  %v4480_v37 = vrot.slane %v4478_v40, 5  ;;  %v6412_v13 = vld [vmem:[%s7565_s25 + $0xa4] sm:$0x1]  ;;  %v7486_v31 = vld [vmem:[%s7565_s25 + $0x18] sm:$0xff]  }
  0xd5   : > { %v4486_v17 = vrot.slane %v4484_v16, 5  ;;  %v4490_v21 = vrot.slane %v4488_v33, 4  ;;  %v4499_v60 = vshrl.u32 %v6404_v47, 16  ;;  %6968 = vmatprep.mubr.msk.bf16.mxu1 %vm360_vm1, %v6051_v7  ;;  %v4468_v27 = vrot.slane %v4467_v61, 4 }
  0xd6   : > { %v4463_v34 = vsel %vm7612_vm4, %v4458_v18, %v4462_v25  ;;  %v4496_v15 = vrot.slane %v4494_v20, 5  ;;  %v4502_v48 = vshll.u32 %v6404_v47, 16  ;;  %v4481_v22 = vor.u32 %v4480_v37, %v4477_v30  ;;  %v6414_v18 = vld [vmem:[%s7565_s25 + $0xac] sm:$0xf] }
  0xd7   : > { %v4491_v26 = vor.u32 %v4490_v21, %v4486_v17  ;;  %v4501_v23 = vrot.slane %v4499_v60, 4  ;;  %v4508_v32 = vshll.u32 %v6405_v59, 16  ;;  %v4473_v11 = vsel %vm7612_vm4, %v4468_v27, %v4472_v24  ;;  %v6415_v21 = vld [vmem:[%s7565_s25 + $0xb0] sm:$0x1] }
  0xd8   : > { %7119 = vmatmul.mubr.msk.bf16.gmra.mrb[8].mxu0 %vm360_vm1, %v6431_v2  ;;  %v4504_v19 = vrot.slane %v4502_v48, 5  ;;  %v4512_v7 = vshrl.u32 %v6405_v59, 16  ;;  %v4518_v56 = vshll.u32 %v6406_v38, 16  ;;  %v6433_v6 = vcombine.low %v4463_v34, %v4473_v11  ;;  %v6413_v59 = vld [vmem:[%s7565_s25 + $0xa8] sm:$0xf] }
  0xd9   : > { %7122 = vmatprep.mubr.msk.bf16.mxu0 %vm360_vm1, %v6432_v9  ;;  %v4482_v35 = vrot.slane %v4481_v22, 4  ;;  %v4492_v45 = vrot.slane %v4491_v26, 4  ;;  %v4510_v46 = vrot.slane %v4508_v32, 5  ;;  %v4523_v55 = vshrl.u32 %v6407_v54, 16  ;;  %v7487_v38 = vld [vmem:[%s7565_s25 + $0x24] sm:$0xff]  }
  0xda   : > { %v4505_v36 = vor.u32 %v4504_v19, %v4501_v23  ;;  %v4514_v53 = vrot.slane %v4512_v7, 4  ;;  %v4520_v12 = vrot.slane %v4518_v56, 5  ;;  %v4526_v8 = vshll.u32 %v6407_v54, 16  ;;  %v6416_v48 = vld [vmem:[%s7565_s25 + $0xb4] sm:$0xf] }
  0xdb   : > { %v4487_v49 = vsel %vm7612_vm4, %v4482_v35, %v4486_v17  ;;  %v4497_v57 = vsel %vm7612_vm4, %v4492_v45, %v4496_v15  ;;  %v4532_v28 = vshll.u32 %v6408_v52, 16  ;;  %v4525_v29 = vrot.slane %v4523_v55, 4  ;;  %v6417_v35 = vld [vmem:[%s7565_s25 + $0xb8] sm:$0xf]  ;;  %v6418_v55 = vld [vmem:[%s7565_s25 + $0xbc] sm:$0x1] }
  0xdc   : > { %v6434_v58 = vcombine.low %v4487_v49, %v4497_v57  ;;  %v4506_v1 = vrot.slane %v4505_v36, 4  ;;  %v4515_v41 = vor.u32 %v4514_v53, %v4510_v46  ;;  %6969 = vmatmul.mubr.msk.bf16.gmra.mrb[28].mxu1 %vm360_vm1, %v6052_v3  ;;  %v4528_v2 = vrot.slane %v4526_v8, 5  ;;  %v7488_v36 = vld [vmem:[%s7565_s25 + $0x30] sm:$0xff]   ;;  %v7489_v8 = vld [vmem:[%s7565_s25 + $0x3c] sm:$0xff]  }
  0xdd   : > { %v4534_v5 = vrot.slane %v4532_v28, 5  ;;  %v4536_v10 = vshrl.u32 %v6408_v52, 16  ;;  %v4542_v25 = vshll.u32 %v6409_v42, 16  ;;  %6974 = vmatprep.mubr.msk.bf16.mxu1 %vm360_vm1, %v7485_v51  ;;  %v4547_v44 = vshrl.u32 %v6410_v50, 16 }
  0xde   : > { %v4511_v39 = vsel %vm7612_vm4, %v4506_v1, %v4510_v46  ;;  %v4516_v47 = vrot.slane %v4515_v41, 4  ;;  %v4550_v24 = vshll.u32 %v6410_v50, 16  ;;  %v4529_v30 = vor.u32 %v4528_v2, %v4525_v29  ;;  %v6419_v41 = vld [vmem:[%s7565_s25 + $0xc0] sm:$0xf] }
  0xdf   : > { %v4538_v62 = vrot.slane %v4536_v10, 4  ;;  %v4544_v14 = vrot.slane %v4542_v25, 5  ;;  %v4556_v3 = vshll.u32 %v6411_v63, 16  ;;  %v4549_v16 = vrot.slane %v4547_v44, 4  ;;  %v6420_v10 = vld [vmem:[%s7565_s25 + $0xc4] sm:$0xf] }
  0xe0   : > { %7123 = vmatmul.mubr.msk.bf16.gmra.mrb[12].mxu0 %vm360_vm1, %v6433_v6  ;;  %v4521_v40 = vsel %vm7612_vm4, %v4516_v47, %v4520_v12  ;;  %v4552_v33 = vrot.slane %v4550_v24, 5  ;;  %v4560_v9 = vshrl.u32 %v6411_v63, 16  ;;  %v4530_v20 = vrot.slane %v4529_v30, 4  ;;  %v6421_v44 = vld [vmem:[%s7565_s25 + $0xc8] sm:$0x1] }
  0xe1   : > { %7126 = vmatprep.mubr.msk.bf16.mxu0 %vm360_vm1, %v6434_v58  ;;  %v6435_v61 = vcombine.low %v4511_v39, %v4521_v40  ;;  %v4539_v37 = vor.u32 %v4538_v62, %v4534_v5  ;;  %v4558_v17 = vrot.slane %v4556_v3, 5  ;;  %v4566_v27 = vshll.u32 %v6412_v13, 16 }
  0xe2   : > { %v4553_v60 = vor.u32 %v4552_v33, %v4549_v16  ;;  %v4562_v34 = vrot.slane %v4560_v9, 4  ;;  %v4571_v15 = vshrl.u32 %v6413_v59, 16  ;;  %v4535_v22 = vsel %vm7612_vm4, %v4530_v20, %v4534_v5  ;;  %v6422_v16 = vld [vmem:[%s7565_s25 + $0xcc] sm:$0xf]  ;;  %v6423_v20 = vld [vmem:[%s7565_s25 + $0xd0] sm:$0xf] }
  0xe3   : > { %v4540_v26 = vrot.slane %v4539_v37, 4  ;;  %v4574_v23 = vshll.u32 %v6413_v59, 16  ;;  %v4580_v32 = vshll.u32 %v6414_v18, 16  ;;  %v4568_v11 = vrot.slane %v4566_v27, 5 }
  0xe4   : > { %v4554_v54 = vrot.slane %v4553_v60, 4  ;;  %v4563_v52 = vor.u32 %v4562_v34, %v4558_v17  ;;  %v4573_v19 = vrot.slane %v4571_v15, 4  ;;  %6975 = vmatmul.mubr.msk.bf16.vlgmr.msra.gmra.mrb[0].mxu1 %vm360_vm1, %v7486_v31  ;;  %v4584_v6 = vshrl.u32 %v6414_v18, 16  ;;  %v6424_v60 = vld [vmem:[%s7565_s25 + $0xd4] sm:$0x1]  ;;  %v7490_v34 = vld [vmem:[%s7565_s25 + $0x48] sm:$0xff]  }
  0xe5   : > { %v4545_v7 = vsel %vm7612_vm4, %v4540_v26, %v4544_v14  ;;  %v4576_v56 = vrot.slane %v4574_v23, 5  ;;  %v4582_v42 = vrot.slane %v4580_v32, 5  ;;  %6978 = vmatprep.mubr.msk.bf16.mxu1 %vm360_vm1, %v7487_v38  ;;  %7177 = vmatpush3.bf16.msra.mxu1 %v7553_v4  ;;  %v4590_v51 = vshll.u32 %v6415_v21, 16  ;;  %v6458_v26 = vld [vmem:[%s7565_s25 + $0x18] sm:$0xe] }
  0xe6   : > { %v6436_v45 = vcombine.low %v4535_v22, %v4545_v7  ;;  %v4559_v46 = vsel %vm7612_vm4, %v4554_v54, %v4558_v17  ;;  %v4564_v50 = vrot.slane %v4563_v52, 4  ;;  %v4586_v12 = vrot.slane %v4584_v6, 4  ;;  %v6459_v23 = vld [vmem:[%s7565_s25 + $0x1c] sm:$0xf]  ;;  %v7491_v32 = vld [vmem:[%s7565_s25 + $0x54] sm:$0xff]  }
  0xe7   : > { %v4577_v53 = vor.u32 %v4576_v56, %v4573_v19  ;;  %v4595_v49 = vshrl.u32 %v6416_v48, 16  ;;  %v4598_v57 = vshll.u32 %v6416_v48, 16  ;;  %v4592_v28 = vrot.slane %v4590_v51, 5  ;;  %v6460_v7 = vld [vmem:[%s7565_s25 + $0x20] sm:$0x1] }
  0xe8   : > { %7127 = vmatmul.mubr.msk.bf16.gmra.mrb[16].mxu0 %vm360_vm1, %v6435_v61  ;;  %v4569_v4 = vsel %vm7612_vm4, %v4564_v50, %v4568_v11  ;;  %v4604_v58 = vshll.u32 %v6417_v35, 16  ;;  %v4608_v1 = vshrl.u32 %v6417_v35, 16  ;;  %v4587_v2 = vor.u32 %v4586_v12, %v4582_v42  ;;  %v6462_v56 = vld [vmem:[%s7565_s25 + $0x28] sm:$0xf] }
  0xe9   : > { %7130 = vmatprep.mubr.msk.bf16.mxu0 %vm360_vm1, %v6436_v45  ;;  %v6437_v29 = vcombine.low %v4559_v46, %v4569_v4  ;;  %v4578_v63 = vrot.slane %v4577_v53, 4  ;;  %v4597_v5 = vrot.slane %v4595_v49, 4  ;;  %v4600_v25 = vrot.slane %v4598_v57, 5  ;;  %v6461_v45 = vld [vmem:[%s7565_s25 + $0x24] sm:$0xe] }
  0xea   : > { %v4606_v39 = vrot.slane %v4604_v58, 5  ;;  %v4610_v47 = vrot.slane %v4608_v1, 4  ;;  %v4614_v13 = vshll.u32 %v6418_v55, 16  ;;  %v4588_v30 = vrot.slane %v4587_v2, 4  ;;  %v6463_v57 = vld [vmem:[%s7565_s25 + $0x2c] sm:$0x1] }
  0xeb   : > { %v4583_v24 = vsel %vm7612_vm4, %v4578_v63, %v4582_v42  ;;  %v4619_v62 = vshrl.u32 %v6419_v41, 16  ;;  %v4622_v14 = vshll.u32 %v6419_v41, 16  ;;  %v4601_v3 = vor.u32 %v4600_v25, %v4597_v5  ;;  %v6464_v1 = vld [vmem:[%s7565_s25 + $0x30] sm:$0xe]  ;;  %v6465_v5 = vld [vmem:[%s7565_s25 + $0x34] sm:$0xf] }
  0xec   : > { %v4611_v59 = vor.u32 %v4610_v47, %v4606_v39  ;;  %v4616_v31 = vrot.slane %v4614_v13, 5  ;;  %v4628_v40 = vshll.u32 %v6420_v10, 16  ;;  %6979 = vmatmul.mubr.msk.bf16.gmra.mrb[4].mxu1 %vm360_vm1, %v7488_v36  ;;  %v4593_v33 = vsel %vm7612_vm4, %v4588_v30, %v4592_v28  ;;  %v6466_v13 = vld [vmem:[%s7565_s25 + $0x38] sm:$0x1] }
  0xed   : > { %v4621_v9 = vrot.slane %v4619_v62, 4  ;;  %v4624_v18 = vrot.slane %v4622_v14, 5  ;;  %v4632_v61 = vshrl.u32 %v6420_v10, 16  ;;  %6982 = vmatprep.mubr.msk.bf16.mxu1 %vm360_vm1, %v7489_v8  ;;  %v6438_v37 = vcombine.low %v4583_v24, %v4593_v33  ;;  %v6467_v62 = vld [vmem:[%s7565_s25 + $0x3c] sm:$0xe]  ;;  %v7492_v14 = vld [vmem:[%s7565_s25 + $0x60] sm:$0xff]  }
  0xee   : > { %v4602_v17 = vrot.slane %v4601_v3, 4  ;;  %v4612_v21 = vrot.slane %v4611_v59, 4  ;;  %v4630_v38 = vrot.slane %v4628_v40, 5  ;;  %v4638_v48 = vshll.u32 %v6421_v44, 16  ;;  %v7493_v33 = vld [vmem:[%s7565_s25 + $0x6c] sm:$0xff]  }
  0xef   : > { %v4625_v27 = vor.u32 %v4624_v18, %v4621_v9  ;;  %v4634_v15 = vrot.slane %v4632_v61, 4  ;;  %v4643_v22 = vshrl.u32 %v6422_v16, 16  ;;  %v4646_v11 = vshll.u32 %v6422_v16, 16  ;;  %v6468_v16 = vld [vmem:[%s7565_s25 + $0x40] sm:$0xf] }
  0xf0   : > { %7131 = vmatmul.mubr.msk.bf16.gmra.mrb[20].mxu0 %vm360_vm1, %v6437_v29  ;;  %v4607_v54 = vsel %vm7612_vm4, %v4602_v17, %v4606_v39  ;;  %v4617_v52 = vsel %vm7612_vm4, %v4612_v21, %v4616_v31  ;;  %v4652_v19 = vshll.u32 %v6423_v20, 16  ;;  %v4640_v35 = vrot.slane %v4638_v48, 5 }
  0xf1   : > { %7134 = vmatprep.mubr.msk.bf16.mxu0 %vm360_vm1, %v6438_v37  ;;  %v4626_v42 = vrot.slane %v4625_v27, 4  ;;  %v4635_v6 = vor.u32 %v4634_v15, %v4630_v38  ;;  %v4645_v46 = vrot.slane %v4643_v22, 4  ;;  %v4648_v50 = vrot.slane %v4646_v11, 5  ;;  %v6471_v37 = vld [vmem:[%s7565_s25 + $0x4c] sm:$0xf] }
  0xf2   : > { %v4654_v51 = vrot.slane %v4652_v19, 5  ;;  %v4656_v36 = vshrl.u32 %v6423_v20, 16  ;;  %v6439_v53 = vcombine.low %v4607_v54, %v4617_v52  ;;  %v4662_v49 = vshll.u32 %v6424_v60, 16  ;;  %v6470_v20 = vld [vmem:[%s7565_s25 + $0x48] sm:$0xe] }
  0xf3   : > { %v4631_v12 = vsel %vm7612_vm4, %v4626_v42, %v4630_v38  ;;  %v4636_v55 = vrot.slane %v4635_v6, 4  ;;  %v4649_v8 = vor.u32 %v4648_v50, %v4645_v46  ;;  %v6506_v28 = vrot.slane %v6458_v26, 9  ;;  %v6469_v60 = vld [vmem:[%s7565_s25 + $0x44] sm:$0x1]  ;;  %v6473_v27 = vld [vmem:[%s7565_s25 + $0x54] sm:$0xe] }
  0xf4   : > { %v4658_v4 = vrot.slane %v4656_v36, 4  ;;  %v5122_v58 = vrot.slane %v6459_v23, 5  ;;  %6983 = vmatmul.mubr.msk.bf16.gmra.mrb[8].mxu1 %vm360_vm1, %v7490_v34  ;;  %v4664_v29 = vrot.slane %v4662_v49, 5  ;;  %v5125_v63 = vrot.slane %v6460_v7, 5  ;;  %v6472_v34 = vld [vmem:[%s7565_s25 + $0x50] sm:$0x1] }
  0xf5   : > { %v4641_v41 = vsel %vm7612_vm4, %v4636_v55, %v4640_v35  ;;  %v5129_v2 = vrot.slane %v6462_v56, 5  ;;  %6986 = vmatprep.mubr.msk.bf16.mxu1 %vm360_vm1, %v7491_v32  ;;  %v4650_v25 = vrot.slane %v4649_v8, 4  ;;  %v6507_v47 = vrot.slane %v6461_v45, 9  ;;  %v6474_v23 = vld [vmem:[%s7565_s25 + $0x58] sm:$0xf] }
  0xf6   : > { %v6440_v10 = vcombine.low %v4631_v12, %v4641_v41  ;;  %v4659_v39 = vor.u32 %v4658_v4, %v4654_v51  ;;  %v5124_v44 = vrot.slane %v5122_v58, 4  ;;  %v5132_v30 = vrot.slane %v6463_v57, 5  ;;  %v6475_v19 = vld [vmem:[%s7565_s25 + $0x5c] sm:$0x1]  ;;  %v6158_v7 = vld [vmem:[%s7565_s25 + $0x6c] sm:$0xf] }
  0xf7   : > { %v5131_v24 = vrot.slane %v5129_v2, 4  ;;  %v5123_v59 = vsel %vm7687_vm7, %v6506_v28, %v5122_v58  ;;  %v6508_v31 = vrot.slane %v6464_v1, 9  ;;  %v5136_v40 = vrot.slane %v6465_v5, 5  ;;  %v6159_v45 = vld [vmem:[%s7565_s25 + $0x70] sm:$0xf]  ;;  %v7494_v41 = vld [vmem:[%s7565_s25 + $0x78] sm:$0xff]  }
  0xf8   : > { %7135 = vmatmul.mubr.msk.bf16.gmra.mrb[24].mxu0 %vm360_vm1, %v6439_v53  ;;  %v4660_v3 = vrot.slane %v4659_v39, 4  ;;  %v4655_v9 = vsel %vm7612_vm4, %v4650_v25, %v4654_v51  ;;  %v5126_v18 = vsel %vm7687_vm7, %v5124_v44, %v5125_v63  ;;  %v5139_v61 = vrot.slane %v6466_v13, 5  ;;  %v6160_v55 = vld [vmem:[%s7565_s25 + $0x74] sm:$0x1]  ;;  %v6161_v57 = vld [vmem:[%s7565_s25 + $0x78] sm:$0xf] }
  0xf9   : > { %7138 = vmatprep.mubr.msk.bf16.mxu0 %vm360_vm1, %v6440_v10  ;;  %v8495_v21 = vsel %vm7687_vm7, %v6507_v47, %v5129_v2  ;;  %v8499_v38 = vsel %vm7687_vm7, %v5131_v24, %v5132_v30  ;;  %v6523_v15 = vcombine.low %v5123_v59, %v5126_v18  ;;  %v5138_v48 = vrot.slane %v5136_v40, 4  ;;  %v6162_v1 = vld [vmem:[%s7565_s25 + $0x7c] sm:$0xf]  ;;  %v7495_v10 = vld [vmem:[%s7565_s25 + $0x84] sm:$0xff]   ;;  %v6163_v24 = vld [vmem:[%s7565_s25 + $0x80] sm:$0x1] }
  0xfa   : > { %v4665_v17 = vsel %vm7612_vm4, %v4660_v3, %v4664_v29  ;;  %v6509_v22 = vrot.slane %v6467_v62, 9  ;;  %v5143_v26 = vrot.slane %v6468_v16, 5  ;;  %v8507_v54 = vsel %vm7687_vm7, %v6508_v31, %v5136_v40  ;;  %v6476_v16 = vld [vmem:[%s7565_s25 + $0x60] sm:$0xe] }
  0xfb   : > { %v6441_v32 = vcombine.low %v4655_v9, %v4665_v17  ;;  %v6510_v52 = vrot.slane %v6470_v20, 9  ;;  %v5150_v11 = vrot.slane %v6471_v37, 5  ;;  %v8514_v56 = vsel %vm7687_vm7, %v5138_v48, %v5139_v61  ;;  %v6480_v37 = vld [vmem:[%s7565_s25 + $0x70] sm:$0xf]  ;;  %v6478_v48 = vld [vmem:[%s7565_s25 + $0x68] sm:$0x1] }
  0xfc   : > { %6987 = vmatmul.mubr.msk.bf16.gmra.mrb[12].mxu1 %vm360_vm1, %v7492_v14  ;;  %v5145_v42 = vrot.slane %v5143_v26, 4  ;;  %v5146_v6 = vrot.slane %v6469_v60, 5  ;;  %v6511_v35 = vrot.slane %v6473_v27, 9  ;;  %v6524_v46 = vcombine.low %v8495_v21, %v8499_v38 }
  0xfd   : > { %6990 = vmatprep.mubr.msk.bf16.mxu1 %vm360_vm1, %v7493_v33  ;;  %v5153_v50 = vrot.slane %v6472_v34, 5  ;;  %v5157_v51 = vrot.slane %v6474_v23, 5  ;;  %v6525_v36 = vcombine.low %v8507_v54, %v8514_v56  ;;  %v8524_v53 = vsel %vm7687_vm7, %v6509_v22, %v5143_v26  ;;  %v6477_v33 = vld [vmem:[%s7565_s25 + $0x64] sm:$0xf]  ;;  %v6479_v34 = vld [vmem:[%s7565_s25 + $0x6c] sm:$0xe] }
  0xfe   : > { %v8528_v12 = vsel %vm7687_vm7, %v6510_v52, %v5150_v11  ;;  %v2696_v49 = vshrl.u32 %v6158_v7, 16  ;;  %v5152_v8 = vrot.slane %v5150_v11, 4  ;;  %v5160_v4 = vrot.slane %v6475_v19, 5  ;;  %v7496_v23 = vld [vmem:[%s7565_s25 + $0x90] sm:$0xff]   ;;  %v6164_v19 = vld [vmem:[%s7565_s25 + $0x84] sm:$0xf] }
  0xff   : > { %v2699_v28 = vshll.u32 %v6158_v7, 16  ;;  %v2705_v58 = vshll.u32 %v6159_v45, 16  ;;  %v8538_v29 = vsel %vm7687_vm7, %v5145_v42, %v5146_v6  ;;  %v8542_v63 = vsel %vm7687_vm7, %v6511_v35, %v5157_v51  ;;  %v6481_v6 = vld [vmem:[%s7565_s25 + $0x74] sm:$0x1] }
 0x100   : > { %7139 = vmatmul.mubr.msk.bf16.gmra.mrb[28].mxu0 %vm360_vm1, %v6441_v32  ;;  %v2698_v2 = vrot.slane %v2696_v49, 4  ;;  %v2709_v5 = vshrl.u32 %v6159_v45, 16  ;;  %v5159_v25 = vrot.slane %v5157_v51, 4  ;;  %v2715_v13 = vshll.u32 %v6160_v55, 16  ;;  %v6165_v45 = vld [vmem:[%s7565_s25 + $0x88] sm:$0xf] }
 0x101   : > { %7144 = vmatprep.mubr.msk.bf16.mxu0 %vm360_vm1, %v6523_v15  ;;  %v2701_v39 = vrot.slane %v2699_v28, 5  ;;  %v2707_v47 = vrot.slane %v2705_v58, 5  ;;  %v2720_v30 = vshrl.u32 %v6161_v57, 16  ;;  %v2723_v62 = vshll.u32 %v6161_v57, 16  ;;  %v6166_v57 = vld [vmem:[%s7565_s25 + $0x8c] sm:$0x1] }
 0x102   : > { %v2711_v44 = vrot.slane %v2709_v5, 4  ;;  %v2729_v14 = vshll.u32 %v6162_v1, 16  ;;  %v8548_v3 = vsel %vm7687_vm7, %v5152_v8, %v5153_v50  ;;  %v2717_v31 = vrot.slane %v2715_v13, 5 }
 0x103   : > { %v2702_v59 = vor.u32 %v2701_v39, %v2698_v2  ;;  %v2733_v40 = vshrl.u32 %v6162_v1, 16  ;;  %v2722_v18 = vrot.slane %v2720_v30, 4  ;;  %v2725_v61 = vrot.slane %v2723_v62, 5  ;;  %v6169_v39 = vld [vmem:[%s7565_s25 + $0x98] sm:$0x1] }
 0x104   : > { %6991 = vmatmul.mubr.msk.bf16.gmra.mrb[16].mxu1 %vm360_vm1, %v7494_v41  ;;  %v2712_v9 = vor.u32 %v2711_v44, %v2707_v47  ;;  %v8553_v20 = vrot.slane %v2729_v14, 5  ;;  %v8559_v17 = vsel %vm7687_vm7, %v5159_v25, %v5160_v4  ;;  %v2739_v60 = vshll.u32 %v6163_v24, 16  ;;  %v6167_v4 = vld [vmem:[%s7565_s25 + $0x90] sm:$0xf]  ;;  %v6482_v30 = vld [vmem:[%s7565_s25 + $0x78] sm:$0xe] }
 0x105   : > { %6994 = vmatprep.mubr.msk.bf16.mxu1 %vm360_vm1, %v7495_v10  ;;  %v2703_v21 = vrot.slane %v2702_v59, 4  ;;  %v2735_v38 = vrot.slane %v2733_v40, 4  ;;  %v2726_v15 = vor.u32 %v2725_v61, %v2722_v18  ;;  %v6512_v22 = vrot.slane %v6476_v16, 9  ;;  %v6484_v18 = vld [vmem:[%s7565_s25 + $0x80] sm:$0x1] }
 0x106   : > { %v2713_v27 = vrot.slane %v2712_v9, 4  ;;  %v5164_v26 = vrot.slane %v6477_v33, 5  ;;  %v6526_v32 = vcombine.low %v8524_v53, %v8538_v29  ;;  %v5171_v11 = vrot.slane %v6480_v37, 5  ;;  %v6168_v29 = vld [vmem:[%s7565_s25 + $0x94] sm:$0xf]  ;;  %v7498_v37 = vld [vmem:[%s7565_s25 + $0xa8] sm:$0xff]  }
 0x107   : > { %v2708_v54 = vsel %vm7612_vm4, %v2703_v21, %v2707_v47  ;;  %v2736_v52 = vor.u32 %v2735_v38, %v8553_v20  ;;  %v6527_v7 = vcombine.low %v8528_v12, %v8548_v3  ;;  %v8576_v42 = vrot.slane %v2726_v15, 4  ;;  %v6485_v61 = vld [vmem:[%s7565_s25 + $0x84] sm:$0xe]  ;;  %v7499_v15 = vld [vmem:[%s7565_s25 + $0xb4] sm:$0xff]  }
 0x108   : > { %7145 = vmatmul.mubr.msk.bf16.vlgmr.msra.gmra.mrb[0].mxu0 %vm360_vm1, %v6524_v46  ;;  %v2718_v56 = vsel %vm7612_vm4, %v2713_v27, %v2717_v31  ;;  %v6513_v35 = vrot.slane %v6479_v34, 9  ;;  %v7497_v46 = vld [vmem:[%s7565_s25 + $0x9c] sm:$0xff]   ;;  %v6528_v50 = vcombine.low %v8542_v63, %v8559_v17  ;;  %v8583_v51 = vrot.slane %v2739_v60, 5  ;;  %v6486_v27 = vld [vmem:[%s7565_s25 + $0x88] sm:$0xf] }
 0x109   : > { %7148 = vmatprep.mubr.msk.bf16.mxu0 %vm360_vm1, %v6525_v36  ;;  %v5166_v36 = vrot.slane %v5164_v26, 4  ;;  %v5167_v53 = vrot.slane %v6478_v48, 5  ;;  %v8585_v55 = vcombine.low %v2708_v54, %v2718_v56  ;;  %v8587_v12 = vrot.slane %v2736_v52, 4  ;;  %v6483_v31 = vld [vmem:[%s7565_s25 + $0x7c] sm:$0xf] }
 0x10a   : > { %v8591_v49 = vsel %vm7687_vm7, %v6512_v22, %v5164_v26  ;;  %v2744_v8 = vshrl.u32 %v6164_v19, 16  ;;  %v5173_v28 = vrot.slane %v5171_v11, 4  ;;  %v5174_v58 = vrot.slane %v6481_v6, 5  ;;  %v6487_v56 = vld [vmem:[%s7565_s25 + $0x8c] sm:$0x1] }
 0x10b   : > { %v2747_v1 = vshll.u32 %v6164_v19, 16  ;;  %v2753_v41 = vshll.u32 %v6165_v45, 16  ;;  %v2732_v2 = vsel %vm7612_vm4, %v8576_v42, %v8553_v20  ;;  %v8603_v5 = vsel %vm7687_vm7, %v6513_v35, %v5171_v11 }
 0x10c   : > { %6995 = vmatmul.mubr.msk.bf16.gmra.mrb[20].mxu1 %vm360_vm1, %v7496_v23  ;;  %v2746_v10 = vrot.slane %v2744_v8, 4  ;;  %v2757_v25 = vshrl.u32 %v6165_v45, 16  ;;  %v8609_v47 = vsel %vm7687_vm7, %v5166_v36, %v5167_v53  ;;  %v2763_v24 = vshll.u32 %v6166_v57, 16  ;;  %v6170_v45 = vld [vmem:[%s7565_s25 + $0x9c] sm:$0xf] }
 0x10d   : > { %6998 = vmatprep.mubr.msk.bf16.mxu1 %vm360_vm1, %v7497_v46  ;;  %v2749_v13 = vrot.slane %v2747_v1, 5  ;;  %v8611_v44 = vrot.slane %v2753_v41, 5  ;;  %v2768_v14 = vshrl.u32 %v6167_v4, 16  ;;  %v2771_v3 = vshll.u32 %v6167_v4, 16  ;;  %v6171_v8 = vld [vmem:[%s7565_s25 + $0xa0] sm:$0xf] }
 0x10e   : > { %v2759_v62 = vrot.slane %v2757_v25, 4  ;;  %v2777_v59 = vshll.u32 %v6168_v29, 16  ;;  %v8618_v40 = vsel %vm7687_vm7, %v5173_v28, %v5174_v58  ;;  %v2781_v33 = vshrl.u32 %v6168_v29, 16  ;;  %v6173_v25 = vld [vmem:[%s7565_s25 + $0xa8] sm:$0xf] }
 0x10f   : > { %v2750_v16 = vor.u32 %v2749_v13, %v2746_v10  ;;  %v2787_v9 = vshll.u32 %v6169_v39, 16  ;;  %v2770_v38 = vrot.slane %v2768_v14, 4  ;;  %v2773_v60 = vrot.slane %v2771_v3, 5 }
 0x110   : > { %7149 = vmatmul.mubr.msk.bf16.gmra.mrb[4].mxu0 %vm360_vm1, %v6526_v32  ;;  %v2760_v21 = vor.u32 %v2759_v62, %v8611_v44  ;;  %v8625_v34 = vrot.slane %v2777_v59, 5  ;;  %v8631_v22 = vrot.slane %v2763_v24, 5  ;;  %v2783_v26 = vrot.slane %v2781_v33, 4  ;;  %v6174_v24 = vld [vmem:[%s7565_s25 + $0xac] sm:$0xf] }
 0x111   : > { %7152 = vmatprep.mubr.msk.bf16.mxu0 %vm360_vm1, %v6527_v7  ;;  %v8629_v48 = vrot.slane %v2750_v16, 4  ;;  %v6514_v23 = vrot.slane %v6482_v30, 9  ;;  %v2774_v54 = vor.u32 %v2773_v60, %v2770_v38  ;;  %v5178_v52 = vrot.slane %v6483_v31, 5  ;;  %v7500_v30 = vld [vmem:[%s7565_s25 + $0xc0] sm:$0xff]  }
 0x112   : > { %v8633_v32 = vrot.slane %v2760_v21, 4  ;;  %v5181_v11 = vrot.slane %v6484_v18, 5  ;;  %v2742_v19 = vsel %vm7612_vm4, %v8587_v12, %v8583_v51  ;;  %v2784_v7 = vor.u32 %v2783_v26, %v8625_v34  ;;  %v6177_v12 = vld [vmem:[%s7565_s25 + $0xb8] sm:$0xf] }
 0x113   : > { %v6515_v6 = vrot.slane %v6485_v61, 9  ;;  %v5185_v35 = vrot.slane %v6486_v27, 5  ;;  %v6529_v46 = vcombine.low %v8591_v49, %v8609_v47  ;;  %v8645_v36 = vrot.slane %v2774_v54, 4  ;;  %v6488_v61 = vld [vmem:[%s7565_s25 + $0x90] sm:$0xe] }
 0x114   : > { %6999 = vmatmul.mubr.msk.bf16.gmra.mrb[24].mxu1 %vm360_vm1, %v7498_v37  ;;  %v8647_v53 = vrot.slane %v2787_v9, 5  ;;  %v5180_v57 = vrot.slane %v5178_v52, 4  ;;  %v6530_v4 = vcombine.low %v8603_v5, %v8618_v40  ;;  %v2756_v28 = vsel %vm7612_vm4, %v8629_v48, %v8611_v44  ;;  %v6172_v5 = vld [vmem:[%s7565_s25 + $0xa4] sm:$0x1]  ;;  %v6175_v40 = vld [vmem:[%s7565_s25 + $0xb0] sm:$0x1] }
 0x115   : > { %7002 = vmatprep.mubr.msk.bf16.mxu1 %vm360_vm1, %v7499_v15  ;;  %v2766_v49 = vsel %vm7612_vm4, %v8633_v32, %v8631_v22  ;;  %v2785_v58 = vrot.slane %v2784_v7, 4  ;;  %v5179_v1 = vsel %vm7687_vm7, %v6514_v23, %v5178_v52  ;;  %v8667_v29 = vsel %vm7687_vm7, %v6515_v6, %v5185_v35  ;;  %v6490_v27 = vld [vmem:[%s7565_s25 + $0x98] sm:$0x1]  ;;  %v6492_v23 = vld [vmem:[%s7565_s25 + $0xa0] sm:$0xf] }
 0x116   : > { %v5182_v41 = vsel %vm7687_vm7, %v5180_v57, %v5181_v11  ;;  %v2792_v10 = vshrl.u32 %v6170_v45, 16  ;;  %v5187_v39 = vrot.slane %v5185_v35, 4  ;;  %v5188_v47 = vrot.slane %v6487_v56, 5  ;;  %v6176_v57 = vld [vmem:[%s7565_s25 + $0xb4] sm:$0xf] }
 0x117   : > { %v2795_v13 = vshll.u32 %v6170_v45, 16  ;;  %v2801_v44 = vshll.u32 %v6171_v8, 16  ;;  %v2780_v62 = vsel %vm7612_vm4, %v8645_v36, %v8625_v34  ;;  %v2790_v63 = vsel %vm7612_vm4, %v2785_v58, %v8647_v53  ;;  %v6489_v34 = vld [vmem:[%s7565_s25 + $0x94] sm:$0xf]  ;;  %v6491_v45 = vld [vmem:[%s7565_s25 + $0x9c] sm:$0xe] }
 0x118   : > { %7153 = vmatmul.mubr.msk.bf16.gmra.mrb[8].mxu0 %vm360_vm1, %v6528_v50  ;;  %v2794_v17 = vrot.slane %v2792_v10, 4  ;;  %v2805_v50 = vshrl.u32 %v6171_v8, 16  ;;  %v6531_v14 = vcombine.low %v5179_v1, %v5182_v41  ;;  %v2811_v31 = vshll.u32 %v6172_v5, 16  ;;  %v6178_v5 = vld [vmem:[%s7565_s25 + $0xbc] sm:$0x1] }
 0x119   : > { %7156 = vmatprep.mubr.msk.bf16.mxu0 %vm360_vm1, %v6529_v46  ;;  %v2797_v3 = vrot.slane %v2795_v13, 5  ;;  %v2803_v59 = vrot.slane %v2801_v44, 5  ;;  %v2816_v33 = vshrl.u32 %v6173_v25, 16  ;;  %v2819_v9 = vshll.u32 %v6173_v25, 16  ;;  %v6179_v25 = vld [vmem:[%s7565_s25 + $0xc0] sm:$0xf] }
 0x11a   : > { %v2807_v16 = vrot.slane %v2805_v50, 4  ;;  %v2825_v18 = vshll.u32 %v6174_v24, 16  ;;  %v8689_v37 = vsel %vm7687_vm7, %v5187_v39, %v5188_v47  ;;  %v2813_v38 = vrot.slane %v2811_v31, 5 }
 0x11b   : > { %v2798_v21 = vor.u32 %v2797_v3, %v2794_v17  ;;  %v2829_v60 = vshrl.u32 %v6174_v24, 16  ;;  %v2818_v48 = vrot.slane %v2816_v33, 4  ;;  %v2821_v22 = vrot.slane %v2819_v9, 5  ;;  %v6494_v33 = vld [vmem:[%s7565_s25 + $0xa8] sm:$0xe] }
 0x11c   : > { %7003 = vmatmul.mubr.msk.bf16.gmra.mrb[28].mxu1 %vm360_vm1, %v7500_v30  ;;  %v2808_v15 = vor.u32 %v2807_v16, %v2803_v59  ;;  %v8694_v26 = vrot.slane %v2825_v18, 5  ;;  %v2835_v52 = vshll.u32 %v6175_v40, 16  ;;  %v6516_v11 = vrot.slane %v6488_v61, 9 }
 0x11d   : > { %7024 = vmatprep.mubr.msk.bf16.mxu1 %vm360_vm1, %v8585_v55  ;;  %v2799_v32 = vrot.slane %v2798_v21, 4  ;;  %v2831_v54 = vrot.slane %v2829_v60, 4  ;;  %v2822_v56 = vor.u32 %v2821_v22, %v2818_v48  ;;  %v5192_v6 = vrot.slane %v6489_v34, 5  ;;  %v6495_v21 = vld [vmem:[%s7565_s25 + $0xac] sm:$0xf] }
 0x11e   : > { %v2809_v7 = vrot.slane %v2808_v15, 4  ;;  %v5195_v35 = vrot.slane %v6490_v27, 5  ;;  %v6192_v55 = vcombine.low %v2732_v2, %v2742_v19  ;;  %v5199_v53 = vrot.slane %v6492_v23, 5  ;;  %v6181_v27 = vld [vmem:[%s7565_s25 + $0xc8] sm:$0x1] }
 0x11f   : > { %v2804_v46 = vsel %vm7612_vm4, %v2799_v32, %v2803_v59  ;;  %v2832_v36 = vor.u32 %v2831_v54, %v8694_v26  ;;  %v6193_v8 = vcombine.low %v2756_v28, %v2766_v49  ;;  %v8715_v51 = vcombine.low %v2780_v62, %v2790_v63  ;;  %v6493_v28 = vld [vmem:[%s7565_s25 + $0xa4] sm:$0x1]  ;;  %v6498_v22 = vld [vmem:[%s7565_s25 + $0xb8] sm:$0xf] }
 0x120   : > { %7157 = vmatmul.mubr.msk.bf16.gmra.mrb[12].mxu0 %vm360_vm1, %v6530_v4  ;;  %v2814_v20 = vsel %vm7612_vm4, %v2809_v7, %v2813_v38  ;;  %v5194_v42 = vrot.slane %v5192_v6, 4  ;;  %v6532_v2 = vcombine.low %v8667_v29, %v8689_v37  ;;  %v8723_v19 = vrot.slane %v2835_v52, 5  ;;  %v6180_v29 = vld [vmem:[%s7565_s25 + $0xc4] sm:$0xf]  ;;  %v6496_v38 = vld [vmem:[%s7565_s25 + $0xb0] sm:$0x1] }
 0x121   : > { %7160 = vmatprep.mubr.msk.bf16.mxu0 %vm360_vm1, %v6531_v14  ;;  %v5193_v4 = vsel %vm7687_vm7, %v6516_v11, %v5192_v6  ;;  %v6517_v49 = vrot.slane %v6491_v45, 9  ;;  %v6195_v58 = vcombine.low %v2804_v46, %v2814_v20  ;;  %v2823_v1 = vrot.slane %v2822_v56, 4  ;;  %v6497_v52 = vld [vmem:[%s7565_s25 + $0xb4] sm:$0xe] }
 0x122   : > { %v5196_v41 = vsel %vm7687_vm7, %v5194_v42, %v5195_v35  ;;  %v2840_v10 = vshrl.u32 %v6176_v57, 16  ;;  %v2833_v39 = vrot.slane %v2832_v36, 4  ;;  %v5201_v47 = vrot.slane %v5199_v53, 4  ;;  %v6500_v36 = vld [vmem:[%s7565_s25 + $0xc0] sm:$0xe] }
 0x123   : > { %v2843_v13 = vshll.u32 %v6176_v57, 16  ;;  %v2849_v44 = vshll.u32 %v6177_v12, 16  ;;  %v6533_v24 = vcombine.low %v5193_v4, %v5196_v41  ;;  %v5202_v30 = vrot.slane %v6493_v28, 5  ;;  %v6501_v42 = vld [vmem:[%s7565_s25 + $0xc4] sm:$0xf] }
 0x124   : > { %7025 = vmatmul.mubr.msk.bf16.vlgmr.msra.gmra.mrb[16].mxu1 %vm360_vm1, %v6192_v55  ;;  %v2842_v62 = vrot.slane %v2840_v10, 4  ;;  %v2853_v63 = vshrl.u32 %v6177_v12, 16  ;;  %v5200_v17 = vsel %vm7687_vm7, %v6517_v49, %v5199_v53  ;;  %v2859_v3 = vshll.u32 %v6178_v5, 16  ;;  %v6499_v55 = vld [vmem:[%s7565_s25 + $0xbc] sm:$0x1] }
 0x125   : > { %7028 = vmatprep.mubr.msk.bf16.mxu1 %vm360_vm1, %v6193_v8  ;;  %v2845_v50 = vrot.slane %v2843_v13, 5  ;;  %v2851_v14 = vrot.slane %v2849_v44, 5  ;;  %v2864_v31 = vshrl.u32 %v6179_v25, 16  ;;  %v2867_v40 = vshll.u32 %v6179_v25, 16  ;;  %v6502_v12 = vld [vmem:[%s7565_s25 + $0xc8] sm:$0x1] }
 0x126   : > { %v2855_v59 = vrot.slane %v2853_v63, 4  ;;  %v2873_v16 = vshll.u32 %v6180_v29, 16  ;;  %v2828_v9 = vsel %vm7612_vm4, %v2823_v1, %v8694_v26  ;;  %v2838_v18 = vsel %vm7612_vm4, %v2833_v39, %v8723_v19  ;;  %v6504_v49 = vld [vmem:[%s7565_s25 + $0xd0] sm:$0xf] }
 0x127   : > { %v2846_v61 = vor.u32 %v2845_v50, %v2842_v62  ;;  %v2877_v37 = vshrl.u32 %v6180_v29, 16  ;;  %v5203_v60 = vsel %vm7687_vm7, %v5201_v47, %v5202_v30  ;;  %v2866_v15 = vrot.slane %v2864_v31, 4  ;;  %v6505_v50 = vld [vmem:[%s7565_s25 + $0xd4] sm:$0x1] }
 0x128   : > { %7161 = vmatmul.mubr.msk.bf16.gmra.mrb[16].mxu0 %vm360_vm1, %v6532_v2  ;;  %v2856_v34 = vor.u32 %v2855_v59, %v2851_v14  ;;  %v2869_v48 = vrot.slane %v2867_v40, 5  ;;  %v2875_v23 = vrot.slane %v2873_v16, 5  ;;  %v6518_v54 = vrot.slane %v6494_v33, 9 }
 0x129   : > { %7164 = vmatprep.mubr.msk.bf16.mxu0 %vm360_vm1, %v6533_v24  ;;  %v2847_v26 = vrot.slane %v2846_v61, 4  ;;  %v2879_v32 = vrot.slane %v2877_v37, 4  ;;  %v2861_v7 = vrot.slane %v2859_v3, 5  ;;  %v5206_v56 = vrot.slane %v6495_v21, 5 }
 0x12a   : > { %v2857_v11 = vrot.slane %v2856_v34, 4  ;;  %v5209_v6 = vrot.slane %v6496_v38, 5  ;;  %v6534_v35 = vcombine.low %v5200_v17, %v5203_v60  ;;  %v2883_v45 = vshll.u32 %v6181_v27, 16  ;;  %v6503_v17 = vld [vmem:[%s7565_s25 + $0xcc] sm:$0xe] }
 0x12b   : > { %v5213_v46 = vrot.slane %v6498_v22, 5  ;;  %v2870_v53 = vor.u32 %v2869_v48, %v2866_v15  ;;  %v5207_v57 = vsel %vm7687_vm7, %v6518_v54, %v5206_v56  ;;  %v5208_v8 = vrot.slane %v5206_v56, 4 }
 0x12c   : > { %7029 = vmatmul.mubr.msk.bf16.gmra.mrb[20].mxu1 %vm360_vm1, %v8715_v51  ;;  %v6519_v20 = vrot.slane %v6497_v52, 9  ;;  %v6196_v2 = vcombine.low %v2828_v9, %v2838_v18  ;;  %v2852_v19 = vsel %vm7612_vm4, %v2847_v26, %v2851_v14  ;;  %v2880_v4 = vor.u32 %v2879_v32, %v2875_v23 }
 0x12d   : > { %7032 = vmatprep.mubr.msk.bf16.mxu1 %vm360_vm1, %v6195_v58  ;;  %v5215_v28 = vrot.slane %v5213_v46, 4  ;;  %v2862_v51 = vsel %vm7612_vm4, %v2857_v11, %v2861_v7  ;;  %v5210_v1 = vsel %vm7687_vm7, %v5208_v8, %v5209_v6  ;;  %v5216_v41 = vrot.slane %v6499_v55, 5 }
 0x12e   : > { %v6520_v5 = vrot.slane %v6500_v36, 9  ;;  %v2885_v58 = vrot.slane %v2883_v45, 5  ;;  %v6535_v10 = vcombine.low %v5207_v57, %v5210_v1  ;;  %v5220_v25 = vrot.slane %v6501_v42, 5 }
 0x12f   : > { %v5223_v39 = vrot.slane %v6502_v12, 5  ;;  %v2871_v47 = vrot.slane %v2870_v53, 4  ;;  %v5214_v13 = vsel %vm7687_vm7, %v6519_v20, %v5213_v46  ;;  %v5217_v44 = vsel %vm7687_vm7, %v5215_v28, %v5216_v41 }
 0x130   : > { %7165 = vmatmul.mubr.msk.bf16.gmra.mrb[20].mxu0 %vm360_vm1, %v6534_v35  ;;  %v5227_v29 = vrot.slane %v6504_v49, 5  ;;  %v6197_v24 = vcombine.low %v2852_v19, %v2862_v51  ;;  %v2881_v30 = vrot.slane %v2880_v4, 4  ;;  %v5221_v62 = vsel %vm7687_vm7, %v6520_v5, %v5220_v25 }
 0x131   : > { %7168 = vmatprep.mubr.msk.bf16.mxu0 %vm360_vm1, %v6535_v10  ;;  %v5222_v63 = vrot.slane %v5220_v25, 4  ;;  %v6536_v14 = vcombine.low %v5214_v13, %v5217_v44  ;;  %v6521_v31 = vrot.slane %v6503_v17, 9  ;;  %v5230_v16 = vrot.slane %v6505_v50, 5 }
 0x132   : > { %v5229_v40 = vrot.slane %v5227_v29, 4  ;;  %v2876_v33 = vsel %vm7612_vm4, %v2871_v47, %v2875_v23  ;;  %v2886_v9 = vsel %vm7612_vm4, %v2881_v30, %v2885_v58 }
 0x133   : > { %v5224_v3 = vsel %vm7687_vm7, %v5222_v63, %v5223_v39  ;;  %v6198_v18 = vcombine.low %v2876_v33, %v2886_v9  ;;  %v5228_v61 = vsel %vm7687_vm7, %v6521_v31, %v5227_v29 }
 0x134   : > { %7033 = vmatmul.mubr.msk.bf16.gmra.mrb[24].mxu1 %vm360_vm1, %v6196_v2  ;;  %v6537_v59 = vcombine.low %v5221_v62, %v5224_v3  ;;  %v5231_v37 = vsel %vm7687_vm7, %v5229_v40, %v5230_v16 }
 0x135   : > { %7036 = vmatprep.mubr.msk.bf16.mxu1 %vm360_vm1, %v6197_v24  ;;  %v6538_v21 = vcombine.low %v5228_v61, %v5231_v37 }
 0x138   : > { %7169 = vmatmul.mubr.msk.bf16.gmra.mrb[24].mxu0 %vm360_vm1, %v6536_v14 }
 0x139   : > { %7172 = vmatprep.mubr.msk.bf16.mxu0 %vm360_vm1, %v6537_v59 }
 0x13c   : > { %7037 = vmatmul.mubr.msk.bf16.gmra.mrb[28].mxu1 %vm360_vm1, %v6198_v18 }
 0x140   : > { %7173 = vmatmul.mubr.msk.bf16.gmra.mrb[28].mxu0 %vm360_vm1, %v6538_v21 }
 0x1b7   : > { %v6976_v38 = vpop.f32.mrb[0].mxu1 }
 0x1b8   : > { %v2232_v60 = vpop.f32.mrb[1].mxu1 }
 0x1b9   : > { %v6977_v43 = vpop.f32.mrb[2].mxu1 }
 0x1ba   : > { %v2235_v34 = vpop.f32.mrb[3].mxu1 }
 0x1bf   : > { %v6980_v27 = vpop.f32.mrb[4].mxu1 }
 0x1c0   : > { %v2248_v15 = vpop.f32.mrb[5].mxu1 }
 0x1c1   : > { %v6981_v48 = vpop.f32.mrb[6].mxu1 }
 0x1c2   : > { %v2251_v22 = vpop.f32.mrb[7].mxu1 }
 0x1c7   : > { %v6984_v26 = vpop.f32.mrb[8].mxu1 }
 0x1c8   : > { %v2264_v23 = vpop.f32.mrb[9].mxu1 }
 0x1c9   : > { %v6985_v32 = vpop.f32.mrb[10].mxu1 }
 0x1ca   : > { %v2267_v54 = vpop.f32.mrb[11].mxu1 }
 0x1cf   : > { %v8795_v0 = vpop.f32.mrb[12].mxu1 }
 0x1d0   : > { %v8797_v52 = vpop.f32.mrb[13].mxu1 }
 0x1d1   : > { %v8799_v11 = vpop.f32.mrb[14].mxu1 }
 0x1d2   : > { %v8801_v7 = vpop.f32.mrb[15].mxu1 }
 0x1db   : > { %v7146_v56 = vpop.f32.mrb[0].mxu0 }
 0x1dc   : > { %v7178_v6 = vadd.f32 %v7146_v56, %v6976_v38  ;;  %v5367_v35 = vpop.f32.mrb[1].mxu0 }
 0x1dd   : > { %v7179_v45 = vadd.f32 %v5367_v35, %v2232_v60  ;;  %v7147_v55 = vpop.f32.mrb[2].mxu0 }
 0x1de   : > { %v7180_v46 = vadd.f32 %v7147_v55, %v6977_v43  ;;  %v5370_v36 = vpop.f32.mrb[3].mxu0  ;;  %v5789_v2 = vmul.f32 %v7178_v6, %v7178_v6 }
 0x1df   : > { %v7181_v53 = vadd.f32 %v5370_v36, %v2235_v34  ;;  %v5787_v8 = vmul.f32 %v7179_v45, %v7179_v45 }
 0x1e0   : > { %v6630_v57 = vpack.c.bf16 %v7180_v46, %v7178_v6  ;;  %v5790_v1 = vmul.f32 %v7180_v46, %v7180_v46 }
 0x1e1   : > { %v6625_v20 = vpack.c.bf16 %v7181_v53, %v7179_v45  ;;  %v5750_v42 = vadd.f32 %v7181_v53, %v7179_v45  ;;  %v5788_v12 = vmul.f32 %v7181_v53, %v7181_v53 }
 0x1e2   : > { %6702 = vst [vmem:[%s8807_s16 + $0x8] sm:$0xff] %v6630_v57  }
 0x1e3   : > { %6626 = vst [vmem:[%s8807_s16] sm:$0xff] %v6625_v20   ;;  %v5751_v19 = vadd.f32 %v7178_v6, %v5750_v42  ;;  %v5819_v4 = vadd.f32 %v5788_v12, %v5787_v8  ;;  %v7150_v28 = vpop.f32.mrb[4].mxu0 }
 0x1e4   : > { %v7182_v49 = vadd.f32 %v7150_v28, %v6980_v27  ;;  %v5383_v51 = vpop.f32.mrb[5].mxu0 }
 0x1e5   : > { %v5820_v41 = vadd.f32 %v5819_v4, %v5789_v2  ;;  %v7183_v5 = vadd.f32 %v5383_v51, %v2248_v15  ;;  %v5752_v58 = vadd.f32 %v7180_v46, %v5751_v19  ;;  %v7151_v10 = vpop.f32.mrb[6].mxu0 }
 0x1e6   : > { %v7184_v25 = vadd.f32 %v7151_v10, %v6981_v48  ;;  %v5386_v39 = vpop.f32.mrb[7].mxu0  ;;  %v5793_v50 = vmul.f32 %v7182_v49, %v7182_v49 }
 0x1e7   : > { %v5753_v47 = vadd.f32 %v7183_v5, %v5752_v58  ;;  %v5791_v13 = vmul.f32 %v7183_v5, %v7183_v5  ;;  %v5821_v44 = vadd.f32 %v5820_v41, %v5790_v1  ;;  %v7185_v29 = vadd.f32 %v5386_v39, %v2251_v22 }
 0x1e8   : > { %v6640_v24 = vpack.c.bf16 %v7184_v25, %v7182_v49  ;;  %v5794_v16 = vmul.f32 %v7184_v25, %v7184_v25 }
 0x1e9   : > { %v5822_v30 = vadd.f32 %v5821_v44, %v5791_v13  ;;  %v6635_v62 = vpack.c.bf16 %v7185_v29, %v7183_v5  ;;  %v5754_v63 = vadd.f32 %v7185_v29, %v5753_v47  ;;  %v5792_v17 = vmul.f32 %v7185_v29, %v7185_v29 }
 0x1ea   : > { %6704 = vst [vmem:[%s8807_s16 + $0x18] sm:$0xff] %v6640_v24  }
 0x1eb   : > { %6703 = vst [vmem:[%s8807_s16 + $0x10] sm:$0xff] %v6635_v62   ;;  %v5755_v14 = vadd.f32 %v7182_v49, %v5754_v63  ;;  %v5823_v3 = vadd.f32 %v5822_v30, %v5792_v17  ;;  %v7154_v59 = vpop.f32.mrb[8].mxu0 }
 0x1ec   : > { %v7186_v31 = vadd.f32 %v7154_v59, %v6984_v26  ;;  %v5399_v40 = vpop.f32.mrb[9].mxu0 }
 0x1ed   : > { %v5824_v33 = vadd.f32 %v5823_v3, %v5793_v50  ;;  %v7187_v9 = vadd.f32 %v5399_v40, %v2264_v23  ;;  %v5756_v18 = vadd.f32 %v7184_v25, %v5755_v14  ;;  %v7155_v61 = vpop.f32.mrb[10].mxu0 }
 0x1ee   : > { %v7188_v37 = vadd.f32 %v7155_v61, %v6985_v32  ;;  %v5402_v21 = vpop.f32.mrb[11].mxu0  ;;  %v5797_v26 = vmul.f32 %v7186_v31, %v7186_v31 }
 0x1ef   : > { %v5757_v38 = vadd.f32 %v7187_v9, %v5756_v18  ;;  %v5795_v60 = vmul.f32 %v7187_v9, %v7187_v9  ;;  %v5825_v43 = vadd.f32 %v5824_v33, %v5794_v16  ;;  %v7189_v34 = vadd.f32 %v5402_v21, %v2267_v54 }
 0x1f0   : > { %v6650_v27 = vpack.c.bf16 %v7188_v37, %v7186_v31  ;;  %v5798_v32 = vmul.f32 %v7188_v37, %v7188_v37 }
 0x1f1   : > { %v5826_v15 = vadd.f32 %v5825_v43, %v5795_v60  ;;  %v6645_v48 = vpack.c.bf16 %v7189_v34, %v7187_v9  ;;  %v5758_v22 = vadd.f32 %v7189_v34, %v5757_v38  ;;  %v5796_v56 = vmul.f32 %v7189_v34, %v7189_v34 }
 0x1f2   : > { %6706 = vst [vmem:[%s8807_s16 + $0x28] sm:$0xff] %v6650_v27  }
 0x1f3   : > { %6705 = vst [vmem:[%s8807_s16 + $0x20] sm:$0xff] %v6645_v48   ;;  %v5759_v6 = vadd.f32 %v7186_v31, %v5758_v22  ;;  %v5827_v35 = vadd.f32 %v5826_v15, %v5796_v56  ;;  %v7158_v23 = vpop.f32.mrb[12].mxu0 }
 0x1f4   : > { %v7190_v45 = vadd.f32 %v7158_v23, %v8795_v0  ;;  %v5415_v55 = vpop.f32.mrb[13].mxu0 }
 0x1f5   : > { %v5828_v46 = vadd.f32 %v5827_v35, %v5797_v26  ;;  %v7191_v36 = vadd.f32 %v5415_v55, %v8797_v52  ;;  %v5760_v53 = vadd.f32 %v7188_v37, %v5759_v6  ;;  %v7159_v54 = vpop.f32.mrb[14].mxu0 }
 0x1f6   : > { %v7192_v57 = vadd.f32 %v7159_v54, %v8799_v11  ;;  %v5418_v8 = vpop.f32.mrb[15].mxu0  ;;  %v5801_v41 = vmul.f32 %v7190_v45, %v7190_v45 }
 0x1f7   : > { %v5761_v20 = vadd.f32 %v7191_v36, %v5760_v53  ;;  %v5799_v42 = vmul.f32 %v7191_v36, %v7191_v36  ;;  %v5829_v12 = vadd.f32 %v5828_v46, %v5798_v32  ;;  %v7193_v2 = vadd.f32 %v5418_v8, %v8801_v7  ;;  %v7026_v19 = vpop.f32.mrb[16].mxu1 }
 0x1f8   : > { %v6660_v4 = vpack.c.bf16 %v7192_v57, %v7190_v45  ;;  %v3086_v0 = vpop.f32.mrb[17].mxu1  ;;  %v5802_v47 = vmul.f32 %v7192_v57, %v7192_v57 }
 0x1f9   : > { %v5830_v28 = vadd.f32 %v5829_v12, %v5799_v42  ;;  %v6655_v49 = vpack.c.bf16 %v7193_v2, %v7191_v36  ;;  %v5762_v51 = vadd.f32 %v7193_v2, %v5761_v20  ;;  %v5800_v1 = vmul.f32 %v7193_v2, %v7193_v2  ;;  %v7027_v52 = vpop.f32.mrb[18].mxu1 }
 0x1fa   : > { %6708 = vst [vmem:[%s8807_s16 + $0x38] sm:$0xff] %v6660_v4   ;;  %v3089_v5 = vpop.f32.mrb[19].mxu1 }
 0x1fb   : > { %6707 = vst [vmem:[%s8807_s16 + $0x30] sm:$0xff] %v6655_v49   ;;  %v5763_v11 = vadd.f32 %v7190_v45, %v5762_v51  ;;  %v5831_v58 = vadd.f32 %v5830_v28, %v5800_v1  ;;  %v7162_v10 = vpop.f32.mrb[16].mxu0 }
 0x1fc   : > { %v7194_v25 = vadd.f32 %v7162_v10, %v7026_v19  ;;  %v5431_v39 = vpop.f32.mrb[17].mxu0 }
 0x1fd   : > { %v5832_v13 = vadd.f32 %v5831_v58, %v5801_v41  ;;  %v7195_v7 = vadd.f32 %v5431_v39, %v3086_v0  ;;  %v5764_v44 = vadd.f32 %v7192_v57, %v5763_v11  ;;  %v7163_v29 = vpop.f32.mrb[18].mxu0 }
 0x1fe   : > { %v7196_v24 = vadd.f32 %v7163_v29, %v7027_v52  ;;  %v5434_v30 = vpop.f32.mrb[19].mxu0  ;;  %v5805_v18 = vmul.f32 %v7194_v25, %v7194_v25 }
 0x1ff   : > { %v5765_v62 = vadd.f32 %v7195_v7, %v5764_v44  ;;  %v5803_v63 = vmul.f32 %v7195_v7, %v7195_v7  ;;  %v5833_v17 = vadd.f32 %v5832_v13, %v5802_v47  ;;  %v7197_v50 = vadd.f32 %v5434_v30, %v3089_v5  ;;  %v7030_v14 = vpop.f32.mrb[20].mxu1 }
 0x200   : > { %v6670_v3 = vpack.c.bf16 %v7196_v24, %v7194_v25  ;;  %v3102_v59 = vpop.f32.mrb[21].mxu1  ;;  %v5806_v34 = vmul.f32 %v7196_v24, %v7196_v24 }
 0x201   : > { %v5834_v31 = vadd.f32 %v5833_v17, %v5803_v63  ;;  %v6665_v40 = vpack.c.bf16 %v7197_v50, %v7195_v7  ;;  %v5766_v16 = vadd.f32 %v7197_v50, %v5765_v62  ;;  %v5804_v33 = vmul.f32 %v7197_v50, %v7197_v50  ;;  %v7031_v9 = vpop.f32.mrb[22].mxu1 }
 0x202   : > { %6710 = vst [vmem:[%s8807_s16 + $0x48] sm:$0xff] %v6670_v3   ;;  %v3105_v61 = vpop.f32.mrb[23].mxu1 }
 0x203   : > { %6709 = vst [vmem:[%s8807_s16 + $0x40] sm:$0xff] %v6665_v40   ;;  %v5767_v37 = vadd.f32 %v7194_v25, %v5766_v16  ;;  %v5835_v21 = vadd.f32 %v5834_v31, %v5804_v33  ;;  %v7166_v38 = vpop.f32.mrb[20].mxu0 }
 0x204   : > { %v7198_v60 = vadd.f32 %v7166_v38, %v7030_v14  ;;  %v5447_v43 = vpop.f32.mrb[21].mxu0 }
 0x205   : > { %v5836_v27 = vadd.f32 %v5835_v21, %v5805_v18  ;;  %v7199_v15 = vadd.f32 %v5447_v43, %v3102_v59  ;;  %v5768_v48 = vadd.f32 %v7196_v24, %v5767_v37  ;;  %v7167_v22 = vpop.f32.mrb[22].mxu0 }
 0x206   : > { %v7200_v56 = vadd.f32 %v7167_v22, %v7031_v9  ;;  %v5450_v26 = vpop.f32.mrb[23].mxu0  ;;  %v5809_v20 = vmul.f32 %v7198_v60, %v7198_v60 }
 0x207   : > { %v5769_v6 = vadd.f32 %v7199_v15, %v5768_v48  ;;  %v5807_v35 = vmul.f32 %v7199_v15, %v7199_v15  ;;  %v5837_v23 = vadd.f32 %v5836_v27, %v5806_v34  ;;  %v7201_v45 = vadd.f32 %v5450_v26, %v3105_v61  ;;  %v7034_v55 = vpop.f32.mrb[24].mxu1 }
 0x208   : > { %v6680_v32 = vpack.c.bf16 %v7200_v56, %v7198_v60  ;;  %v3118_v46 = vpop.f32.mrb[25].mxu1  ;;  %v5810_v28 = vmul.f32 %v7200_v56, %v7200_v56 }
 0x209   : > { %v5838_v36 = vadd.f32 %v5837_v23, %v5807_v35  ;;  %v6675_v53 = vpack.c.bf16 %v7201_v45, %v7199_v15  ;;  %v5770_v54 = vadd.f32 %v7201_v45, %v5769_v6  ;;  %v5808_v57 = vmul.f32 %v7201_v45, %v7201_v45  ;;  %v7035_v8 = vpop.f32.mrb[26].mxu1 }
 0x20a   : > { %6712 = vst [vmem:[%s8807_s16 + $0x58] sm:$0xff] %v6680_v32   ;;  %v3121_v42 = vpop.f32.mrb[27].mxu1 }
 0x20b   : > { %6711 = vst [vmem:[%s8807_s16 + $0x50] sm:$0xff] %v6675_v53   ;;  %v5771_v12 = vadd.f32 %v7198_v60, %v5770_v54  ;;  %v5839_v2 = vadd.f32 %v5838_v36, %v5808_v57  ;;  %v7170_v19 = vpop.f32.mrb[24].mxu0 }
 0x20c   : > { %v7202_v4 = vadd.f32 %v7170_v19, %v7034_v55  ;;  %v5463_v0 = vpop.f32.mrb[25].mxu0 }
 0x20d   : > { %v5840_v49 = vadd.f32 %v5839_v2, %v5809_v20  ;;  %v7203_v51 = vadd.f32 %v5463_v0, %v3118_v46  ;;  %v5772_v1 = vadd.f32 %v7200_v56, %v5771_v12  ;;  %v7171_v52 = vpop.f32.mrb[26].mxu0 }
 0x20e   : > { %v7204_v41 = vadd.f32 %v7171_v52, %v7035_v8  ;;  %v5466_v5 = vpop.f32.mrb[27].mxu0  ;;  %v5813_v62 = vmul.f32 %v7202_v4, %v7202_v4 }
 0x20f   : > { %v5773_v11 = vadd.f32 %v7203_v51, %v5772_v1  ;;  %v5811_v58 = vmul.f32 %v7203_v51, %v7203_v51  ;;  %v5841_v10 = vadd.f32 %v5840_v49, %v5810_v28  ;;  %v7205_v25 = vadd.f32 %v5466_v5, %v3121_v42  ;;  %v7038_v39 = vpop.f32.mrb[28].mxu1 }
 0x210   : > { %v6690_v47 = vpack.c.bf16 %v7204_v41, %v7202_v4  ;;  %v3134_v13 = vpop.f32.mrb[29].mxu1  ;;  %v5814_v31 = vmul.f32 %v7204_v41, %v7204_v41 }
 0x211   : > { %v5842_v7 = vadd.f32 %v5841_v10, %v5811_v58  ;;  %v6685_v44 = vpack.c.bf16 %v7205_v25, %v7203_v51  ;;  %v5774_v29 = vadd.f32 %v7205_v25, %v5773_v11  ;;  %v5812_v24 = vmul.f32 %v7205_v25, %v7205_v25  ;;  %v7039_v30 = vpop.f32.mrb[30].mxu1 }
 0x212   : > { %6714 = vst [vmem:[%s8807_s16 + $0x68] sm:$0xff] %v6690_v47   ;;  %v3137_v63 = vpop.f32.mrb[31].mxu1 }
 0x213   : > { %6713 = vst [vmem:[%s8807_s16 + $0x60] sm:$0xff] %v6685_v44   ;;  %v5775_v17 = vadd.f32 %v7202_v4, %v5774_v29  ;;  %v5843_v50 = vadd.f32 %v5842_v7, %v5812_v24  ;;  %v7174_v14 = vpop.f32.mrb[28].mxu0 }
 0x214   : > { %v7206_v3 = vadd.f32 %v7174_v14, %v7038_v39  ;;  %v5479_v59 = vpop.f32.mrb[29].mxu0 }
 0x215   : > { %v5844_v40 = vadd.f32 %v5843_v50, %v5813_v62  ;;  %v7207_v16 = vadd.f32 %v5479_v59, %v3134_v13  ;;  %v5776_v33 = vadd.f32 %v7204_v41, %v5775_v17  ;;  %v7175_v9 = vpop.f32.mrb[30].mxu0 }
 0x216   : > { %v7208_v18 = vadd.f32 %v7175_v9, %v7039_v30  ;;  %v5482_v61 = vpop.f32.mrb[31].mxu0  ;;  %v5817_v22 = vmul.f32 %v7206_v3, %v7206_v3 }
 0x217   : > { %v5777_v37 = vadd.f32 %v7207_v16, %v5776_v33  ;;  %v5815_v21 = vmul.f32 %v7207_v16, %v7207_v16  ;;  %v5845_v38 = vadd.f32 %v5844_v40, %v5814_v31  ;;  %v7209_v60 = vadd.f32 %v5482_v61, %v3137_v63 }
 0x218   : > { %v6700_v43 = vpack.c.bf16 %v7208_v18, %v7206_v3  ;;  %v5818_v6 = vmul.f32 %v7208_v18, %v7208_v18 }
 0x219   : > { %v5846_v34 = vadd.f32 %v5845_v38, %v5815_v21  ;;  %v6695_v27 = vpack.c.bf16 %v7209_v60, %v7207_v16  ;;  %v5778_v15 = vadd.f32 %v7209_v60, %v5777_v37  ;;  %v5816_v48 = vmul.f32 %v7209_v60, %v7209_v60 }
 0x21a   : > { %6716 = vst [vmem:[%s8807_s16 + $0x78] sm:$0xff] %v6700_v43  }
 0x21b   : > { %6715 = vst [vmem:[%s8807_s16 + $0x70] sm:$0xff] %v6695_v27   ;;  %v5779_v56 = vadd.f32 %v7206_v3, %v5778_v15  ;;  %v5847_v26 = vadd.f32 %v5846_v34, %v5816_v48 }
 0x21d   : > { %v5780_v35 = vadd.f32 %v7208_v18, %v5779_v56  ;;  %v5848_v23 = vadd.f32 %v5847_v26, %v5817_v22 }
 0x21f   : > { %v5781_v45 = vrot.slane %v5780_v35, 4  ;;  %v5849_v55 = vadd.f32 %v5848_v23, %v5818_v6 }
 0x221   : > { %v5782_v32 = vadd.f32 %v5781_v45, %v5780_v35  ;;  %v5850_v46 = vrot.slane %v5849_v55, 4 }
 0x223   : > { %v5783_v36 = vrot.slane %v5782_v32, 2  ;;  %v5851_v53 = vadd.f32 %v5850_v46, %v5849_v55 }
 0x225   : > { %v5784_v54 = vadd.f32 %v5783_v36, %v5782_v32  ;;  %v5852_v57 = vrot.slane %v5851_v53, 2 }
 0x227   : > { %v5785_v8 = vrot.slane %v5784_v54, 1  ;;  %v5853_v20 = vadd.f32 %v5852_v57, %v5851_v53 }
 0x229   : > { %v5854_v42 = vrot.slane %v5853_v20, 1  ;;  %v5786_v12 = vadd.f32 %v5785_v8, %v5784_v54 }
 0x22b   : > { %v5855_v2 = vadd.f32 %v5854_v42, %v5853_v20 }
 0x22d   : > { %v5857_v19 = vsel %vm5856_vm8, %v5786_v12, %v5855_v2 }
 0x22e   : > { %v5858_v4 = vsel %vm409_vm0, %v5857_v19, 0.0 }
 0x22f   : > { %5859 = vst [vmem:[%s181_s20] sm:$0xff] %v5858_v4 }
 0x230 PF: > { %s14_s12 = sadd.s32 1, %s7508_s12  }
 0x231   : > { %p11_p4 = scmp.ge.s32.totalorder %s14_s12, 4  }
 0x233   :  { %13 = sbr.rel (!%p11_p4) target bundleno = 1 (0x1), region = 80 }

// kernel: basic_block_forward.4
= control target key start
LH: loop header
LB: loop body
LE: loop exit
PB: predicated region body
PF: predicated region fallthrough
CT: control target
= control target key end

     0   :  { %s9867_s30 = smov 0   ;;  %s11069_s0 = inlined_call_operand.vmem [shape: bf16[2,16,16,128], index: 0, kind: input, shape index: {}]   ;;  %s11070_s1 = inlined_call_operand.vmem [shape: f32[1,128], index: 1, kind: input, shape index: {}]   ;;  %s11071_s2 = inlined_call_operand.vmem [shape: f32[1,128], index: 2, kind: input, shape index: {}]   ;;  %s11072_s3 = inlined_call_operand.vmem [shape: bf16[9,128,128], index: 3, kind: input, shape index: {}]   ;;  %s11073_s4 = inlined_call_operand.vmem [shape: bf16[2,16,16,4], index: 4, kind: input, shape index: {}]   ;;  %s11074_s5 = inlined_call_operand.vmem [shape: bf16[4,128], index: 5, kind: input, shape index: {}]   ;;  %s11075_s6 = inlined_call_operand.vmem [shape: bf16[2,16,16,128], index: 6, kind: output, shape index: {0}]   ;;  %s11076_s7 = inlined_call_operand.vmem [shape: f32[16,128], index: 7, kind: output, shape index: {1}]   ;;  %s11077_s8 = inlined_call_operand.vmem [shape: bf16[2,16,16,128], index: 8, kind: output, shape index: {2}]   ;;  %s11078_s9 = inlined_call_operand.vmem [shape: f32[16,128], index: 9, kind: output, shape index: {3}]  }
   0x1 LB: > { %s7716_s10 = sadd.s32 4294967295, %s9814_s30   ;;  %p7720_p0 = scmp.ge.s32.totalorder %s9814_s30, 1  ;;  %s9814_s30 = sphi %s9867_s30, %s20_s30  }
   0x2   : > { %p304_p1 = scmp.lt.s32.totalorder %s9814_s30, 3 }
   0x4   : > { %p305_p2 = pnand %p7720_p0, %p304_p1 }
   0x5   : > { %v9669_v0 = vld [vmem:[%s11072_s3] sm:$0xff] (!%p305_p2)   ;;  %v9881_v1 = vld [vmem:[%s11072_s3 + $0x8] sm:$0xff] (!%p305_p2)   ;;  %v9816_v2 = vmov (!%p305_p2), 0   ;;  %p358_p3 = scmp.lt.s32.totalorder (!%p305_p2), %s7716_s10, 1  ;;  %v9672_v4 = vld [vmem:[%s11072_s3 + $0x10] sm:$0xff] (!%p305_p2)   ;;  %vm647_vm0 = vcmask (!%p305_p2), 1040384  }
   0x6   : > { %308 = sbr.rel (%p305_p2) target bundleno = 688 (0x2b0), region = 44  ;;  %561 = vst [vmem:[#allocation2] sm:$0xf] (!%p305_p2), %v9816_v2  ;;  %562 = vst [vmem:[#allocation2 + $0x4] sm:$0xf] (!%p305_p2), %v9816_v2  ;;  %8937 = vmatprep.subr.bf16.mxu1 (!%p305_p2), %v9669_v0  ;;  %v9671_v3 = vld [vmem:[%s11072_s3 + $0x100] sm:$0xff] (!%p305_p2)  }
   0x7   : > { %563 = vst [vmem:[#allocation2 + $0x8] sm:$0x1] (!%p305_p2), %v9816_v2  ;;  %564 = vst [vmem:[#allocation2 + $0xc] sm:$0xf] (!%p305_p2), %v9816_v2  ;;  %8938 = vmatpush3.bf16.msra.mxu1 (!%p305_p2), %v9669_v0  ;;  %9129 = vmatprep.subr.bf16.mxu0 (!%p305_p2), %v9671_v3  ;;  %v9673_v5 = vld [vmem:[%s11072_s3 + $0x108] sm:$0xff] (!%p305_p2)   ;;  %v9675_v6 = vld [vmem:[%s11072_s3 + $0x110] sm:$0xff] (!%p305_p2)  }
   0x8   : > { %565 = vst [vmem:[#allocation2 + $0x10] sm:$0xf] (!%p305_p2), %v9816_v2  ;;  %566 = vst [vmem:[#allocation2 + $0x14] sm:$0x1] (!%p305_p2), %v9816_v2  ;;  %8939 = vmatprep.subr.bf16.mxu1 (!%p305_p2), %v9881_v1  ;;  %9130 = vmatpush3.bf16.msra.mxu0 (!%p305_p2), %v9671_v3  ;;  %v9674_v7 = vld [vmem:[%s11072_s3 + $0x18] sm:$0xff] (!%p305_p2)   ;;  %v9676_v9 = vld [vmem:[%s11072_s3 + $0x20] sm:$0xff] (!%p305_p2)  }
   0x9   : > { %567 = vst [vmem:[#allocation2 + $0x18] sm:$0xf] (!%p305_p2), %v9816_v2  ;;  %568 = vst [vmem:[#allocation2 + $0x1c] sm:$0xf] (!%p305_p2), %v9816_v2  ;;  %9131 = vmatprep.subr.bf16.mxu0 (!%p305_p2), %v9673_v5  ;;  %v9677_v8 = vld [vmem:[%s11072_s3 + $0x118] sm:$0xff] (!%p305_p2)   ;;  %v9679_v10 = vld [vmem:[%s11072_s3 + $0x120] sm:$0xff] (!%p305_p2)  }
   0xa   : > { %569 = vst [vmem:[#allocation2 + $0x20] sm:$0x1] (!%p305_p2), %v9816_v2  ;;  %570 = vst [vmem:[#allocation2 + $0x24] sm:$0xf] (!%p305_p2), %v9816_v2  ;;  %v9678_v12 = vld [vmem:[%s11072_s3 + $0x28] sm:$0xff] (!%p305_p2)   ;;  %v9680_v19 = vld [vmem:[%s11072_s3 + $0x30] sm:$0xff] (!%p305_p2)  }
   0xb   : > { %571 = vst [vmem:[#allocation2 + $0x28] sm:$0xf] (!%p305_p2), %v9816_v2  ;;  %572 = vst [vmem:[#allocation2 + $0x2c] sm:$0x1] (!%p305_p2), %v9816_v2  ;;  %8940 = vmatpush3.bf16.msra.mxu1 (!%p305_p2), %v9881_v1  ;;  %v9931_v14 = vld [vmem:[%s11070_s1] ss:$0 sm:$0xff] (!%p305_p2) }
   0xc   : > { %573 = vst [vmem:[#allocation2 + $0x30] sm:$0xf] (!%p305_p2), %v9816_v2  ;;  %574 = vst [vmem:[#allocation2 + $0x34] sm:$0xf] (!%p305_p2), %v9816_v2  ;;  %8941 = vmatprep.subr.bf16.mxu1 (!%p305_p2), %v9672_v4  ;;  %9132 = vmatpush3.bf16.msra.mxu0 (!%p305_p2), %v9673_v5  ;;  %v9681_v17 = vld [vmem:[%s11072_s3 + $0x128] sm:$0xff] (!%p305_p2)   ;;  %v9683_v28 = vld [vmem:[%s11072_s3 + $0x130] sm:$0xff] (!%p305_p2)  }
   0xd   : > { %575 = vst [vmem:[#allocation2 + $0x38] sm:$0x1] %v9816_v2  ;;  %576 = vst [vmem:[#allocation2 + $0x3c] sm:$0xf] %v9816_v2  ;;  %s11084_s10 = smov (!%p358_p3, %s7716_s10), 1  ;;  %9133 = vmatprep.subr.bf16.mxu0 %v9675_v6  ;;  %v9684_v11 = vld [vmem:[#allocation2] sm:$0xff]  }
   0xe   : > { %577 = vst [vmem:[#allocation2 + $0x40] sm:$0xf] %v9816_v2  ;;  %578 = vst [vmem:[#allocation2 + $0x44] sm:$0x1] %v9816_v2  ;;  %s9910_s27 = sshll.u32 %s11084_s10, 7  ;;  %8953 = vmatprep.mubr.bf16.mxu1 %v9684_v11  ;;  %v9682_v36 = vld [vmem:[%s11072_s3 + $0x38] sm:$0xff]  }
   0xf   : > { %579 = vst [vmem:[#allocation2 + $0x48] sm:$0xf] %v9816_v2  ;;  %580 = vst [vmem:[#allocation2 + $0x4c] sm:$0xf] %v9816_v2  ;;  %8942 = vmatpush3.bf16.msra.mxu1 %v9672_v4  ;;  %s9919_s13 = scalar_lea.vmem %s11069_s0, %s9910_s27  ;;  %v9939_v18 = vld [vmem:[%s11071_s2] ss:$0 sm:$0xff]  ;;  %s10987_s16 = scalar_lea.vmem %s11077_s8, %s9910_s27 }
  0x10   : > { %581 = vst [vmem:[#allocation2 + $0x50] sm:$0x1] %v9816_v2  ;;  %582 = vst [vmem:[#allocation2 + $0x54] sm:$0xf] %v9816_v2  ;;  %8943 = vmatprep.subr.bf16.mxu1 %v9674_v7  ;;  %9134 = vmatpush3.bf16.msra.mxu0 %v9675_v6  ;;  %v8388_v13 = vld [vmem:[%s9919_s13] sm:$0xff]   ;;  %v8651_v22 = vld [vmem:[%s9919_s13 + $0x8] sm:$0xff]   ;;  %s10995_s19 = scalar_lea.vmem %s11075_s6, %s9910_s27 }
  0x11   : > { %583 = vst [vmem:[#allocation2 + $0x58] sm:$0xf] %v9816_v2  ;;  %584 = vst [vmem:[#allocation2 + $0x5c] sm:$0x1] %v9816_v2  ;;  %9135 = vmatprep.subr.bf16.mxu0 %v9677_v8  ;;  %v8389_v15 = vunpack.c.l.bf16 %v8388_v13  ;;  %v8390_v16 = vunpack.c.h.bf16 %v8388_v13  ;;  %v8393_v25 = vunpack.c.l.bf16 %v8651_v22  ;;  %v8394_v26 = vunpack.c.h.bf16 %v8651_v22  ;;  %v8652_v27 = vld [vmem:[%s9919_s13 + $0x10] sm:$0xff]   ;;  %v8653_v31 = vld [vmem:[%s9919_s13 + $0x18] sm:$0xff]  }
  0x12   : > { %585 = vst [vmem:[#allocation2 + $0x60] sm:$0xf] %v9816_v2  ;;  %586 = vst [vmem:[#allocation2 + $0x64] sm:$0xf] %v9816_v2  ;;  %v8397_v29 = vunpack.c.l.bf16 %v8652_v27  ;;  %v8398_v30 = vunpack.c.h.bf16 %v8652_v27  ;;  %v8401_v39 = vunpack.c.l.bf16 %v8653_v31  ;;  %v8402_v40 = vunpack.c.h.bf16 %v8653_v31  ;;  %v9686_v45 = vld [vmem:[%s11072_s3 + $0x138] sm:$0xff]   ;;  %v8654_v54 = vld [vmem:[%s9919_s13 + $0x20] sm:$0xff]  }
  0x13   : > { %587 = vst [vmem:[#allocation2 + $0x68] sm:$0x1] %v9816_v2  ;;  %588 = vst [vmem:[#allocation2 + $0x6c] sm:$0xf] %v9816_v2  ;;  %8944 = vmatpush3.bf16.msra.mxu1 %v9674_v7  ;;  %v458_v20 = vmul.f32 %v8389_v15, %v9931_v14  ;;  %v459_v21 = vmul.f32 %v8390_v16, %v9931_v14  ;;  %v460_v34 = vmul.f32 %v8393_v25, %v9931_v14  ;;  %v9977_v59 = vld [vmem:[%s11072_s3 + $0x40] sm:$0xff]   ;;  %vm2463_vm4 = vcmask 1042432  }
  0x14   : > { %589 = vst [vmem:[#allocation2 + $0x70] sm:$0xf] %v9816_v2  ;;  %590 = vst [vmem:[#allocation2 + $0x74] sm:$0x1] %v9816_v2  ;;  %8945 = vmatprep.subr.bf16.mxu1 %v9676_v9  ;;  %9136 = vmatpush3.bf16.msra.mxu0 %v9677_v8  ;;  %v461_v35 = vmul.f32 %v8394_v26, %v9931_v14  ;;  %v462_v37 = vmul.f32 %v8397_v29, %v9931_v14  ;;  %v9983_v0 = vld [vmem:[%s11072_s3 + $0x140] sm:$0xff]   ;;  %v8405_v3 = vunpack.c.l.bf16 %v8654_v54  ;;  %vm2464_vm5 = vcmask 1046532  }
  0x15   : > { %591 = vst [vmem:[#allocation2 + $0x78] sm:$0xf] %v9816_v2  ;;  %592 = vst [vmem:[#allocation2 + $0x7c] sm:$0xf] %v9816_v2  ;;  %9137 = vmatprep.subr.bf16.mxu0 %v9679_v10  ;;  %v497_v23 = vadd.f32 %v9939_v18, %v458_v20  ;;  %v498_v24 = vadd.f32 %v9939_v18, %v459_v21  ;;  %v463_v38 = vmul.f32 %v8398_v30, %v9931_v14  ;;  %vm1594_vm1 = vsmask.f32 3328 }
  0x16   : > { %593 = vst [vmem:[#allocation2 + $0x80] sm:$0x1] %v9816_v2  ;;  %594 = vst [vmem:[#allocation2 + $0x84] sm:$0xf] %v9816_v2  ;;  %v499_v43 = vadd.f32 %v9939_v18, %v460_v34  ;;  %v500_v44 = vadd.f32 %v9939_v18, %v461_v35  ;;  %v501_v46 = vadd.f32 %v9939_v18, %v462_v37  ;;  %v8406_v4 = vunpack.c.h.bf16 %v8654_v54  ;;  %v8656_v20 = vld [vmem:[%s9919_s13 + $0x30] sm:$0xff]   ;;  %v9692_v30 = vld [vmem:[%s11072_s3 + $0x48] sm:$0xff]  }
  0x17   : > { %595 = vst [vmem:[#allocation2 + $0x88] sm:$0xf] %v9816_v2  ;;  %596 = vst [vmem:[#allocation2 + $0x8c] sm:$0x1] %v9816_v2  ;;  %8946 = vmatpush3.bf16.msra.mxu1 %v9676_v9  ;;  %v529_v32 = vmax.f32 %v497_v23, 0.0  ;;  %v530_v33 = vmax.f32 %v498_v24, 0.0  ;;  %v502_v47 = vadd.f32 %v9939_v18, %v463_v38  ;;  %v464_v48 = vmul.f32 %v8401_v39, %v9931_v14 }
  0x18   : > { %597 = vst [vmem:[#allocation2 + $0x90] sm:$0xf] %v9816_v2  ;;  %598 = vst [vmem:[#allocation2 + $0x94] sm:$0xf] %v9816_v2  ;;  %8947 = vmatprep.subr.bf16.mxu1 %v9678_v12  ;;  %9138 = vmatpush3.bf16.msra.mxu0 %v9679_v10  ;;  %v465_v49 = vmul.f32 %v8402_v40, %v9931_v14  ;;  %v531_v53 = vmax.f32 %v499_v43, 0.0  ;;  %v532_v58 = vmax.f32 %v500_v44, 0.0  ;;  %v8414_v38 = vunpack.c.h.bf16 %v8656_v20 }
  0x19   : > { %599 = vst [vmem:[#allocation2 + $0x98] sm:$0x1] %v9816_v2  ;;  %600 = vst [vmem:[#allocation2 + $0x9c] sm:$0xf] %v9816_v2  ;;  %9139 = vmatprep.subr.bf16.mxu0 %v9681_v17  ;;  %v648_v41 = vrot.slane %v529_v32, 7  ;;  %v649_v42 = vrot.slane %v530_v33, 7  ;;  %v503_v63 = vadd.f32 %v9939_v18, %v464_v48  ;;  %v467_v27 = vmul.f32 %v8406_v4, %v9931_v14 }
  0x1a   : > { %601 = vst [vmem:[#allocation2 + $0xa0] sm:$0xf] %v9816_v2  ;;  %602 = vst [vmem:[#allocation2 + $0xa4] sm:$0x1] %v9816_v2  ;;  %v651_v60 = vrot.slane %v531_v53, 7  ;;  %v533_v61 = vmax.f32 %v501_v46, 0.0  ;;  %v8413_v33 = vunpack.c.l.bf16 %v8656_v20 }
  0x1b   : > { %603 = vst [vmem:[#allocation2 + $0xa8] sm:$0xf] %v9816_v2  ;;  %604 = vst [vmem:[#allocation2 + $0xac] sm:$0xf] %v9816_v2  ;;  %8948 = vmatpush3.bf16.msra.mxu1 %v9678_v12  ;;  %v650_v50 = vsel %vm647_vm0, %v648_v41, %v649_v42  ;;  %v744_v51 = vsel %vm647_vm0, 0.0, %v648_v41  ;;  %v760_v52 = vsel %vm647_vm0, %v649_v42, 0.0  ;;  %v466_v12 = vmul.f32 %v8405_v3, %v9931_v14 }
  0x1c   : > { %605 = vst [vmem:[#allocation2 + $0xb0] sm:$0x1] %v9816_v2  ;;  %606 = vst [vmem:[#allocation2 + $0xb4] sm:$0xf] %v9816_v2  ;;  %8949 = vmatprep.subr.bf16.mxu1 %v9680_v19  ;;  %9140 = vmatpush3.bf16.msra.mxu0 %v9681_v17  ;;  %v8275_v55 = vpack.c.bf16 %v744_v51, %v744_v51  ;;  %v8276_v56 = vpack.c.bf16 %v650_v50, %v650_v50  ;;  %v534_v62 = vmax.f32 %v502_v47, 0.0  ;;  %vm6956_vm7 = vcmask 1041408  }
  0x1d   : > { %607 = vst [vmem:[#allocation2 + $0xb8] sm:$0xf] %v9816_v2  ;;  %608 = vst [vmem:[#allocation2 + $0xbc] sm:$0x1] %v9816_v2  ;;  %9141 = vmatprep.subr.bf16.mxu0 %v9683_v28  ;;  %v8277_v57 = vpack.c.bf16 %v760_v52, %v760_v52  ;;  %v652_v1 = vrot.slane %v532_v58, 7  ;;  %v745_v5 = vsel %vm647_vm0, 0.0, %v651_v60  ;;  %v10008_v37 = vadd.f32 %v9939_v18, %v467_v27 }
  0x1e   : > { %609 = vst [vmem:[#allocation2 + $0xc0] sm:$0xf] %v9816_v2  ;;  %610 = vst [vmem:[#allocation2 + $0xc4] sm:$0xf] %v9816_v2  ;;  %v654_v6 = vrot.slane %v533_v61, 7  ;;  %v655_v7 = vrot.slane %v534_v62, 7 }
  0x1f   : > { %611 = vst [vmem:[#allocation2 + $0xc8] sm:$0x1] %v9816_v2  ;;  %612 = vst [vmem:[#allocation2 + $0xcc] sm:$0xf] %v9816_v2  ;;  %8950 = vmatpush3.bf16.msra.mxu1 %v9680_v19  ;;  %v535_v8 = vmax.f32 %v503_v63, 0.0  ;;  %v653_v9 = vsel %vm647_vm0, %v651_v60, %v652_v1  ;;  %v761_v10 = vsel %vm647_vm0, %v652_v1, 0.0  ;;  %v470_v1 = vmul.f32 %v8413_v33, %v9931_v14 }
  0x20   : > { %613 = vst [vmem:[#allocation2 + $0xd0] sm:$0xf] %v9816_v2  ;;  %614 = vst [vmem:[#allocation2 + $0xd4] sm:$0x1] %v9816_v2  ;;  %8951 = vmatprep.subr.bf16.mxu1 %v9682_v36  ;;  %9142 = vmatpush3.bf16.msra.mxu0 %v9683_v28  ;;  %v504_v2 = vadd.f32 %v9939_v18, %v465_v49  ;;  %vm1595_vm2 = vsmask.f32 7440  ;;  %v8280_v13 = vpack.c.bf16 %v761_v10, %v761_v10 }
  0x21   : > { %985 = vst [vmem:[#allocation2 + $0xc] sm:$0xf] %v8275_v55  ;;  %986 = vst [vmem:[#allocation2 + $0x10] sm:$0xf] %v8276_v56  ;;  %9143 = vmatprep.subr.bf16.mxu0 %v9686_v45  ;;  %v8454_v15 = vpack.c.bf16 %v653_v9, %v745_v5  ;;  %v656_v16 = vsel %vm647_vm0, %v654_v6, %v655_v7  ;;  %v746_v17 = vsel %vm647_vm0, 0.0, %v654_v6  ;;  %v8655_v19 = vld [vmem:[%s9919_s13 + $0x28] sm:$0xff]  }
  0x22   : > { %987 = vst [vmem:[#allocation2 + $0x14] sm:$0x1] %v8277_v57  ;;  %v536_v11 = vmax.f32 %v504_v2, 0.0  ;;  %v8281_v21 = vpack.c.bf16 %v746_v17, %v746_v17  ;;  %v8282_v22 = vpack.c.bf16 %v656_v16, %v656_v16  ;;  %v762_v23 = vsel %vm647_vm0, %v655_v7, 0.0  ;;  %990 = vst [vmem:[#allocation2 + $0x20] sm:$0x1] %v8280_v13 }
  0x23   : > { %8952 = vmatpush3.bf16.msra.mxu1 %v9682_v36  ;;  %v657_v24 = vrot.slane %v535_v8, 7  ;;  %8666 = vst [vmem:[#allocation2 + $0x18] sm:$0xff] %v8454_v15   ;;  %v8283_v25 = vpack.c.bf16 %v762_v23, %v762_v23  ;;  %v9999_v28 = vadd.f32 %v9939_v18, %v466_v12  ;;  %v8409_v31 = vunpack.c.l.bf16 %v8655_v19  ;;  %v9696_v58 = vld [vmem:[%s11072_s3 + $0x50] sm:$0xff]   ;;  %v9700_v8 = vld [vmem:[%s11072_s3 + $0x58] sm:$0xff]   ;;  %vm10031_vm3 = vmor %vm1594_vm1, %vm1595_vm2 }
  0x24   : > { %8985 = vmatprep.subr.bf16.mxu1 %v9977_v59  ;;  %9144 = vmatpush3.bf16.msra.mxu0 %v9686_v45  ;;  %v658_v26 = vrot.slane %v536_v11, 7  ;;  %991 = vst [vmem:[#allocation2 + $0x24] sm:$0xf] %v8281_v21  ;;  %992 = vst [vmem:[#allocation2 + $0x28] sm:$0xf] %v8282_v22  ;;  %v8410_v32 = vunpack.c.h.bf16 %v8655_v19  ;;  %v538_v52 = vmax.f32 %v10008_v37, 0.0  ;;  %v471_v2 = vmul.f32 %v8414_v38, %v9931_v14 }
  0x25   : > { %9177 = vmatprep.subr.bf16.mxu0 %v9983_v0  ;;  %v747_v29 = vsel %vm647_vm0, 0.0, %v657_v24  ;;  %993 = vst [vmem:[#allocation2 + $0x2c] sm:$0x1] %v8283_v25  ;;  %v468_v44 = vmul.f32 %v8409_v31, %v9931_v14  ;;  %v537_v51 = vmax.f32 %v9999_v28, 0.0  ;;  %v10036_v15 = vadd.f32 %v9939_v18, %v470_v1  ;;  %vm10298_vm6 = vmor %vm2463_vm4, %vm2464_vm5 }
  0x26   : > { %v659_v35 = vsel %vm647_vm0, %v657_v24, %v658_v26  ;;  %v763_v36 = vsel %vm647_vm0, %v658_v26, 0.0  ;;  %v469_v45 = vmul.f32 %v8410_v32, %v9931_v14  ;;  %v10043_v31 = vadd.f32 %v9939_v18, %v471_v2  ;;  %v9704_v32 = vld [vmem:[%s11072_s3 + $0x60] sm:$0xff]  }
  0x27   : > { %v8286_v42 = vpack.c.bf16 %v763_v36, %v763_v36  ;;  %v8459_v43 = vpack.c.bf16 %v659_v35, %v747_v29  ;;  %v10016_v53 = vadd.f32 %v9939_v18, %v468_v44  ;;  %v660_v24 = vrot.slane %v537_v51, 7 }
  0x28   : > { %v9685_v34 = vld [vmem:[#allocation2 + $0xc] sm:$0xff]   ;;  %v10022_v63 = vadd.f32 %v9939_v18, %v469_v45  ;;  %vm7072_vm8 = vcmask 31744  }
  0x29   : > { %v3382_v39 = vld [vmem:[#allocation2 + $0xc] sm:$0xf]  ;;  %v3383_v40 = vld [vmem:[#allocation2 + $0x10] sm:$0xf]  ;;  %v3384_v41 = vld [vmem:[#allocation2 + $0x14] sm:$0x1]  ;;  %8954 = vmatmul.mubr.bf16.vlgmr.msra.gmra.mrb[0].mxu1 %v9685_v34 }
  0x2a   : > { %v3463_v46 = vshrl.u32 %v3382_v39, 16  ;;  %v3466_v47 = vshll.u32 %v3382_v39, 16  ;;  %v3472_v48 = vshll.u32 %v3383_v40, 16  ;;  %v3476_v49 = vshrl.u32 %v3383_v40, 16  ;;  %8986 = vmatpush3.bf16.msra.mxu1 %v9977_v59  ;;  %8667 = vst [vmem:[#allocation2 + $0x30] sm:$0xff] %v8459_v43   ;;  %v9689_v62 = vld [vmem:[#allocation2 + $0x18] sm:$0xff]  }
  0x2b   : > { %v3482_v50 = vshll.u32 %v3384_v41, 16  ;;  %996 = vst [vmem:[#allocation2 + $0x38] sm:$0x1] %v8286_v42  ;;  %8987 = vmatprep.subr.bf16.mxu1 %v9692_v30  ;;  %v3385_v59 = vld [vmem:[#allocation2 + $0x18] sm:$0xf]  ;;  %8957 = vmatprep.mubr.bf16.mxu1 %v9689_v62  ;;  %v9690_v13 = vld [vmem:[#allocation2 + $0x24] sm:$0xff]  }
  0x2c   : > { %v3465_v54 = vrot.slane %v3463_v46, 4  ;;  %v3468_v55 = vrot.slane %v3466_v47, 5  ;;  %v3474_v56 = vrot.slane %v3472_v48, 5  ;;  %v3478_v57 = vrot.slane %v3476_v49, 4  ;;  %v3386_v61 = vld [vmem:[#allocation2 + $0x1c] sm:$0xf] }
  0x2d   : > { %v3484_v60 = vrot.slane %v3482_v50, 5  ;;  %v3387_v5 = vld [vmem:[#allocation2 + $0x20] sm:$0x1]  ;;  %v3487_v6 = vshrl.u32 %v3385_v59, 16  ;;  %v3490_v7 = vshll.u32 %v3385_v59, 16  ;;  %v3496_v10 = vshll.u32 %v3386_v61, 16 }
  0x2e   : > { %v3469_v3 = vor.u32 %v3468_v55, %v3465_v54  ;;  %v3479_v4 = vor.u32 %v3478_v57, %v3474_v56  ;;  %v3500_v11 = vshrl.u32 %v3386_v61, 16  ;;  %v3506_v12 = vshll.u32 %v3387_v5, 16  ;;  %8988 = vmatpush3.bf16.msra.mxu1 %v9692_v30  ;;  %v3388_v28 = vld [vmem:[#allocation2 + $0x24] sm:$0xf]  ;;  %v3389_v29 = vld [vmem:[#allocation2 + $0x28] sm:$0xf] }
  0x2f   : > { %v3489_v19 = vrot.slane %v3487_v6, 4  ;;  %v3492_v20 = vrot.slane %v3490_v7, 5  ;;  %8989 = vmatprep.subr.bf16.mxu1 %v9696_v58  ;;  %v3498_v21 = vrot.slane %v3496_v10, 5  ;;  %v3390_v30 = vld [vmem:[#allocation2 + $0x2c] sm:$0x1]  ;;  %v3511_v35 = vshrl.u32 %v3388_v28, 16 }
  0x30   : > { %v3470_v16 = vrot.slane %v3469_v3, 4  ;;  %v3480_v17 = vrot.slane %v3479_v4, 4  ;;  %v3502_v22 = vrot.slane %v3500_v11, 4  ;;  %v3508_v23 = vrot.slane %v3506_v12, 5  ;;  %v9691_v62 = vld [vmem:[%s11072_s3 + $0x148] sm:$0xff]  }
  0x31   : > { %v3493_v27 = vor.u32 %v3492_v20, %v3489_v19  ;;  %8958 = vmatmul.mubr.bf16.gmra.mrb[4].mxu1 %v9690_v13  ;;  %v3514_v36 = vshll.u32 %v3388_v28, 16  ;;  %v3391_v38 = vld [vmem:[#allocation2 + $0x30] sm:$0xf]  ;;  %v3392_v39 = vld [vmem:[#allocation2 + $0x34] sm:$0xf]  ;;  %v3520_v41 = vshll.u32 %v3389_v29, 16 }
  0x32   : > { %v3475_v25 = vsel %vm10031_vm3, %v3470_v16, %v3474_v56  ;;  %v3485_v26 = vsel %vm10031_vm3, %v3480_v17, %v3484_v60  ;;  %v3503_v34 = vor.u32 %v3502_v22, %v3498_v21  ;;  %8990 = vmatpush3.bf16.msra.mxu1 %v9696_v58  ;;  %v3524_v42 = vshrl.u32 %v3389_v29, 16  ;;  %v3393_v44 = vld [vmem:[#allocation2 + $0x38] sm:$0x1]  ;;  %v9693_v55 = vld [vmem:[#allocation2 + $0x30] sm:$0xff]   ;;  %v9708_v3 = vld [vmem:[%s11072_s3 + $0x68] sm:$0xff]  }
  0x33   : > { %v7957_v33 = vcombine.low %v3475_v25, %v3485_v26  ;;  %v3494_v40 = vrot.slane %v3493_v27, 4  ;;  %v3530_v43 = vshll.u32 %v3390_v30, 16  ;;  %8991 = vmatprep.subr.bf16.mxu1 %v9700_v8  ;;  %v3513_v46 = vrot.slane %v3511_v35, 4  ;;  %8961 = vmatprep.mubr.bf16.mxu1 %v9693_v55  ;;  %v9695_v22 = vld [vmem:[%s11072_s3 + $0x150] sm:$0xff]  }
  0x34   : > { %v3504_v45 = vrot.slane %v3503_v34, 4  ;;  %v3516_v47 = vrot.slane %v3514_v36, 5  ;;  %v3535_v48 = vshrl.u32 %v3391_v38, 16  ;;  %v3522_v50 = vrot.slane %v3520_v41, 5 }
  0x35   : > { %9145 = vmatprep.mubr.bf16.mxu0 %v7957_v33  ;;  %v3499_v49 = vsel %vm10031_vm3, %v3494_v40, %v3498_v21  ;;  %v3526_v51 = vrot.slane %v3524_v42, 4  ;;  %v3532_v54 = vrot.slane %v3530_v43, 5  ;;  %v3538_v60 = vshll.u32 %v3391_v38, 16 }
  0x36   : > { %v3509_v56 = vsel %vm10031_vm3, %v3504_v45, %v3508_v23  ;;  %v3517_v57 = vor.u32 %v3516_v47, %v3513_v46  ;;  %v3537_v58 = vrot.slane %v3535_v48, 4  ;;  %8992 = vmatpush3.bf16.msra.mxu1 %v9700_v8  ;;  %v3544_v1 = vshll.u32 %v3392_v39, 16  ;;  %v10096_v48 = vld [vmem:[%s9919_s13 + $0x40] sm:$0xff]  }
  0x37   : > { %v7958_v59 = vcombine.low %v3499_v49, %v3509_v56  ;;  %v3527_v61 = vor.u32 %v3526_v51, %v3522_v50  ;;  %v3548_v2 = vshrl.u32 %v3392_v39, 16  ;;  %8993 = vmatprep.subr.bf16.mxu1 %v9704_v32  ;;  %v3540_v5 = vrot.slane %v3538_v60, 5  ;;  %v10099_v49 = vld [vmem:[%s9919_s13 + $0x48] sm:$0xff]   ;;  %v10103_v56 = vld [vmem:[%s9919_s13 + $0x50] sm:$0xff]  }
  0x38   : > { %v3518_v4 = vrot.slane %v3517_v57, 4  ;;  %v3554_v6 = vshll.u32 %v3393_v44, 16  ;;  %v661_v7 = vrot.slane %v538_v52, 7  ;;  %v3546_v10 = vrot.slane %v3544_v1, 5 }
  0x39   : > { %9146 = vmatmul.mubr.bf16.vlgmr.msra.gmra.mrb[0].mxu0 %v7958_v59  ;;  %v3528_v8 = vrot.slane %v3527_v61, 4  ;;  %v3550_v11 = vrot.slane %v3548_v2, 4  ;;  %v748_v12 = vsel %vm647_vm0, 0.0, %v660_v24  ;;  %v3541_v16 = vor.u32 %v3540_v5, %v3537_v58  ;;  %v9703_v61 = vld [vmem:[%s11072_s3 + $0x160] sm:$0xff]  }
  0x3a   : > { %9178 = vmatpush3.bf16.msra.mxu0 %v9983_v0  ;;  %v3523_v13 = vsel %vm10031_vm3, %v3518_v4, %v3522_v50  ;;  %v3556_v17 = vrot.slane %v3554_v6, 5  ;;  %v662_v19 = vsel %vm647_vm0, %v660_v24, %v661_v7  ;;  %8994 = vmatpush3.bf16.msra.mxu1 %v9704_v32  ;;  %v8287_v20 = vpack.c.bf16 %v748_v12, %v748_v12  ;;  %v8657_v0 = vld [vmem:[%s9919_s13 + $0x38] sm:$0xff]   ;;  %v9712_v24 = vld [vmem:[%s11072_s3 + $0x70] sm:$0xff]  }
  0x3b   : > { %v3533_v37 = vsel %vm10031_vm3, %v3528_v8, %v3532_v54  ;;  %9179 = vmatprep.subr.bf16.mxu0 %v9691_v62  ;;  %v3551_v52 = vor.u32 %v3550_v11, %v3546_v10  ;;  %v8288_v21 = vpack.c.bf16 %v662_v19, %v662_v19  ;;  %v3542_v25 = vrot.slane %v3541_v16, 4  ;;  %8995 = vmatprep.subr.bf16.mxu1 %v9708_v3 }
  0x3c   : > { %v7959_v23 = vcombine.low %v3523_v13, %v3533_v37  ;;  %v764_v26 = vsel %vm647_vm0, %v661_v7, 0.0  ;;  %v539_v27 = vmax.f32 %v10016_v53, 0.0  ;;  %997 = vst [vmem:[#allocation2 + $0x3c] sm:$0xf] %v8287_v20  ;;  %v540_v30 = vmax.f32 %v10022_v63, 0.0 }
  0x3d   : > { %v3552_v28 = vrot.slane %v3551_v52, 4  ;;  %998 = vst [vmem:[#allocation2 + $0x40] sm:$0xf] %v8288_v21  ;;  %v8289_v29 = vpack.c.bf16 %v764_v26, %v764_v26  ;;  %v541_v32 = vmax.f32 %v10036_v15, 0.0  ;;  %v3547_v33 = vsel %vm10031_vm3, %v3542_v25, %v3546_v10  ;;  %v9699_v15 = vld [vmem:[%s11072_s3 + $0x158] sm:$0xff]  }
  0x3e   : > { %9149 = vmatprep.mubr.bf16.mxu0 %v7959_v23  ;;  %9180 = vmatpush3.bf16.msra.mxu0 %v9691_v62  ;;  %v663_v34 = vrot.slane %v539_v27, 7  ;;  %v542_v53 = vmax.f32 %v10043_v31, 0.0  ;;  %v8417_v35 = vunpack.c.l.bf16 %v8657_v0  ;;  %v664_v38 = vrot.slane %v540_v30, 7  ;;  %v9715_v31 = vld [vmem:[%s11072_s3 + $0x78] sm:$0xff]   ;;  %v9718_v62 = vld [vmem:[%s11072_s3 + $0x80] sm:$0xff]   ;;  %v9707_v27 = vld [vmem:[%s11072_s3 + $0x168] sm:$0xff]  }
  0x3f   : > { %v3557_v36 = vsel %vm10031_vm3, %v3552_v28, %v3556_v17  ;;  %999 = vst [vmem:[#allocation2 + $0x44] sm:$0x1] %v8289_v29  ;;  %9181 = vmatprep.subr.bf16.mxu0 %v9695_v22  ;;  %v666_v63 = vrot.slane %v541_v32, 7  ;;  %v8418_v39 = vunpack.c.h.bf16 %v8657_v0  ;;  %8996 = vmatpush3.bf16.msra.mxu1 %v9708_v3  ;;  %v8421_v3 = vunpack.c.l.bf16 %v10096_v48 }
  0x40   : > { %v7960_v40 = vcombine.low %v3547_v33, %v3557_v36  ;;  %v749_v41 = vsel %vm647_vm0, 0.0, %v663_v34  ;;  %v667_v42 = vrot.slane %v542_v53, 7  ;;  %v472_v43 = vmul.f32 %v8417_v35, %v9931_v14  ;;  %8997 = vmatprep.subr.bf16.mxu1 %v9712_v24  ;;  %v9711_v35 = vld [vmem:[%s11072_s3 + $0x170] sm:$0xff]  }
  0x41   : > { %v665_v44 = vsel %vm647_vm0, %v663_v34, %v664_v38  ;;  %v765_v45 = vsel %vm647_vm0, %v664_v38, 0.0  ;;  %v750_v46 = vsel %vm647_vm0, 0.0, %v666_v63  ;;  %v473_v47 = vmul.f32 %v8418_v39, %v9931_v14 }
  0x42   : > { %9150 = vmatmul.mubr.bf16.gmra.mrb[4].mxu0 %v7960_v40  ;;  %v8292_v50 = vpack.c.bf16 %v765_v45, %v765_v45  ;;  %v8464_v51 = vpack.c.bf16 %v665_v44, %v749_v41  ;;  %v668_v54 = vsel %vm647_vm0, %v666_v63, %v667_v42  ;;  %v8293_v55 = vpack.c.bf16 %v750_v46, %v750_v46 }
  0x43   : > { %9182 = vmatpush3.bf16.msra.mxu0 %v9695_v22  ;;  %v8294_v57 = vpack.c.bf16 %v668_v54, %v668_v54  ;;  %v766_v58 = vsel %vm647_vm0, %v667_v42, 0.0  ;;  %v511_v60 = vadd.f32 %v9939_v18, %v472_v43  ;;  %v512_v59 = vadd.f32 %v9939_v18, %v473_v47  ;;  %8998 = vmatpush3.bf16.msra.mxu1 %v9712_v24  ;;  %v3394_v6 = vld [vmem:[#allocation2 + $0x3c] sm:$0xf] }
  0x44   : > { %v9694_v1 = vld [vmem:[#allocation2 + $0x3c] sm:$0xff]   ;;  %8668 = vst [vmem:[#allocation2 + $0x48] sm:$0xff] %v8464_v51   ;;  %1002 = vst [vmem:[#allocation2 + $0x50] sm:$0x1] %v8292_v50  ;;  %v8295_v2 = vpack.c.bf16 %v766_v58, %v766_v58  ;;  %9183 = vmatprep.subr.bf16.mxu0 %v9699_v15  ;;  %v8422_v4 = vunpack.c.h.bf16 %v10096_v48  ;;  %v8425_v5 = vunpack.c.l.bf16 %v10099_v49  ;;  %8999 = vmatprep.subr.bf16.mxu1 %v9715_v31  ;;  %v8426_v11 = vunpack.c.h.bf16 %v10099_v49 }
  0x45   : > { %1003 = vst [vmem:[#allocation2 + $0x54] sm:$0xf] %v8293_v55  ;;  %v3395_v7 = vld [vmem:[#allocation2 + $0x40] sm:$0xf]  ;;  %1004 = vst [vmem:[#allocation2 + $0x58] sm:$0xf] %v8294_v57  ;;  %v8429_v12 = vunpack.c.l.bf16 %v10103_v56  ;;  %8962 = vmatmul.mubr.bf16.gmra.mrb[8].mxu1 %v9694_v1  ;;  %v474_v22 = vmul.f32 %v8421_v3, %v9931_v14 }
  0x46   : > { %v543_v8 = vmax.f32 %v511_v60, 0.0  ;;  %v544_v10 = vmax.f32 %v512_v59, 0.0  ;;  %v3396_v13 = vld [vmem:[#allocation2 + $0x44] sm:$0x1]  ;;  %v3559_v16 = vshrl.u32 %v3394_v6, 16  ;;  %v3562_v17 = vshll.u32 %v3394_v6, 16 }
  0x47   : > { %v3568_v19 = vshll.u32 %v3395_v7, 16  ;;  %v3572_v37 = vshrl.u32 %v3395_v7, 16  ;;  %1005 = vst [vmem:[#allocation2 + $0x5c] sm:$0x1] %v8295_v2  ;;  %v3578_v52 = vshll.u32 %v3396_v13, 16  ;;  %9184 = vmatpush3.bf16.msra.mxu0 %v9699_v15  ;;  %9000 = vmatpush3.bf16.msra.mxu1 %v9715_v31  ;;  %v475_v15 = vmul.f32 %v8422_v4, %v9931_v14  ;;  %v9716_v57 = vld [vmem:[%s11072_s3 + $0x178] sm:$0xff]  }
  0x48   : > { %v669_v20 = vrot.slane %v543_v8, 7  ;;  %v670_v21 = vrot.slane %v544_v10, 7  ;;  %v3561_v0 = vrot.slane %v3559_v16, 4  ;;  %v3564_v23 = vrot.slane %v3562_v17, 5  ;;  %9185 = vmatprep.subr.bf16.mxu0 %v9703_v61  ;;  %9033 = vmatprep.subr.bf16.mxu1 %v9718_v62 }
  0x49   : > { %v3570_v25 = vrot.slane %v3568_v19, 5  ;;  %v3574_v26 = vrot.slane %v3572_v37, 4  ;;  %v3580_v24 = vrot.slane %v3578_v52, 5  ;;  %v10131_v39 = vadd.f32 %v9939_v18, %v474_v22 }
  0x4a   : > { %v671_v28 = vsel %vm647_vm0, %v669_v20, %v670_v21  ;;  %v751_v29 = vsel %vm647_vm0, 0.0, %v669_v20  ;;  %v767_v30 = vsel %vm647_vm0, %v670_v21, 0.0  ;;  %v3565_v32 = vor.u32 %v3564_v23, %v3561_v0  ;;  %v10154_v23 = vld [vmem:[%s11072_s3 + $0x180] sm:$0xff]  }
  0x4b   : > { %v3575_v33 = vor.u32 %v3574_v26, %v3570_v25  ;;  %v8298_v34 = vpack.c.bf16 %v767_v30, %v767_v30  ;;  %v8469_v53 = vpack.c.bf16 %v671_v28, %v751_v29  ;;  %v3397_v36 = vld [vmem:[#allocation2 + $0x48] sm:$0xf]  ;;  %v3398_v38 = vld [vmem:[#allocation2 + $0x4c] sm:$0xf]  ;;  %v3399_v63 = vld [vmem:[#allocation2 + $0x50] sm:$0x1]  ;;  %v476_v31 = vmul.f32 %v8425_v5, %v9931_v14  ;;  %9186 = vmatpush3.bf16.msra.mxu0 %v9703_v61 }
  0x4c   : > { %v10135_v40 = vmul.f32 %v8426_v11, %v9931_v14  ;;  %v3566_v41 = vrot.slane %v3565_v32, 4  ;;  %v3583_v43 = vshrl.u32 %v3397_v36, 16  ;;  %v3586_v44 = vshll.u32 %v3397_v36, 16  ;;  %9187 = vmatprep.subr.bf16.mxu0 %v9707_v27  ;;  %v9697_v48 = vld [vmem:[#allocation2 + $0x48] sm:$0xff]   ;;  %v9698_v62 = vld [vmem:[#allocation2 + $0x54] sm:$0xff]  }
  0x4d   : > { %v3576_v42 = vrot.slane %v3575_v33, 4  ;;  %8669 = vst [vmem:[#allocation2 + $0x60] sm:$0xff] %v8469_v53   ;;  %1008 = vst [vmem:[#allocation2 + $0x68] sm:$0x1] %v8298_v34  ;;  %v3592_v45 = vshll.u32 %v3398_v38, 16  ;;  %v3596_v46 = vshrl.u32 %v3398_v38, 16  ;;  %v10138_v49 = vadd.f32 %v9939_v18, %v475_v15  ;;  %8965 = vmatprep.mubr.bf16.mxu1 %v9697_v48 }
  0x4e   : > { %v3602_v47 = vshll.u32 %v3399_v63, 16  ;;  %v3571_v50 = vsel %vm10031_vm3, %v3566_v41, %v3570_v25  ;;  %v3585_v54 = vrot.slane %v3583_v43, 4  ;;  %v3588_v55 = vrot.slane %v3586_v44, 5  ;;  %v3400_v1 = vld [vmem:[#allocation2 + $0x54] sm:$0xf]  ;;  %8966 = vmatmul.mubr.bf16.gmra.mrb[12].mxu1 %v9698_v62 }
  0x4f   : > { %v3581_v51 = vsel %vm10031_vm3, %v3576_v42, %v3580_v24  ;;  %v3594_v60 = vrot.slane %v3592_v45, 5  ;;  %v3598_v59 = vrot.slane %v3596_v46, 4  ;;  %9188 = vmatpush3.bf16.msra.mxu0 %v9707_v27  ;;  %v3401_v3 = vld [vmem:[#allocation2 + $0x58] sm:$0xf]  ;;  %v3402_v4 = vld [vmem:[#allocation2 + $0x5c] sm:$0x1]  ;;  %v10148_v7 = vadd.f32 %v9939_v18, %v476_v31 }
  0x50   : > { %v7961_v58 = vcombine.low %v3571_v50, %v3581_v51  ;;  %v3604_v61 = vrot.slane %v3602_v47, 5  ;;  %v3589_v2 = vor.u32 %v3588_v55, %v3585_v54  ;;  %v3607_v5 = vshrl.u32 %v3400_v1, 16  ;;  %9189 = vmatprep.subr.bf16.mxu0 %v9711_v35 }
  0x51   : > { %v3610_v6 = vshll.u32 %v3400_v1, 16  ;;  %v3599_v8 = vor.u32 %v3598_v59, %v3594_v60  ;;  %v3616_v10 = vshll.u32 %v3401_v3, 16  ;;  %v3620_v11 = vshrl.u32 %v3401_v3, 16  ;;  %v8662_v3 = vld [vmem:[%s9919_s13 + $0x60] sm:$0xff]  }
  0x52   : > { %9153 = vmatprep.mubr.bf16.mxu0 %v7961_v58  ;;  %v3626_v13 = vshll.u32 %v3402_v4, 16  ;;  %v3590_v16 = vrot.slane %v3589_v2, 4  ;;  %v3609_v17 = vrot.slane %v3607_v5, 4  ;;  %v545_v37 = vmax.f32 %v10131_v39, 0.0  ;;  %v8661_v2 = vld [vmem:[%s9919_s13 + $0x58] sm:$0xff]  }
  0x53   : > { %v3612_v19 = vrot.slane %v3610_v6, 5  ;;  %v3600_v52 = vrot.slane %v3599_v8, 4  ;;  %v3618_v20 = vrot.slane %v3616_v10, 5  ;;  %v3622_v21 = vrot.slane %v3620_v11, 4  ;;  %9190 = vmatpush3.bf16.msra.mxu0 %v9711_v35 }
  0x54   : > { %v3628_v22 = vrot.slane %v3626_v13, 5  ;;  %v3403_v0 = vld [vmem:[#allocation2 + $0x60] sm:$0xf]  ;;  %v3595_v25 = vsel %vm10031_vm3, %v3590_v16, %v3594_v60  ;;  %v3404_v27 = vld [vmem:[#allocation2 + $0x64] sm:$0xf]  ;;  %9191 = vmatprep.subr.bf16.mxu0 %v9716_v57  ;;  %v546_v44 = vmax.f32 %v10138_v49, 0.0  ;;  %v516_v50 = vadd.f32 %v9939_v18, %v10135_v40 }
  0x55   : > { %v3613_v26 = vor.u32 %v3612_v19, %v3609_v17  ;;  %v3405_v24 = vld [vmem:[#allocation2 + $0x68] sm:$0x1]  ;;  %v3631_v28 = vshrl.u32 %v3403_v0, 16  ;;  %v3634_v29 = vshll.u32 %v3403_v0, 16  ;;  %v3605_v30 = vsel %vm10031_vm3, %v3600_v52, %v3604_v61  ;;  %v9701_v63 = vld [vmem:[#allocation2 + $0x60] sm:$0xff]  }
  0x56   : > { %v3623_v32 = vor.u32 %v3622_v21, %v3618_v20  ;;  %v3640_v33 = vshll.u32 %v3404_v27, 16  ;;  %v3644_v34 = vshrl.u32 %v3404_v27, 16  ;;  %v7962_v53 = vcombine.low %v3595_v25, %v3605_v30  ;;  %8969 = vmatprep.mubr.bf16.mxu1 %v9701_v63 }
  0x57   : > { %v3614_v35 = vrot.slane %v3613_v26, 4  ;;  %v3633_v36 = vrot.slane %v3631_v28, 4  ;;  %v3636_v38 = vrot.slane %v3634_v29, 5  ;;  %v3650_v41 = vshll.u32 %v3405_v24, 16  ;;  %9192 = vmatpush3.bf16.msra.mxu0 %v9716_v57 }
  0x58   : > { %v3624_v15 = vrot.slane %v3623_v32, 4  ;;  %v3642_v39 = vrot.slane %v3640_v33, 5  ;;  %v3646_v31 = vrot.slane %v3644_v34, 4  ;;  %9154 = vmatmul.mubr.bf16.gmra.mrb[8].mxu0 %v7962_v53  ;;  %v672_v45 = vrot.slane %v545_v37, 7  ;;  %9225 = vmatprep.subr.bf16.mxu0 %v10154_v23 }
  0x59   : > { %v3619_v42 = vsel %vm10031_vm3, %v3614_v35, %v3618_v20  ;;  %v3637_v43 = vor.u32 %v3636_v38, %v3633_v36  ;;  %v3652_v48 = vrot.slane %v3650_v41, 5  ;;  %v673_v55 = vrot.slane %v546_v44, 7 }
  0x5a   : > { %v3629_v46 = vsel %vm10031_vm3, %v3624_v15, %v3628_v22  ;;  %v3647_v47 = vor.u32 %v3646_v31, %v3642_v39  ;;  %v752_v57 = vsel %vm647_vm0, 0.0, %v672_v45  ;;  %v547_v60 = vmax.f32 %v10148_v7, 0.0 }
  0x5b   : > { %v7963_v51 = vcombine.low %v3619_v42, %v3629_v46  ;;  %v3638_v54 = vrot.slane %v3637_v43, 4  ;;  %v8299_v49 = vpack.c.bf16 %v752_v57, %v752_v57  ;;  %v548_v59 = vmax.f32 %v516_v50, 0.0  ;;  %v10209_v42 = vld [vmem:[%s9919_s13 + $0x70] sm:$0xff]  }
  0x5c   : > { %v3648_v58 = vrot.slane %v3647_v47, 4  ;;  %v674_v62 = vsel %vm647_vm0, %v672_v45, %v673_v55  ;;  %v768_v40 = vsel %vm647_vm0, %v673_v55, 0.0  ;;  %v8430_v1 = vunpack.c.h.bf16 %v10103_v56  ;;  %v8663_v56 = vld [vmem:[%s9919_s13 + $0x68] sm:$0xff]  }
  0x5d   : > { %9157 = vmatprep.mubr.bf16.mxu0 %v7963_v51  ;;  %v3643_v61 = vsel %vm10031_vm3, %v3638_v54, %v3642_v39  ;;  %v8300_v5 = vpack.c.bf16 %v674_v62, %v674_v62  ;;  %1009 = vst [vmem:[#allocation2 + $0x6c] sm:$0xf] %v8299_v49  ;;  %v8301_v6 = vpack.c.bf16 %v768_v40, %v768_v40  ;;  %v675_v7 = vrot.slane %v547_v60, 7 }
  0x5e   : > { %v3653_v4 = vsel %vm10031_vm3, %v3648_v58, %v3652_v48  ;;  %v676_v10 = vrot.slane %v548_v59, 7  ;;  %v478_v11 = vmul.f32 %v8429_v12, %v9931_v14  ;;  %v479_v13 = vmul.f32 %v8430_v1, %v9931_v14  ;;  %v10192_v14 = vld [vmem:[%s11070_s1] ss:$0 sm:$0xff] }
  0x5f   : > { %v7964_v8 = vcombine.low %v3643_v61, %v3653_v4  ;;  %1010 = vst [vmem:[#allocation2 + $0x70] sm:$0xf] %v8300_v5  ;;  %1011 = vst [vmem:[#allocation2 + $0x74] sm:$0x1] %v8301_v6  ;;  %v753_v16 = vsel %vm647_vm0, 0.0, %v675_v7  ;;  %v8433_v17 = vunpack.c.l.bf16 %v8661_v2  ;;  %v8434_v19 = vunpack.c.h.bf16 %v8661_v2 }
  0x60   : > { %v8437_v37 = vunpack.c.l.bf16 %v8662_v3  ;;  %v677_v52 = vsel %vm647_vm0, %v675_v7, %v676_v10  ;;  %v769_v20 = vsel %vm647_vm0, %v676_v10, 0.0  ;;  %v517_v21 = vadd.f32 %v9939_v18, %v478_v11 }
  0x61   : > { %9158 = vmatmul.mubr.bf16.gmra.mrb[12].mxu0 %v7964_v8  ;;  %v518_v22 = vadd.f32 %v9939_v18, %v479_v13  ;;  %v8304_v12 = vpack.c.bf16 %v769_v20, %v769_v20  ;;  %v8474_v0 = vpack.c.bf16 %v677_v52, %v753_v16  ;;  %v480_v25 = vmul.f32 %v10192_v14, %v8433_v17  ;;  %v10200_v18 = vld [vmem:[%s11071_s2] ss:$0 sm:$0xff] }
  0x62   : > { %v481_v26 = vmul.f32 %v10192_v14, %v8434_v19  ;;  %v549_v27 = vmax.f32 %v517_v21, 0.0  ;;  %v8438_v28 = vunpack.c.h.bf16 %v8662_v3  ;;  %v482_v29 = vmul.f32 %v10192_v14, %v8437_v37 }
  0x63   : > { %v550_v24 = vmax.f32 %v518_v22, 0.0  ;;  %8670 = vst [vmem:[#allocation2 + $0x78] sm:$0xff] %v8474_v0   ;;  %1014 = vst [vmem:[#allocation2 + $0x80] sm:$0x1] %v8304_v12  ;;  %v519_v30 = vadd.f32 %v10200_v18, %v480_v25  ;;  %v8441_v33 = vunpack.c.l.bf16 %v8663_v56  ;;  %v8442_v34 = vunpack.c.h.bf16 %v8663_v56 }
  0x64   : > { %v520_v32 = vadd.f32 %v10200_v18, %v481_v26  ;;  %v3406_v53 = vld [vmem:[#allocation2 + $0x6c] sm:$0xf]  ;;  %v678_v35 = vrot.slane %v549_v27, 7  ;;  %v483_v38 = vmul.f32 %v10192_v14, %v8438_v28  ;;  %v10206_v63 = vadd.f32 %v10200_v18, %v482_v29 }
  0x65   : > { %v679_v36 = vrot.slane %v550_v24, 7  ;;  %v3655_v15 = vshrl.u32 %v3406_v53, 16  ;;  %v3658_v39 = vshll.u32 %v3406_v53, 16  ;;  %v551_v31 = vmax.f32 %v519_v30, 0.0 }
  0x66   : > { %v552_v41 = vmax.f32 %v520_v32, 0.0  ;;  %v9702_v43 = vld [vmem:[#allocation2 + $0x6c] sm:$0xff]   ;;  %v754_v46 = vsel %vm647_vm0, 0.0, %v678_v35  ;;  %v10214_v47 = vadd.f32 %v10200_v18, %v483_v38  ;;  %v484_v48 = vmul.f32 %v10192_v14, %v8441_v33  ;;  %v3408_v50 = vld [vmem:[#allocation2 + $0x74] sm:$0x1] }
  0x67   : > { %v3407_v44 = vld [vmem:[#allocation2 + $0x70] sm:$0xf]  ;;  %v680_v45 = vsel %vm647_vm0, %v678_v35, %v679_v36  ;;  %v3657_v51 = vrot.slane %v3655_v15, 4  ;;  %v3660_v54 = vrot.slane %v3658_v39, 5  ;;  %8970 = vmatmul.mubr.bf16.gmra.mrb[16].mxu1 %v9702_v43  ;;  %v3674_v58 = vshll.u32 %v3408_v50, 16 }
  0x68   : > { %v3664_v55 = vshll.u32 %v3407_v44, 16  ;;  %v3668_v57 = vshrl.u32 %v3407_v44, 16  ;;  %v8305_v49 = vpack.c.bf16 %v754_v46, %v754_v46  ;;  %v8306_v60 = vpack.c.bf16 %v680_v45, %v680_v45 }
  0x69   : > { %v770_v59 = vsel %vm647_vm0, %v679_v36, 0.0  ;;  %v3661_v61 = vor.u32 %v3660_v54, %v3657_v51  ;;  %v3676_v2 = vrot.slane %v3674_v58, 5  ;;  %v485_v6 = vmul.f32 %v10192_v14, %v8442_v34 }
  0x6a   : > { %v3666_v62 = vrot.slane %v3664_v55, 5  ;;  %v3670_v40 = vrot.slane %v3668_v57, 4  ;;  %v8307_v1 = vpack.c.bf16 %v770_v59, %v770_v59  ;;  %v3409_v3 = vld [vmem:[#allocation2 + $0x78] sm:$0xf]  ;;  %v3410_v4 = vld [vmem:[#allocation2 + $0x7c] sm:$0xf]  ;;  %v10220_v7 = vadd.f32 %v10200_v18, %v484_v48 }
  0x6b   : > { %v9705_v5 = vld [vmem:[#allocation2 + $0x78] sm:$0xff]   ;;  %1015 = vst [vmem:[#allocation2 + $0x84] sm:$0xf] %v8305_v49  ;;  %1016 = vst [vmem:[#allocation2 + $0x88] sm:$0xf] %v8306_v60  ;;  %v8445_v8 = vunpack.c.l.bf16 %v10209_v42  ;;  %v3662_v10 = vrot.slane %v3661_v61, 4  ;;  %v10232_v39 = vadd.f32 %v10200_v18, %v485_v6 }
  0x6c   : > { %v3671_v11 = vor.u32 %v3670_v40, %v3666_v62  ;;  %v3411_v13 = vld [vmem:[#allocation2 + $0x80] sm:$0x1]  ;;  %v3679_v16 = vshrl.u32 %v3409_v3, 16  ;;  %v3682_v17 = vshll.u32 %v3409_v3, 16  ;;  %1017 = vst [vmem:[#allocation2 + $0x8c] sm:$0x1] %v8307_v1  ;;  %8973 = vmatprep.mubr.bf16.mxu1 %v9705_v5 }
  0x6d   : > { %v3688_v19 = vshll.u32 %v3410_v4, 16  ;;  %v3692_v37 = vshrl.u32 %v3410_v4, 16  ;;  %v3698_v52 = vshll.u32 %v3411_v13, 16  ;;  %v681_v20 = vrot.slane %v551_v31, 7  ;;  %v8665_v6 = vld [vmem:[%s9919_s13 + $0x78] sm:$0xff]   ;;  %s10733_s13 = scalar_lea.vmem %s11073_s4, %s9910_s27  ;;  %s7727_s27 = sshll.u32 %s11084_s10, 3 }
  0x6e   : > { %v3667_v21 = vsel %vm10031_vm3, %v3662_v10, %v3666_v62  ;;  %v3672_v22 = vrot.slane %v3671_v11, 4  ;;  %v3681_v56 = vrot.slane %v3679_v16, 4  ;;  %v3684_v12 = vrot.slane %v3682_v17, 5  ;;  %s385_s21 = scalar_lea.vmem %s11078_s9, %s7727_s27  ;;  %s376_s23 = scalar_lea.vmem %s11076_s7, %s7727_s27 }
  0x6f   : > { %v3690_v0 = vrot.slane %v3688_v19, 5  ;;  %v3694_v25 = vrot.slane %v3692_v37, 4  ;;  %v3700_v26 = vrot.slane %v3698_v52, 5  ;;  %v682_v27 = vrot.slane %v552_v41, 7 }
  0x70   : > { %v3677_v24 = vsel %vm10031_vm3, %v3672_v22, %v3676_v2  ;;  %v3685_v28 = vor.u32 %v3684_v12, %v3681_v56  ;;  %v755_v29 = vsel %vm647_vm0, 0.0, %v681_v20  ;;  %v553_v30 = vmax.f32 %v10206_v63, 0.0 }
  0x71   : > { %v7965_v32 = vcombine.low %v3667_v21, %v3677_v24  ;;  %v3695_v33 = vor.u32 %v3694_v25, %v3690_v0  ;;  %v683_v34 = vsel %vm647_vm0, %v681_v20, %v682_v27  ;;  %v771_v53 = vsel %vm647_vm0, %v682_v27, 0.0 }
  0x72   : > { %v3686_v35 = vrot.slane %v3685_v28, 4  ;;  %v9706_v36 = vld [vmem:[#allocation2 + $0x84] sm:$0xff]   ;;  %v8310_v38 = vpack.c.bf16 %v771_v53, %v771_v53  ;;  %v8479_v15 = vpack.c.bf16 %v683_v34, %v755_v29  ;;  %v554_v44 = vmax.f32 %v10214_v47, 0.0 }
  0x73   : > { %9161 = vmatprep.mubr.bf16.mxu0 %v7965_v32  ;;  %v3696_v31 = vrot.slane %v3695_v33, 4  ;;  %v3412_v41 = vld [vmem:[#allocation2 + $0x84] sm:$0xf]  ;;  %v3413_v43 = vld [vmem:[#allocation2 + $0x88] sm:$0xf]  ;;  %v8446_v63 = vunpack.c.h.bf16 %v10209_v42  ;;  %v486_v45 = vmul.f32 %v10192_v14, %v8445_v8  ;;  %8974 = vmatmul.mubr.bf16.gmra.mrb[20].mxu1 %v9706_v36  ;;  %v684_v58 = vrot.slane %v553_v30, 7 }
  0x74   : > { %v3691_v46 = vsel %vm10031_vm3, %v3686_v35, %v3690_v0  ;;  %v3414_v48 = vld [vmem:[#allocation2 + $0x8c] sm:$0x1]  ;;  %v3703_v50 = vshrl.u32 %v3412_v41, 16  ;;  %v3706_v51 = vshll.u32 %v3412_v41, 16  ;;  %v3712_v54 = vshll.u32 %v3413_v43, 16  ;;  %8671 = vst [vmem:[#allocation2 + $0x90] sm:$0xff] %v8479_v15  }
  0x75   : > { %1020 = vst [vmem:[#allocation2 + $0x98] sm:$0x1] %v8310_v38  ;;  %v3701_v55 = vsel %vm10031_vm3, %v3696_v31, %v3700_v26  ;;  %v3716_v57 = vshrl.u32 %v3413_v43, 16  ;;  %v3722_v47 = vshll.u32 %v3414_v48, 16  ;;  %v685_v40 = vrot.slane %v554_v44, 7 }
  0x76   : > { %v7966_v42 = vcombine.low %v3691_v46, %v3701_v55  ;;  %v3705_v49 = vrot.slane %v3703_v50, 4  ;;  %v3708_v60 = vrot.slane %v3706_v51, 5  ;;  %v3714_v59 = vrot.slane %v3712_v54, 5 }
  0x77   : > { %v3718_v61 = vrot.slane %v3716_v57, 4  ;;  %v3724_v62 = vrot.slane %v3722_v47, 5  ;;  %v756_v1 = vsel %vm647_vm0, 0.0, %v684_v58  ;;  %v555_v4 = vmax.f32 %v10220_v7, 0.0 }
  0x78   : > { %9162 = vmatmul.mubr.bf16.gmra.mrb[16].mxu0 %v7966_v42  ;;  %v3709_v2 = vor.u32 %v3708_v60, %v3705_v49  ;;  %v8311_v3 = vpack.c.bf16 %v756_v1, %v756_v1  ;;  %v556_v5 = vmax.f32 %v10232_v39, 0.0  ;;  %v686_v10 = vsel %vm647_vm0, %v684_v58, %v685_v40 }
  0x79   : > { %v3719_v8 = vor.u32 %v3718_v61, %v3714_v59  ;;  %v772_v11 = vsel %vm647_vm0, %v685_v40, 0.0  ;;  %v487_v13 = vmul.f32 %v10192_v14, %v8446_v63  ;;  %v8312_v17 = vpack.c.bf16 %v686_v10, %v686_v10 }
  0x7a   : > { %v3710_v16 = vrot.slane %v3709_v2, 4  ;;  %1021 = vst [vmem:[#allocation2 + $0x9c] sm:$0xf] %v8311_v3  ;;  %v8313_v19 = vpack.c.bf16 %v772_v11, %v772_v11  ;;  %v687_v37 = vrot.slane %v555_v4, 7  ;;  %v525_v7 = vadd.f32 %v10200_v18, %v486_v45  ;;  %v1514_v11 = vld [vmem:[#allocation2] sm:$0xf] }
  0x7b   : > { %v3720_v52 = vrot.slane %v3719_v8, 4  ;;  %v3415_v20 = vld [vmem:[#allocation2 + $0x90] sm:$0xf]  ;;  %v3416_v21 = vld [vmem:[#allocation2 + $0x94] sm:$0xf]  ;;  %v526_v56 = vadd.f32 %v10200_v18, %v487_v13  ;;  %v8449_v12 = vunpack.c.l.bf16 %v8665_v6  ;;  %v8450_v32 = vunpack.c.h.bf16 %v8665_v6 }
  0x7c   : > { %v9709_v22 = vld [vmem:[#allocation2 + $0x90] sm:$0xff]   ;;  %v3715_v0 = vsel %vm10031_vm3, %v3710_v16, %v3714_v59  ;;  %v3417_v25 = vld [vmem:[#allocation2 + $0x98] sm:$0x1]  ;;  %v3727_v26 = vshrl.u32 %v3415_v20, 16  ;;  %v3730_v27 = vshll.u32 %v3415_v20, 16  ;;  %v3736_v24 = vshll.u32 %v3416_v21, 16 }
  0x7d   : > { %1022 = vst [vmem:[#allocation2 + $0xa0] sm:$0xf] %v8312_v17  ;;  %1023 = vst [vmem:[#allocation2 + $0xa4] sm:$0x1] %v8313_v19  ;;  %v3725_v28 = vsel %vm10031_vm3, %v3720_v52, %v3724_v62  ;;  %v3740_v29 = vshrl.u32 %v3416_v21, 16  ;;  %v3746_v30 = vshll.u32 %v3417_v25, 16  ;;  %8977 = vmatprep.mubr.bf16.mxu1 %v9709_v22  ;;  %v488_v44 = vmul.f32 %v10192_v14, %v8449_v12 }
  0x7e   : > { %v7967_v33 = vcombine.low %v3715_v0, %v3725_v28  ;;  %v3729_v34 = vrot.slane %v3727_v26, 4  ;;  %v3732_v53 = vrot.slane %v3730_v27, 5  ;;  %v3738_v35 = vrot.slane %v3736_v24, 5  ;;  %v10268_v22 = vld [vmem:[#allocation2 + $0x4] sm:$0xf] }
  0x7f   : > { %v3742_v36 = vrot.slane %v3740_v29, 4  ;;  %v3748_v38 = vrot.slane %v3746_v30, 5  ;;  %v688_v15 = vrot.slane %v556_v5, 7  ;;  %v757_v39 = vsel %vm647_vm0, 0.0, %v687_v37 }
  0x80   : > { %9165 = vmatprep.mubr.bf16.mxu0 %v7967_v33  ;;  %v3733_v31 = vor.u32 %v3732_v53, %v3729_v34  ;;  %v557_v41 = vmax.f32 %v525_v7, 0.0  ;;  %v558_v43 = vmax.f32 %v526_v56, 0.0  ;;  %v489_v50 = vmul.f32 %v10192_v14, %v8450_v32 }
  0x81   : > { %v3743_v63 = vor.u32 %v3742_v36, %v3738_v35  ;;  %v3418_v45 = vld [vmem:[#allocation2 + $0x9c] sm:$0xf]  ;;  %v689_v46 = vsel %vm647_vm0, %v687_v37, %v688_v15  ;;  %v773_v48 = vsel %vm647_vm0, %v688_v15, 0.0  ;;  %v527_v60 = vadd.f32 %v10200_v18, %v488_v44 }
  0x82   : > { %v3734_v51 = vrot.slane %v3733_v31, 4  ;;  %v3751_v54 = vshrl.u32 %v3418_v45, 16  ;;  %v3754_v55 = vshll.u32 %v3418_v45, 16  ;;  %v8316_v57 = vpack.c.bf16 %v773_v48, %v773_v48 }
  0x83   : > { %v3744_v47 = vrot.slane %v3743_v63, 4  ;;  %v8484_v49 = vpack.c.bf16 %v689_v46, %v757_v39  ;;  %v528_v59 = vadd.f32 %v10200_v18, %v489_v50  ;;  %v690_v5 = vrot.slane %v557_v41, 7 }
  0x84   : > { %v9710_v58 = vld [vmem:[#allocation2 + $0x9c] sm:$0xff]   ;;  %v3739_v61 = vsel %vm10031_vm3, %v3734_v51, %v3738_v35  ;;  %v3420_v62 = vld [vmem:[#allocation2 + $0xa4] sm:$0x1]  ;;  %v3753_v40 = vrot.slane %v3751_v54, 4  ;;  %v3756_v1 = vrot.slane %v3754_v55, 5  ;;  %v691_v18 = vrot.slane %v558_v43, 7 }
  0x85   : > { %v3419_v42 = vld [vmem:[#allocation2 + $0xa0] sm:$0xf]  ;;  %1026 = vst [vmem:[#allocation2 + $0xb0] sm:$0x1] %v8316_v57  ;;  %v3749_v14 = vsel %vm10031_vm3, %v3744_v47, %v3748_v38  ;;  %8978 = vmatmul.mubr.bf16.gmra.mrb[24].mxu1 %v9710_v58  ;;  %v3770_v4 = vshll.u32 %v3420_v62, 16  ;;  %8672 = vst [vmem:[#allocation2 + $0xa8] sm:$0xff] %v8484_v49  }
  0x86   : > { %v3760_v2 = vshll.u32 %v3419_v42, 16  ;;  %v3764_v3 = vshrl.u32 %v3419_v42, 16  ;;  %v7968_v6 = vcombine.low %v3739_v61, %v3749_v14  ;;  %v3757_v8 = vor.u32 %v3756_v1, %v3753_v40 }
  0x87   : > { %v3772_v16 = vrot.slane %v3770_v4, 5  ;;  %v758_v17 = vsel %vm647_vm0, 0.0, %v690_v5  ;;  %v559_v19 = vmax.f32 %v527_v60, 0.0  ;;  %v692_v52 = vsel %vm647_vm0, %v690_v5, %v691_v18  ;;  %v1516_v5 = vld [vmem:[#allocation2 + $0x8] sm:$0x1] }
  0x88   : > { %v3762_v10 = vrot.slane %v3760_v2, 5  ;;  %v3766_v13 = vrot.slane %v3764_v3, 4  ;;  %9166 = vmatmul.mubr.bf16.gmra.mrb[20].mxu0 %v7968_v6  ;;  %v3758_v37 = vrot.slane %v3757_v8, 4  ;;  %v8317_v20 = vpack.c.bf16 %v758_v17, %v758_v17 }
  0x89   : > { %v774_v21 = vsel %vm647_vm0, %v691_v18, 0.0  ;;  %v8318_v56 = vpack.c.bf16 %v692_v52, %v692_v52  ;;  %v560_v0 = vmax.f32 %v528_v59, 0.0  ;;  %v693_v26 = vrot.slane %v559_v19, 7 }
  0x8a   : > { %v3767_v7 = vor.u32 %v3766_v13, %v3762_v10  ;;  %v8319_v12 = vpack.c.bf16 %v774_v21, %v774_v21  ;;  %v3763_v25 = vsel %vm10031_vm3, %v3758_v37, %v3762_v10  ;;  %1027 = vst [vmem:[#allocation2 + $0xb4] sm:$0xf] %v8317_v20  ;;  %v1598_v27 = vshrl.u32 %v1514_v11, 16 }
  0x8b   : > { %v1601_v24 = vshll.u32 %v1514_v11, 16  ;;  %1028 = vst [vmem:[#allocation2 + $0xb8] sm:$0xf] %v8318_v56  ;;  %v694_v30 = vrot.slane %v560_v0, 7  ;;  %v1607_v32 = vshll.u32 %v10268_v22, 16  ;;  %v1611_v33 = vshrl.u32 %v10268_v22, 16 }
  0x8c   : > { %v3768_v28 = vrot.slane %v3767_v7, 4  ;;  %v3423_v29 = vld [vmem:[#allocation2 + $0xb0] sm:$0x1]  ;;  %1029 = vst [vmem:[#allocation2 + $0xbc] sm:$0x1] %v8319_v12  ;;  %v9713_v36 = vld [vmem:[#allocation2 + $0xa8] sm:$0xff]  }
  0x8d   : > { %v3421_v34 = vld [vmem:[#allocation2 + $0xa8] sm:$0xf]  ;;  %v3422_v53 = vld [vmem:[#allocation2 + $0xac] sm:$0xf]  ;;  %v3794_v35 = vshll.u32 %v3423_v29, 16  ;;  %8981 = vmatprep.mubr.bf16.mxu1 %v9713_v36  ;;  %v695_v63 = vsel %vm647_vm0, %v693_v26, %v694_v30  ;;  %v759_v50 = vsel %vm647_vm0, 0.0, %v693_v26 }
  0x8e   : > { %v3773_v38 = vsel %vm10031_vm3, %v3768_v28, %v3772_v16  ;;  %v3775_v15 = vshrl.u32 %v3421_v34, 16  ;;  %v3778_v39 = vshll.u32 %v3421_v34, 16  ;;  %v3784_v31 = vshll.u32 %v3422_v53, 16  ;;  %v1517_v11 = vld [vmem:[#allocation2 + $0xc] sm:$0xf] }
  0x8f   : > { %v7969_v41 = vcombine.low %v3763_v25, %v3773_v38  ;;  %v3788_v43 = vshrl.u32 %v3422_v53, 16  ;;  %v3796_v44 = vrot.slane %v3794_v35, 5  ;;  %v775_v54 = vsel %vm647_vm0, %v694_v30, 0.0 }
  0x90   : > { %v3777_v45 = vrot.slane %v3775_v15, 4  ;;  %v3780_v46 = vrot.slane %v3778_v39, 5  ;;  %v3786_v48 = vrot.slane %v3784_v31, 5  ;;  %v8489_v55 = vpack.c.bf16 %v695_v63, %v759_v50  ;;  %v1518_v31 = vld [vmem:[#allocation2 + $0x10] sm:$0xf] }
  0x91   : > { %9169 = vmatprep.mubr.bf16.mxu0 %v7969_v41  ;;  %v3790_v51 = vrot.slane %v3788_v43, 4  ;;  %v1600_v57 = vrot.slane %v1598_v27, 4  ;;  %v3424_v58 = vld [vmem:[#allocation2 + $0xb4] sm:$0xf]  ;;  %v8322_v42 = vpack.c.bf16 %v775_v54, %v775_v54  ;;  %v1603_v49 = vrot.slane %v1601_v24, 5 }
  0x92   : > { %v3781_v47 = vor.u32 %v3780_v46, %v3777_v45  ;;  %v10279_v60 = vrot.slane %v1607_v32, 5  ;;  %v9714_v61 = vld [vmem:[#allocation2 + $0xb4] sm:$0xff]   ;;  %v3799_v40 = vshrl.u32 %v3424_v58, 16  ;;  %8673 = vst [vmem:[#allocation2 + $0xc0] sm:$0xff] %v8489_v55   ;;  %v3802_v14 = vshll.u32 %v3424_v58, 16 }
  0x93   : > { %v3791_v59 = vor.u32 %v3790_v51, %v3786_v48  ;;  %v3425_v62 = vld [vmem:[#allocation2 + $0xb8] sm:$0xf]  ;;  %v3426_v2 = vld [vmem:[#allocation2 + $0xbc] sm:$0x1]  ;;  %1032 = vst [vmem:[#allocation2 + $0xc8] sm:$0x1] %v8322_v42  ;;  %8982 = vmatmul.mubr.bf16.gmra.mrb[28].mxu1 %v9714_v61  ;;  %v1604_v18 = vor.u32 %v1603_v49, %v1600_v57 }
  0x94   : > { %v3782_v1 = vrot.slane %v3781_v47, 4  ;;  %v3808_v3 = vshll.u32 %v3425_v62, 16  ;;  %v3812_v4 = vshrl.u32 %v3425_v62, 16  ;;  %v3801_v8 = vrot.slane %v3799_v40, 4  ;;  %v1519_v45 = vld [vmem:[#allocation2 + $0x14] sm:$0x1] }
  0x95   : > { %v3792_v6 = vrot.slane %v3791_v59, 4  ;;  %v3818_v10 = vshll.u32 %v3426_v2, 16  ;;  %v3804_v16 = vrot.slane %v3802_v14, 5  ;;  %v1605_v52 = vrot.slane %v1604_v18, 4  ;;  %v4200_v54 = vld [vmem:[#allocation2 + $0xc] sm:$0xe] }
  0x96   : > { %v3787_v13 = vsel %vm10031_vm3, %v3782_v1, %v3786_v48  ;;  %v3810_v17 = vrot.slane %v3808_v3, 5  ;;  %v3814_v19 = vrot.slane %v3812_v4, 4  ;;  %v1613_v20 = vrot.slane %v1611_v33, 4  ;;  %v4201_v42 = vld [vmem:[#allocation2 + $0x10] sm:$0xf] }
  0x97   : > { %v3797_v37 = vsel %vm10031_vm3, %v3792_v6, %v3796_v44  ;;  %v3805_v22 = vor.u32 %v3804_v16, %v3801_v8  ;;  %v3820_v56 = vrot.slane %v3818_v10, 5  ;;  %v1617_v0 = vshll.u32 %v1516_v5, 16  ;;  %v4202_v61 = vld [vmem:[#allocation2 + $0x14] sm:$0x1]  ;;  %v4203_v62 = vld [vmem:[#allocation2 + $0x18] sm:$0xe] }
  0x98   : > { %v7970_v21 = vcombine.low %v3787_v13, %v3797_v37  ;;  %v3815_v7 = vor.u32 %v3814_v19, %v3810_v17  ;;  %v1614_v12 = vor.u32 %v1613_v20, %v10279_v60  ;;  %v1622_v25 = vshrl.u32 %v1517_v11, 16  ;;  %v4204_v3 = vld [vmem:[#allocation2 + $0x1c] sm:$0xf]  ;;  %v4205_v4 = vld [vmem:[#allocation2 + $0x20] sm:$0x1] }
  0x99   : > { %v1625_v26 = vshll.u32 %v1517_v11, 16  ;;  %v3806_v27 = vrot.slane %v3805_v22, 4  ;;  %v3427_v28 = vld [vmem:[#allocation2 + $0xc0] sm:$0xf]  ;;  %v3428_v29 = vld [vmem:[#allocation2 + $0xc4] sm:$0xf]  ;;  %v1610_v30 = vsel %vm10031_vm3, %v1605_v52, %v10279_v60 }
  0x9a   : > { %9170 = vmatmul.mubr.bf16.gmra.mrb[24].mxu0 %v7970_v21  ;;  %v3816_v24 = vrot.slane %v3815_v7, 4  ;;  %v3429_v32 = vld [vmem:[#allocation2 + $0xc8] sm:$0x1]  ;;  %v3823_v33 = vshrl.u32 %v3427_v28, 16  ;;  %v3826_v34 = vshll.u32 %v3427_v28, 16  ;;  %v3832_v53 = vshll.u32 %v3428_v29, 16 }
  0x9b   : > { %v3836_v35 = vshrl.u32 %v3428_v29, 16  ;;  %v3811_v36 = vsel %vm10031_vm3, %v3806_v27, %v3810_v17  ;;  %v3842_v15 = vshll.u32 %v3429_v32, 16  ;;  %v1615_v39 = vrot.slane %v1614_v12, 4  ;;  %v1520_v10 = vld [vmem:[#allocation2 + $0x18] sm:$0xf] }
  0x9c   : > { %v3821_v38 = vsel %vm10031_vm3, %v3816_v24, %v3820_v56  ;;  %v3825_v43 = vrot.slane %v3823_v33, 4  ;;  %v3828_v44 = vrot.slane %v3826_v34, 5  ;;  %v3834_v63 = vrot.slane %v3832_v53, 5  ;;  %v1521_v21 = vld [vmem:[#allocation2 + $0x1c] sm:$0xf] }
  0x9d   : > { %v7971_v41 = vcombine.low %v3811_v36, %v3821_v38  ;;  %v3838_v46 = vrot.slane %v3836_v35, 4  ;;  %v3844_v48 = vrot.slane %v3842_v15, 5  ;;  %v1619_v50 = vrot.slane %v1617_v0, 5  ;;  %v1522_v0 = vld [vmem:[#allocation2 + $0x20] sm:$0x1] }
  0x9e   : > { %v1624_v51 = vrot.slane %v1622_v25, 4  ;;  %v3829_v55 = vor.u32 %v3828_v44, %v3825_v43  ;;  %v1627_v57 = vrot.slane %v1625_v26, 5  ;;  %v1631_v47 = vshll.u32 %v1518_v31, 16  ;;  %v1523_v25 = vld [vmem:[#allocation2 + $0x24] sm:$0xf]  ;;  %v9720_v44 = vld [vmem:[%s11072_s3 + $0x88] sm:$0xff]  }
  0x9f   : > { %9173 = vmatprep.mubr.bf16.mxu0 %v7971_v41  ;;  %v1635_v58 = vshrl.u32 %v1518_v31, 16  ;;  %v3839_v49 = vor.u32 %v3838_v46, %v3834_v63  ;;  %v1620_v60 = vsel %vm10031_vm3, %v1615_v39, %v1619_v50  ;;  %v1641_v59 = vshll.u32 %v1519_v45, 16  ;;  %v1524_v38 = vld [vmem:[#allocation2 + $0x28] sm:$0xf]  ;;  %v1525_v43 = vld [vmem:[#allocation2 + $0x2c] sm:$0x1] }
  0xa0   : > { %v3830_v40 = vrot.slane %v3829_v55, 4  ;;  %v7821_v1 = vcombine.low %v1610_v30, %v1620_v60  ;;  %v1628_v2 = vor.u32 %v1627_v57, %v1624_v51  ;;  %v1633_v14 = vrot.slane %v1631_v47, 5  ;;  %v4206_v50 = vld [vmem:[#allocation2 + $0x24] sm:$0xe]  ;;  %v4207_v47 = vld [vmem:[#allocation2 + $0x28] sm:$0xf] }
  0xa1   : > { %v3840_v5 = vrot.slane %v3839_v49, 4  ;;  %v1637_v6 = vrot.slane %v1635_v58, 4  ;;  %v1643_v8 = vrot.slane %v1641_v59, 5  ;;  %v7981_v16 = vrot.slane %v4200_v54, 9  ;;  %v4208_v58 = vld [vmem:[#allocation2 + $0x2c] sm:$0x1] }
  0xa2   : > { %v3835_v18 = vsel %vm10031_vm3, %v3830_v40, %v3834_v63  ;;  %9001 = vmatprep.mubr.bf16.mxu1 %v7821_v1  ;;  %v1629_v11 = vrot.slane %v1628_v2, 4  ;;  %v4330_v17 = vrot.slane %v4201_v42, 5  ;;  %v4333_v52 = vrot.slane %v4202_v61, 5  ;;  %v9719_v42 = vld [vmem:[%s11072_s3 + $0x188] sm:$0xff]   ;;  %v9807_v59 = vld [vmem:[%s11072_s3 + $0x80] sm:$0xff]   ;;  %v9722_v1 = vld [vmem:[%s11072_s3 + $0x90] sm:$0xff]  }
  0xa3   : > { %v3845_v19 = vsel %vm10031_vm3, %v3840_v5, %v3844_v48  ;;  %v1638_v37 = vor.u32 %v1637_v6, %v1633_v14  ;;  %v7982_v20 = vrot.slane %v4203_v62, 9  ;;  %v4337_v27 = vrot.slane %v4204_v3, 5  ;;  %v4209_v40 = vld [vmem:[#allocation2 + $0x30] sm:$0xe] }
  0xa4   : > { %v7972_v22 = vcombine.low %v3835_v18, %v3845_v19  ;;  %v1634_v7 = vsel %vm10031_vm3, %v1629_v11, %v1633_v14  ;;  %v4331_v56 = vsel %vm10298_vm6, %v7981_v16, %v4330_v17  ;;  %v4332_v12 = vrot.slane %v4330_v17, 4  ;;  %v4210_v18 = vld [vmem:[#allocation2 + $0x34] sm:$0xf] }
  0xa5   : > { %v1639_v26 = vrot.slane %v1638_v37, 4  ;;  %v4340_v24 = vrot.slane %v4205_v4, 5  ;;  %v1646_v28 = vshrl.u32 %v1520_v10, 16  ;;  %v1649_v30 = vshll.u32 %v1520_v10, 16  ;;  %v4211_v37 = vld [vmem:[#allocation2 + $0x38] sm:$0x1] }
  0xa6   : > { %9174 = vmatmul.mubr.bf16.gmra.mrb[28].mxu0 %v7972_v22  ;;  %v4334_v29 = vsel %vm10298_vm6, %v4332_v12, %v4333_v52  ;;  %v1655_v32 = vshll.u32 %v1521_v21, 16  ;;  %v1659_v33 = vshrl.u32 %v1521_v21, 16  ;;  %v4338_v35 = vsel %vm10298_vm6, %v7982_v20, %v4337_v27  ;;  %v1526_v52 = vld [vmem:[#allocation2 + $0x30] sm:$0xf] }
  0xa7   : > { %v1644_v34 = vsel %vm10031_vm3, %v1639_v26, %v1643_v8  ;;  %v8013_v53 = vcombine.low %v4331_v56, %v4334_v29  ;;  %v4339_v36 = vrot.slane %v4337_v27, 4  ;;  %v1648_v39 = vrot.slane %v1646_v28, 4  ;;  %v1527_v26 = vld [vmem:[#allocation2 + $0x34] sm:$0xf]  ;;  %v1528_v29 = vld [vmem:[#allocation2 + $0x38] sm:$0x1] }
  0xa8   : > { %v7822_v15 = vcombine.low %v1634_v7, %v1644_v34  ;;  %v1651_v31 = vrot.slane %v1649_v30, 5  ;;  %v1657_v41 = vrot.slane %v1655_v32, 5  ;;  %v1661_v45 = vrot.slane %v1659_v33, 4  ;;  %v9721_v27 = vld [vmem:[%s11072_s3 + $0x190] sm:$0xff]   ;;  %v9724_v32 = vld [vmem:[%s11072_s3 + $0x98] sm:$0xff]  }
  0xa9   : > { %9193 = vmatprep.mubr.bf16.mxu0 %v8013_v53  ;;  %v4341_v63 = vsel %vm10298_vm6, %v4339_v36, %v4340_v24  ;;  %v1665_v46 = vshll.u32 %v1522_v0, 16  ;;  %v1670_v48 = vshrl.u32 %v1523_v25, 16  ;;  %v1673_v55 = vshll.u32 %v1523_v25, 16  ;;  %v1529_v36 = vld [vmem:[#allocation2 + $0x3c] sm:$0xf] }
  0xaa   : > { %9002 = vmatmul.mubr.bf16.vlgmr.msra.gmra.mrb[0].mxu1 %v7822_v15  ;;  %v8014_v51 = vcombine.low %v4338_v35, %v4341_v63  ;;  %v1652_v54 = vor.u32 %v1651_v31, %v1648_v39  ;;  %v1679_v57 = vshll.u32 %v1524_v38, 16  ;;  %v1662_v49 = vor.u32 %v1661_v45, %v1657_v41 }
  0xab   : > { %v1667_v60 = vrot.slane %v1665_v46, 5  ;;  %9034 = vmatpush3.bf16.msra.mxu1 %v9807_v59  ;;  %v1672_v61 = vrot.slane %v1670_v48, 4  ;;  %v1683_v62 = vshrl.u32 %v1524_v38, 16  ;;  %v1675_v14 = vrot.slane %v1673_v55, 5  ;;  %v1530_v38 = vld [vmem:[#allocation2 + $0x40] sm:$0xf] }
  0xac   : > { %v1653_v2 = vrot.slane %v1652_v54, 4  ;;  %v1681_v3 = vrot.slane %v1679_v57, 5  ;;  %v1689_v4 = vshll.u32 %v1525_v43, 16  ;;  %9035 = vmatprep.subr.bf16.mxu1 %v9720_v44  ;;  %v1663_v5 = vrot.slane %v1662_v49, 4  ;;  %v1531_v43 = vld [vmem:[#allocation2 + $0x44] sm:$0x1] }
  0xad   : > { %v1685_v6 = vrot.slane %v1683_v62, 4  ;;  %v7983_v8 = vrot.slane %v4206_v50, 9  ;;  %v4344_v10 = vrot.slane %v4207_v47, 5  ;;  %v1676_v16 = vor.u32 %v1675_v14, %v1672_v61  ;;  %v4212_v50 = vld [vmem:[#allocation2 + $0x3c] sm:$0xe] }
  0xae   : > { %9194 = vmatmul.mubr.bf16.vlgmr.msra.gmra.mrb[0].mxu0 %v8014_v51  ;;  %v1658_v11 = vsel %vm10031_vm3, %v1653_v2, %v1657_v41  ;;  %v1691_v17 = vrot.slane %v1689_v4, 5  ;;  %v4347_v19 = vrot.slane %v4208_v58, 5  ;;  %v1668_v20 = vsel %vm10031_vm3, %v1663_v5, %v1667_v60  ;;  %v4213_v51 = vld [vmem:[#allocation2 + $0x40] sm:$0xf]  ;;  %v4214_v58 = vld [vmem:[#allocation2 + $0x44] sm:$0x1] }
  0xaf   : > { %9226 = vmatpush3.bf16.msra.mxu0 %v10154_v23  ;;  %v1686_v21 = vor.u32 %v1685_v6, %v1681_v3  ;;  %v4345_v22 = vsel %vm10298_vm6, %v7983_v8, %v4344_v10  ;;  %v4346_v7 = vrot.slane %v4344_v10, 4  ;;  %9036 = vmatpush3.bf16.msra.mxu1 %v9720_v44  ;;  %v7823_v56 = vcombine.low %v1658_v11, %v1668_v20  ;;  %v9726_v44 = vld [vmem:[%s11072_s3 + $0xa0] sm:$0xff]   ;;  %v4215_v62 = vld [vmem:[#allocation2 + $0x48] sm:$0xe]  ;;  %v4217_v4 = vld [vmem:[#allocation2 + $0x50] sm:$0x1] }
  0xb0   : > { %v1677_v12 = vrot.slane %v1676_v16, 4  ;;  %9227 = vmatprep.subr.bf16.mxu0 %v9719_v42  ;;  %v7984_v0 = vrot.slane %v4209_v40, 9  ;;  %v4351_v25 = vrot.slane %v4210_v18, 5  ;;  %9037 = vmatprep.subr.bf16.mxu1 %v9722_v1  ;;  %v4354_v28 = vrot.slane %v4211_v37, 5  ;;  %v9725_v5 = vld [vmem:[%s11072_s3 + $0x1a0] sm:$0xff]   ;;  %v9728_v16 = vld [vmem:[%s11072_s3 + $0xa8] sm:$0xff]  }
  0xb1   : > { %v1687_v23 = vrot.slane %v1686_v21, 4  ;;  %v4348_v24 = vsel %vm10298_vm6, %v4346_v7, %v4347_v19  ;;  %v1694_v30 = vshrl.u32 %v1526_v52, 16  ;;  %9005 = vmatprep.mubr.bf16.mxu1 %v7823_v56  ;;  %v1697_v31 = vshll.u32 %v1526_v52, 16  ;;  %v1532_v11 = vld [vmem:[#allocation2 + $0x48] sm:$0xf] }
  0xb2   : > { %v1682_v33 = vsel %vm10031_vm3, %v1677_v12, %v1681_v3  ;;  %v8015_v34 = vcombine.low %v4345_v22, %v4348_v24  ;;  %v4352_v53 = vsel %vm10298_vm6, %v7984_v0, %v4351_v25  ;;  %v4353_v35 = vrot.slane %v4351_v25, 4  ;;  %v4216_v3 = vld [vmem:[#allocation2 + $0x4c] sm:$0xf] }
  0xb3   : > { %v1692_v15 = vsel %vm10031_vm3, %v1687_v23, %v1691_v17  ;;  %9228 = vmatpush3.bf16.msra.mxu0 %v9719_v42  ;;  %v1696_v39 = vrot.slane %v1694_v30, 4  ;;  %v1703_v41 = vshll.u32 %v1527_v26, 16  ;;  %9038 = vmatpush3.bf16.msra.mxu1 %v9722_v1  ;;  %v1707_v46 = vshrl.u32 %v1527_v26, 16  ;;  %v9723_v42 = vld [vmem:[%s11072_s3 + $0x198] sm:$0xff]   ;;  %v1533_v56 = vld [vmem:[#allocation2 + $0x4c] sm:$0xf] }
  0xb4   : > { %v7824_v63 = vcombine.low %v1682_v33, %v1692_v15  ;;  %9197 = vmatprep.mubr.bf16.mxu0 %v8015_v34  ;;  %v4355_v45 = vsel %vm10298_vm6, %v4353_v35, %v4354_v28  ;;  %v1713_v48 = vshll.u32 %v1528_v29, 16  ;;  %9229 = vmatprep.subr.bf16.mxu0 %v9721_v27  ;;  %v1699_v55 = vrot.slane %v1697_v31, 5  ;;  %v1535_v30 = vld [vmem:[#allocation2 + $0x54] sm:$0xf]  ;;  %v9727_v35 = vld [vmem:[%s11072_s3 + $0x1a8] sm:$0xff]  }
  0xb5   : > { %v8016_v54 = vcombine.low %v4352_v53, %v4355_v45  ;;  %v1705_v57 = vrot.slane %v1703_v41, 5  ;;  %v1718_v47 = vshrl.u32 %v1529_v36, 16  ;;  %9039 = vmatprep.subr.bf16.mxu1 %v9724_v32  ;;  %v1709_v49 = vrot.slane %v1707_v46, 4  ;;  %v1536_v41 = vld [vmem:[#allocation2 + $0x58] sm:$0xf] }
  0xb6   : > { %9006 = vmatmul.mubr.bf16.gmra.mrb[4].mxu1 %v7824_v63  ;;  %v1715_v60 = vrot.slane %v1713_v48, 5  ;;  %v1721_v59 = vshll.u32 %v1529_v36, 16  ;;  %v1727_v61 = vshll.u32 %v1530_v38, 16  ;;  %v1700_v40 = vor.u32 %v1699_v55, %v1696_v39  ;;  %v9730_v36 = vld [vmem:[%s11072_s3 + $0xb0] sm:$0xff]  }
  0xb7   : > { %9198 = vmatmul.mubr.bf16.gmra.mrb[4].mxu0 %v8016_v54  ;;  %v1720_v1 = vrot.slane %v1718_v47, 4  ;;  %v1731_v2 = vshrl.u32 %v1530_v38, 16  ;;  %v1737_v14 = vshll.u32 %v1531_v43, 16  ;;  %9040 = vmatpush3.bf16.msra.mxu1 %v9724_v32  ;;  %v1710_v6 = vor.u32 %v1709_v49, %v1705_v57  ;;  %v1537_v43 = vld [vmem:[#allocation2 + $0x5c] sm:$0x1] }
  0xb8   : > { %v1723_v8 = vrot.slane %v1721_v59, 5  ;;  %v1729_v10 = vrot.slane %v1727_v61, 5  ;;  %v7985_v18 = vrot.slane %v4212_v50, 9  ;;  %9230 = vmatpush3.bf16.msra.mxu0 %v9721_v27  ;;  %9041 = vmatprep.subr.bf16.mxu1 %v9726_v44  ;;  %v1701_v17 = vrot.slane %v1700_v40, 4  ;;  %v1534_v27 = vld [vmem:[#allocation2 + $0x50] sm:$0x1] }
  0xb9   : > { %v1733_v19 = vrot.slane %v1731_v2, 4  ;;  %v1739_v37 = vrot.slane %v1737_v14, 5  ;;  %v4358_v52 = vrot.slane %v4213_v51, 5  ;;  %9231 = vmatprep.subr.bf16.mxu0 %v9723_v42  ;;  %v1711_v20 = vrot.slane %v1710_v6, 4  ;;  %v4218_v48 = vld [vmem:[#allocation2 + $0x54] sm:$0xe] }
  0xba   : > { %v1724_v21 = vor.u32 %v1723_v8, %v1720_v1  ;;  %v4361_v22 = vrot.slane %v4214_v58, 5  ;;  %v7986_v7 = vrot.slane %v4215_v62, 9  ;;  %v1706_v12 = vsel %vm10031_vm3, %v1701_v17, %v1705_v57  ;;  %v4219_v57 = vld [vmem:[#allocation2 + $0x58] sm:$0xf]  ;;  %v4220_v59 = vld [vmem:[#allocation2 + $0x5c] sm:$0x1] }
  0xbb   : > { %v1734_v0 = vor.u32 %v1733_v19, %v1729_v10  ;;  %v4359_v25 = vsel %vm10298_vm6, %v7985_v18, %v4358_v52  ;;  %v4360_v26 = vrot.slane %v4358_v52, 4  ;;  %9042 = vmatpush3.bf16.msra.mxu1 %v9726_v44  ;;  %v1716_v23 = vsel %vm10031_vm3, %v1711_v20, %v1715_v60  ;;  %v9731_v47 = vld [vmem:[%s11072_s3 + $0xb8] sm:$0xff]   ;;  %v4221_v61 = vld [vmem:[#allocation2 + $0x60] sm:$0xe]  ;;  %v9729_v62 = vld [vmem:[%s11072_s3 + $0x1b0] sm:$0xff]  }
  0xbc   : > { %v1725_v24 = vrot.slane %v1724_v21, 4  ;;  %v4365_v28 = vrot.slane %v4216_v3, 5  ;;  %v4368_v29 = vrot.slane %v4217_v4, 5  ;;  %9232 = vmatpush3.bf16.msra.mxu0 %v9723_v42  ;;  %9043 = vmatprep.subr.bf16.mxu1 %v9728_v16  ;;  %v7825_v32 = vcombine.low %v1706_v12, %v1716_v23  ;;  %v4222_v8 = vld [vmem:[#allocation2 + $0x64] sm:$0xf]  ;;  %v9732_v18 = vld [vmem:[%s11072_s3 + $0x1b8] sm:$0xff]  }
  0xbd   : > { %v1735_v33 = vrot.slane %v1734_v0, 4  ;;  %v4362_v34 = vsel %vm10298_vm6, %v4360_v26, %v4361_v22  ;;  %v1742_v53 = vshrl.u32 %v1532_v11, 16  ;;  %9233 = vmatprep.subr.bf16.mxu0 %v9725_v5  ;;  %v1745_v45 = vshll.u32 %v1532_v11, 16  ;;  %v10397_v52 = vld [vmem:[%s11072_s3 + $0xc0] sm:$0xff]  }
  0xbe   : > { %v1730_v38 = vsel %vm10031_vm3, %v1725_v24, %v1729_v10  ;;  %v8017_v15 = vcombine.low %v4359_v25, %v4362_v34  ;;  %v4366_v39 = vsel %vm10298_vm6, %v7986_v7, %v4365_v28  ;;  %v4367_v31 = vrot.slane %v4365_v28, 4  ;;  %9009 = vmatprep.mubr.bf16.mxu1 %v7825_v32  ;;  %v4223_v10 = vld [vmem:[#allocation2 + $0x68] sm:$0x1]  ;;  %v1539_v26 = vld [vmem:[#allocation2 + $0x64] sm:$0xf] }
  0xbf   : > { %v1740_v44 = vsel %vm10031_vm3, %v1735_v33, %v1739_v37  ;;  %v1744_v63 = vrot.slane %v1742_v53, 4  ;;  %v1751_v46 = vshll.u32 %v1533_v56, 16  ;;  %9044 = vmatpush3.bf16.msra.mxu1 %v9728_v16  ;;  %v1755_v54 = vshrl.u32 %v1533_v56, 16  ;;  %v1538_v37 = vld [vmem:[#allocation2 + $0x60] sm:$0xf] }
  0xc0   : > { %v7826_v50 = vcombine.low %v1730_v38, %v1740_v44  ;;  %9201 = vmatprep.mubr.bf16.mxu0 %v8017_v15  ;;  %v4369_v51 = vsel %vm10298_vm6, %v4367_v31, %v4368_v29  ;;  %v1761_v55 = vshll.u32 %v1534_v27, 16  ;;  %9234 = vmatpush3.bf16.msra.mxu0 %v9725_v5  ;;  %v1747_v42 = vrot.slane %v1745_v45, 5  ;;  %v1540_v34 = vld [vmem:[#allocation2 + $0x68] sm:$0x1]  ;;  %v1541_v15 = vld [vmem:[#allocation2 + $0x6c] sm:$0xf] }
  0xc1   : > { %v8018_v58 = vcombine.low %v4366_v39, %v4369_v51  ;;  %v1753_v49 = vrot.slane %v1751_v46, 5  ;;  %v1766_v60 = vshrl.u32 %v1535_v30, 16  ;;  %9235 = vmatprep.subr.bf16.mxu0 %v9727_v35  ;;  %9045 = vmatprep.subr.bf16.mxu1 %v9730_v36  ;;  %v1757_v40 = vrot.slane %v1755_v54, 4  ;;  %v10411_v39 = vld [vmem:[%s11072_s3 + $0x1c0] sm:$0xff]   ;;  %v1543_v45 = vld [vmem:[#allocation2 + $0x74] sm:$0x1] }
  0xc2   : > { %9010 = vmatmul.mubr.bf16.gmra.mrb[8].mxu1 %v7826_v50  ;;  %v1763_v1 = vrot.slane %v1761_v55, 5  ;;  %v1769_v2 = vshll.u32 %v1535_v30, 16  ;;  %v1775_v14 = vshll.u32 %v1536_v41, 16  ;;  %v1748_v3 = vor.u32 %v1747_v42, %v1744_v63  ;;  %v1542_v63 = vld [vmem:[#allocation2 + $0x70] sm:$0xf] }
  0xc3   : > { %9202 = vmatmul.mubr.bf16.gmra.mrb[8].mxu0 %v8018_v58  ;;  %v1768_v4 = vrot.slane %v1766_v60, 4  ;;  %v1779_v5 = vshrl.u32 %v1536_v41, 16  ;;  %v1785_v6 = vshll.u32 %v1537_v43, 16  ;;  %9046 = vmatpush3.bf16.msra.mxu1 %v9730_v36  ;;  %v1758_v11 = vor.u32 %v1757_v40, %v1753_v49  ;;  %v4224_v54 = vld [vmem:[#allocation2 + $0x6c] sm:$0xe] }
  0xc4   : > { %v1771_v16 = vrot.slane %v1769_v2, 5  ;;  %v1777_v17 = vrot.slane %v1775_v14, 5  ;;  %v7987_v19 = vrot.slane %v4218_v48, 9  ;;  %9236 = vmatpush3.bf16.msra.mxu0 %v9727_v35  ;;  %9047 = vmatprep.subr.bf16.mxu1 %v9731_v47  ;;  %v1749_v20 = vrot.slane %v1748_v3, 4  ;;  %v4225_v42 = vld [vmem:[#allocation2 + $0x70] sm:$0xf] }
  0xc5   : > { %v1781_v21 = vrot.slane %v1779_v5, 4  ;;  %v1787_v22 = vrot.slane %v1785_v6, 5  ;;  %v4372_v7 = vrot.slane %v4219_v57, 5  ;;  %9237 = vmatprep.subr.bf16.mxu0 %v9729_v62  ;;  %v1759_v56 = vrot.slane %v1758_v11, 4  ;;  %v4227_v40 = vld [vmem:[#allocation2 + $0x78] sm:$0xe] }
  0xc6   : > { %v1772_v12 = vor.u32 %v1771_v16, %v1768_v4  ;;  %v4375_v0 = vrot.slane %v4220_v59, 5  ;;  %v7988_v25 = vrot.slane %v4221_v61, 9  ;;  %v1754_v27 = vsel %vm10031_vm3, %v1749_v20, %v1753_v49 }
  0xc7   : > { %v1782_v23 = vor.u32 %v1781_v21, %v1777_v17  ;;  %v4373_v24 = vsel %vm10298_vm6, %v7987_v19, %v4372_v7  ;;  %v4374_v28 = vrot.slane %v4372_v7, 4  ;;  %9048 = vmatpush3.bf16.msra.mxu1 %v9731_v47  ;;  %v1764_v29 = vsel %vm10031_vm3, %v1759_v56, %v1763_v1 }
  0xc8   : > { %v1773_v30 = vrot.slane %v1772_v12, 4  ;;  %v4379_v32 = vrot.slane %v4222_v8, 5  ;;  %v4382_v33 = vrot.slane %v4223_v10, 5  ;;  %9238 = vmatpush3.bf16.msra.mxu0 %v9729_v62  ;;  %9081 = vmatprep.subr.bf16.mxu1 %v10397_v52  ;;  %v7827_v53 = vcombine.low %v1754_v27, %v1764_v29  ;;  %v4226_v62 = vld [vmem:[#allocation2 + $0x74] sm:$0x1] }
  0xc9   : > { %v1783_v35 = vrot.slane %v1782_v23, 4  ;;  %v4376_v36 = vsel %vm10298_vm6, %v4374_v28, %v4375_v0  ;;  %v1790_v38 = vshrl.u32 %v1538_v37, 16  ;;  %9239 = vmatprep.subr.bf16.mxu0 %v9732_v18  ;;  %v1793_v50 = vshll.u32 %v1538_v37, 16  ;;  %v4228_v10 = vld [vmem:[#allocation2 + $0x7c] sm:$0xf] }
  0xca   : > { %v1778_v31 = vsel %vm10031_vm3, %v1773_v30, %v1777_v17  ;;  %v8019_v41 = vcombine.low %v4373_v24, %v4376_v36  ;;  %v4380_v43 = vsel %vm10298_vm6, %v7988_v25, %v4379_v32  ;;  %v4381_v44 = vrot.slane %v4379_v32, 4  ;;  %9013 = vmatprep.mubr.bf16.mxu1 %v7827_v53  ;;  %v1544_v37 = vld [vmem:[#allocation2 + $0x78] sm:$0xf]  ;;  %v1545_v28 = vld [vmem:[#allocation2 + $0x7c] sm:$0xf] }
  0xcb   : > { %v1788_v46 = vsel %vm10031_vm3, %v1783_v35, %v1787_v22  ;;  %v1792_v48 = vrot.slane %v1790_v38, 4  ;;  %v1799_v51 = vshll.u32 %v1539_v26, 16  ;;  %v1803_v47 = vshrl.u32 %v1539_v26, 16 }
  0xcc   : > { %v7828_v55 = vcombine.low %v1778_v31, %v1788_v46  ;;  %9205 = vmatprep.mubr.bf16.mxu0 %v8019_v41  ;;  %v4383_v57 = vsel %vm10298_vm6, %v4381_v44, %v4382_v33  ;;  %v1809_v58 = vshll.u32 %v1540_v34, 16  ;;  %9240 = vmatpush3.bf16.msra.mxu0 %v9732_v18  ;;  %v1795_v60 = vrot.slane %v1793_v50, 5  ;;  %v4229_v18 = vld [vmem:[#allocation2 + $0x80] sm:$0x1]  ;;  %v1548_v31 = vld [vmem:[#allocation2 + $0x88] sm:$0xf] }
  0xcd   : > { %v8020_v49 = vcombine.low %v4380_v43, %v4383_v57  ;;  %v1801_v59 = vrot.slane %v1799_v51, 5  ;;  %v1814_v61 = vshrl.u32 %v1541_v15, 16  ;;  %9273 = vmatprep.subr.bf16.mxu0 %v10411_v39  ;;  %v1805_v1 = vrot.slane %v1803_v47, 4  ;;  %v1546_v34 = vld [vmem:[#allocation2 + $0x80] sm:$0x1] }
  0xce   : > { %9014 = vmatmul.mubr.bf16.gmra.mrb[12].mxu1 %v7828_v55  ;;  %v1811_v2 = vrot.slane %v1809_v58, 5  ;;  %v1817_v14 = vshll.u32 %v1541_v15, 16  ;;  %v1823_v3 = vshll.u32 %v1542_v63, 16  ;;  %v1796_v4 = vor.u32 %v1795_v60, %v1792_v48  ;;  %v1547_v15 = vld [vmem:[#allocation2 + $0x84] sm:$0xf] }
  0xcf   : > { %9206 = vmatmul.mubr.bf16.gmra.mrb[12].mxu0 %v8020_v49  ;;  %v1816_v5 = vrot.slane %v1814_v61, 4  ;;  %v1827_v6 = vshrl.u32 %v1542_v63, 16  ;;  %v1833_v8 = vshll.u32 %v1543_v45, 16  ;;  %v1806_v11 = vor.u32 %v1805_v1, %v1801_v59  ;;  %v1549_v45 = vld [vmem:[#allocation2 + $0x8c] sm:$0x1] }
  0xd0   : > { %v1819_v16 = vrot.slane %v1817_v14, 5  ;;  %v1825_v17 = vrot.slane %v1823_v3, 5  ;;  %v7989_v19 = vrot.slane %v4224_v54, 9  ;;  %v1797_v20 = vrot.slane %v1796_v4, 4  ;;  %v4230_v54 = vld [vmem:[#allocation2 + $0x84] sm:$0xe] }
  0xd1   : > { %v1829_v21 = vrot.slane %v1827_v6, 4  ;;  %v1835_v22 = vrot.slane %v1833_v8, 5  ;;  %v4386_v7 = vrot.slane %v4225_v42, 5  ;;  %v1807_v56 = vrot.slane %v1806_v11, 4  ;;  %v4231_v42 = vld [vmem:[#allocation2 + $0x88] sm:$0xf] }
  0xd2   : > { %v1820_v12 = vor.u32 %v1819_v16, %v1816_v5  ;;  %v4389_v0 = vrot.slane %v4226_v62, 5  ;;  %v7990_v25 = vrot.slane %v4227_v40, 9  ;;  %v1802_v26 = vsel %vm10031_vm3, %v1797_v20, %v1801_v59  ;;  %v4232_v62 = vld [vmem:[#allocation2 + $0x8c] sm:$0x1]  ;;  %v4233_v40 = vld [vmem:[#allocation2 + $0x90] sm:$0xe] }
  0xd3   : > { %v1830_v27 = vor.u32 %v1829_v21, %v1825_v17  ;;  %v4387_v23 = vsel %vm10298_vm6, %v7989_v19, %v4386_v7  ;;  %v4388_v24 = vrot.slane %v4386_v7, 4  ;;  %v1812_v29 = vsel %vm10031_vm3, %v1807_v56, %v1811_v2 }
  0xd4   : > { %v1821_v30 = vrot.slane %v1820_v12, 4  ;;  %v4393_v32 = vrot.slane %v4228_v10, 5  ;;  %v4396_v33 = vrot.slane %v4229_v18, 5  ;;  %v7829_v53 = vcombine.low %v1802_v26, %v1812_v29  ;;  %v4234_v10 = vld [vmem:[#allocation2 + $0x94] sm:$0xf] }
  0xd5   : > { %v1831_v35 = vrot.slane %v1830_v27, 4  ;;  %v4390_v36 = vsel %vm10298_vm6, %v4388_v24, %v4389_v0  ;;  %v1838_v38 = vshrl.u32 %v1544_v37, 16  ;;  %v1841_v50 = vshll.u32 %v1544_v37, 16  ;;  %v1552_v29 = vld [vmem:[#allocation2 + $0x98] sm:$0x1] }
  0xd6   : > { %v1826_v41 = vsel %vm10031_vm3, %v1821_v30, %v1825_v17  ;;  %v8021_v43 = vcombine.low %v4387_v23, %v4390_v36  ;;  %v4394_v44 = vsel %vm10298_vm6, %v7990_v25, %v4393_v32  ;;  %v4395_v63 = vrot.slane %v4393_v32, 4  ;;  %9017 = vmatprep.mubr.bf16.mxu1 %v7829_v53  ;;  %v1550_v25 = vld [vmem:[#allocation2 + $0x90] sm:$0xf]  ;;  %v1553_v53 = vld [vmem:[#allocation2 + $0x9c] sm:$0xf] }
  0xd7   : > { %v1836_v46 = vsel %vm10031_vm3, %v1831_v35, %v1835_v22  ;;  %v1840_v48 = vrot.slane %v1838_v38, 4  ;;  %v1847_v51 = vshll.u32 %v1545_v28, 16  ;;  %v1851_v47 = vshrl.u32 %v1545_v28, 16  ;;  %v4235_v22 = vld [vmem:[#allocation2 + $0x98] sm:$0x1] }
  0xd8   : > { %v7830_v55 = vcombine.low %v1826_v41, %v1836_v46  ;;  %9209 = vmatprep.mubr.bf16.mxu0 %v8021_v43  ;;  %v4397_v57 = vsel %vm10298_vm6, %v4395_v63, %v4396_v33  ;;  %v1857_v58 = vshll.u32 %v1546_v34, 16  ;;  %v1843_v60 = vrot.slane %v1841_v50, 5  ;;  %v1551_v28 = vld [vmem:[#allocation2 + $0x94] sm:$0xf] }
  0xd9   : > { %v8022_v49 = vcombine.low %v4394_v44, %v4397_v57  ;;  %v1849_v59 = vrot.slane %v1847_v51, 5  ;;  %v1862_v61 = vshrl.u32 %v1547_v15, 16  ;;  %v1853_v1 = vrot.slane %v1851_v47, 4 }
  0xda   : > { %9018 = vmatmul.mubr.bf16.gmra.mrb[16].mxu1 %v7830_v55  ;;  %v1859_v2 = vrot.slane %v1857_v58, 5  ;;  %v1865_v14 = vshll.u32 %v1547_v15, 16  ;;  %v1871_v3 = vshll.u32 %v1548_v31, 16  ;;  %v1844_v4 = vor.u32 %v1843_v60, %v1840_v48 }
  0xdb   : > { %9210 = vmatmul.mubr.bf16.gmra.mrb[16].mxu0 %v8022_v49  ;;  %v1864_v5 = vrot.slane %v1862_v61, 4  ;;  %v1875_v6 = vshrl.u32 %v1548_v31, 16  ;;  %v1881_v8 = vshll.u32 %v1549_v45, 16  ;;  %v1854_v18 = vor.u32 %v1853_v1, %v1849_v59  ;;  %v1554_v31 = vld [vmem:[#allocation2 + $0xa0] sm:$0xf] }
  0xdc   : > { %v1867_v11 = vrot.slane %v1865_v14, 5  ;;  %v1873_v16 = vrot.slane %v1871_v3, 5  ;;  %v7991_v17 = vrot.slane %v4230_v54, 9  ;;  %v1845_v19 = vrot.slane %v1844_v4, 4  ;;  %v1555_v45 = vld [vmem:[#allocation2 + $0xa4] sm:$0x1] }
  0xdd   : > { %v1877_v37 = vrot.slane %v1875_v6, 4  ;;  %v1883_v20 = vrot.slane %v1881_v8, 5  ;;  %v4400_v21 = vrot.slane %v4231_v42, 5  ;;  %v1855_v7 = vrot.slane %v1854_v18, 4  ;;  %v4236_v54 = vld [vmem:[#allocation2 + $0x9c] sm:$0xe] }
  0xde   : > { %v1868_v56 = vor.u32 %v1867_v11, %v1864_v5  ;;  %v4403_v12 = vrot.slane %v4232_v62, 5  ;;  %v7992_v0 = vrot.slane %v4233_v40, 9  ;;  %v1850_v26 = vsel %vm10031_vm3, %v1845_v19, %v1849_v59  ;;  %v4237_v42 = vld [vmem:[#allocation2 + $0xa0] sm:$0xf]  ;;  %v4238_v62 = vld [vmem:[#allocation2 + $0xa4] sm:$0x1] }
  0xdf   : > { %v1878_v27 = vor.u32 %v1877_v37, %v1873_v16  ;;  %v4401_v23 = vsel %vm10298_vm6, %v7991_v17, %v4400_v21  ;;  %v4402_v24 = vrot.slane %v4400_v21, 4  ;;  %v1860_v30 = vsel %vm10031_vm3, %v1855_v7, %v1859_v2  ;;  %v4239_v8 = vld [vmem:[#allocation2 + $0xa8] sm:$0xe]  ;;  %v4240_v17 = vld [vmem:[#allocation2 + $0xac] sm:$0xf] }
  0xe0   : > { %v1869_v32 = vrot.slane %v1868_v56, 4  ;;  %v4407_v33 = vrot.slane %v4234_v10, 5  ;;  %v4410_v34 = vrot.slane %v4235_v22, 5  ;;  %v7831_v35 = vcombine.low %v1850_v26, %v1860_v30  ;;  %v4241_v22 = vld [vmem:[#allocation2 + $0xb0] sm:$0x1] }
  0xe1   : > { %v1879_v36 = vrot.slane %v1878_v27, 4  ;;  %v4404_v38 = vsel %vm10298_vm6, %v4402_v24, %v4403_v12  ;;  %v1886_v15 = vshrl.u32 %v1550_v25, 16  ;;  %v1889_v50 = vshll.u32 %v1550_v25, 16  ;;  %v1556_v25 = vld [vmem:[#allocation2 + $0xa8] sm:$0xf] }
  0xe2   : > { %v1874_v41 = vsel %vm10031_vm3, %v1869_v32, %v1873_v16  ;;  %v8023_v43 = vcombine.low %v4401_v23, %v4404_v38  ;;  %v4408_v44 = vsel %vm10298_vm6, %v7992_v0, %v4407_v33  ;;  %v4409_v63 = vrot.slane %v4407_v33, 4  ;;  %9021 = vmatprep.mubr.bf16.mxu1 %v7831_v35 }
  0xe3   : > { %v1884_v46 = vsel %vm10031_vm3, %v1879_v36, %v1883_v20  ;;  %v1888_v48 = vrot.slane %v1886_v15, 4  ;;  %v1895_v51 = vshll.u32 %v1551_v28, 16  ;;  %v1899_v47 = vshrl.u32 %v1551_v28, 16  ;;  %v1557_v28 = vld [vmem:[#allocation2 + $0xac] sm:$0xf] }
  0xe4   : > { %v7832_v55 = vcombine.low %v1874_v41, %v1884_v46  ;;  %9213 = vmatprep.mubr.bf16.mxu0 %v8023_v43  ;;  %v4411_v57 = vsel %vm10298_vm6, %v4409_v63, %v4410_v34  ;;  %v1905_v58 = vshll.u32 %v1552_v29, 16  ;;  %v1891_v60 = vrot.slane %v1889_v50, 5  ;;  %v1558_v29 = vld [vmem:[#allocation2 + $0xb0] sm:$0x1] }
  0xe5   : > { %v8024_v49 = vcombine.low %v4408_v44, %v4411_v57  ;;  %v1897_v59 = vrot.slane %v1895_v51, 5  ;;  %v1910_v61 = vshrl.u32 %v1553_v53, 16  ;;  %v1901_v40 = vrot.slane %v1899_v47, 4 }
  0xe6   : > { %9022 = vmatmul.mubr.bf16.gmra.mrb[20].mxu1 %v7832_v55  ;;  %v1907_v1 = vrot.slane %v1905_v58, 5  ;;  %v1913_v2 = vshll.u32 %v1553_v53, 16  ;;  %v1919_v14 = vshll.u32 %v1554_v31, 16  ;;  %v1892_v3 = vor.u32 %v1891_v60, %v1888_v48  ;;  %v1559_v53 = vld [vmem:[#allocation2 + $0xb4] sm:$0xf] }
  0xe7   : > { %9214 = vmatmul.mubr.bf16.gmra.mrb[20].mxu0 %v8024_v49  ;;  %v1912_v4 = vrot.slane %v1910_v61, 4  ;;  %v1923_v5 = vshrl.u32 %v1554_v31, 16  ;;  %v1929_v6 = vshll.u32 %v1555_v45, 16  ;;  %v1902_v10 = vor.u32 %v1901_v40, %v1897_v59  ;;  %v1560_v31 = vld [vmem:[#allocation2 + $0xb8] sm:$0xf] }
  0xe8   : > { %v1915_v18 = vrot.slane %v1913_v2, 5  ;;  %v1921_v11 = vrot.slane %v1919_v14, 5  ;;  %v7993_v16 = vrot.slane %v4236_v54, 9  ;;  %v1893_v19 = vrot.slane %v1892_v3, 4  ;;  %v1561_v45 = vld [vmem:[#allocation2 + $0xbc] sm:$0x1] }
  0xe9   : > { %v1925_v37 = vrot.slane %v1923_v5, 4  ;;  %v1931_v20 = vrot.slane %v1929_v6, 5  ;;  %v4414_v21 = vrot.slane %v4237_v42, 5  ;;  %v1903_v7 = vrot.slane %v1902_v10, 4  ;;  %v4242_v54 = vld [vmem:[#allocation2 + $0xb4] sm:$0xe] }
  0xea   : > { %v1916_v56 = vor.u32 %v1915_v18, %v1912_v4  ;;  %v4417_v12 = vrot.slane %v4238_v62, 5  ;;  %v7994_v0 = vrot.slane %v4239_v8, 9  ;;  %v1898_v26 = vsel %vm10031_vm3, %v1893_v19, %v1897_v59  ;;  %v4243_v42 = vld [vmem:[#allocation2 + $0xb8] sm:$0xf]  ;;  %v4244_v62 = vld [vmem:[#allocation2 + $0xbc] sm:$0x1] }
  0xeb   : > { %v1926_v27 = vor.u32 %v1925_v37, %v1921_v11  ;;  %v4415_v23 = vsel %vm10298_vm6, %v7993_v16, %v4414_v21  ;;  %v4416_v24 = vrot.slane %v4414_v21, 4  ;;  %v1908_v30 = vsel %vm10031_vm3, %v1903_v7, %v1907_v1  ;;  %v4245_v3 = vld [vmem:[#allocation2 + $0xc0] sm:$0xe]  ;;  %v4246_v10 = vld [vmem:[#allocation2 + $0xc4] sm:$0xf] }
  0xec   : > { %v1917_v32 = vrot.slane %v1916_v56, 4  ;;  %v4421_v33 = vrot.slane %v4240_v17, 5  ;;  %v4424_v34 = vrot.slane %v4241_v22, 5  ;;  %v7833_v35 = vcombine.low %v1898_v26, %v1908_v30  ;;  %v4247_v19 = vld [vmem:[#allocation2 + $0xc8] sm:$0x1] }
  0xed   : > { %v1927_v36 = vrot.slane %v1926_v27, 4  ;;  %v4418_v38 = vsel %vm10298_vm6, %v4416_v24, %v4417_v12  ;;  %v1934_v15 = vshrl.u32 %v1556_v25, 16  ;;  %v1937_v50 = vshll.u32 %v1556_v25, 16  ;;  %v2335_v7 = vld [vmem:[#allocation2] sm:$0xe] }
  0xee   : > { %v1922_v41 = vsel %vm10031_vm3, %v1917_v32, %v1921_v11  ;;  %v8025_v43 = vcombine.low %v4415_v23, %v4418_v38  ;;  %v4422_v44 = vsel %vm10298_vm6, %v7994_v0, %v4421_v33  ;;  %v4423_v63 = vrot.slane %v4421_v33, 4  ;;  %9025 = vmatprep.mubr.bf16.mxu1 %v7833_v35  ;;  %v2336_v26 = vld [vmem:[#allocation2 + $0x4] sm:$0xf]  ;;  %v2337_v27 = vld [vmem:[#allocation2 + $0x8] sm:$0x1] }
  0xef   : > { %v1932_v46 = vsel %vm10031_vm3, %v1927_v36, %v1931_v20  ;;  %v1936_v48 = vrot.slane %v1934_v15, 4  ;;  %v1943_v51 = vshll.u32 %v1557_v28, 16  ;;  %v1947_v47 = vshrl.u32 %v1557_v28, 16  ;;  %v2338_v23 = vld [vmem:[#allocation2 + $0xc] sm:$0xe] }
  0xf0   : > { %v7834_v55 = vcombine.low %v1922_v41, %v1932_v46  ;;  %9217 = vmatprep.mubr.bf16.mxu0 %v8025_v43  ;;  %v4425_v57 = vsel %vm10298_vm6, %v4423_v63, %v4424_v34  ;;  %v1953_v58 = vshll.u32 %v1558_v29, 16  ;;  %v1939_v60 = vrot.slane %v1937_v50, 5  ;;  %v2339_v32 = vld [vmem:[#allocation2 + $0x10] sm:$0xf]  ;;  %v2340_v33 = vld [vmem:[#allocation2 + $0x14] sm:$0x1] }
  0xf1   : > { %v8026_v49 = vcombine.low %v4422_v44, %v4425_v57  ;;  %v1945_v59 = vrot.slane %v1943_v51, 5  ;;  %v1958_v61 = vshrl.u32 %v1559_v53, 16  ;;  %v1949_v40 = vrot.slane %v1947_v47, 4  ;;  %v2341_v38 = vld [vmem:[#allocation2 + $0x18] sm:$0xe] }
  0xf2   : > { %9026 = vmatmul.mubr.bf16.gmra.mrb[24].mxu1 %v7834_v55  ;;  %v1955_v1 = vrot.slane %v1953_v58, 5  ;;  %v1961_v2 = vshll.u32 %v1559_v53, 16  ;;  %v1967_v14 = vshll.u32 %v1560_v31, 16  ;;  %v1940_v4 = vor.u32 %v1939_v60, %v1936_v48  ;;  %v2342_v44 = vld [vmem:[#allocation2 + $0x1c] sm:$0xf] }
  0xf3   : > { %9218 = vmatmul.mubr.bf16.gmra.mrb[24].mxu0 %v8026_v49  ;;  %v1960_v5 = vrot.slane %v1958_v61, 4  ;;  %v1971_v6 = vshrl.u32 %v1560_v31, 16  ;;  %v1977_v8 = vshll.u32 %v1561_v45, 16  ;;  %v1950_v18 = vor.u32 %v1949_v40, %v1945_v59  ;;  %v2343_v63 = vld [vmem:[#allocation2 + $0x20] sm:$0x1]  ;;  %v9733_v60 = vld [vmem:[#allocation2 + $0x18] sm:$0xff]  }
  0xf4   : > { %v1963_v11 = vrot.slane %v1961_v2, 5  ;;  %v1969_v16 = vrot.slane %v1967_v14, 5  ;;  %v7995_v17 = vrot.slane %v4242_v54, 9  ;;  %v1941_v37 = vrot.slane %v1940_v4, 4  ;;  %v2344_v2 = vld [vmem:[#allocation2 + $0x24] sm:$0xe] }
  0xf5   : > { %v1973_v20 = vrot.slane %v1971_v6, 4  ;;  %v1979_v21 = vrot.slane %v1977_v8, 5  ;;  %v4428_v22 = vrot.slane %v4243_v42, 5  ;;  %v1951_v56 = vrot.slane %v1950_v18, 4  ;;  %v2346_v14 = vld [vmem:[#allocation2 + $0x2c] sm:$0x1] }
  0xf6   : > { %v1964_v12 = vor.u32 %v1963_v11, %v1960_v5  ;;  %v4431_v0 = vrot.slane %v4244_v62, 5  ;;  %v7996_v25 = vrot.slane %v4245_v3, 9  ;;  %v1946_v24 = vsel %vm10031_vm3, %v1941_v37, %v1945_v59  ;;  %v2345_v59 = vld [vmem:[#allocation2 + $0x28] sm:$0xf]  ;;  %v2347_v6 = vld [vmem:[#allocation2 + $0x30] sm:$0xe] }
  0xf7   : > { %v1974_v28 = vor.u32 %v1973_v20, %v1969_v16  ;;  %v4429_v29 = vsel %vm10298_vm6, %v7995_v17, %v4428_v22  ;;  %v4430_v30 = vrot.slane %v4428_v22, 4  ;;  %v1956_v34 = vsel %vm10031_vm3, %v1951_v56, %v1955_v1  ;;  %v2348_v11 = vld [vmem:[#allocation2 + $0x34] sm:$0xf] }
  0xf8   : > { %v1965_v53 = vrot.slane %v1964_v12, 4  ;;  %v4435_v35 = vrot.slane %v4246_v10, 5  ;;  %v4438_v36 = vrot.slane %v4247_v19, 5  ;;  %v7835_v15 = vcombine.low %v1946_v24, %v1956_v34 }
  0xf9   : > { %v1975_v31 = vrot.slane %v1974_v28, 4  ;;  %v4432_v41 = vsel %vm10298_vm6, %v4430_v30, %v4431_v0  ;;  %v7845_v43 = vrot.slane %v2335_v7, 9  ;;  %v2468_v54 = vrot.slane %v2336_v26, 5  ;;  %v9738_v30 = vld [vmem:[%s11072_s3 + $0x1c8] sm:$0xff]  }
  0xfa   : > { %v1970_v45 = vsel %vm10031_vm3, %v1965_v53, %v1969_v16  ;;  %v8027_v46 = vcombine.low %v4429_v29, %v4432_v41  ;;  %v4436_v48 = vsel %vm10298_vm6, %v7996_v25, %v4435_v35  ;;  %v4437_v50 = vrot.slane %v4435_v35, 4  ;;  %9029 = vmatprep.mubr.bf16.mxu1 %v7835_v15  ;;  %v2349_v16 = vld [vmem:[#allocation2 + $0x38] sm:$0x1]  ;;  %v2351_v25 = vld [vmem:[#allocation2 + $0x40] sm:$0xf] }
  0xfb   : > { %v1980_v51 = vsel %vm10031_vm3, %v1975_v31, %v1979_v21  ;;  %v2471_v55 = vrot.slane %v2337_v27, 5  ;;  %v7846_v57 = vrot.slane %v2338_v23, 9  ;;  %v2475_v42 = vrot.slane %v2339_v32, 5  ;;  %v9735_v21 = vld [vmem:[#allocation2 + $0x24] sm:$0xff]   ;;  %v9737_v23 = vld [vmem:[#allocation2 + $0x30] sm:$0xff]  }
  0xfc   : > { %v7836_v47 = vcombine.low %v1970_v45, %v1980_v51  ;;  %9221 = vmatprep.mubr.bf16.mxu0 %v8027_v46  ;;  %v4439_v58 = vsel %vm10298_vm6, %v4437_v50, %v4438_v36  ;;  %v2478_v49 = vrot.slane %v2340_v33, 5  ;;  %v2469_v62 = vsel %vm10298_vm6, %v7845_v43, %v2468_v54  ;;  %v2354_v32 = vld [vmem:[#allocation2 + $0x4c] sm:$0xf]  ;;  %v9742_v36 = vld [vmem:[%s11072_s3 + $0x1d0] sm:$0xff]   ;;  %v2350_v31 = vld [vmem:[#allocation2 + $0x3c] sm:$0xe] }
  0xfd   : > { %v8028_v61 = vcombine.low %v4436_v48, %v4439_v58  ;;  %v2470_v40 = vrot.slane %v2468_v54, 4  ;;  %v7847_v1 = vrot.slane %v2341_v38, 9  ;;  %v2477_v3 = vrot.slane %v2475_v42, 4  ;;  %v9740_v33 = vld [vmem:[%s11072_s3 + $0xc8] sm:$0xff]   ;;  %v2352_v41 = vld [vmem:[#allocation2 + $0x44] sm:$0x1] }
  0xfe   : > { %9030 = vmatmul.mubr.bf16.gmra.mrb[28].mxu1 %v7836_v47  ;;  %v2482_v4 = vrot.slane %v2342_v44, 5  ;;  %v2485_v5 = vrot.slane %v2343_v63, 5  ;;  %v2476_v10 = vsel %vm10298_vm6, %v7846_v57, %v2475_v42  ;;  %v2489_v18 = vrot.slane %v2345_v59, 5  ;;  %v9744_v43 = vld [vmem:[%s11072_s3 + $0xd0] sm:$0xff]   ;;  %v2353_v63 = vld [vmem:[#allocation2 + $0x48] sm:$0xe] }
  0xff   : > { %9222 = vmatmul.mubr.bf16.gmra.mrb[28].mxu0 %v8028_v61  ;;  %v2472_v8 = vsel %vm10298_vm6, %v2470_v40, %v2471_v55  ;;  %v2479_v19 = vsel %vm10298_vm6, %v2477_v3, %v2478_v49  ;;  %v7848_v22 = vrot.slane %v2344_v2, 9  ;;  %v2492_v12 = vrot.slane %v2346_v14, 5  ;;  %v2355_v45 = vld [vmem:[#allocation2 + $0x50] sm:$0x1]  ;;  %v9741_v54 = vld [vmem:[#allocation2 + $0x48] sm:$0xff]   ;;  %v9746_v42 = vld [vmem:[%s11072_s3 + $0x1d8] sm:$0xff]  }
 0x100   : > { %v7877_v17 = vcombine.low %v2469_v62, %v2472_v8  ;;  %9241 = vmatprep.mubr.bf16.mxu0 %v9733_v60  ;;  %v2483_v37 = vsel %vm10298_vm6, %v7847_v1, %v2482_v4  ;;  %v2484_v20 = vrot.slane %v2482_v4, 4  ;;  %v7878_v7 = vcombine.low %v2476_v10, %v2479_v19  ;;  %v2357_v58 = vld [vmem:[#allocation2 + $0x58] sm:$0xf]  ;;  %v2360_v49 = vld [vmem:[#allocation2 + $0x64] sm:$0xf] }
 0x101   : > { %v2496_v0 = vrot.slane %v2348_v11, 5  ;;  %v2491_v27 = vrot.slane %v2489_v18, 4  ;;  %v7849_v24 = vrot.slane %v2347_v6, 9  ;;  %v2499_v29 = vrot.slane %v2349_v16, 5  ;;  %v9748_v60 = vld [vmem:[%s11072_s3 + $0xd8] sm:$0xff]   ;;  %v9750_v4 = vld [vmem:[%s11072_s3 + $0x1e0] sm:$0xff]  }
 0x102   : > { %9049 = vmatprep.mubr.bf16.mxu1 %v7877_v17  ;;  %v2486_v56 = vsel %vm10298_vm6, %v2484_v20, %v2485_v5  ;;  %v2490_v34 = vsel %vm10298_vm6, %v7848_v22, %v2489_v18  ;;  %v2503_v35 = vrot.slane %v2351_v25, 5  ;;  %v2510_v44 = vrot.slane %v2354_v32, 5  ;;  %v2356_v2 = vld [vmem:[#allocation2 + $0x54] sm:$0xe]  ;;  %v2358_v14 = vld [vmem:[#allocation2 + $0x5c] sm:$0x1] }
 0x103   : > { %v7879_v26 = vcombine.low %v2483_v37, %v2486_v56  ;;  %v2498_v28 = vrot.slane %v2496_v0, 4  ;;  %v2493_v53 = vsel %vm10298_vm6, %v2491_v27, %v2492_v12  ;;  %v2497_v38 = vsel %vm10298_vm6, %v7849_v24, %v2496_v0  ;;  %v9743_v5 = vld [vmem:[#allocation2 + $0x54] sm:$0xff]   ;;  %v2359_v6 = vld [vmem:[#allocation2 + $0x60] sm:$0xe]  ;;  %v2361_v8 = vld [vmem:[#allocation2 + $0x68] sm:$0x1] }
 0x104   : > { %v7850_v48 = vrot.slane %v2350_v31, 9  ;;  %v2505_v50 = vrot.slane %v2503_v35, 4  ;;  %v2506_v51 = vrot.slane %v2352_v41, 5  ;;  %v7851_v55 = vrot.slane %v2353_v63, 9  ;;  %v2363_v18 = vld [vmem:[#allocation2 + $0x70] sm:$0xf] }
 0x105   : > { %v2500_v15 = vsel %vm10298_vm6, %v2498_v28, %v2499_v29  ;;  %v2512_v57 = vrot.slane %v2510_v44, 4  ;;  %v2513_v47 = vrot.slane %v2355_v45, 5  ;;  %v2517_v62 = vrot.slane %v2357_v58, 5  ;;  %v9752_v11 = vld [vmem:[%s11072_s3 + $0xe0] sm:$0xff]   ;;  %v2364_v12 = vld [vmem:[#allocation2 + $0x74] sm:$0x1] }
 0x106   : > { %9050 = vmatmul.mubr.bf16.vlgmr.msra.gmra.mrb[0].mxu1 %v7878_v7  ;;  %v7881_v46 = vcombine.low %v2497_v38, %v2500_v15  ;;  %v2504_v59 = vsel %vm10298_vm6, %v7850_v48, %v2503_v35  ;;  %v2507_v61 = vsel %vm10298_vm6, %v2505_v50, %v2506_v51  ;;  %v2511_v40 = vsel %vm10298_vm6, %v7851_v55, %v2510_v44  ;;  %v9745_v20 = vld [vmem:[#allocation2 + $0x60] sm:$0xff]   ;;  %v2366_v0 = vld [vmem:[#allocation2 + $0x7c] sm:$0xf]  ;;  %v9754_v25 = vld [vmem:[%s11072_s3 + $0x1e8] sm:$0xff]  }
 0x107   : > { %9242 = vmatmul.mubr.bf16.vlgmr.msra.gmra.mrb[0].mxu0 %v9735_v21  ;;  %9053 = vmatprep.mubr.bf16.mxu1 %v7879_v26  ;;  %v2514_v1 = vsel %vm10298_vm6, %v2512_v57, %v2513_v47  ;;  %v2524_v3 = vrot.slane %v2360_v49, 5  ;;  %v7882_v10 = vcombine.low %v2504_v59, %v2507_v61  ;;  %v7852_v17 = vrot.slane %v2356_v2, 9  ;;  %v2362_v21 = vld [vmem:[#allocation2 + $0x6c] sm:$0xe]  ;;  %v2365_v29 = vld [vmem:[#allocation2 + $0x78] sm:$0xe] }
 0x108   : > { %9274 = vmatpush3.bf16.msra.mxu0 %v10411_v39  ;;  %9082 = vmatpush3.bf16.msra.mxu1 %v10397_v52  ;;  %v7880_v39 = vcombine.low %v2490_v34, %v2493_v53  ;;  %v9739_v52 = vld [vmem:[#allocation2 + $0x3c] sm:$0xff]   ;;  %v7883_v16 = vcombine.low %v2511_v40, %v2514_v1  ;;  %v2519_v19 = vrot.slane %v2517_v62, 4  ;;  %v2520_v37 = vrot.slane %v2358_v14, 5  ;;  %v9756_v27 = vld [vmem:[%s11072_s3 + $0xe8] sm:$0xff]   ;;  %v9760_v41 = vld [vmem:[%s11072_s3 + $0xf0] sm:$0xff]  }
 0x109   : > { %9245 = vmatprep.mubr.bf16.mxu0 %v9737_v23  ;;  %9275 = vmatprep.subr.bf16.mxu0 %v9738_v30  ;;  %v7853_v22 = vrot.slane %v2359_v6, 9  ;;  %v2526_v7 = vrot.slane %v2524_v3, 4  ;;  %v2527_v56 = vrot.slane %v2361_v8, 5  ;;  %v2531_v26 = vrot.slane %v2363_v18, 5  ;;  %v2369_v23 = vld [vmem:[#allocation2 + $0x88] sm:$0xf] }
 0x10a   : > { %9083 = vmatprep.subr.bf16.mxu1 %v9740_v33  ;;  %v2518_v24 = vsel %vm10298_vm6, %v7852_v17, %v2517_v62  ;;  %v2521_v28 = vsel %vm10298_vm6, %v2519_v19, %v2520_v37  ;;  %v7854_v34 = vrot.slane %v2362_v21, 9  ;;  %v2367_v53 = vld [vmem:[#allocation2 + $0x80] sm:$0x1]  ;;  %v2538_v35 = vrot.slane %v2366_v0, 5  ;;  %v2370_v44 = vld [vmem:[#allocation2 + $0x8c] sm:$0x1] }
 0x10b   : > { %v2525_v32 = vsel %vm10298_vm6, %v7853_v22, %v2524_v3  ;;  %v2533_v38 = vrot.slane %v2531_v26, 4  ;;  %v2534_v15 = vrot.slane %v2364_v12, 5  ;;  %v2545_v31 = vrot.slane %v2369_v23, 5  ;;  %v2372_v63 = vld [vmem:[#allocation2 + $0x94] sm:$0xf]  ;;  %v9747_v45 = vld [vmem:[#allocation2 + $0x6c] sm:$0xff]  }
 0x10c   : > { %9276 = vmatpush3.bf16.msra.mxu0 %v9738_v30  ;;  %9084 = vmatpush3.bf16.msra.mxu1 %v9740_v33  ;;  %v9758_v30 = vld [vmem:[%s11072_s3 + $0x1f0] sm:$0xff]   ;;  %v2528_v33 = vsel %vm10298_vm6, %v2526_v7, %v2527_v56  ;;  %v10562_v50 = vsel %vm10298_vm6, %v7854_v34, %v2531_v26  ;;  %v2540_v51 = vrot.slane %v2538_v35, 4  ;;  %v2373_v57 = vld [vmem:[#allocation2 + $0x98] sm:$0x1]  ;;  %v2374_v47 = vld [vmem:[#allocation2 + $0x9c] sm:$0xe] }
 0x10d   : > { %9277 = vmatprep.subr.bf16.mxu0 %v9742_v36  ;;  %9085 = vmatprep.subr.bf16.mxu1 %v9744_v43  ;;  %v2371_v48 = vld [vmem:[#allocation2 + $0x90] sm:$0xe]  ;;  %v9761_v58 = vld [vmem:[%s11072_s3 + $0xf8] sm:$0xff]   ;;  %v2547_v49 = vrot.slane %v2545_v31, 4  ;;  %v2552_v59 = vrot.slane %v2372_v63, 5  ;;  %v7858_v17 = vrot.slane %v2374_v47, 9 }
 0x10e   : > { %9054 = vmatmul.mubr.bf16.gmra.mrb[4].mxu1 %v7880_v39  ;;  %v7885_v39 = vcombine.low %v2525_v32, %v2528_v33  ;;  %v9763_v61 = vld [vmem:[%s11072_s3 + $0x1f8] sm:$0xff]   ;;  %v10572_v62 = vld [vmem:[#allocation2 + $0xa0] sm:$0xf]  ;;  %v10583_v6 = vld [vmem:[#allocation2 + $0xa4] sm:$0x1] }
 0x10f   : > { %9246 = vmatmul.mubr.bf16.gmra.mrb[4].mxu0 %v9739_v52  ;;  %9057 = vmatprep.mubr.bf16.mxu1 %v7881_v46  ;;  %v9749_v52 = vld [vmem:[#allocation2 + $0x78] sm:$0xff]   ;;  %v7855_v46 = vrot.slane %v2365_v29, 9  ;;  %v10585_v8 = vld [vmem:[#allocation2 + $0xa8] sm:$0xe]  ;;  %v10591_v19 = vld [vmem:[#allocation2 + $0xac] sm:$0xf] }
 0x110   : > { %9249 = vmatprep.mubr.bf16.mxu0 %v9741_v54  ;;  %9278 = vmatpush3.bf16.msra.mxu0 %v9742_v36  ;;  %v2368_v36 = vld [vmem:[#allocation2 + $0x84] sm:$0xe]  ;;  %v2541_v54 = vrot.slane %v2367_v53, 5  ;;  %v5245_v40 = vld [vmem:[#allocation2 + $0x18] sm:$0xf]  ;;  %v2559_v12 = vrot.slane %v10572_v62, 5 }
 0x111   : > { %9086 = vmatpush3.bf16.msra.mxu1 %v9744_v43  ;;  %9279 = vmatprep.subr.bf16.mxu0 %v9746_v42  ;;  %v7884_v43 = vcombine.low %v2518_v24, %v2521_v28  ;;  %v7856_v55 = vrot.slane %v2368_v36, 9  ;;  %v2539_v1 = vsel %vm10298_vm6, %v7855_v46, %v2538_v35  ;;  %v5246_v2 = vld [vmem:[#allocation2 + $0x1c] sm:$0xf]  ;;  %v10596_v37 = vld [vmem:[%s11072_s3 + $0x200] sm:$0xff]   ;;  %v5329_v21 = vshll.u32 %v5245_v40, 16  ;;  %v9753_v24 = vld [vmem:[#allocation2 + $0x90] sm:$0xff]  }
 0x112   : > { %9087 = vmatprep.subr.bf16.mxu1 %v9748_v60  ;;  %v2542_v3 = vsel %vm10298_vm6, %v2540_v51, %v2541_v54  ;;  %v5335_v22 = vshll.u32 %v5246_v2, 16  ;;  %v5339_v7 = vshrl.u32 %v5246_v2, 16  ;;  %v2379_v0 = vld [vmem:[#allocation2 + $0xb0] sm:$0x1]  ;;  %v10601_v26 = vld [vmem:[#allocation2 + $0xb8] sm:$0xf]  ;;  %v10621_v53 = vsel %vm10298_vm6, %v7858_v17, %v2559_v12 }
 0x113   : > { %v7887_v56 = vcombine.low %v2539_v1, %v2542_v3  ;;  %v2562_v29 = vrot.slane %v10583_v6, 5  ;;  %v5248_v32 = vld [vmem:[#allocation2 + $0x24] sm:$0xf]  ;;  %v5249_v33 = vld [vmem:[#allocation2 + $0x28] sm:$0xf]  ;;  %v7859_v35 = vrot.slane %v10585_v8, 9 }
 0x114   : > { %9280 = vmatpush3.bf16.msra.mxu0 %v9746_v42  ;;  %v2535_v42 = vsel %vm10298_vm6, %v2533_v38, %v2534_v15  ;;  %v2566_v36 = vrot.slane %v10591_v19, 5  ;;  %v5247_v38 = vld [vmem:[#allocation2 + $0x20] sm:$0x1]  ;;  %v5251_v15 = vld [vmem:[#allocation2 + $0x30] sm:$0xf]  ;;  %v5350_v63 = vshrl.u32 %v5248_v32, 16 }
 0x115   : > { %9088 = vmatpush3.bf16.msra.mxu1 %v9748_v60  ;;  %9281 = vmatprep.subr.bf16.mxu0 %v9750_v4  ;;  %v2548_v60 = vrot.slane %v2370_v44, 5  ;;  %v7886_v14 = vcombine.low %v10562_v50, %v2535_v42  ;;  %v5341_v44 = vrot.slane %v5339_v7, 4  ;;  %v5252_v46 = vld [vmem:[#allocation2 + $0x34] sm:$0xf]  ;;  %v2569_v50 = vrot.slane %v2379_v0, 5  ;;  %v9755_v42 = vld [vmem:[#allocation2 + $0x9c] sm:$0xff]  }
 0x116   : > { %9058 = vmatmul.mubr.bf16.gmra.mrb[8].mxu1 %v7882_v10  ;;  %9089 = vmatprep.subr.bf16.mxu1 %v9752_v11  ;;  %v9751_v10 = vld [vmem:[#allocation2 + $0x84] sm:$0xff]   ;;  %v2573_v54 = vrot.slane %v10601_v26, 5  ;;  %v5374_v47 = vshrl.u32 %v5251_v15, 16  ;;  %v5345_v62 = vshll.u32 %v5247_v38, 16  ;;  %v5352_v1 = vrot.slane %v5350_v63, 4 }
 0x117   : > { %9250 = vmatmul.mubr.bf16.gmra.mrb[8].mxu0 %v9743_v5  ;;  %9061 = vmatprep.mubr.bf16.mxu1 %v7883_v16  ;;  %v7857_v5 = vrot.slane %v2371_v48, 9  ;;  %v10589_v18 = vsel %vm10298_vm6, %v2547_v49, %v2548_v60  ;;  %v2555_v16 = vrot.slane %v2373_v57, 5  ;;  %v2561_v48 = vrot.slane %v2559_v12, 4  ;;  %v9757_v60 = vld [vmem:[#allocation2 + $0xa8] sm:$0xff]   ;;  %v5255_v7 = vld [vmem:[#allocation2 + $0x40] sm:$0xf] }
 0x118   : > { %9253 = vmatprep.mubr.bf16.mxu0 %v9745_v20  ;;  %9282 = vmatpush3.bf16.msra.mxu0 %v9750_v4  ;;  %v10581_v4 = vsel %vm10298_vm6, %v7856_v55, %v2545_v31  ;;  %v5326_v20 = vshrl.u32 %v5245_v40, 16  ;;  %v2568_v55 = vrot.slane %v2566_v36, 4  ;;  %v5250_v40 = vld [vmem:[#allocation2 + $0x2c] sm:$0x1]  ;;  %v5383_v6 = vshll.u32 %v5252_v46, 16 }
 0x119   : > { %9090 = vmatpush3.bf16.msra.mxu1 %v9752_v11  ;;  %9283 = vmatprep.subr.bf16.mxu0 %v9754_v25  ;;  %v2554_v11 = vrot.slane %v2552_v59, 4  ;;  %v7888_v23 = vcombine.low %v10581_v4, %v10589_v18  ;;  %v10612_v28 = vsel %vm10298_vm6, %v7857_v5, %v2552_v59  ;;  %v2563_v4 = vsel %vm10298_vm6, %v2561_v48, %v2562_v29  ;;  %v5253_v0 = vld [vmem:[#allocation2 + $0x38] sm:$0x1] }
 0x11a   : > { %9091 = vmatprep.subr.bf16.mxu1 %v9756_v27  ;;  %v5328_v31 = vrot.slane %v5326_v20, 4  ;;  %v2567_v5 = vsel %vm10298_vm6, %v7859_v35, %v2566_v36  ;;  %v5387_v8 = vshrl.u32 %v5252_v46, 16  ;;  %v2570_v18 = vsel %vm10298_vm6, %v2568_v55, %v2569_v50  ;;  %v9759_v36 = vld [vmem:[#allocation2 + $0xb4] sm:$0xff]   ;;  %v9762_v46 = vld [vmem:[#allocation2 + $0xc0] sm:$0xff]  }
 0x11b   : > { %v2556_v34 = vsel %vm10298_vm6, %v2554_v11, %v2555_v16  ;;  %v2575_v11 = vrot.slane %v2573_v54, 4  ;;  %v5376_v16 = vrot.slane %v5374_v47, 4  ;;  %v5411_v35 = vshrl.u32 %v5255_v7, 16 }
 0x11c   : > { %9284 = vmatpush3.bf16.msra.mxu0 %v9754_v25  ;;  %v10599_v25 = vld [vmem:[#allocation2 + $0xb4] sm:$0xe]  ;;  %v7889_v49 = vcombine.low %v10612_v28, %v2556_v34  ;;  %v5389_v29 = vrot.slane %v5387_v8, 4  ;;  %v5407_v34 = vshll.u32 %v5255_v7, 16  ;;  %v5393_v50 = vshll.u32 %v5253_v0, 16  ;;  %v9765_v7 = vld [vmem:[#allocation2 + $0xc] sm:$0xff]  }
 0x11d   : > { %9092 = vmatpush3.bf16.msra.mxu1 %v9756_v27  ;;  %9285 = vmatprep.subr.bf16.mxu0 %v9758_v30  ;;  %v10606_v27 = vld [vmem:[%s11074_s5] sm:$0x3]  ;;  %v7860_v51 = vrot.slane %v10599_v25, 9 }
 0x11e   : > { %9062 = vmatmul.mubr.bf16.gmra.mrb[12].mxu1 %v7884_v43  ;;  %9093 = vmatprep.subr.bf16.mxu1 %v9760_v41  ;;  %v10626_v43 = vrot.slane %v5335_v22, 5  ;;  %v5369_v22 = vshll.u32 %v5250_v40, 16  ;;  %v10669_v47 = vrot.slane %v5407_v34, 5 }
 0x11f   : > { %9254 = vmatmul.mubr.bf16.gmra.mrb[12].mxu0 %v9747_v45  ;;  %9065 = vmatprep.mubr.bf16.mxu1 %v7885_v39  ;;  %v5353_v45 = vshll.u32 %v5248_v32, 16  ;;  %v5359_v39 = vshll.u32 %v5249_v33, 16  ;;  %v10647_v28 = vsel %vm10298_vm6, %v7860_v51, %v2573_v54  ;;  %v7891_v32 = vcombine.low %v2567_v5, %v2570_v18 }
 0x120   : > { %9257 = vmatprep.mubr.bf16.mxu0 %v9749_v52  ;;  %9286 = vmatpush3.bf16.msra.mxu0 %v9758_v30  ;;  %v10615_v30 = vld [vmem:[#allocation2 + $0xbc] sm:$0x1]  ;;  %v5363_v52 = vshrl.u32 %v5249_v33, 16 }
 0x121   : > { %9094 = vmatpush3.bf16.msra.mxu1 %v9760_v41  ;;  %9287 = vmatprep.subr.bf16.mxu0 %v9763_v61  ;;  %v5331_v41 = vrot.slane %v5329_v21, 5  ;;  %v2576_v57 = vrot.slane %v10615_v30, 5  ;;  %v5355_v2 = vrot.slane %v5353_v45, 5  ;;  %v5347_v21 = vrot.slane %v5345_v62, 5  ;;  %v5257_v30 = vld [vmem:[#allocation2 + $0x48] sm:$0xf] }
 0x122   : > { %9095 = vmatprep.subr.bf16.mxu1 %v9761_v58  ;;  %v5365_v3 = vrot.slane %v5363_v52, 4  ;;  %v5258_v52 = vld [vmem:[#allocation2 + $0x4c] sm:$0xf]  ;;  %v5422_v51 = vshrl.u32 %v5257_v30, 16  ;;  %v5425_v54 = vshll.u32 %v5257_v30, 16 }
 0x123   : > { %v5332_v59 = vor.u32 %v5331_v41, %v5328_v31  ;;  %v10653_v38 = vsel %vm10298_vm6, %v2575_v11, %v2576_v57  ;;  %v10660_v31 = vrot.slane %v5369_v22, 5  ;;  %v5256_v41 = vld [vmem:[#allocation2 + $0x44] sm:$0x1]  ;;  %v9764_v22 = vld [vmem:[#allocation2 + $0xcc] sm:$0xff]  }
 0x124   : > { %9288 = vmatpush3.bf16.msra.mxu0 %v9763_v61  ;;  %v5342_v61 = vor.u32 %v5341_v44, %v10626_v43  ;;  %v7892_v55 = vcombine.low %v10647_v28, %v10653_v38  ;;  %v5424_v8 = vrot.slane %v5422_v51, 4 }
 0x125   : > { %9096 = vmatpush3.bf16.msra.mxu1 %v9761_v58  ;;  %9321 = vmatprep.subr.bf16.mxu0 %v10596_v37  ;;  %v5377_v58 = vshll.u32 %v5251_v15, 16  ;;  %v5333_v19 = vrot.slane %v5332_v59, 4  ;;  %v5435_v59 = vshrl.u32 %v5258_v52, 16 }
 0x126   : > { %9066 = vmatmul.mubr.bf16.gmra.mrb[16].mxu1 %v7886_v14  ;;  %9659 = vmatprep.subr.msk.bf16.mxu1 %vm6956_vm7, %v10606_v27  ;;  %v10635_v14 = vrot.slane %v5359_v39, 5  ;;  %v5343_v20 = vrot.slane %v5342_v61, 4  ;;  %v5261_v61 = vld [vmem:[#allocation2 + $0x58] sm:$0xf] }
 0x127   : > { %9258 = vmatmul.mubr.bf16.gmra.mrb[16].mxu0 %v9751_v10  ;;  %9069 = vmatprep.mubr.bf16.mxu1 %v7887_v56  ;;  %v5254_v10 = vld [vmem:[#allocation2 + $0x3c] sm:$0xf]  ;;  %v5379_v17 = vrot.slane %v5377_v58, 5  ;;  %v5356_v56 = vor.u32 %v5355_v2, %v5352_v1  ;;  %v5413_v58 = vrot.slane %v5411_v35, 4  ;;  %v5417_v2 = vshll.u32 %v5256_v41, 16 }
 0x128   : > { %9261 = vmatprep.mubr.bf16.mxu0 %v9753_v24  ;;  %v5366_v12 = vor.u32 %v5365_v3, %v10635_v14  ;;  %v5398_v25 = vshrl.u32 %v5254_v10, 16  ;;  %v5401_v26 = vshll.u32 %v5254_v10, 16  ;;  %v7890_v24 = vcombine.low %v10621_v53, %v2563_v4  ;;  %v5259_v3 = vld [vmem:[#allocation2 + $0x50] sm:$0x1]  ;;  %v5264_v4 = vld [vmem:[#allocation2 + $0x64] sm:$0xf] }
 0x129   : > { %v5380_v33 = vor.u32 %v5379_v17, %v5376_v16  ;;  %v5338_v53 = vsel %vm10031_vm3, %v5333_v19, %v10626_v43  ;;  %v5348_v15 = vsel %vm10031_vm3, %v5343_v20, %v5347_v21  ;;  %v10662_v44 = vrot.slane %v5356_v56, 4  ;;  %v5260_v43 = vld [vmem:[#allocation2 + $0x54] sm:$0xf] }
 0x12a   : > { %v10664_v63 = vrot.slane %v5366_v12, 4  ;;  %v5400_v45 = vrot.slane %v5398_v25, 4  ;;  %v5403_v39 = vrot.slane %v5401_v26, 5  ;;  %v5427_v10 = vrot.slane %v5425_v54, 5 }
 0x12b   : > { %v5381_v57 = vrot.slane %v5380_v33, 4  ;;  %v5362_v62 = vsel %vm10031_vm3, %v10662_v44, %v10635_v14  ;;  %v5414_v14 = vor.u32 %v5413_v58, %v10669_v47  ;;  %v5446_v11 = vshrl.u32 %v5260_v43, 16  ;;  %v5266_v44 = vld [vmem:[#allocation2 + $0x6c] sm:$0xf] }
 0x12c   : > { %v5372_v40 = vsel %vm10031_vm3, %v10664_v63, %v10660_v31  ;;  %v5404_v1 = vor.u32 %v5403_v39, %v5400_v45  ;;  %v5449_v16 = vshll.u32 %v5260_v43, 16  ;;  %v5437_v19 = vrot.slane %v5435_v59, 4  ;;  %v9768_v59 = vld [vmem:[#allocation2 + $0x24] sm:$0xff]  }
 0x12d   : > { %v5455_v20 = vshll.u32 %v5261_v61, 16  ;;  %v5459_v21 = vshrl.u32 %v5261_v61, 16  ;;  %v10691_v12 = vrot.slane %v5417_v2, 5  ;;  %v5479_v28 = vshll.u32 %v5264_v4, 16 }
 0x12e   : > { %9070 = vmatmul.mubr.bf16.gmra.mrb[20].mxu1 %v7888_v23  ;;  %v10649_v23 = vrot.slane %v5383_v6, 5  ;;  %v5395_v6 = vrot.slane %v5393_v50, 5  ;;  %v10689_v56 = vrot.slane %v5404_v1, 4  ;;  %v5428_v30 = vor.u32 %v5427_v10, %v5424_v8  ;;  %v9766_v50 = vld [vmem:[#allocation2 + $0x18] sm:$0xff]  }
 0x12f   : > { %9262 = vmatmul.mubr.bf16.gmra.mrb[20].mxu0 %v9755_v42  ;;  %9073 = vmatprep.mubr.bf16.mxu1 %v7889_v49  ;;  %v8093_v42 = vcombine.low %v5338_v53, %v5348_v15  ;;  %v10673_v49 = vsel %vm6956_vm7, %v10606_v27, 0  ;;  %v5263_v27 = vld [vmem:[#allocation2 + $0x60] sm:$0xf]  ;;  %v5448_v33 = vrot.slane %v5446_v11, 4  ;;  %v5451_v34 = vrot.slane %v5449_v16, 5 }
 0x130   : > { %9265 = vmatprep.mubr.bf16.mxu0 %v9757_v60  ;;  %v5390_v48 = vor.u32 %v5389_v29, %v10649_v23  ;;  %v5431_v60 = vshll.u32 %v5258_v52, 16  ;;  %v5386_v18 = vsel %vm10031_vm3, %v5381_v57, %v10649_v23  ;;  %v5470_v0 = vshrl.u32 %v5263_v27, 16  ;;  %v5265_v15 = vld [vmem:[#allocation2 + $0x68] sm:$0x1] }
 0x131   : > { %v5473_v25 = vshll.u32 %v5263_v27, 16  ;;  %v5483_v23 = vshrl.u32 %v5264_v4, 16  ;;  %v10695_v29 = vrot.slane %v5414_v14, 4  ;;  %v5461_v38 = vrot.slane %v5459_v21, 4 }
 0x132   : > { %v5391_v5 = vrot.slane %v5390_v48, 4  ;;  %v10687_v17 = vrot.slane %v5431_v60, 5  ;;  %v8094_v53 = vcombine.low %v5362_v62, %v5372_v40  ;;  %v5472_v31 = vrot.slane %v5470_v0, 4  ;;  %v5269_v48 = vld [vmem:[#allocation2 + $0x78] sm:$0xf] }
 0x133   : > { %v5475_v41 = vrot.slane %v5473_v25, 5  ;;  %v5410_v45 = vsel %vm10031_vm3, %v10689_v56, %v10669_v47  ;;  %v10704_v39 = vrot.slane %v5479_v28, 5  ;;  %v5485_v52 = vrot.slane %v5483_v23, 4  ;;  %v5270_v47 = vld [vmem:[#allocation2 + $0x7c] sm:$0xf]  ;;  %v9769_v56 = vld [vmem:[#allocation2 + $0x30] sm:$0xff]  }
 0x134   : > { %v5396_v26 = vsel %vm10031_vm3, %v5391_v5, %v5395_v6  ;;  %v5438_v35 = vor.u32 %v5437_v19, %v10687_v17  ;;  %v5420_v51 = vsel %vm10031_vm3, %v10695_v29, %v10691_v12  ;;  %v5429_v54 = vrot.slane %v5428_v30, 4  ;;  %v9770_v5 = vld [vmem:[%s11072_s3 + $0x208] sm:$0xff]   ;;  %v5268_v25 = vld [vmem:[#allocation2 + $0x74] sm:$0x1]  ;;  %v5271_v28 = vld [vmem:[#allocation2 + $0x80] sm:$0x1] }
 0x135   : > { %v8095_v63 = vcombine.low %v5386_v18, %v5396_v26  ;;  %v5452_v58 = vor.u32 %v5451_v34, %v5448_v33  ;;  %v5494_v60 = vshrl.u32 %v5266_v44, 16  ;;  %v5476_v61 = vor.u32 %v5475_v41, %v5472_v31  ;;  %v5272_v30 = vld [vmem:[#allocation2 + $0x84] sm:$0xf]  ;;  %v5273_v34 = vld [vmem:[#allocation2 + $0x88] sm:$0xf] }
 0x136   : > { %9074 = vmatmul.mubr.bf16.gmra.mrb[24].mxu1 %v7890_v24  ;;  %v5441_v24 = vshll.u32 %v5259_v3, 16  ;;  %v5439_v57 = vrot.slane %v5438_v35, 4  ;;  %v5497_v62 = vshll.u32 %v5266_v44, 16  ;;  %v5486_v2 = vor.u32 %v5485_v52, %v10704_v39  ;;  %v5275_v35 = vld [vmem:[#allocation2 + $0x90] sm:$0xf] }
 0x137   : > { %9266 = vmatmul.mubr.bf16.gmra.mrb[24].mxu0 %v9759_v36  ;;  %9077 = vmatprep.mubr.bf16.mxu1 %v7891_v32  ;;  %v5262_v32 = vld [vmem:[#allocation2 + $0x5c] sm:$0x1]  ;;  %v10698_v36 = vrot.slane %v5455_v20, 5  ;;  %v5489_v3 = vshll.u32 %v5265_v15, 16  ;;  %v5518_v27 = vshrl.u32 %v5269_v48, 16  ;;  %v5521_v4 = vshll.u32 %v5269_v48, 16 }
 0x138   : > { %9269 = vmatprep.mubr.bf16.mxu0 %v9762_v46  ;;  %v5267_v46 = vld [vmem:[#allocation2 + $0x70] sm:$0xf]  ;;  %v5443_v43 = vrot.slane %v5441_v24, 5  ;;  %v5434_v6 = vsel %vm10031_vm3, %v5429_v54, %v10687_v17  ;;  %v5527_v10 = vshll.u32 %v5270_v47, 16  ;;  %v5531_v18 = vshrl.u32 %v5270_v47, 16 }
 0x139   : > { %v5503_v40 = vshll.u32 %v5267_v46, 16  ;;  %v5507_v1 = vshrl.u32 %v5267_v46, 16  ;;  %v5453_v11 = vrot.slane %v5452_v58, 4  ;;  %v5496_v19 = vrot.slane %v5494_v60, 4  ;;  %v9773_v20 = vld [vmem:[%s11072_s3 + $0x210] sm:$0xff]   ;;  %v9776_v46 = vld [vmem:[%s11072_s3 + $0x218] sm:$0xff]  }
 0x13a   : > { %v5444_v14 = vsel %vm10031_vm3, %v5439_v57, %v5443_v43  ;;  %v5477_v21 = vrot.slane %v5476_v61, 4  ;;  %v5487_v12 = vrot.slane %v5486_v2, 4  ;;  %v5491_v0 = vrot.slane %v5489_v3, 5  ;;  %v9772_v61 = vld [vmem:[#allocation2 + $0x48] sm:$0xff]   ;;  %v9779_v2 = vld [vmem:[%s11072_s3 + $0x220] sm:$0xff]  }
 0x13b   : > { %v5509_v17 = vrot.slane %v5507_v1, 4  ;;  %v5520_v26 = vrot.slane %v5518_v27, 4  ;;  %v5523_v24 = vrot.slane %v5521_v4, 5  ;;  %v10727_v23 = vrot.slane %v5527_v10, 5  ;;  %v5274_v3 = vld [vmem:[#allocation2 + $0x8c] sm:$0x1] }
 0x13c   : > { %v5533_v29 = vrot.slane %v5531_v18, 4  ;;  %v5482_v15 = vsel %vm10031_vm3, %v5477_v21, %v10704_v39  ;;  %v5513_v44 = vshll.u32 %v5268_v25, 16  ;;  %v5542_v52 = vshrl.u32 %v5272_v30, 16  ;;  %v5279_v4 = vld [vmem:[#allocation2 + $0xa0] sm:$0xf] }
 0x13d   : > { %v5551_v39 = vshll.u32 %v5273_v34, 16  ;;  %v5566_v54 = vshrl.u32 %v5275_v35, 16  ;;  %v5569_v43 = vshll.u32 %v5275_v35, 16  ;;  %v5599_v25 = vshll.u32 %v5279_v4, 16 }
 0x13e   : > { %9078 = vmatmul.mubr.bf16.gmra.mrb[28].mxu1 %v7892_v55  ;;  %v5465_v55 = vshll.u32 %v5262_v32, 16  ;;  %v5458_v32 = vsel %vm10031_vm3, %v5453_v11, %v10698_v36  ;;  %v5534_v48 = vor.u32 %v5533_v29, %v10727_v23  ;;  %v10754_v47 = vrot.slane %v5513_v44, 5  ;;  %v5281_v11 = vld [vmem:[#allocation2 + $0xa8] sm:$0xf] }
 0x13f   : > { %9270 = vmatmul.mubr.bf16.gmra.mrb[28].mxu0 %v9764_v22  ;;  %9097 = vmatprep.mubr.bf16.mxu1 %v9765_v7  ;;  %v5499_v22 = vrot.slane %v5497_v62, 5  ;;  %v10723_v7 = vrot.slane %v5503_v40, 5  ;;  %v5544_v27 = vrot.slane %v5542_v52, 4  ;;  %v10763_v10 = vrot.slane %v5551_v39, 5  ;;  %v9785_v39 = vld [vmem:[%s11072_s3 + $0x230] sm:$0xff]  }
 0x140   : > { %9289 = vmatprep.mubr.bf16.mxu0 %v8093_v42  ;;  %v5462_v42 = vor.u32 %v5461_v38, %v10698_v36  ;;  %v5467_v8 = vrot.slane %v5465_v55, 5  ;;  %v5276_v38 = vld [vmem:[#allocation2 + $0x94] sm:$0xf]  ;;  %v5524_v36 = vor.u32 %v5523_v24, %v5520_v26  ;;  %v5603_v26 = vshrl.u32 %v5279_v4, 16  ;;  %v9788_v4 = vld [vmem:[%s11072_s3 + $0x238] sm:$0xff]  }
 0x141   : > { %v5500_v31 = vor.u32 %v5499_v22, %v5496_v19  ;;  %v5510_v41 = vor.u32 %v5509_v17, %v10723_v7  ;;  %v5575_v55 = vshll.u32 %v5276_v38, 16  ;;  %v5579_v57 = vshrl.u32 %v5276_v38, 16  ;;  %v5282_v22 = vld [vmem:[#allocation2 + $0xac] sm:$0xf] }
 0x142   : > { %v5463_v16 = vrot.slane %v5462_v42, 4  ;;  %v10756_v40 = vrot.slane %v5524_v36, 4  ;;  %v5571_v19 = vrot.slane %v5569_v43, 5  ;;  %v5614_v24 = vshrl.u32 %v5281_v11, 16 }
 0x143   : > { %v10750_v42 = vrot.slane %v5500_v31, 4  ;;  %v10752_v60 = vrot.slane %v5510_v41, 4  ;;  %v5581_v21 = vrot.slane %v5579_v57, 4  ;;  %v5627_v31 = vshrl.u32 %v5282_v22, 16  ;;  %v9775_v41 = vld [vmem:[#allocation2 + $0x60] sm:$0xff]  }
 0x144   : > { %v5468_v33 = vsel %vm10031_vm3, %v5463_v16, %v5467_v8  ;;  %v5568_v16 = vrot.slane %v5566_v54, 4  ;;  %v5530_v29 = vsel %vm10031_vm3, %v10756_v40, %v10727_v23  ;;  %v5280_v23 = vld [vmem:[#allocation2 + $0xa4] sm:$0x1]  ;;  %v10787_v44 = vrot.slane %v5599_v25, 5  ;;  %v9777_v54 = vld [vmem:[#allocation2 + $0x6c] sm:$0xff]  }
 0x145   : > { %v8098_v58 = vcombine.low %v5458_v32, %v5468_v33  ;;  %v5506_v17 = vsel %vm10031_vm3, %v10750_v42, %v10723_v7  ;;  %v5616_v36 = vrot.slane %v5614_v24, 4  ;;  %v5609_v57 = vshll.u32 %v5280_v23, 16  ;;  %v5290_v23 = vld [vmem:[#allocation2 + $0xcc] sm:$0xf] }
 0x146   : > { %9098 = vmatmul.mubr.bf16.vlgmr.msra.gmra.mrb[0].mxu1 %v9766_v50  ;;  %v5545_v50 = vshll.u32 %v5272_v30, 16  ;;  %v5572_v33 = vor.u32 %v5571_v19, %v5568_v16 }
 0x147   : > { %9290 = vmatmul.mubr.bf16.vlgmr.msra.gmra.mrb[0].mxu0 %v8094_v53  ;;  %9101 = vmatprep.mubr.bf16.mxu1 %v9768_v59  ;;  %v9771_v53 = vld [vmem:[#allocation2 + $0x3c] sm:$0xff]  }
 0x148   : > { %9322 = vmatpush3.bf16.msra.mxu0 %v10596_v37  ;;  %9370 = vmatpush3.bf16.msra.mxu1 %v10673_v49  ;;  %v8096_v37 = vcombine.low %v5410_v45, %v5420_v51  ;;  %v8097_v49 = vcombine.low %v5434_v6, %v5444_v14  ;;  %v5537_v45 = vshll.u32 %v5271_v28, 16  ;;  %v5555_v51 = vshrl.u32 %v5273_v34, 16  ;;  %v5278_v59 = vld [vmem:[#allocation2 + $0x9c] sm:$0xf]  ;;  %v5277_v14 = vld [vmem:[#allocation2 + $0x98] sm:$0x1] }
 0x149   : > { %9293 = vmatprep.mubr.bf16.mxu0 %v8095_v63  ;;  %9323 = vmatprep.subr.bf16.mxu0 %v9770_v5  ;;  %v5492_v63 = vsel %vm10031_vm3, %v5487_v12, %v5491_v0  ;;  %v5535_v6 = vrot.slane %v5534_v48, 4  ;;  %v5547_v8 = vrot.slane %v5545_v50, 5  ;;  %v5590_v12 = vshrl.u32 %v5278_v59, 16  ;;  %v5283_v50 = vld [vmem:[#allocation2 + $0xb0] sm:$0x1] }
 0x14a   : > { %v8099_v62 = vcombine.low %v5482_v15, %v5492_v63  ;;  %v10758_v1 = vrot.slane %v5537_v45, 5  ;;  %v5557_v18 = vrot.slane %v5555_v51, 4  ;;  %v5593_v0 = vshll.u32 %v5278_v59, 16  ;;  %v5284_v51 = vld [vmem:[#allocation2 + $0xb4] sm:$0xf] }
 0x14b   : > { %v5617_v28 = vshll.u32 %v5281_v11, 16  ;;  %v5548_v30 = vor.u32 %v5547_v8, %v5544_v27  ;;  %v5585_v35 = vshll.u32 %v5277_v14, 16  ;;  %v5592_v38 = vrot.slane %v5590_v12, 4  ;;  %v5287_v27 = vld [vmem:[#allocation2 + $0xc0] sm:$0xf] }
 0x14c   : > { %9324 = vmatpush3.bf16.msra.mxu0 %v9770_v5  ;;  %v9774_v5 = vld [vmem:[#allocation2 + $0x54] sm:$0xff]   ;;  %v5558_v7 = vor.u32 %v5557_v18, %v10763_v10  ;;  %v5540_v32 = vsel %vm10031_vm3, %v5535_v6, %v10758_v1  ;;  %v5623_v15 = vshll.u32 %v5282_v22, 16  ;;  %v5605_v63 = vrot.slane %v5603_v26, 4  ;;  %v5288_v14 = vld [vmem:[#allocation2 + $0xc4] sm:$0xf] }
 0x14d   : > { %9325 = vmatprep.subr.bf16.mxu0 %v9773_v20  ;;  %v5619_v45 = vrot.slane %v5617_v28, 5  ;;  %v5549_v52 = vrot.slane %v5548_v30, 4  ;;  %v5573_v43 = vrot.slane %v5572_v33, 4  ;;  %v8101_v42 = vcombine.low %v5530_v29, %v5540_v32  ;;  %v5285_v1 = vld [vmem:[#allocation2 + $0xb8] sm:$0xf] }
 0x14e   : > { %9102 = vmatmul.mubr.bf16.gmra.mrb[4].mxu1 %v9769_v56  ;;  %v5516_v56 = vsel %vm10031_vm3, %v10752_v60, %v10754_v47  ;;  %v10792_v60 = vrot.slane %v5623_v15, 5  ;;  %v5629_v47 = vrot.slane %v5627_v31, 4  ;;  %v5611_v6 = vrot.slane %v5609_v57, 5 }
 0x14f   : > { %9294 = vmatmul.mubr.bf16.gmra.mrb[4].mxu0 %v8096_v37  ;;  %9105 = vmatprep.mubr.bf16.mxu1 %v9771_v53  ;;  %v5561_v37 = vshll.u32 %v5274_v3, 16  ;;  %v5595_v53 = vrot.slane %v5593_v0, 5  ;;  %v5620_v40 = vor.u32 %v5619_v45, %v5616_v36  ;;  %v5633_v8 = vshll.u32 %v5283_v50, 16  ;;  %v5286_v0 = vld [vmem:[#allocation2 + $0xbc] sm:$0x1] }
 0x150   : > { %9297 = vmatprep.mubr.bf16.mxu0 %v8097_v49  ;;  %9326 = vmatpush3.bf16.msra.mxu0 %v9773_v20  ;;  %v10765_v20 = vrot.slane %v5575_v55, 5  ;;  %v9782_v49 = vld [vmem:[%s11072_s3 + $0x228] sm:$0xff]   ;;  %v5587_v55 = vrot.slane %v5585_v35, 5  ;;  %v5638_v18 = vshrl.u32 %v5284_v51, 16  ;;  %v5641_v11 = vshll.u32 %v5284_v51, 16 }
 0x151   : > { %9327 = vmatprep.subr.bf16.mxu0 %v9776_v46  ;;  %v5563_v48 = vrot.slane %v5561_v37, 5  ;;  %v5647_v16 = vshll.u32 %v5285_v1, 16  ;;  %v5651_v19 = vshrl.u32 %v5285_v1, 16  ;;  %v5621_v12 = vrot.slane %v5620_v40, 4  ;;  %v5289_v35 = vld [vmem:[#allocation2 + $0xc8] sm:$0x1] }
 0x152   : > { %v5582_v34 = vor.u32 %v5581_v21, %v10765_v20  ;;  %v9778_v21 = vld [vmem:[#allocation2 + $0x78] sm:$0xff]   ;;  %v5662_v25 = vshrl.u32 %v5287_v27, 16  ;;  %v5665_v26 = vshll.u32 %v5287_v27, 16  ;;  %v5671_v24 = vshll.u32 %v5288_v14, 16  ;;  %v5292_v1 = vld [vmem:[#allocation2 + $0xd4] sm:$0x1] }
 0x153   : > { %v5675_v28 = vshrl.u32 %v5288_v14, 16  ;;  %v5635_v30 = vrot.slane %v5633_v8, 5  ;;  %v5649_v32 = vrot.slane %v5647_v16, 5  ;;  %v5653_v33 = vrot.slane %v5651_v19, 4  ;;  %v6064_v8 = vld [vmem:[#allocation2 + $0x1c] sm:$0xf] }
 0x154   : > { %9328 = vmatpush3.bf16.msra.mxu0 %v9776_v46  ;;  %v5559_v46 = vrot.slane %v5558_v7, 4  ;;  %v5583_v59 = vrot.slane %v5582_v34, 4  ;;  %v5640_v7 = vrot.slane %v5638_v18, 4  ;;  %v5673_v15 = vrot.slane %v5671_v24, 5  ;;  %v9784_v19 = vld [vmem:[#allocation2 + $0xa8] sm:$0xff]  }
 0x155   : > { %9329 = vmatprep.subr.bf16.mxu0 %v9779_v2  ;;  %v5677_v31 = vrot.slane %v5675_v28, 4  ;;  %v5626_v45 = vsel %vm10031_vm3, %v5621_v12, %v10792_v60  ;;  %v5654_v50 = vor.u32 %v5653_v33, %v5649_v32  ;;  %v5686_v51 = vshrl.u32 %v5290_v23, 16  ;;  %v6065_v12 = vld [vmem:[#allocation2 + $0x20] sm:$0x1] }
 0x156   : > { %9106 = vmatmul.mubr.bf16.gmra.mrb[8].mxu1 %v9772_v61  ;;  %v5596_v61 = vor.u32 %v5595_v53, %v5592_v38  ;;  %v5564_v3 = vsel %vm10031_vm3, %v5559_v46, %v5563_v48  ;;  %v5588_v22 = vsel %vm10031_vm3, %v5583_v59, %v5587_v55  ;;  %v5664_v38 = vrot.slane %v5662_v25, 4 }
 0x157   : > { %9298 = vmatmul.mubr.bf16.gmra.mrb[8].mxu0 %v8098_v58  ;;  %9109 = vmatprep.mubr.bf16.mxu1 %v9774_v5  ;;  %v8100_v58 = vcombine.low %v5506_v17, %v5516_v56  ;;  %v5578_v5 = vsel %vm10031_vm3, %v5573_v43, %v10765_v20  ;;  %v9780_v20 = vld [vmem:[#allocation2 + $0x84] sm:$0xff]   ;;  %v5667_v53 = vrot.slane %v5665_v26, 5  ;;  %v5678_v57 = vor.u32 %v5677_v31, %v5673_v15 }
 0x158   : > { %9301 = vmatprep.mubr.bf16.mxu0 %v8099_v62  ;;  %9330 = vmatpush3.bf16.msra.mxu0 %v9779_v2  ;;  %v5606_v62 = vor.u32 %v5605_v63, %v10787_v44  ;;  %v5554_v2 = vsel %vm10031_vm3, %v5549_v52, %v10763_v10  ;;  %v5630_v10 = vor.u32 %v5629_v47, %v10792_v60  ;;  %v5597_v17 = vrot.slane %v5596_v61, 4  ;;  %v9783_v60 = vld [vmem:[#allocation2 + $0x9c] sm:$0xff]  }
 0x159   : > { %9331 = vmatprep.subr.bf16.mxu0 %v9782_v49  ;;  %v8102_v29 = vcombine.low %v5554_v2, %v5564_v3  ;;  %v8103_v34 = vcombine.low %v5578_v5, %v5588_v22  ;;  %v5657_v52 = vshll.u32 %v5286_v0, 16  ;;  %v5668_v55 = vor.u32 %v5667_v53, %v5664_v38  ;;  %v9786_v0 = vld [vmem:[#allocation2 + $0xb4] sm:$0xff]   ;;  %v6066_v38 = vld [vmem:[#allocation2 + $0x24] sm:$0xe]  ;;  %v6068_v53 = vld [vmem:[#allocation2 + $0x2c] sm:$0x1] }
 0x15a   : > { %v5607_v56 = vrot.slane %v5606_v62, 4  ;;  %v5631_v37 = vrot.slane %v5630_v10, 4  ;;  %v5602_v63 = vsel %vm10031_vm3, %v5597_v17, %v10787_v44  ;;  %v5655_v62 = vrot.slane %v5654_v50, 4  ;;  %v6063_v17 = vld [vmem:[#allocation2 + $0x18] sm:$0xe]  ;;  %v9787_v31 = vld [vmem:[#allocation2 + $0xc0] sm:$0xff]  }
 0x15b   : > { %v5659_v47 = vrot.slane %v5657_v52, 5  ;;  %v5688_v2 = vrot.slane %v5686_v51, 4  ;;  %v5669_v5 = vrot.slane %v5668_v55, 4  ;;  %v5705_v16 = vshll.u32 %v5292_v1, 16 }
 0x15c   : > { %9332 = vmatpush3.bf16.msra.mxu0 %v9782_v49  ;;  %v5643_v49 = vrot.slane %v5641_v11, 5  ;;  %v5612_v36 = vsel %vm10031_vm3, %v5607_v56, %v5611_v6  ;;  %v5636_v46 = vsel %vm10031_vm3, %v5631_v37, %v5635_v30  ;;  %v5679_v6 = vrot.slane %v5678_v57, 4  ;;  %v6067_v37 = vld [vmem:[#allocation2 + $0x28] sm:$0xf] }
 0x15d   : > { %9333 = vmatprep.subr.bf16.mxu0 %v9785_v39  ;;  %v8105_v59 = vcombine.low %v5626_v45, %v5636_v46  ;;  %v5660_v14 = vsel %vm10031_vm3, %v5655_v62, %v5659_v47  ;;  %v6193_v56 = vrot.slane %v6064_v8, 5  ;;  %v5707_v28 = vrot.slane %v5705_v16, 5  ;;  %v9789_v45 = vld [vmem:[%s10733_s13] sm:$0xff]   ;;  %v6072_v47 = vld [vmem:[#allocation2 + $0x3c] sm:$0xe] }
 0x15e   : > { %9110 = vmatmul.mubr.bf16.gmra.mrb[12].mxu1 %v9775_v41  ;;  %v5291_v41 = vld [vmem:[#allocation2 + $0xd0] sm:$0xf]  ;;  %v5644_v48 = vor.u32 %v5643_v49, %v5640_v7  ;;  %v6196_v7 = vrot.slane %v6065_v12, 5  ;;  %v6070_v49 = vld [vmem:[#allocation2 + $0x34] sm:$0xf]  ;;  %v8118_v46 = vrot.slane %v6066_v38, 9 }
 0x15f   : > { %9302 = vmatmul.mubr.bf16.gmra.mrb[12].mxu0 %v8100_v58  ;;  %9113 = vmatprep.mubr.bf16.mxu1 %v9777_v54  ;;  %v5689_v54 = vshll.u32 %v5290_v23, 16  ;;  %v5695_v44 = vshll.u32 %v5291_v41, 16  ;;  %v5699_v43 = vshrl.u32 %v5291_v41, 16  ;;  %v9781_v58 = vld [vmem:[#allocation2 + $0x90] sm:$0xff]   ;;  %v6195_v30 = vrot.slane %v6193_v56, 4 }
 0x160   : > { %9305 = vmatprep.mubr.bf16.mxu0 %v8101_v42  ;;  %9334 = vmatpush3.bf16.msra.mxu0 %v9785_v39  ;;  %v5681_v39 = vshll.u32 %v5289_v35, 16  ;;  %v8104_v42 = vcombine.low %v5602_v63, %v5612_v36  ;;  %v5645_v61 = vrot.slane %v5644_v48, 4  ;;  %v6069_v41 = vld [vmem:[#allocation2 + $0x30] sm:$0xe]  ;;  %v6071_v63 = vld [vmem:[#allocation2 + $0x38] sm:$0x1] }
 0x161   : > { %9335 = vmatprep.subr.bf16.mxu0 %v9788_v4  ;;  %v5691_v3 = vrot.slane %v5689_v54, 5  ;;  %v5697_v27 = vrot.slane %v5695_v44, 5  ;;  %v6197_v23 = vsel %vm10298_vm6, %v6195_v30, %v6196_v7  ;;  %v6203_v48 = vrot.slane %v6068_v53, 5  ;;  %v6073_v54 = vld [vmem:[#allocation2 + $0x40] sm:$0xf] }
 0x162   : > { %v5683_v40 = vrot.slane %v5681_v39, 5  ;;  %v5650_v18 = vsel %vm10031_vm3, %v5645_v61, %v5649_v32  ;;  %v8119_v50 = vrot.slane %v6069_v41, 9  ;;  %v6210_v51 = vrot.slane %v6071_v63, 5  ;;  %v6076_v44 = vld [vmem:[#allocation2 + $0x4c] sm:$0xf] }
 0x163   : > { %v5692_v10 = vor.u32 %v5691_v3, %v5688_v2  ;;  %v6214_v57 = vrot.slane %v6073_v54, 5  ;;  %v9790_v61 = vld [vmem:[%s10733_s13 + $0x8] sm:$0xff]   ;;  %v9791_v2 = vld [vmem:[%s10733_s13 + $0x10] sm:$0xff]  }
 0x164   : > { %9336 = vmatpush3.bf16.msra.mxu0 %v9788_v4  ;;  %v5701_v4 = vrot.slane %v5699_v43, 4  ;;  %v5684_v22 = vsel %vm10031_vm3, %v5679_v6, %v5683_v40  ;;  %v6075_v62 = vld [vmem:[#allocation2 + $0x48] sm:$0xe]  ;;  %v6077_v40 = vld [vmem:[#allocation2 + $0x50] sm:$0x1] }
 0x165   : > { %v5693_v26 = vrot.slane %v5692_v10, 4  ;;  %v8121_v6 = vrot.slane %v6075_v62, 9  ;;  %v6082_v10 = vld [vmem:[#allocation2 + $0x64] sm:$0xf]  ;;  %v6086_v41 = vld [vmem:[#allocation2 + $0x74] sm:$0x1] }
 0x166   : > { %9114 = vmatmul.mubr.bf16.gmra.mrb[16].mxu1 %v9778_v21  ;;  %v5702_v11 = vor.u32 %v5701_v4, %v5697_v27  ;;  %v5674_v21 = vsel %vm10031_vm3, %v5669_v5, %v5673_v15  ;;  %v6207_v15 = vrot.slane %v6070_v49, 5  ;;  %v6216_v4 = vrot.slane %v6214_v57, 4  ;;  %v6092_v62 = vld [vmem:[#allocation2 + $0x8c] sm:$0x1] }
 0x167   : > { %9306 = vmatmul.mubr.bf16.gmra.mrb[16].mxu0 %v8102_v29  ;;  %9117 = vmatprep.mubr.bf16.mxu1 %v9780_v20  ;;  %v8106_v20 = vcombine.low %v5650_v18, %v5660_v14  ;;  %v8107_v25 = vcombine.low %v5674_v21, %v5684_v22  ;;  %v8117_v29 = vrot.slane %v6063_v17, 9  ;;  %v5698_v32 = vsel %vm10031_vm3, %v5693_v26, %v5697_v27  ;;  %v6079_v14 = vld [vmem:[#allocation2 + $0x58] sm:$0xf]  ;;  %v6078_v17 = vld [vmem:[#allocation2 + $0x54] sm:$0xe] }
 0x168   : > { %9309 = vmatprep.mubr.bf16.mxu0 %v8103_v34  ;;  %v5703_v24 = vrot.slane %v5702_v11, 4  ;;  %v6200_v34 = vrot.slane %v6067_v37, 5  ;;  %v6209_v39 = vrot.slane %v6207_v15, 4  ;;  %v8120_v27 = vrot.slane %v6072_v47, 9 }
 0x169   : > { %v6194_v35 = vsel %vm10298_vm6, %v8117_v29, %v6193_v56  ;;  %v6224_v18 = vrot.slane %v6077_v40, 5  ;;  %v6080_v56 = vld [vmem:[#allocation2 + $0x5c] sm:$0x1]  ;;  %v6235_v12 = vrot.slane %v6082_v10, 5  ;;  %v8122_v29 = vrot.slane %v6078_v17, 9 }
 0x16a   : > { %v5708_v33 = vsel %vm10031_vm3, %v5703_v24, %v5707_v28  ;;  %v8149_v52 = vcombine.low %v6194_v35, %v6197_v23  ;;  %v6202_v9 = vrot.slane %v6200_v34, 4  ;;  %v6201_v43 = vsel %vm10298_vm6, %v8118_v46, %v6200_v34  ;;  %v9793_v24 = vld [vmem:[%s10733_s13 + $0x20] sm:$0xff]   ;;  %v6088_v34 = vld [vmem:[#allocation2 + $0x7c] sm:$0xf] }
 0x16b   : > { %v8108_v36 = vcombine.low %v5698_v32, %v5708_v33  ;;  %v6215_v11 = vsel %vm10298_vm6, %v8120_v27, %v6214_v57  ;;  %v6231_v7 = vrot.slane %v6080_v56, 5  ;;  %v6237_v49 = vrot.slane %v6235_v12, 4  ;;  %v6085_v33 = vld [vmem:[#allocation2 + $0x70] sm:$0xf]  ;;  %v6094_v57 = vld [vmem:[#allocation2 + $0x94] sm:$0xf] }
 0x16c   : > { %v6204_v55 = vsel %vm10298_vm6, %v6202_v9, %v6203_v48  ;;  %v6242_v38 = vrot.slane %v6085_v33, 5  ;;  %v6249_v63 = vrot.slane %v6088_v34, 5  ;;  %v9795_v9 = vld [vmem:[%s10733_s13 + $0x30] sm:$0xff]   ;;  %v6263_v40 = vrot.slane %v6094_v57, 5 }
 0x16d   : > { %v8150_v1 = vcombine.low %v6201_v43, %v6204_v55  ;;  %v6091_v55 = vld [vmem:[#allocation2 + $0x88] sm:$0xf] }
 0x16e   : > { %9118 = vmatmul.mubr.bf16.gmra.mrb[20].mxu1 %v9781_v58  ;;  %v6208_v58 = vsel %vm10298_vm6, %v8119_v50, %v6207_v15  ;;  %v6256_v47 = vrot.slane %v6091_v55, 5  ;;  %v6265_v10 = vrot.slane %v6263_v40, 4 }
 0x16f   : > { %9310 = vmatmul.mubr.bf16.gmra.mrb[20].mxu0 %v8104_v42  ;;  %9121 = vmatprep.mubr.bf16.mxu1 %v9783_v60  ;;  %v6211_v42 = vsel %vm10298_vm6, %v6209_v39, %v6210_v51  ;;  %v6074_v60 = vld [vmem:[#allocation2 + $0x44] sm:$0x1]  ;;  %v6244_v39 = vrot.slane %v6242_v38, 4  ;;  %v6245_v51 = vrot.slane %v6086_v41, 5 }
 0x170   : > { %9313 = vmatprep.mubr.bf16.mxu0 %v8105_v59  ;;  %v6221_v59 = vrot.slane %v6076_v44, 5  ;;  %v8151_v3 = vcombine.low %v6208_v58, %v6211_v42  ;;  %v6217_v5 = vrot.slane %v6074_v60, 5  ;;  %v6251_v44 = vrot.slane %v6249_v63, 4 }
 0x171   : > { %v6246_v42 = vsel %vm10298_vm6, %v6244_v39, %v6245_v51  ;;  %v9801_v39 = vld [vmem:[%s10733_s13 + $0x60] sm:$0xff]  }
 0x172   : > { %v6223_v8 = vrot.slane %v6221_v59, 4  ;;  %v6218_v16 = vsel %vm10298_vm6, %v6216_v4, %v6217_v5  ;;  %v6222_v21 = vsel %vm10298_vm6, %v8121_v6, %v6221_v59  ;;  %v9797_v4 = vld [vmem:[%s10733_s13 + $0x40] sm:$0xff]  }
 0x173   : > { %v8152_v26 = vcombine.low %v6215_v11, %v6218_v16  ;;  %v6097_v16 = vld [vmem:[#allocation2 + $0xa0] sm:$0xf] }
 0x174   : > { %v6225_v22 = vsel %vm10298_vm6, %v6223_v8, %v6224_v18  ;;  %v6258_v8 = vrot.slane %v6256_v47, 4  ;;  %v6259_v18 = vrot.slane %v6092_v62, 5  ;;  %v6270_v17 = vrot.slane %v6097_v16, 5 }
 0x175   : > { %v8153_v28 = vcombine.low %v6222_v21, %v6225_v22 }
 0x176   : > { %9122 = vmatmul.mubr.bf16.gmra.mrb[24].mxu1 %v9784_v19  ;;  %v6228_v19 = vrot.slane %v6079_v14, 5  ;;  %v6260_v22 = vsel %vm10298_vm6, %v6258_v8, %v6259_v18 }
 0x177   : > { %9314 = vmatmul.mubr.bf16.gmra.mrb[24].mxu0 %v8106_v20  ;;  %9125 = vmatprep.mubr.bf16.mxu1 %v9786_v0  ;;  %v9792_v20 = vld [vmem:[%s10733_s13 + $0x18] sm:$0xff]   ;;  %v6081_v0 = vld [vmem:[#allocation2 + $0x60] sm:$0xe] }
 0x178   : > { %9317 = vmatprep.mubr.bf16.mxu0 %v8107_v25  ;;  %v6083_v25 = vld [vmem:[#allocation2 + $0x68] sm:$0x1]  ;;  %v6230_v30 = vrot.slane %v6228_v19, 4  ;;  %v8123_v37 = vrot.slane %v6081_v0, 9  ;;  %v6229_v35 = vsel %vm10298_vm6, %v8122_v29, %v6228_v19  ;;  %v6100_v19 = vld [vmem:[#allocation2 + $0xac] sm:$0xf] }
 0x179   : > { %v6238_v32 = vrot.slane %v6083_v25, 5  ;;  %v6098_v0 = vld [vmem:[#allocation2 + $0xa4] sm:$0x1]  ;;  %v6277_v25 = vrot.slane %v6100_v19, 5 }
 0x17a   : > { %v6232_v23 = vsel %vm10298_vm6, %v6230_v30, %v6231_v7  ;;  %v6236_v53 = vsel %vm10298_vm6, %v8123_v37, %v6235_v12  ;;  %v9799_v30 = vld [vmem:[%s10733_s13 + $0x50] sm:$0xff]  }
 0x17b   : > { %v6239_v15 = vsel %vm10298_vm6, %v6237_v49, %v6238_v32  ;;  %v8154_v46 = vcombine.low %v6229_v35, %v6232_v23  ;;  %v6272_v49 = vrot.slane %v6270_v17, 4  ;;  %v6273_v32 = vrot.slane %v6098_v0, 5  ;;  %v6103_v23 = vld [vmem:[#allocation2 + $0xb8] sm:$0xf] }
 0x17c   : > { %v8155_v48 = vcombine.low %v6236_v53, %v6239_v15  ;;  %v6279_v34 = vrot.slane %v6277_v25, 4 }
 0x17d   : > { %v6274_v15 = vsel %vm10298_vm6, %v6272_v49, %v6273_v32 }
 0x17e   : > { %9126 = vmatmul.mubr.bf16.gmra.mrb[28].mxu1 %v9787_v31  ;;  %v6084_v31 = vld [vmem:[#allocation2 + $0x6c] sm:$0xe] }
 0x17f   : > { %9318 = vmatmul.mubr.bf16.gmra.mrb[28].mxu0 %v8108_v36  ;;  %9371 = vmatprep.mubr.msk.bf16.mxu1 %vm7072_vm8, %v9789_v45  ;;  %v9794_v36 = vld [vmem:[%s10733_s13 + $0x28] sm:$0xff]   ;;  %v6087_v45 = vld [vmem:[#allocation2 + $0x78] sm:$0xe]  ;;  %v8124_v50 = vrot.slane %v6084_v31, 9  ;;  %v6284_v31 = vrot.slane %v6103_v23, 5 }
 0x180   : > { %9337 = vmatprep.mubr.bf16.mxu0 %v8149_v52  ;;  %v6089_v52 = vld [vmem:[#allocation2 + $0x80] sm:$0x1]  ;;  %v8125_v54 = vrot.slane %v6087_v45, 9  ;;  %v6104_v45 = vld [vmem:[#allocation2 + $0xbc] sm:$0x1] }
 0x181   : > { %v6252_v43 = vrot.slane %v6089_v52, 5  ;;  %v6243_v58 = vsel %vm10298_vm6, %v8124_v50, %v6242_v38  ;;  %v6106_v38 = vld [vmem:[#allocation2 + $0xc4] sm:$0xf] }
 0x182   : > { %v6250_v60 = vsel %vm10298_vm6, %v8125_v54, %v6249_v63  ;;  %v8156_v27 = vcombine.low %v6243_v58, %v6246_v42  ;;  %v6291_v52 = vrot.slane %v6106_v38, 5  ;;  %v6109_v42 = vld [vmem:[#allocation2 + $0xd0] sm:$0xf] }
 0x183   : > { %v6253_v59 = vsel %vm10298_vm6, %v6251_v44, %v6252_v43  ;;  %v6286_v44 = vrot.slane %v6284_v31, 4  ;;  %v6287_v43 = vrot.slane %v6104_v45, 5 }
 0x184   : > { %v8157_v5 = vcombine.low %v6250_v60, %v6253_v59  ;;  %v6293_v57 = vrot.slane %v6291_v52, 4  ;;  %v6298_v59 = vrot.slane %v6109_v42, 5 }
 0x185   : > { %v6288_v60 = vsel %vm10298_vm6, %v6286_v44, %v6287_v43 }
 0x186   : > { %9372 = vmatmul.mubr.msk.bf16.vlgmr.msra.gmra.mrb[32].mxu1 %vm7072_vm8, %v9790_v61  ;;  %v6090_v61 = vld [vmem:[#allocation2 + $0x84] sm:$0xe] }
 0x187   : > { %9338 = vmatmul.mubr.bf16.vlgmr.msra.gmra.mrb[0].mxu0 %v8150_v1  ;;  %9375 = vmatprep.mubr.msk.bf16.mxu1 %vm7072_vm8, %v9791_v2  ;;  %v9796_v1 = vld [vmem:[%s10733_s13 + $0x38] sm:$0xff]   ;;  %v6093_v2 = vld [vmem:[#allocation2 + $0x90] sm:$0xe]  ;;  %v8126_v6 = vrot.slane %v6090_v61, 9 }
 0x188   : > { %9341 = vmatprep.mubr.bf16.mxu0 %v8151_v3  ;;  %v6095_v3 = vld [vmem:[#allocation2 + $0x98] sm:$0x1]  ;;  %v8127_v14 = vrot.slane %v6093_v2, 9  ;;  %v9802_v2 = vld [vmem:[%s10733_s13 + $0x68] sm:$0xff]  }
 0x189   : > { %v6266_v11 = vrot.slane %v6095_v3, 5  ;;  %v6257_v21 = vsel %vm10298_vm6, %v8126_v6, %v6256_v47  ;;  %v6300_v6 = vrot.slane %v6298_v59, 4 }
 0x18a   : > { %v6264_v56 = vsel %vm10298_vm6, %v8127_v14, %v6263_v40  ;;  %v8158_v29 = vcombine.low %v6257_v21, %v6260_v22  ;;  %v6108_v40 = vld [vmem:[#allocation2 + $0xcc] sm:$0xe] }
 0x18b   : > { %v6267_v12 = vsel %vm10298_vm6, %v6265_v10, %v6266_v11  ;;  %v9804_v10 = vld [vmem:[%s10733_s13 + $0x78] sm:$0xff]  }
 0x18c   : > { %v8159_v7 = vcombine.low %v6264_v56, %v6267_v12 }
 0x18e   : > { %9376 = vmatmul.mubr.msk.bf16.gmra.mrb[36].mxu1 %vm7072_vm8, %v9792_v20  ;;  %v6096_v20 = vld [vmem:[#allocation2 + $0x9c] sm:$0xe] }
 0x18f   : > { %9342 = vmatmul.mubr.bf16.gmra.mrb[4].mxu0 %v8152_v26  ;;  %9379 = vmatprep.mubr.msk.bf16.mxu1 %vm7072_vm8, %v9793_v24  ;;  %v9798_v26 = vld [vmem:[%s10733_s13 + $0x48] sm:$0xff]   ;;  %v8128_v37 = vrot.slane %v6096_v20, 9 }
 0x190   : > { %9345 = vmatprep.mubr.bf16.mxu0 %v8153_v28  ;;  %v6099_v24 = vld [vmem:[#allocation2 + $0xa8] sm:$0xe]  ;;  %v6101_v28 = vld [vmem:[#allocation2 + $0xb0] sm:$0x1] }
 0x191   : > { %v8129_v33 = vrot.slane %v6099_v24, 9  ;;  %v6280_v35 = vrot.slane %v6101_v28, 5  ;;  %v6271_v53 = vsel %vm10298_vm6, %v8128_v37, %v6270_v17 }
 0x192   : > { %v8160_v50 = vcombine.low %v6271_v53, %v6274_v15 }
 0x193   : > { %v6278_v41 = vsel %vm10298_vm6, %v8129_v33, %v6277_v25  ;;  %v6281_v63 = vsel %vm10298_vm6, %v6279_v34, %v6280_v35 }
 0x194   : > { %v8161_v51 = vcombine.low %v6278_v41, %v6281_v63 }
 0x196   : > { %9380 = vmatmul.mubr.msk.bf16.gmra.mrb[40].mxu1 %vm7072_vm8, %v9794_v36  ;;  %v6102_v36 = vld [vmem:[#allocation2 + $0xb4] sm:$0xe] }
 0x197   : > { %9346 = vmatmul.mubr.bf16.gmra.mrb[8].mxu0 %v8154_v46  ;;  %9383 = vmatprep.mubr.msk.bf16.mxu1 %vm7072_vm8, %v9795_v9  ;;  %v9800_v46 = vld [vmem:[%s10733_s13 + $0x58] sm:$0xff]   ;;  %v6105_v9 = vld [vmem:[#allocation2 + $0xc0] sm:$0xe]  ;;  %v8130_v54 = vrot.slane %v6102_v36, 9 }
 0x198   : > { %9349 = vmatprep.mubr.bf16.mxu0 %v8155_v48  ;;  %v6107_v48 = vld [vmem:[#allocation2 + $0xc8] sm:$0x1]  ;;  %v8131_v55 = vrot.slane %v6105_v9, 9 }
 0x199   : > { %v6294_v58 = vrot.slane %v6107_v48, 5  ;;  %v6285_v47 = vsel %vm10298_vm6, %v8130_v54, %v6284_v31 }
 0x19a   : > { %v6292_v61 = vsel %vm10298_vm6, %v8131_v55, %v6291_v52  ;;  %v8162_v3 = vcombine.low %v6285_v47, %v6288_v60 }
 0x19b   : > { %v6295_v62 = vsel %vm10298_vm6, %v6293_v57, %v6294_v58 }
 0x19e   : > { %9384 = vmatmul.mubr.msk.bf16.gmra.mrb[44].mxu1 %vm7072_vm8, %v9796_v1  ;;  %v6110_v1 = vld [vmem:[#allocation2 + $0xd4] sm:$0x1] }
 0x19f   : > { %9350 = vmatmul.mubr.bf16.gmra.mrb[12].mxu0 %v8156_v27  ;;  %9387 = vmatprep.mubr.msk.bf16.mxu1 %vm7072_vm8, %v9797_v4  ;;  %v9803_v27 = vld [vmem:[%s10733_s13 + $0x70] sm:$0xff]   ;;  %v8163_v4 = vcombine.low %v6292_v61, %v6295_v62  ;;  %v6301_v8 = vrot.slane %v6110_v1, 5 }
 0x1a0   : > { %9353 = vmatprep.mubr.bf16.mxu0 %v8157_v5  ;;  %v8132_v5 = vrot.slane %v6108_v40, 9 }
 0x1a1   : > { %v6302_v14 = vsel %vm10298_vm6, %v6300_v6, %v6301_v8 }
 0x1a2   : > { %v6299_v18 = vsel %vm10298_vm6, %v8132_v5, %v6298_v59 }
 0x1a3   : > { %v8164_v11 = vcombine.low %v6299_v18, %v6302_v14 }
 0x1a6   : > { %9388 = vmatmul.mubr.msk.bf16.gmra.mrb[48].mxu1 %vm7072_vm8, %v9798_v26 }
 0x1a7   : > { %9354 = vmatmul.mubr.bf16.gmra.mrb[16].mxu0 %v8158_v29  ;;  %9391 = vmatprep.mubr.msk.bf16.mxu1 %vm7072_vm8, %v9799_v30 }
 0x1a8   : > { %9357 = vmatprep.mubr.bf16.mxu0 %v8159_v7 }
 0x1ae   : > { %9392 = vmatmul.mubr.msk.bf16.gmra.mrb[52].mxu1 %vm7072_vm8, %v9800_v46 }
 0x1af   : > { %9358 = vmatmul.mubr.bf16.gmra.mrb[20].mxu0 %v8160_v50  ;;  %9395 = vmatprep.mubr.msk.bf16.mxu1 %vm7072_vm8, %v9801_v39 }
 0x1b0   : > { %9361 = vmatprep.mubr.bf16.mxu0 %v8161_v51 }
 0x1b6   : > { %9396 = vmatmul.mubr.msk.bf16.gmra.mrb[56].mxu1 %vm7072_vm8, %v9802_v2 }
 0x1b7   : > { %9362 = vmatmul.mubr.bf16.gmra.mrb[24].mxu0 %v8162_v3  ;;  %9399 = vmatprep.mubr.msk.bf16.mxu1 %vm7072_vm8, %v9803_v27 }
 0x1b8   : > { %9365 = vmatprep.mubr.bf16.mxu0 %v8163_v4 }
 0x1be   : > { %9400 = vmatmul.mubr.msk.bf16.gmra.mrb[60].mxu1 %vm7072_vm8, %v9804_v10 }
 0x1bf   : > { %9366 = vmatmul.mubr.bf16.gmra.mrb[28].mxu0 %v8164_v11 }
 0x219   : > { %v9099_v16 = vpop.f32.mrb[0].mxu1 }
 0x21a   : > { %v3191_v19 = vpop.f32.mrb[1].mxu1 }
 0x21b   : > { %v9100_v21 = vpop.f32.mrb[2].mxu1 }
 0x21c   : > { %v3194_v22 = vpop.f32.mrb[3].mxu1 }
 0x221   : > { %v10927_v17 = vpop.f32.mrb[4].mxu1 }
 0x222   : > { %v10929_v56 = vpop.f32.mrb[5].mxu1 }
 0x223   : > { %v10931_v12 = vpop.f32.mrb[6].mxu1 }
 0x224   : > { %v10933_v20 = vpop.f32.mrb[7].mxu1 }
 0x229   : > { %v10935_v0 = vpop.f32.mrb[8].mxu1 }
 0x22a   : > { %v10937_v13 = vpop.f32.mrb[9].mxu1 }
 0x22b   : > { %v10939_v25 = vpop.f32.mrb[10].mxu1 }
 0x22c   : > { %v10941_v26 = vpop.f32.mrb[11].mxu1 }
 0x231   : > { %v10943_v24 = vpop.f32.mrb[12].mxu1 }
 0x232   : > { %v10945_v28 = vpop.f32.mrb[13].mxu1 }
 0x233   : > { %v10947_v29 = vpop.f32.mrb[14].mxu1 }
 0x234   : > { %v10949_v30 = vpop.f32.mrb[15].mxu1 }
 0x239   : > { %v10951_v7 = vpop.f32.mrb[16].mxu1 }
 0x23a   : > { %v10953_v37 = vpop.f32.mrb[17].mxu1 }
 0x23b   : > { %v10955_v49 = vpop.f32.mrb[18].mxu1 }
 0x23c   : > { %v10957_v32 = vpop.f32.mrb[19].mxu1 }
 0x241   : > { %v10959_v33 = vpop.f32.mrb[20].mxu1 }
 0x242   : > { %v10961_v34 = vpop.f32.mrb[21].mxu1 }
 0x243   : > { %v10963_v35 = vpop.f32.mrb[22].mxu1 }
 0x244   : > { %v10965_v23 = vpop.f32.mrb[23].mxu1 }
 0x249   : > { %v10967_v38 = vpop.f32.mrb[24].mxu1 }
 0x24a   : > { %v10969_v53 = vpop.f32.mrb[25].mxu1 }
 0x24b   : > { %v10971_v15 = vpop.f32.mrb[26].mxu1 }
 0x24c   : > { %v10973_v31 = vpop.f32.mrb[27].mxu1 }
 0x251   : > { %v10975_v41 = vpop.f32.mrb[28].mxu1 }
 0x252   : > { %v10977_v63 = vpop.f32.mrb[29].mxu1 }
 0x253   : > { %v10979_v36 = vpop.f32.mrb[30].mxu1 }
 0x254   : > { %v10981_v45 = vpop.f32.mrb[31].mxu1 }
 0x259   : > { %v9373_v52 = vpop.f32.mrb[32].mxu1 }
 0x25a   : > { %v7158_v46 = vpop.f32.mrb[33].mxu1  ;;  %v9339_v9 = vpop.f32.mrb[0].mxu0  ;;  %v7484_v57 = vmul.f32 %v9373_v52, %v9373_v52 }
 0x25b   : > { %v7482_v48 = vmul.f32 %v7158_v46, %v7158_v46  ;;  %v9374_v50 = vpop.f32.mrb[34].mxu1  ;;  %v9403_v39 = vadd.f32 %v9339_v9, %v9099_v16  ;;  %v6466_v51 = vpop.f32.mrb[1].mxu0 }
 0x25c   : > { %v8579_v54 = vpack.c.bf16 %v9374_v50, %v9373_v52  ;;  %v7161_v44 = vpop.f32.mrb[35].mxu1  ;;  %v9404_v43 = vadd.f32 %v6466_v51, %v3191_v19  ;;  %v9340_v55 = vpop.f32.mrb[2].mxu0  ;;  %v7485_v62 = vmul.f32 %v9374_v50, %v9374_v50 }
 0x25d   : > { %v8574_v58 = vpack.c.bf16 %v7161_v44, %v7158_v46  ;;  %v7445_v42 = vadd.f32 %v7161_v44, %v7158_v46  ;;  %v7483_v47 = vmul.f32 %v7161_v44, %v7161_v44  ;;  %v6469_v60 = vpop.f32.mrb[3].mxu0  ;;  %v9405_v59 = vadd.f32 %v9340_v55, %v9100_v21 }
 0x25e   : > { %8689 = vst [vmem:[%s10987_s16 + $0x8] sm:$0xff] %v8579_v54   ;;  %v9406_v61 = vadd.f32 %v6469_v60, %v3194_v22  ;;  %v6886_v5 = vmul.f32 %v9404_v43, %v9404_v43  ;;  %v6888_v14 = vmul.f32 %v9403_v39, %v9403_v39 }
 0x25f   : > { %8575 = vst [vmem:[%s10987_s16] sm:$0xff] %v8574_v58   ;;  %v7446_v40 = vadd.f32 %v9373_v52, %v7445_v42  ;;  %v7514_v1 = vadd.f32 %v7483_v47, %v7482_v48  ;;  %v8499_v2 = vpack.c.bf16 %v9405_v59, %v9403_v39  ;;  %v6889_v48 = vmul.f32 %v9405_v59, %v9405_v59 }
 0x260   : > { %v8494_v3 = vpack.c.bf16 %v9406_v61, %v9404_v43  ;;  %v6849_v27 = vadd.f32 %v9406_v61, %v9404_v43  ;;  %v6887_v6 = vmul.f32 %v9406_v61, %v9406_v61 }
 0x261   : > { %v7515_v4 = vadd.f32 %v7514_v1, %v7484_v57  ;;  %v9377_v8 = vpop.f32.mrb[36].mxu1  ;;  %v7447_v18 = vadd.f32 %v9374_v50, %v7446_v40  ;;  %8674 = vst [vmem:[%s10995_s19 + $0x8] sm:$0xff] %v8499_v2  }
 0x262   : > { %8495 = vst [vmem:[%s10995_s19] sm:$0xff] %v8494_v3   ;;  %v6850_v10 = vadd.f32 %v9403_v39, %v6849_v27  ;;  %v7174_v11 = vpop.f32.mrb[37].mxu1  ;;  %v9343_v16 = vpop.f32.mrb[4].mxu0  ;;  %v6918_v19 = vadd.f32 %v6887_v6, %v6886_v5  ;;  %v7488_v47 = vmul.f32 %v9377_v8, %v9377_v8 }
 0x263   : > { %v7448_v21 = vadd.f32 %v7447_v18, %v7174_v11  ;;  %v7486_v22 = vmul.f32 %v7174_v11, %v7174_v11  ;;  %v7516_v52 = vadd.f32 %v7515_v4, %v7485_v62  ;;  %v9378_v46 = vpop.f32.mrb[38].mxu1  ;;  %v6482_v9 = vpop.f32.mrb[5].mxu0  ;;  %v9407_v44 = vadd.f32 %v9343_v16, %v10927_v17 }
 0x264   : > { %v8589_v51 = vpack.c.bf16 %v9378_v46, %v9377_v8  ;;  %v7177_v54 = vpop.f32.mrb[39].mxu1  ;;  %v9408_v50 = vadd.f32 %v6482_v9, %v10929_v56  ;;  %v9344_v43 = vpop.f32.mrb[6].mxu0  ;;  %v6919_v55 = vadd.f32 %v6918_v19, %v6888_v14  ;;  %v6851_v61 = vadd.f32 %v9405_v59, %v6850_v10 }
 0x265   : > { %v7517_v39 = vadd.f32 %v7516_v52, %v7486_v22  ;;  %v8584_v57 = vpack.c.bf16 %v7177_v54, %v7174_v11  ;;  %v7449_v58 = vadd.f32 %v7448_v21, %v7177_v54  ;;  %v6485_v42 = vpop.f32.mrb[7].mxu0  ;;  %v7487_v60 = vmul.f32 %v7177_v54, %v7177_v54 }
 0x266   : > { %8691 = vst [vmem:[%s10987_s16 + $0x18] sm:$0xff] %v8589_v51   ;;  %v6890_v62 = vmul.f32 %v9408_v50, %v9408_v50  ;;  %v6920_v1 = vadd.f32 %v6919_v55, %v6889_v48  ;;  %v9409_v2 = vadd.f32 %v9344_v43, %v10931_v12  ;;  %v9410_v17 = vadd.f32 %v6485_v42, %v10933_v20 }
 0x267   : > { %8690 = vst [vmem:[%s10987_s16 + $0x10] sm:$0xff] %v8584_v57   ;;  %v7450_v40 = vadd.f32 %v9377_v8, %v7449_v58  ;;  %v7489_v56 = vmul.f32 %v9378_v46, %v9378_v46  ;;  %v7518_v3 = vadd.f32 %v7517_v39, %v7487_v60  ;;  %v6852_v27 = vadd.f32 %v9408_v50, %v6851_v61 }
 0x268   : > { %v6921_v4 = vadd.f32 %v6920_v1, %v6890_v62  ;;  %v8509_v5 = vpack.c.bf16 %v9409_v2, %v9407_v44  ;;  %v8504_v6 = vpack.c.bf16 %v9410_v17, %v9408_v50  ;;  %v6891_v59 = vmul.f32 %v9410_v17, %v9410_v17 }
 0x269   : > { %v9381_v18 = vpop.f32.mrb[40].mxu1  ;;  %v7519_v14 = vadd.f32 %v7518_v3, %v7488_v47  ;;  %v6853_v11 = vadd.f32 %v9410_v17, %v6852_v27  ;;  %v6892_v8 = vmul.f32 %v9407_v44, %v9407_v44  ;;  %v7451_v19 = vadd.f32 %v9378_v46, %v7450_v40 }
 0x26a   : > { %v7190_v10 = vpop.f32.mrb[41].mxu1  ;;  %v9347_v16 = vpop.f32.mrb[8].mxu0  ;;  %8676 = vst [vmem:[%s10995_s19 + $0x18] sm:$0xff] %v8509_v5   ;;  %8675 = vst [vmem:[%s10995_s19 + $0x10] sm:$0xff] %v8504_v6   ;;  %v6922_v9 = vadd.f32 %v6921_v4, %v6891_v59  ;;  %v6893_v43 = vmul.f32 %v9409_v2, %v9409_v2  ;;  %v7492_v46 = vmul.f32 %v9381_v18, %v9381_v18 }
 0x26b   : > { %v7490_v12 = vmul.f32 %v7190_v10, %v7190_v10  ;;  %v9382_v21 = vpop.f32.mrb[42].mxu1  ;;  %v9411_v20 = vadd.f32 %v9347_v16, %v10935_v0  ;;  %v6498_v22 = vpop.f32.mrb[9].mxu0  ;;  %v6854_v52 = vadd.f32 %v9407_v44, %v6853_v11  ;;  %v7520_v48 = vadd.f32 %v7519_v14, %v7489_v56 }
 0x26c   : > { %v8599_v51 = vpack.c.bf16 %v9382_v21, %v9381_v18  ;;  %v7193_v54 = vpop.f32.mrb[43].mxu1  ;;  %v9348_v50 = vpop.f32.mrb[10].mxu0  ;;  %v7452_v55 = vadd.f32 %v7451_v19, %v7190_v10  ;;  %v6923_v42 = vadd.f32 %v6922_v9, %v6892_v8  ;;  %v9412_v0 = vadd.f32 %v6498_v22, %v10937_v13 }
 0x26d   : > { %v8594_v39 = vpack.c.bf16 %v7193_v54, %v7190_v10  ;;  %v7491_v57 = vmul.f32 %v7193_v54, %v7193_v54  ;;  %v6501_v58 = vpop.f32.mrb[11].mxu0  ;;  %v7521_v47 = vadd.f32 %v7520_v48, %v7490_v12  ;;  %v6855_v44 = vadd.f32 %v9409_v2, %v6854_v52 }
 0x26e   : > { %8693 = vst [vmem:[%s10987_s16 + $0x28] sm:$0xff] %v8599_v51   ;;  %v7453_v60 = vadd.f32 %v7452_v55, %v7193_v54  ;;  %v9413_v61 = vadd.f32 %v9348_v50, %v10939_v25  ;;  %v9414_v62 = vadd.f32 %v6501_v58, %v10941_v26  ;;  %v7493_v40 = vmul.f32 %v9382_v21, %v9382_v21 }
 0x26f   : > { %8692 = vst [vmem:[%s10987_s16 + $0x20] sm:$0xff] %v8594_v39   ;;  %v7522_v1 = vadd.f32 %v7521_v47, %v7491_v57  ;;  %v6894_v17 = vmul.f32 %v9412_v0, %v9412_v0  ;;  %v6924_v56 = vadd.f32 %v6923_v42, %v6893_v43  ;;  %v6896_v27 = vmul.f32 %v9411_v20, %v9411_v20 }
 0x270   : > { %v7454_v3 = vadd.f32 %v9381_v18, %v7453_v60  ;;  %v6856_v4 = vadd.f32 %v9412_v0, %v6855_v44  ;;  %v8519_v5 = vpack.c.bf16 %v9413_v61, %v9411_v20  ;;  %v8514_v11 = vpack.c.bf16 %v9414_v62, %v9412_v0 }
 0x271   : > { %v9385_v6 = vpop.f32.mrb[44].mxu1  ;;  %v7523_v14 = vadd.f32 %v7522_v1, %v7492_v46  ;;  %v6925_v13 = vadd.f32 %v6924_v56, %v6894_v17  ;;  %v6895_v59 = vmul.f32 %v9414_v62, %v9414_v62  ;;  %v6897_v25 = vmul.f32 %v9413_v61, %v9413_v61 }
 0x272   : > { %v7206_v2 = vpop.f32.mrb[45].mxu1  ;;  %v9351_v10 = vpop.f32.mrb[12].mxu0  ;;  %8678 = vst [vmem:[%s10995_s19 + $0x28] sm:$0xff] %v8519_v5   ;;  %v6857_v26 = vadd.f32 %v9414_v62, %v6856_v4  ;;  %v7455_v16 = vadd.f32 %v9382_v21, %v7454_v3  ;;  %8677 = vst [vmem:[%s10995_s19 + $0x20] sm:$0xff] %v8514_v11   ;;  %v7496_v22 = vmul.f32 %v9385_v6, %v9385_v6 }
 0x273   : > { %v7494_v8 = vmul.f32 %v7206_v2, %v7206_v2  ;;  %v9386_v19 = vpop.f32.mrb[46].mxu1  ;;  %v6514_v12 = vpop.f32.mrb[13].mxu0  ;;  %v6926_v18 = vadd.f32 %v6925_v13, %v6895_v59  ;;  %v7524_v52 = vadd.f32 %v7523_v14, %v7493_v40  ;;  %v9415_v21 = vadd.f32 %v9351_v10, %v10943_v24 }
 0x274   : > { %v8609_v9 = vpack.c.bf16 %v9386_v19, %v9385_v6  ;;  %v7209_v48 = vpop.f32.mrb[47].mxu1  ;;  %v9352_v51 = vpop.f32.mrb[14].mxu0  ;;  %v6858_v54 = vadd.f32 %v9411_v20, %v6857_v26  ;;  %v7456_v50 = vadd.f32 %v7455_v16, %v7206_v2  ;;  %v9416_v42 = vadd.f32 %v6514_v12, %v10945_v28 }
 0x275   : > { %v8604_v43 = vpack.c.bf16 %v7209_v48, %v7206_v2  ;;  %v7495_v55 = vmul.f32 %v7209_v48, %v7209_v48  ;;  %v6517_v39 = vpop.f32.mrb[15].mxu0  ;;  %v6927_v57 = vadd.f32 %v6926_v18, %v6896_v27  ;;  %v7525_v58 = vadd.f32 %v7524_v52, %v7494_v8 }
 0x276   : > { %8695 = vst [vmem:[%s10987_s16 + $0x38] sm:$0xff] %v8609_v9   ;;  %v7457_v46 = vadd.f32 %v7456_v50, %v7209_v48  ;;  %v6859_v47 = vadd.f32 %v9413_v61, %v6858_v54  ;;  %v9417_v0 = vadd.f32 %v9352_v51, %v10947_v29  ;;  %v9418_v60 = vadd.f32 %v6517_v39, %v10949_v30 }
 0x277   : > { %8694 = vst [vmem:[%s10987_s16 + $0x30] sm:$0xff] %v8604_v43   ;;  %v7497_v20 = vmul.f32 %v9386_v19, %v9386_v19  ;;  %v7526_v44 = vadd.f32 %v7525_v58, %v7495_v55  ;;  %v6898_v62 = vmul.f32 %v9416_v42, %v9416_v42  ;;  %v6928_v40 = vadd.f32 %v6927_v57, %v6897_v25 }
 0x278   : > { %v7458_v1 = vadd.f32 %v9385_v6, %v7457_v46  ;;  %v6900_v17 = vmul.f32 %v9415_v21, %v9415_v21  ;;  %v6860_v56 = vadd.f32 %v9416_v42, %v6859_v47  ;;  %v8529_v3 = vpack.c.bf16 %v9417_v0, %v9415_v21 }
 0x279   : > { %v9389_v24 = vpop.f32.mrb[48].mxu1  ;;  %v7527_v27 = vadd.f32 %v7526_v44, %v7496_v22  ;;  %v6929_v28 = vadd.f32 %v6928_v40, %v6898_v62  ;;  %v8524_v4 = vpack.c.bf16 %v9418_v60, %v9416_v42  ;;  %v6899_v5 = vmul.f32 %v9418_v60, %v9418_v60 }
 0x27a   : > { %v7222_v61 = vpop.f32.mrb[49].mxu1  ;;  %v9355_v14 = vpop.f32.mrb[16].mxu0  ;;  %8680 = vst [vmem:[%s10995_s19 + $0x38] sm:$0xff] %v8529_v3   ;;  %v6901_v29 = vmul.f32 %v9417_v0, %v9417_v0  ;;  %v6861_v30 = vadd.f32 %v9418_v60, %v6860_v56  ;;  %v7459_v13 = vadd.f32 %v9386_v19, %v7458_v1  ;;  %v7500_v10 = vmul.f32 %v9389_v24, %v9389_v24 }
 0x27b   : > { %v7498_v11 = vmul.f32 %v7222_v61, %v7222_v61  ;;  %v9390_v59 = vpop.f32.mrb[50].mxu1  ;;  %v6530_v2 = vpop.f32.mrb[17].mxu0  ;;  %8679 = vst [vmem:[%s10995_s19 + $0x30] sm:$0xff] %v8524_v4   ;;  %v6930_v6 = vadd.f32 %v6929_v28, %v6899_v5  ;;  %v7528_v25 = vadd.f32 %v7527_v27, %v7497_v20  ;;  %v9419_v19 = vadd.f32 %v9355_v14, %v10951_v7 }
 0x27c   : > { %v8619_v26 = vpack.c.bf16 %v9390_v59, %v9389_v24  ;;  %v7225_v16 = vpop.f32.mrb[51].mxu1  ;;  %v9356_v8 = vpop.f32.mrb[18].mxu0  ;;  %v6862_v12 = vadd.f32 %v9415_v21, %v6861_v30  ;;  %v7460_v18 = vadd.f32 %v7459_v13, %v7222_v61  ;;  %v9420_v54 = vadd.f32 %v6530_v2, %v10953_v37 }
 0x27d   : > { %v8614_v22 = vpack.c.bf16 %v7225_v16, %v7222_v61  ;;  %v7499_v52 = vmul.f32 %v7225_v16, %v7225_v16  ;;  %v6533_v9 = vpop.f32.mrb[19].mxu0  ;;  %v6931_v48 = vadd.f32 %v6930_v6, %v6900_v17  ;;  %v7529_v51 = vadd.f32 %v7528_v25, %v7498_v11 }
 0x27e   : > { %8697 = vst [vmem:[%s10987_s16 + $0x48] sm:$0xff] %v8619_v26   ;;  %v7461_v50 = vadd.f32 %v7460_v18, %v7225_v16  ;;  %v6863_v43 = vadd.f32 %v9417_v0, %v6862_v12  ;;  %v9421_v55 = vadd.f32 %v9356_v8, %v10955_v49  ;;  %v9422_v39 = vadd.f32 %v6533_v9, %v10957_v32 }
 0x27f   : > { %8696 = vst [vmem:[%s10987_s16 + $0x40] sm:$0xff] %v8614_v22   ;;  %v7501_v57 = vmul.f32 %v9390_v59, %v9390_v59  ;;  %v7530_v58 = vadd.f32 %v7529_v51, %v7499_v52  ;;  %v6902_v21 = vmul.f32 %v9420_v54, %v9420_v54  ;;  %v6932_v42 = vadd.f32 %v6931_v48, %v6901_v29 }
 0x280   : > { %v7462_v46 = vadd.f32 %v9389_v24, %v7461_v50  ;;  %v6904_v47 = vmul.f32 %v9419_v19, %v9419_v19  ;;  %v6864_v60 = vadd.f32 %v9420_v54, %v6863_v43  ;;  %v8539_v20 = vpack.c.bf16 %v9421_v55, %v9419_v19 }
 0x281   : > { %v9393_v7 = vpop.f32.mrb[52].mxu1  ;;  %v7531_v44 = vadd.f32 %v7530_v58, %v7500_v10  ;;  %v6933_v37 = vadd.f32 %v6932_v42, %v6902_v21  ;;  %v8534_v62 = vpack.c.bf16 %v9422_v39, %v9420_v54  ;;  %v6903_v40 = vmul.f32 %v9422_v39, %v9422_v39 }
 0x282   : > { %v7238_v0 = vpop.f32.mrb[53].mxu1  ;;  %v9359_v1 = vpop.f32.mrb[20].mxu0  ;;  %8682 = vst [vmem:[%s10995_s19 + $0x48] sm:$0xff] %v8539_v20   ;;  %v6905_v49 = vmul.f32 %v9421_v55, %v9421_v55  ;;  %v6865_v32 = vadd.f32 %v9422_v39, %v6864_v60  ;;  %v7463_v17 = vadd.f32 %v9390_v59, %v7462_v46  ;;  %v7504_v28 = vmul.f32 %v9393_v7, %v9393_v7 }
 0x283   : > { %v7502_v56 = vmul.f32 %v7238_v0, %v7238_v0  ;;  %v9394_v3 = vpop.f32.mrb[54].mxu1  ;;  %v6546_v27 = vpop.f32.mrb[21].mxu0  ;;  %8681 = vst [vmem:[%s10995_s19 + $0x40] sm:$0xff] %v8534_v62   ;;  %v6934_v24 = vadd.f32 %v6933_v37, %v6903_v40  ;;  %v7532_v4 = vadd.f32 %v7531_v44, %v7501_v57  ;;  %v9423_v59 = vadd.f32 %v9359_v1, %v10959_v33 }
 0x284   : > { %v8629_v5 = vpack.c.bf16 %v9394_v3, %v9393_v7  ;;  %v7241_v61 = vpop.f32.mrb[55].mxu1  ;;  %v9360_v14 = vpop.f32.mrb[22].mxu0  ;;  %v6866_v29 = vadd.f32 %v9419_v19, %v6865_v32  ;;  %v7464_v30 = vadd.f32 %v7463_v17, %v7238_v0  ;;  %v9424_v25 = vadd.f32 %v6546_v27, %v10961_v34 }
 0x285   : > { %v8624_v13 = vpack.c.bf16 %v7241_v61, %v7238_v0  ;;  %v7503_v11 = vmul.f32 %v7241_v61, %v7241_v61  ;;  %v6549_v2 = vpop.f32.mrb[23].mxu0  ;;  %v6935_v6 = vadd.f32 %v6934_v24, %v6904_v47  ;;  %v7533_v10 = vadd.f32 %v7532_v4, %v7502_v56 }
 0x286   : > { %8699 = vst [vmem:[%s10987_s16 + $0x58] sm:$0xff] %v8629_v5   ;;  %v7465_v26 = vadd.f32 %v7464_v30, %v7241_v61  ;;  %v6867_v16 = vadd.f32 %v9421_v55, %v6866_v29  ;;  %v9425_v8 = vadd.f32 %v9360_v14, %v10963_v35  ;;  %v9426_v12 = vadd.f32 %v6549_v2, %v10965_v23 }
 0x287   : > { %8698 = vst [vmem:[%s10987_s16 + $0x50] sm:$0xff] %v8624_v13   ;;  %v7505_v18 = vmul.f32 %v9394_v3, %v9394_v3  ;;  %v7534_v22 = vadd.f32 %v7533_v10, %v7503_v11  ;;  %v6906_v52 = vmul.f32 %v9424_v25, %v9424_v25  ;;  %v6936_v9 = vadd.f32 %v6935_v6, %v6905_v49 }
 0x288   : > { %v7466_v48 = vadd.f32 %v9393_v7, %v7465_v26  ;;  %v6908_v51 = vmul.f32 %v9423_v59, %v9423_v59  ;;  %v6868_v19 = vadd.f32 %v9424_v25, %v6867_v16  ;;  %v8549_v54 = vpack.c.bf16 %v9425_v8, %v9423_v59 }
 0x289   : > { %v9397_v33 = vpop.f32.mrb[56].mxu1  ;;  %v7535_v50 = vadd.f32 %v7534_v22, %v7504_v28  ;;  %v6937_v34 = vadd.f32 %v6936_v9, %v6906_v52  ;;  %v8544_v43 = vpack.c.bf16 %v9426_v12, %v9424_v25  ;;  %v6907_v39 = vmul.f32 %v9426_v12, %v9426_v12 }
 0x28a   : > { %v7254_v55 = vpop.f32.mrb[57].mxu1  ;;  %v9363_v57 = vpop.f32.mrb[24].mxu0  ;;  %8684 = vst [vmem:[%s10995_s19 + $0x58] sm:$0xff] %v8549_v54   ;;  %v6909_v35 = vmul.f32 %v9425_v8, %v9425_v8  ;;  %v6869_v23 = vadd.f32 %v9426_v12, %v6868_v19  ;;  %v7467_v58 = vadd.f32 %v9394_v3, %v7466_v48  ;;  %v7508_v60 = vmul.f32 %v9397_v33, %v9397_v33 }
 0x28b   : > { %v7506_v21 = vmul.f32 %v7254_v55, %v7254_v55  ;;  %v9398_v42 = vpop.f32.mrb[58].mxu1  ;;  %v6562_v46 = vpop.f32.mrb[25].mxu0  ;;  %8683 = vst [vmem:[%s10995_s19 + $0x50] sm:$0xff] %v8544_v43   ;;  %v6938_v47 = vadd.f32 %v6937_v34, %v6907_v39  ;;  %v7536_v20 = vadd.f32 %v7535_v50, %v7505_v18  ;;  %v9427_v56 = vadd.f32 %v9363_v57, %v10967_v38 }
 0x28c   : > { %v8639_v7 = vpack.c.bf16 %v9398_v42, %v9397_v33  ;;  %v7257_v44 = vpop.f32.mrb[59].mxu1  ;;  %v9364_v37 = vpop.f32.mrb[26].mxu0  ;;  %v6870_v62 = vadd.f32 %v9423_v59, %v6869_v23  ;;  %v7468_v40 = vadd.f32 %v7467_v58, %v7254_v55  ;;  %v9428_v3 = vadd.f32 %v6562_v46, %v10969_v53 }
 0x28d   : > { %v8634_v0 = vpack.c.bf16 %v7257_v44, %v7254_v55  ;;  %v7507_v1 = vmul.f32 %v7257_v44, %v7257_v44  ;;  %v6565_v49 = vpop.f32.mrb[27].mxu0  ;;  %v6939_v32 = vadd.f32 %v6938_v47, %v6908_v51  ;;  %v7537_v17 = vadd.f32 %v7536_v20, %v7506_v21 }
 0x28e   : > { %8701 = vst [vmem:[%s10987_s16 + $0x68] sm:$0xff] %v8639_v7   ;;  %v7469_v27 = vadd.f32 %v7468_v40, %v7257_v44  ;;  %v6871_v24 = vadd.f32 %v9425_v8, %v6870_v62  ;;  %v9429_v28 = vadd.f32 %v9364_v37, %v10971_v15  ;;  %v9430_v4 = vadd.f32 %v6565_v49, %v10973_v31 }
 0x28f   : > { %8700 = vst [vmem:[%s10987_s16 + $0x60] sm:$0xff] %v8634_v0   ;;  %v7509_v5 = vmul.f32 %v9398_v42, %v9398_v42  ;;  %v7538_v61 = vadd.f32 %v7537_v17, %v7507_v1  ;;  %v6910_v14 = vmul.f32 %v9428_v3, %v9428_v3  ;;  %v6940_v29 = vadd.f32 %v6939_v32, %v6909_v35 }
 0x290   : > { %v7470_v30 = vadd.f32 %v9397_v33, %v7469_v27  ;;  %v6912_v13 = vmul.f32 %v9427_v56, %v9427_v56  ;;  %v6872_v11 = vadd.f32 %v9428_v3, %v6871_v24  ;;  %v8559_v2 = vpack.c.bf16 %v9429_v28, %v9427_v56 }
 0x291   : > { %v9401_v38 = vpop.f32.mrb[60].mxu1  ;;  %v7539_v6 = vadd.f32 %v7538_v61, %v7508_v60  ;;  %v6941_v53 = vadd.f32 %v6940_v29, %v6910_v14  ;;  %v8554_v10 = vpack.c.bf16 %v9430_v4, %v9428_v3  ;;  %v6911_v59 = vmul.f32 %v9430_v4, %v9430_v4 }
 0x292   : > { %v7270_v25 = vpop.f32.mrb[61].mxu1  ;;  %v9367_v26 = vpop.f32.mrb[28].mxu0  ;;  %8686 = vst [vmem:[%s10995_s19 + $0x68] sm:$0xff] %v8559_v2   ;;  %v6913_v15 = vmul.f32 %v9429_v28, %v9429_v28  ;;  %v6873_v31 = vadd.f32 %v9430_v4, %v6872_v11  ;;  %v7471_v16 = vadd.f32 %v9398_v42, %v7470_v30  ;;  %v7512_v52 = vmul.f32 %v9401_v38, %v9401_v38 }
 0x293   : > { %v7510_v8 = vmul.f32 %v7270_v25, %v7270_v25  ;;  %v9402_v12 = vpop.f32.mrb[62].mxu1  ;;  %v6578_v18 = vpop.f32.mrb[29].mxu0  ;;  %8685 = vst [vmem:[%s10995_s19 + $0x60] sm:$0xff] %v8554_v10   ;;  %v6942_v22 = vadd.f32 %v6941_v53, %v6911_v59  ;;  %v7540_v9 = vadd.f32 %v7539_v6, %v7509_v5  ;;  %v9431_v57 = vadd.f32 %v9367_v26, %v10975_v41 }
 0x294   : > { %v8649_v48 = vpack.c.bf16 %v9402_v12, %v9401_v38  ;;  %v7273_v51 = vpop.f32.mrb[63].mxu1  ;;  %v9368_v19 = vpop.f32.mrb[30].mxu0  ;;  %v6874_v54 = vadd.f32 %v9427_v56, %v6873_v31  ;;  %v7472_v33 = vadd.f32 %v7471_v16, %v7270_v25  ;;  %v9432_v35 = vadd.f32 %v6578_v18, %v10977_v63 }
 0x295   : > { %v8644_v50 = vpack.c.bf16 %v7273_v51, %v7270_v25  ;;  %v7511_v34 = vmul.f32 %v7273_v51, %v7273_v51  ;;  %v6581_v43 = vpop.f32.mrb[31].mxu0  ;;  %v6943_v39 = vadd.f32 %v6942_v22, %v6912_v13  ;;  %v7541_v55 = vadd.f32 %v7540_v9, %v7510_v8 }
 0x296   : > { %8703 = vst [vmem:[%s10987_s16 + $0x78] sm:$0xff] %v8649_v48   ;;  %v7473_v23 = vadd.f32 %v7472_v33, %v7273_v51  ;;  %v6875_v58 = vadd.f32 %v9429_v28, %v6874_v54  ;;  %v9433_v21 = vadd.f32 %v9368_v19, %v10979_v36  ;;  %v9434_v42 = vadd.f32 %v6581_v43, %v10981_v45 }
 0x297   : > { %8702 = vst [vmem:[%s10987_s16 + $0x70] sm:$0xff] %v8644_v50   ;;  %v7513_v46 = vmul.f32 %v9402_v12, %v9402_v12  ;;  %v7542_v47 = vadd.f32 %v7541_v55, %v7511_v34  ;;  %v6914_v60 = vmul.f32 %v9432_v35, %v9432_v35  ;;  %v6944_v20 = vadd.f32 %v6943_v39, %v6913_v15 }
 0x298   : > { %v7474_v7 = vadd.f32 %v9401_v38, %v7473_v23  ;;  %v6876_v44 = vadd.f32 %v9432_v35, %v6875_v58  ;;  %v8569_v37 = vpack.c.bf16 %v9433_v21, %v9431_v57  ;;  %v8564_v40 = vpack.c.bf16 %v9434_v42, %v9432_v35 }
 0x299   : > { %v7543_v62 = vadd.f32 %v7542_v47, %v7512_v52  ;;  %v6945_v41 = vadd.f32 %v6944_v20, %v6914_v60  ;;  %v6915_v63 = vmul.f32 %v9434_v42, %v9434_v42  ;;  %v6916_v32 = vmul.f32 %v9431_v57, %v9431_v57 }
 0x29a   : > { %v7475_v0 = vadd.f32 %v9402_v12, %v7474_v7  ;;  %8688 = vst [vmem:[%s10995_s19 + $0x78] sm:$0xff] %v8569_v37   ;;  %v6877_v1 = vadd.f32 %v9434_v42, %v6876_v44  ;;  %8687 = vst [vmem:[%s10995_s19 + $0x70] sm:$0xff] %v8564_v40   ;;  %v6917_v3 = vmul.f32 %v9433_v21, %v9433_v21 }
 0x29b   : > { %v7544_v49 = vadd.f32 %v7543_v62, %v7513_v46  ;;  %v6946_v36 = vadd.f32 %v6945_v41, %v6915_v63 }
 0x29c   : > { %v7476_v45 = vrot.slane %v7475_v0, 4  ;;  %v6878_v17 = vadd.f32 %v9431_v57, %v6877_v1 }
 0x29d   : > { %v7545_v56 = vrot.slane %v7544_v49, 4  ;;  %v6947_v27 = vadd.f32 %v6946_v36, %v6916_v32 }
 0x29e   : > { %v7477_v24 = vadd.f32 %v7476_v45, %v7475_v0  ;;  %v6879_v28 = vadd.f32 %v9433_v21, %v6878_v17 }
 0x29f   : > { %v7546_v4 = vadd.f32 %v7545_v56, %v7544_v49  ;;  %v6948_v5 = vadd.f32 %v6947_v27, %v6917_v3 }
 0x2a0   : > { %v7478_v61 = vrot.slane %v7477_v24, 2  ;;  %v6880_v14 = vrot.slane %v6879_v28, 4 }
 0x2a1   : > { %v7547_v29 = vrot.slane %v7546_v4, 2  ;;  %v6949_v30 = vrot.slane %v6948_v5, 4 }
 0x2a2   : > { %v7479_v13 = vadd.f32 %v7478_v61, %v7477_v24  ;;  %v6881_v11 = vadd.f32 %v6880_v14, %v6879_v28 }
 0x2a3   : > { %v7548_v2 = vadd.f32 %v7547_v29, %v7546_v4  ;;  %v6950_v38 = vadd.f32 %v6949_v30, %v6948_v5 }
 0x2a4   : > { %v7480_v6 = vrot.slane %v7479_v13, 1  ;;  %v6882_v53 = vrot.slane %v6881_v11, 2 }
 0x2a5   : > { %v7549_v10 = vrot.slane %v7548_v2, 1  ;;  %v6951_v59 = vrot.slane %v6950_v38, 2 }
 0x2a6   : > { %v6883_v25 = vadd.f32 %v6882_v53, %v6881_v11  ;;  %v7481_v26 = vadd.f32 %v7480_v6, %v7479_v13 }
 0x2a7   : > { %v7550_v15 = vadd.f32 %v7549_v10, %v7548_v2  ;;  %v6952_v31 = vadd.f32 %v6951_v59, %v6950_v38 }
 0x2a8   : > { %v6884_v16 = vrot.slane %v6883_v25, 1 }
 0x2a9   : > { %v7551_v8 = vsel %vm647_vm0, %v7481_v26, %v7550_v15  ;;  %v6953_v12 = vrot.slane %v6952_v31, 1 }
 0x2aa   : > { %v7552_v18 = vsel %vm6956_vm7, %v7551_v8, 0.0  ;;  %v6885_v22 = vadd.f32 %v6884_v16, %v6883_v25 }
 0x2ab   : > { %7553 = vst [vmem:[%s385_s21] sm:$0xff] %v7552_v18  ;;  %v6954_v52 = vadd.f32 %v6953_v12, %v6952_v31 }
 0x2ad   : > { %v6955_v9 = vsel %vm647_vm0, %v6885_v22, %v6954_v52 }
 0x2ae   : > { %v6957_v48 = vsel %vm6956_vm7, %v6955_v9, 0.0 }
 0x2af   : > { %6958 = vst [vmem:[%s376_s23] sm:$0xff] %v6957_v48 }
 0x2b0 PF: > { %s20_s30 = sadd.s32 1, %s9814_s30  }
 0x2b1   : > { %p17_p4 = scmp.ge.s32.totalorder %s20_s30, 4  }
 0x2b3   :  { %19 = sbr.rel (!%p17_p4) target bundleno = 1 (0x1), region = 123 }

</bundles_post_ra>
